<compile_context>
chip_gen: v7x
topology: tpu7x:2x2x1
jax: 0.10.0
libtpu: 0.0.40
codegen_flags: <defaults>
</compile_context>

<pallas_src>
import functools
import math

import jax
import jax.numpy as jnp
from jax.experimental import pallas as pl
from jax.experimental.pallas import tpu as pltpu

_PAD = 3                     # GeoCyclicPadding(pad_width=3)
_KS = 7                      # depthwise kernel size
_LN_EPS = 1e-6
_HIDDEN_CHUNK = 512          # lane-chunk of the 4C hidden dim in kernel 2
_VMEM_FALLBACK = 32 * 1024 * 1024


def _pick_vmem_limit():
    """Per-generation scoped-VMEM budget (leave ~25% headroom)."""
    try:
        cap = getattr(pltpu.get_tpu_info(), "vmem_capacity_bytes", None)
        if not isinstance(cap, int) or cap <= 0:
            return _VMEM_FALLBACK
        return max(_VMEM_FALLBACK, min(96 << 20, (cap * 3) // 4))
    except Exception:
        return _VMEM_FALLBACK


# ----------------------------------------------------------------------------
# GeoCyclicPadding: pure data movement (concat / roll), done as JAX glue.
# ----------------------------------------------------------------------------
def geo_cyclic_pad(x, pad=_PAD):
    """Port of GeoCyclicPadding.  x: (B, C, H, W) -> (B, C, H+2p, W+2p)."""
    b, c, h, w = x.shape
    circ = jnp.concatenate([x[..., -pad:], x, x[..., :pad]], axis=-1)  # (B,C,H,W+2p)
    mid = w // 2
    top = [jnp.roll(circ[:, :, (pad - i - 1) % h, :], -mid, axis=-1) for i in range(pad)]
    bot = [jnp.roll(circ[:, :, (h - i - 1) % h, :], -mid, axis=-1) for i in range(pad)]
    top = jnp.stack(top, axis=2)
    bot = jnp.stack(bot, axis=2)
    return jnp.concatenate([top, circ, bot], axis=2)


# ----------------------------------------------------------------------------
# Exact (erf-based) GELU.  Abramowitz & Stegun 7.1.26 (|err| < 1.5e-7); the
# divide is replaced by an EUP approximate reciprocal + one Newton refinement
# (near-exact, keeps the long divide off the VPU).  Kernel-only helper.
# ----------------------------------------------------------------------------
def _erf_approx(x):
    a1, a2, a3, a4, a5 = (0.254829592, -0.284496736, 1.421413741,
                          -1.453152027, 1.061405429)
    p = 0.3275911
    s = jnp.where(x >= 0.0, 1.0, -1.0)
    z = x * s
    d = 1.0 + p * z                           # d >= 1, reciprocal is safe
    t = pl.reciprocal(d, approx=True)
    t = t * (2.0 - d * t)                     # one Newton step
    poly = ((((a5 * t + a4) * t + a3) * t + a2) * t + a1) * t
    return s * (1.0 - poly * jnp.exp(-z * z))


def _gelu_exact(x):
    return 0.5 * x * (1.0 + _erf_approx(x * 0.7071067811865476))


# ----------------------------------------------------------------------------
# Kernel 1: row-tiled depthwise 7x7 conv + bias, fused with the SE global pool
# (row-axis accumulator), SE excitation (epilogue), and the NHWC residual.
# ----------------------------------------------------------------------------
def _dwconv_pool_gate_kernel(xt_ref, w_ref, b_ref, w1_ref, w2_ref,
                             conv_ref, res_ref, gate_ref, pool_acc,
                             *, inv_hw):
    # xt_ref  : (1, TH+6, W+6, C) haloed padded row tile (channels-last)
    # w_ref   : (7, 7, C) depthwise weights     b_ref: (1, C) bias
    # w1_ref  : (C, C/r) SE fc1                 w2_ref: (C/r, C) SE fc2
    # conv_ref: (1, TH, W, C) conv output       res_ref: (1, TH, W, C) residual
    # gate_ref: (1, 1, C) per-batch SE gate (f32), written only on last row tile
    # pool_acc: (1, C) f32 scratch, partial spatial sum across row tiles
    j = pl.program_id(1)
    th, w = conv_ref.shape[1], conv_ref.shape[2]
    x = xt_ref[0]                                         # (TH+6, W+6, C) native dtype
    wk = w_ref[...].astype(jnp.float32)

    @pl.when(j == 0)
    def _():
        pool_acc[...] = jnp.zeros_like(pool_acc)

    acc = jnp.zeros((th, w, x.shape[-1]), jnp.float32)
    # dx outer: only 7 sublane-misaligned (W-axis) slices; dy slices are on the
    # 3rd-from-last axis and are free.
    for dx in range(_KS):
        x_dx = x[:, dx:dx + w, :].astype(jnp.float32)     # (TH+6, W, C)
        for dy in range(_KS):
            acc = acc + x_dx[dy:dy + th] * wk[dy, dx, :]
    y = acc + b_ref[...].astype(jnp.float32)              # (TH, W, C) + (1, C)

    conv_ref[...] = y[None].astype(conv_ref.dtype)
    # Residual = central crop of the padded tile (== original x in NHWC).
    res_ref[...] = x[_PAD:_PAD + th, _PAD:_PAD + w, :][None].astype(res_ref.dtype)

    pool_acc[...] += jnp.sum(y, axis=(0, 1)).reshape(1, -1)

    @pl.when(j == pl.num_programs(1) - 1)
    def _():
        pooled = pool_acc[...] * inv_hw                    # (1, C) spatial mean
        hse = jnp.maximum(
            jnp.dot(pooled, w1_ref[...].astype(jnp.float32),
                    preferred_element_type=jnp.float32), 0.0)
        gate = jax.nn.sigmoid(
            jnp.dot(hse, w2_ref[...].astype(jnp.float32),
                    preferred_element_type=jnp.float32))
        gate_ref[...] = gate[None]                         # (1, 1, C)


# ----------------------------------------------------------------------------
# Kernel 2: fused SE-scale + LayerNorm + low-rank MLP + layer-scale + residual.
# ----------------------------------------------------------------------------
def _block_pointwise_kernel(conv_ref, res_ref, gate_ref, lnw_ref, lnb_ref,
                            b1_ref, a1_ref, b2_ref, a2_ref, gamma_ref, o_ref):
    # conv_ref/res_ref/o_ref : (1, T, C) tiles (C on lanes)
    # gate_ref : (1, 1, C)  per-batch SE gate
    y = conv_ref[0].astype(jnp.float32) * gate_ref[0]             # SE scale
    # LayerNorm over channels (channels_last, eps inside sqrt)
    mu = jnp.mean(y, axis=-1, keepdims=True)
    d = y - mu
    var = jnp.mean(d * d, axis=-1, keepdims=True)
    xn = d * jax.lax.rsqrt(var + _LN_EPS)
    xn = xn * lnw_ref[...] + lnb_ref[...]
    # pwconv1 core: x @ B1.T -> (T, r)
    hcore = jnp.dot(xn, b1_ref[...].astype(jnp.float32),
                    preferred_element_type=jnp.float32)
    # Hidden (4C) dim processed in lane chunks so the live f32 intermediate
    # stays small: gelu(hcore @ A1.T[:, chunk]) @ B2.T[chunk, :] accumulated.
    hidden = a1_ref.shape[1]
    rank2 = b2_ref.shape[1]
    acc2 = jnp.zeros((xn.shape[0], rank2), jnp.float32)
    for h0 in range(0, hidden, _HIDDEN_CHUNK):
        hc = min(_HIDDEN_CHUNK, hidden - h0)
        hbig = jnp.dot(hcore, a1_ref[:, h0:h0 + hc].astype(jnp.float32),
                       preferred_element_type=jnp.float32)        # (T, hc)
        hbig = _gelu_exact(hbig)
        acc2 = acc2 + jnp.dot(hbig, b2_ref[h0:h0 + hc, :].astype(jnp.float32),
                              preferred_element_type=jnp.float32)  # (T, r)
    hout = jnp.dot(acc2, a2_ref[...].astype(jnp.float32),
                   preferred_element_type=jnp.float32)            # (T, C)
    out = res_ref[0].astype(jnp.float32) + gamma_ref[...] * hout
    o_ref[...] = out[None].astype(o_ref.dtype)                    # single native-dtype store


# ----------------------------------------------------------------------------
# Tile pickers
# ----------------------------------------------------------------------------
def _pick_row_tile(h, w, c, itemsize, budget=4 << 20):
    """Largest divisor of H whose haloed input tile fits `budget`; prefer >=2
    row steps (accumulator/pipeline overlap) when a reasonable divisor exists."""
    divisors = [d for d in range(1, h + 1) if h % d == 0]
    fits = [d for d in divisors
            if (d + 2 * _PAD) * (w + 2 * _PAD) * c * itemsize <= budget]
    best = max(fits) if fits else 1
    if best == h:
        halves = [d for d in fits if d < h and d * 4 >= h]
        if halves:
            best = max(halves)
    return best


def _pick_spatial_tile(b, hw):
    """Largest divisor of H*W that is <=256 (fills the 256-wide MXU M dim),
    shrunk while the total grid would have < 4 steps (pipelining/megacore)."""
    t = 1
    for d in range(1, min(hw, 256) + 1):
        if hw % d == 0:
            t = d
    while t > 8 and t % 2 == 0 and b * (hw // t) < 4:
        t //= 2
    return t


# ----------------------------------------------------------------------------
# Block forward wrapper
# ----------------------------------------------------------------------------
def block_forward(x, params):
    """Forward pass of Block.  x: (B, C, H, W) -> (B, C, H, W)."""
    b, c, h, w = x.shape
    hw = h * w
    rank = params["a1t"].shape[0]
    hidden = params["a1t"].shape[1]
    cr = params["w_se1"].shape[1]
    vmem_limit = _pick_vmem_limit()

    # Stage 0: GeoCyclicPadding + NHWC layout (plain-JAX data movement), then
    # haloed row tiles so kernel 1 only holds a small slab in VMEM per step.
    # TODO(synk): replace the haloed-copy row tiles with element-indexed /
    # manual-DMA halos to avoid duplicating ~6/TH of the padded rows in HBM.
    xp = geo_cyclic_pad(x, _PAD)                       # (B, C, H+6, W+6)
    xp = jnp.transpose(xp, (0, 2, 3, 1))               # (B, H+6, W+6, C)
    th = _pick_row_tile(h, w, c, x.dtype.itemsize)
    n_rows = h // th
    wp = w + 2 * _PAD
    tiles = jnp.stack(
        [jax.lax.slice_in_dim(xp, j * th, j * th + th + 2 * _PAD, axis=1)
         for j in range(n_rows)], axis=1)              # (B, nR, TH+6, W+6, C)
    tiles = tiles.reshape(b * n_rows, th + 2 * _PAD, wp, c)
    b_dw = params["b_dw"].reshape(1, c)

    # Stage 1: depthwise conv + bias + SE pool/gate + NHWC residual.
    kernel1 = functools.partial(_dwconv_pool_gate_kernel, inv_hw=1.0 / float(hw))
    conv_t, res_t, gates = pl.pallas_call(
        kernel1,
        out_shape=(jax.ShapeDtypeStruct((b * n_rows, th, w, c), x.dtype),
                   jax.ShapeDtypeStruct((b * n_rows, th, w, c), x.dtype),
                   jax.ShapeDtypeStruct((b, 1, c), jnp.float32)),
        grid_spec=pltpu.PrefetchScalarGridSpec(
            num_scalar_prefetch=0,
            grid=(b, n_rows),
            in_specs=[
                pl.BlockSpec((1, th + 2 * _PAD, wp, c),
                             lambda i, j, n=n_rows: (i * n + j, 0, 0, 0)),
                pl.BlockSpec((_KS, _KS, c), lambda i, j: (0, 0, 0)),
                pl.BlockSpec((1, c), lambda i, j: (0, 0)),
                pl.BlockSpec((c, cr), lambda i, j: (0, 0)),
                pl.BlockSpec((cr, c), lambda i, j: (0, 0)),
            ],
            out_specs=[
                pl.BlockSpec((1, th, w, c), lambda i, j, n=n_rows: (i * n + j, 0, 0, 0)),
                pl.BlockSpec((1, th, w, c), lambda i, j, n=n_rows: (i * n + j, 0, 0, 0)),
                pl.BlockSpec((1, 1, c), lambda i, j: (i, 0, 0)),
            ],
            scratch_shapes=[pltpu.VMEM((1, c), jnp.float32)],
        ),
        compiler_params=pltpu.CompilerParams(
            dimension_semantics=("parallel", "arbitrary"),
            vmem_limit_bytes=vmem_limit),
    )(tiles, params["w_dw"], b_dw, params["w_se1"], params["w_se2"])

    # Stage 2: fused pointwise pipeline, tiled over (batch, spatial).
    conv_flat = conv_t.reshape(b, hw, c)               # free reshapes (row-major)
    res_flat = res_t.reshape(b, hw, c)
    t = _pick_spatial_tile(b, hw)
    n_sp = hw // t

    lnw = params["ln_w"].reshape(1, c).astype(jnp.float32)
    lnb = params["ln_b"].reshape(1, c).astype(jnp.float32)
    gamma = params["gamma"].reshape(1, c).astype(jnp.float32)

    # TODO(synk): for C < 128 (test case) the lane axis is under-filled; pad C
    # to 128 or fold spatial rows into lanes if small C must be fast.
    out_flat = pl.pallas_call(
        _block_pointwise_kernel,
        out_shape=jax.ShapeDtypeStruct((b, hw, c), x.dtype),
        grid_spec=pltpu.PrefetchScalarGridSpec(
            num_scalar_prefetch=0,
            grid=(b, n_sp),
            in_specs=[
                pl.BlockSpec((1, t, c), lambda i, j: (i, j, 0)),    # conv tile
                pl.BlockSpec((1, t, c), lambda i, j: (i, j, 0)),    # residual tile
                pl.BlockSpec((1, 1, c), lambda i, j: (i, 0, 0)),    # SE gate
                pl.BlockSpec((1, c), lambda i, j: (0, 0)),          # LN weight
                pl.BlockSpec((1, c), lambda i, j: (0, 0)),          # LN bias
                pl.BlockSpec((c, rank), lambda i, j: (0, 0)),       # B1.T
                pl.BlockSpec((rank, hidden), lambda i, j: (0, 0)),  # A1.T
                pl.BlockSpec((hidden, rank), lambda i, j: (0, 0)),  # B2.T
                pl.BlockSpec((rank, c), lambda i, j: (0, 0)),       # A2.T
                pl.BlockSpec((1, c), lambda i, j: (0, 0)),          # gamma
            ],
            out_specs=pl.BlockSpec((1, t, c), lambda i, j: (i, j, 0)),
        ),
        compiler_params=pltpu.CompilerParams(
            dimension_semantics=("parallel", "parallel"),
            vmem_limit_bytes=vmem_limit),
    )(conv_flat, res_flat, gates, lnw, lnb,
      params["b1t"], params["a1t"], params["b2t"], params["a2t"], gamma)

    return jnp.transpose(out_flat.reshape(b, h, w, c), (0, 3, 1, 2))


# ----------------------------------------------------------------------------
# Plain-JAX reference of the full Block forward (mirrors the torch module).
# ----------------------------------------------------------------------------
def _block_reference(x, params):
    b, c, h, w = x.shape
    xp = geo_cyclic_pad(x, _PAD)
    acc = jnp.zeros((b, c, h, w), jnp.float32)
    for dy in range(_KS):
        for dx in range(_KS):
            acc = acc + xp[:, :, dy:dy + h, dx:dx + w].astype(jnp.float32) \
                        * params["w_dw"][dy, dx][None, :, None, None]
    y = acc + params["b_dw"][None, :, None, None]
    pooled = jnp.mean(y, axis=(2, 3))
    g = jax.nn.sigmoid(jnp.maximum(pooled @ params["w_se1"], 0.0) @ params["w_se2"])
    y = y * g[:, :, None, None]
    y = jnp.transpose(y, (0, 2, 3, 1))                       # channels_last
    mu = jnp.mean(y, axis=-1, keepdims=True)
    var = jnp.mean((y - mu) ** 2, axis=-1, keepdims=True)
    y = (y - mu) * jax.lax.rsqrt(var + _LN_EPS)
    y = y * params["ln_w"] + params["ln_b"]
    y = (y @ params["b1t"]) @ params["a1t"]
    y = jax.nn.gelu(y, approximate=False)                    # exact (erf) GELU
    y = (y @ params["b2t"]) @ params["a2t"]
    y = params["gamma"] * y
    y = jnp.transpose(y, (0, 3, 1, 2))
    return x + y.astype(x.dtype)


if __name__ == "__main__":
    B, C, H, W = 2, 32, 16, 16         # dim=32: SE hidden = 32//16 = 2, rank = 32//4 = 8
    REDUCTION, RANK_FACTOR = 16, 4
    CR = C // REDUCTION
    RANK = max(C // RANK_FACTOR, 1)
    HIDDEN = 4 * C

    key = jax.random.PRNGKey(0)
    ks = jax.random.split(key, 12)

    x = jax.random.normal(ks[0], (B, C, H, W), dtype=jnp.float32)

    params = {
        # depthwise Conv2d(dim, dim, 7, groups=dim): torch weight (C,1,7,7) -> stored (7,7,C)
        "w_dw": jax.random.normal(ks[1], (_KS, _KS, C), jnp.float32) / _KS,
        "b_dw": 0.1 * jax.random.normal(ks[2], (C,), jnp.float32),
        # SELayer fc weights (bias-free), stored transposed vs torch Linear: (in, out)
        "w_se1": jax.random.normal(ks[3], (C, CR), jnp.float32) / math.sqrt(C),
        "w_se2": jax.random.normal(ks[4], (CR, C), jnp.float32) / math.sqrt(CR),
        # LayerNorm affine
        "ln_w": 1.0 + 0.1 * jax.random.normal(ks[5], (C,), jnp.float32),
        "ln_b": 0.1 * jax.random.normal(ks[6], (C,), jnp.float32),
        # LowRankLinear pwconv1 (x @ B.T @ A.T): store B.T=(C,r), A.T=(r,4C)
        "b1t": jax.random.normal(ks[7], (C, RANK), jnp.float32) / math.sqrt(C),
        "a1t": jax.random.normal(ks[8], (RANK, HIDDEN), jnp.float32) / math.sqrt(RANK),
        # pwconv2: B.T=(4C,r), A.T=(r,C)
        "b2t": jax.random.normal(ks[9], (HIDDEN, RANK), jnp.float32) / math.sqrt(HIDDEN),
        "a2t": jax.random.normal(ks[10], (RANK, C), jnp.float32) / math.sqrt(RANK),
        # layer scale (module inits to 1e-6*ones; random here so the branch is exercised)
        "gamma": 0.5 * jax.random.normal(ks[11], (C,), jnp.float32),
    }

    fwd = jax.jit(block_forward)
    out = fwd(x, params)
    jax.block_until_ready(out)

    ref = _block_reference(x, params)
    assert out.shape == (B, C, H, W)
    assert out.dtype == x.dtype
    max_err = jnp.max(jnp.abs(out - ref))
    # Tolerance leaves headroom for MXU f32 pass decomposition vs XLA matmuls,
    # the 1.5e-7 erf polynomial and the Newton-refined approx reciprocal.
    assert jnp.allclose(out, ref, atol=2e-3, rtol=2e-3), f"mismatch vs reference: {max_err}"
    assert jnp.mean(jnp.abs(out - ref)) < 5e-4, f"mean error too large: {max_err}"

    print("KERNEL_OK")
</pallas_src>

<mosaic_0001>
module attributes {stable_mosaic.version = 11 : i64} {
  func.func @_dwconv_pool_gate_kernel(%arg0: i32, %arg1: i32, %arg2: memref<1x14x22x32xf32, #tpu.memory_space<vmem>>, %arg3: memref<7x7x32xf32, #tpu.memory_space<vmem>>, %arg4: memref<1x32xf32, #tpu.memory_space<vmem>>, %arg5: memref<32x2xf32, #tpu.memory_space<vmem>>, %arg6: memref<2x32xf32, #tpu.memory_space<vmem>>, %arg7: memref<1x8x16x32xf32, #tpu.memory_space<vmem>>, %arg8: memref<1x8x16x32xf32, #tpu.memory_space<vmem>>, %arg9: memref<1x1x32xf32, #tpu.memory_space<vmem>>, %arg10: memref<1x32xf32, #tpu.memory_space<vmem>>) attributes {dimension_semantics = [#tpu.dimension_semantics<parallel>, #tpu.dimension_semantics<arbitrary>], iteration_bounds = array<i64: 2, 2>, scalar_prefetch = 0 : i64, scratch_operands = 1 : i64, tpu.core_type = #tpu.core_type<tc>, window_params = [{transform_indices = @transform_0, window_bounds = array<i64: 1, 14, 22, 32>}, {pipeline_mode = #tpu.pipeline_mode<synchronous>, transform_indices = @transform_1, window_bounds = array<i64: 7, 7, 32>}, {pipeline_mode = #tpu.pipeline_mode<synchronous>, transform_indices = @transform_2, window_bounds = array<i64: 1, 32>}, {pipeline_mode = #tpu.pipeline_mode<synchronous>, transform_indices = @transform_3, window_bounds = array<i64: 32, 2>}, {pipeline_mode = #tpu.pipeline_mode<synchronous>, transform_indices = @transform_4, window_bounds = array<i64: 2, 32>}, {transform_indices = @transform_5, window_bounds = array<i64: 1, 8, 16, 32>}, {transform_indices = @transform_6, window_bounds = array<i64: 1, 8, 16, 32>}, {transform_indices = @transform_7, window_bounds = array<i64: 1, 1, 32>}]} {
    %c0 = arith.constant 0 : index
    %c0_0 = arith.constant 0 : index
    %c0_1 = arith.constant 0 : index
    %c0_2 = arith.constant 0 : index
    %0 = vector.load %arg2[%c0, %c0_0, %c0_1, %c0_2] : memref<1x14x22x32xf32, #tpu.memory_space<vmem>>, vector<1x14x22x32xf32>
    %1 = vector.shape_cast %0 : vector<1x14x22x32xf32> to vector<14x22x32xf32>
    %c0_3 = arith.constant 0 : index
    %c0_4 = arith.constant 0 : index
    %c0_5 = arith.constant 0 : index
    %2 = vector.load %arg3[%c0_3, %c0_4, %c0_5] : memref<7x7x32xf32, #tpu.memory_space<vmem>>, vector<7x7x32xf32>
    %c0_i32 = arith.constant 0 : i32
    %3 = arith.cmpi eq, %arg1, %c0_i32 : i32
    %4 = arith.extui %3 : i1 to i32
    %c0_i32_6 = arith.constant 0 : i32
    %5 = arith.cmpi ne, %4, %c0_i32_6 : i32
    scf.if %5 {
      %cst_23 = arith.constant 0.000000e+00 : f32
      %374 = vector.broadcast %cst_23 : f32 to vector<1x32xf32>
      %c0_24 = arith.constant 0 : index
      %c0_25 = arith.constant 0 : index
      %375 = vector.load %arg10[%c0_24, %c0_25] : memref<1x32xf32, #tpu.memory_space<vmem>>, vector<1x32xf32>
      tpu.vector_store %arg10[%c0_24, %c0_25], %374 {strides = array<i32>} : memref<1x32xf32, #tpu.memory_space<vmem>>, vector<1x32xf32>,
    } else {
    }
    %cst = arith.constant 0.000000e+00 : f32
    %6 = vector.broadcast %cst : f32 to vector<8x16x32xf32>
    %7 = vector.extract_strided_slice %1 {offsets = [0, 0, 0], sizes = [14, 16, 32], strides = [1, 1, 1]} : vector<14x22x32xf32> to vector<14x16x32xf32>
    %8 = vector.extract_strided_slice %7 {offsets = [0, 0, 0], sizes = [8, 16, 32], strides = [1, 1, 1]} : vector<14x16x32xf32> to vector<8x16x32xf32>
    %9 = vector.extract_strided_slice %2 {offsets = [0, 0, 0], sizes = [1, 1, 32], strides = [1, 1, 1]} : vector<7x7x32xf32> to vector<1x1x32xf32>
    %10 = vector.shape_cast %9 : vector<1x1x32xf32> to vector<32xf32>
    %11 = vector.shape_cast %10 : vector<32xf32> to vector<1x1x32xf32>
    %12 = vector.broadcast %11 : vector<1x1x32xf32> to vector<8x16x32xf32>
    %13 = arith.mulf %8, %12 : vector<8x16x32xf32>
    %14 = arith.addf %6, %13 : vector<8x16x32xf32>
    %15 = vector.extract_strided_slice %7 {offsets = [1, 0, 0], sizes = [8, 16, 32], strides = [1, 1, 1]} : vector<14x16x32xf32> to vector<8x16x32xf32>
    %16 = vector.extract_strided_slice %2 {offsets = [1, 0, 0], sizes = [1, 1, 32], strides = [1, 1, 1]} : vector<7x7x32xf32> to vector<1x1x32xf32>
    %17 = vector.shape_cast %16 : vector<1x1x32xf32> to vector<32xf32>
    %18 = vector.shape_cast %17 : vector<32xf32> to vector<1x1x32xf32>
    %19 = vector.broadcast %18 : vector<1x1x32xf32> to vector<8x16x32xf32>
    %20 = arith.mulf %15, %19 : vector<8x16x32xf32>
    %21 = arith.addf %14, %20 : vector<8x16x32xf32>
    %22 = vector.extract_strided_slice %7 {offsets = [2, 0, 0], sizes = [8, 16, 32], strides = [1, 1, 1]} : vector<14x16x32xf32> to vector<8x16x32xf32>
    %23 = vector.extract_strided_slice %2 {offsets = [2, 0, 0], sizes = [1, 1, 32], strides = [1, 1, 1]} : vector<7x7x32xf32> to vector<1x1x32xf32>
    %24 = vector.shape_cast %23 : vector<1x1x32xf32> to vector<32xf32>
    %25 = vector.shape_cast %24 : vector<32xf32> to vector<1x1x32xf32>
    %26 = vector.broadcast %25 : vector<1x1x32xf32> to vector<8x16x32xf32>
    %27 = arith.mulf %22, %26 : vector<8x16x32xf32>
    %28 = arith.addf %21, %27 : vector<8x16x32xf32>
    %29 = vector.extract_strided_slice %7 {offsets = [3, 0, 0], sizes = [8, 16, 32], strides = [1, 1, 1]} : vector<14x16x32xf32> to vector<8x16x32xf32>
    %30 = vector.extract_strided_slice %2 {offsets = [3, 0, 0], sizes = [1, 1, 32], strides = [1, 1, 1]} : vector<7x7x32xf32> to vector<1x1x32xf32>
    %31 = vector.shape_cast %30 : vector<1x1x32xf32> to vector<32xf32>
    %32 = vector.shape_cast %31 : vector<32xf32> to vector<1x1x32xf32>
    %33 = vector.broadcast %32 : vector<1x1x32xf32> to vector<8x16x32xf32>
    %34 = arith.mulf %29, %33 : vector<8x16x32xf32>
    %35 = arith.addf %28, %34 : vector<8x16x32xf32>
    %36 = vector.extract_strided_slice %7 {offsets = [4, 0, 0], sizes = [8, 16, 32], strides = [1, 1, 1]} : vector<14x16x32xf32> to vector<8x16x32xf32>
    %37 = vector.extract_strided_slice %2 {offsets = [4, 0, 0], sizes = [1, 1, 32], strides = [1, 1, 1]} : vector<7x7x32xf32> to vector<1x1x32xf32>
    %38 = vector.shape_cast %37 : vector<1x1x32xf32> to vector<32xf32>
    %39 = vector.shape_cast %38 : vector<32xf32> to vector<1x1x32xf32>
    %40 = vector.broadcast %39 : vector<1x1x32xf32> to vector<8x16x32xf32>
    %41 = arith.mulf %36, %40 : vector<8x16x32xf32>
    %42 = arith.addf %35, %41 : vector<8x16x32xf32>
    %43 = vector.extract_strided_slice %7 {offsets = [5, 0, 0], sizes = [8, 16, 32], strides = [1, 1, 1]} : vector<14x16x32xf32> to vector<8x16x32xf32>
    %44 = vector.extract_strided_slice %2 {offsets = [5, 0, 0], sizes = [1, 1, 32], strides = [1, 1, 1]} : vector<7x7x32xf32> to vector<1x1x32xf32>
    %45 = vector.shape_cast %44 : vector<1x1x32xf32> to vector<32xf32>
    %46 = vector.shape_cast %45 : vector<32xf32> to vector<1x1x32xf32>
    %47 = vector.broadcast %46 : vector<1x1x32xf32> to vector<8x16x32xf32>
    %48 = arith.mulf %43, %47 : vector<8x16x32xf32>
    %49 = arith.addf %42, %48 : vector<8x16x32xf32>
    %50 = vector.extract_strided_slice %7 {offsets = [6, 0, 0], sizes = [8, 16, 32], strides = [1, 1, 1]} : vector<14x16x32xf32> to vector<8x16x32xf32>
    %51 = vector.extract_strided_slice %2 {offsets = [6, 0, 0], sizes = [1, 1, 32], strides = [1, 1, 1]} : vector<7x7x32xf32> to vector<1x1x32xf32>
    %52 = vector.shape_cast %51 : vector<1x1x32xf32> to vector<32xf32>
    %53 = vector.shape_cast %52 : vector<32xf32> to vector<1x1x32xf32>
    %54 = vector.broadcast %53 : vector<1x1x32xf32> to vector<8x16x32xf32>
    %55 = arith.mulf %50, %54 : vector<8x16x32xf32>
    %56 = arith.addf %49, %55 : vector<8x16x32xf32>
    %57 = vector.extract_strided_slice %1 {offsets = [0, 1, 0], sizes = [14, 16, 32], strides = [1, 1, 1]} : vector<14x22x32xf32> to vector<14x16x32xf32>
    %58 = vector.extract_strided_slice %57 {offsets = [0, 0, 0], sizes = [8, 16, 32], strides = [1, 1, 1]} : vector<14x16x32xf32> to vector<8x16x32xf32>
    %59 = vector.extract_strided_slice %2 {offsets = [0, 1, 0], sizes = [1, 1, 32], strides = [1, 1, 1]} : vector<7x7x32xf32> to vector<1x1x32xf32>
    %60 = vector.shape_cast %59 : vector<1x1x32xf32> to vector<32xf32>
    %61 = vector.shape_cast %60 : vector<32xf32> to vector<1x1x32xf32>
    %62 = vector.broadcast %61 : vector<1x1x32xf32> to vector<8x16x32xf32>
    %63 = arith.mulf %58, %62 : vector<8x16x32xf32>
    %64 = arith.addf %56, %63 : vector<8x16x32xf32>
    %65 = vector.extract_strided_slice %57 {offsets = [1, 0, 0], sizes = [8, 16, 32], strides = [1, 1, 1]} : vector<14x16x32xf32> to vector<8x16x32xf32>
    %66 = vector.extract_strided_slice %2 {offsets = [1, 1, 0], sizes = [1, 1, 32], strides = [1, 1, 1]} : vector<7x7x32xf32> to vector<1x1x32xf32>
    %67 = vector.shape_cast %66 : vector<1x1x32xf32> to vector<32xf32>
    %68 = vector.shape_cast %67 : vector<32xf32> to vector<1x1x32xf32>
    %69 = vector.broadcast %68 : vector<1x1x32xf32> to vector<8x16x32xf32>
    %70 = arith.mulf %65, %69 : vector<8x16x32xf32>
    %71 = arith.addf %64, %70 : vector<8x16x32xf32>
    %72 = vector.extract_strided_slice %57 {offsets = [2, 0, 0], sizes = [8, 16, 32], strides = [1, 1, 1]} : vector<14x16x32xf32> to vector<8x16x32xf32>
    %73 = vector.extract_strided_slice %2 {offsets = [2, 1, 0], sizes = [1, 1, 32], strides = [1, 1, 1]} : vector<7x7x32xf32> to vector<1x1x32xf32>
    %74 = vector.shape_cast %73 : vector<1x1x32xf32> to vector<32xf32>
    %75 = vector.shape_cast %74 : vector<32xf32> to vector<1x1x32xf32>
    %76 = vector.broadcast %75 : vector<1x1x32xf32> to vector<8x16x32xf32>
    %77 = arith.mulf %72, %76 : vector<8x16x32xf32>
    %78 = arith.addf %71, %77 : vector<8x16x32xf32>
    %79 = vector.extract_strided_slice %57 {offsets = [3, 0, 0], sizes = [8, 16, 32], strides = [1, 1, 1]} : vector<14x16x32xf32> to vector<8x16x32xf32>
    %80 = vector.extract_strided_slice %2 {offsets = [3, 1, 0], sizes = [1, 1, 32], strides = [1, 1, 1]} : vector<7x7x32xf32> to vector<1x1x32xf32>
    %81 = vector.shape_cast %80 : vector<1x1x32xf32> to vector<32xf32>
    %82 = vector.shape_cast %81 : vector<32xf32> to vector<1x1x32xf32>
    %83 = vector.broadcast %82 : vector<1x1x32xf32> to vector<8x16x32xf32>
    %84 = arith.mulf %79, %83 : vector<8x16x32xf32>
    %85 = arith.addf %78, %84 : vector<8x16x32xf32>
    %86 = vector.extract_strided_slice %57 {offsets = [4, 0, 0], sizes = [8, 16, 32], strides = [1, 1, 1]} : vector<14x16x32xf32> to vector<8x16x32xf32>
    %87 = vector.extract_strided_slice %2 {offsets = [4, 1, 0], sizes = [1, 1, 32], strides = [1, 1, 1]} : vector<7x7x32xf32> to vector<1x1x32xf32>
    %88 = vector.shape_cast %87 : vector<1x1x32xf32> to vector<32xf32>
    %89 = vector.shape_cast %88 : vector<32xf32> to vector<1x1x32xf32>
    %90 = vector.broadcast %89 : vector<1x1x32xf32> to vector<8x16x32xf32>
    %91 = arith.mulf %86, %90 : vector<8x16x32xf32>
    %92 = arith.addf %85, %91 : vector<8x16x32xf32>
    %93 = vector.extract_strided_slice %57 {offsets = [5, 0, 0], sizes = [8, 16, 32], strides = [1, 1, 1]} : vector<14x16x32xf32> to vector<8x16x32xf32>
    %94 = vector.extract_strided_slice %2 {offsets = [5, 1, 0], sizes = [1, 1, 32], strides = [1, 1, 1]} : vector<7x7x32xf32> to vector<1x1x32xf32>
    %95 = vector.shape_cast %94 : vector<1x1x32xf32> to vector<32xf32>
    %96 = vector.shape_cast %95 : vector<32xf32> to vector<1x1x32xf32>
    %97 = vector.broadcast %96 : vector<1x1x32xf32> to vector<8x16x32xf32>
    %98 = arith.mulf %93, %97 : vector<8x16x32xf32>
    %99 = arith.addf %92, %98 : vector<8x16x32xf32>
    %100 = vector.extract_strided_slice %57 {offsets = [6, 0, 0], sizes = [8, 16, 32], strides = [1, 1, 1]} : vector<14x16x32xf32> to vector<8x16x32xf32>
    %101 = vector.extract_strided_slice %2 {offsets = [6, 1, 0], sizes = [1, 1, 32], strides = [1, 1, 1]} : vector<7x7x32xf32> to vector<1x1x32xf32>
    %102 = vector.shape_cast %101 : vector<1x1x32xf32> to vector<32xf32>
    %103 = vector.shape_cast %102 : vector<32xf32> to vector<1x1x32xf32>
    %104 = vector.broadcast %103 : vector<1x1x32xf32> to vector<8x16x32xf32>
    %105 = arith.mulf %100, %104 : vector<8x16x32xf32>
    %106 = arith.addf %99, %105 : vector<8x16x32xf32>
    %107 = vector.extract_strided_slice %1 {offsets = [0, 2, 0], sizes = [14, 16, 32], strides = [1, 1, 1]} : vector<14x22x32xf32> to vector<14x16x32xf32>
    %108 = vector.extract_strided_slice %107 {offsets = [0, 0, 0], sizes = [8, 16, 32], strides = [1, 1, 1]} : vector<14x16x32xf32> to vector<8x16x32xf32>
    %109 = vector.extract_strided_slice %2 {offsets = [0, 2, 0], sizes = [1, 1, 32], strides = [1, 1, 1]} : vector<7x7x32xf32> to vector<1x1x32xf32>
    %110 = vector.shape_cast %109 : vector<1x1x32xf32> to vector<32xf32>
    %111 = vector.shape_cast %110 : vector<32xf32> to vector<1x1x32xf32>
    %112 = vector.broadcast %111 : vector<1x1x32xf32> to vector<8x16x32xf32>
    %113 = arith.mulf %108, %112 : vector<8x16x32xf32>
    %114 = arith.addf %106, %113 : vector<8x16x32xf32>
    %115 = vector.extract_strided_slice %107 {offsets = [1, 0, 0], sizes = [8, 16, 32], strides = [1, 1, 1]} : vector<14x16x32xf32> to vector<8x16x32xf32>
    %116 = vector.extract_strided_slice %2 {offsets = [1, 2, 0], sizes = [1, 1, 32], strides = [1, 1, 1]} : vector<7x7x32xf32> to vector<1x1x32xf32>
    %117 = vector.shape_cast %116 : vector<1x1x32xf32> to vector<32xf32>
    %118 = vector.shape_cast %117 : vector<32xf32> to vector<1x1x32xf32>
    %119 = vector.broadcast %118 : vector<1x1x32xf32> to vector<8x16x32xf32>
    %120 = arith.mulf %115, %119 : vector<8x16x32xf32>
    %121 = arith.addf %114, %120 : vector<8x16x32xf32>
    %122 = vector.extract_strided_slice %107 {offsets = [2, 0, 0], sizes = [8, 16, 32], strides = [1, 1, 1]} : vector<14x16x32xf32> to vector<8x16x32xf32>
    %123 = vector.extract_strided_slice %2 {offsets = [2, 2, 0], sizes = [1, 1, 32], strides = [1, 1, 1]} : vector<7x7x32xf32> to vector<1x1x32xf32>
    %124 = vector.shape_cast %123 : vector<1x1x32xf32> to vector<32xf32>
    %125 = vector.shape_cast %124 : vector<32xf32> to vector<1x1x32xf32>
    %126 = vector.broadcast %125 : vector<1x1x32xf32> to vector<8x16x32xf32>
    %127 = arith.mulf %122, %126 : vector<8x16x32xf32>
    %128 = arith.addf %121, %127 : vector<8x16x32xf32>
    %129 = vector.extract_strided_slice %107 {offsets = [3, 0, 0], sizes = [8, 16, 32], strides = [1, 1, 1]} : vector<14x16x32xf32> to vector<8x16x32xf32>
    %130 = vector.extract_strided_slice %2 {offsets = [3, 2, 0], sizes = [1, 1, 32], strides = [1, 1, 1]} : vector<7x7x32xf32> to vector<1x1x32xf32>
    %131 = vector.shape_cast %130 : vector<1x1x32xf32> to vector<32xf32>
    %132 = vector.shape_cast %131 : vector<32xf32> to vector<1x1x32xf32>
    %133 = vector.broadcast %132 : vector<1x1x32xf32> to vector<8x16x32xf32>
    %134 = arith.mulf %129, %133 : vector<8x16x32xf32>
    %135 = arith.addf %128, %134 : vector<8x16x32xf32>
    %136 = vector.extract_strided_slice %107 {offsets = [4, 0, 0], sizes = [8, 16, 32], strides = [1, 1, 1]} : vector<14x16x32xf32> to vector<8x16x32xf32>
    %137 = vector.extract_strided_slice %2 {offsets = [4, 2, 0], sizes = [1, 1, 32], strides = [1, 1, 1]} : vector<7x7x32xf32> to vector<1x1x32xf32>
    %138 = vector.shape_cast %137 : vector<1x1x32xf32> to vector<32xf32>
    %139 = vector.shape_cast %138 : vector<32xf32> to vector<1x1x32xf32>
    %140 = vector.broadcast %139 : vector<1x1x32xf32> to vector<8x16x32xf32>
    %141 = arith.mulf %136, %140 : vector<8x16x32xf32>
    %142 = arith.addf %135, %141 : vector<8x16x32xf32>
    %143 = vector.extract_strided_slice %107 {offsets = [5, 0, 0], sizes = [8, 16, 32], strides = [1, 1, 1]} : vector<14x16x32xf32> to vector<8x16x32xf32>
    %144 = vector.extract_strided_slice %2 {offsets = [5, 2, 0], sizes = [1, 1, 32], strides = [1, 1, 1]} : vector<7x7x32xf32> to vector<1x1x32xf32>
    %145 = vector.shape_cast %144 : vector<1x1x32xf32> to vector<32xf32>
    %146 = vector.shape_cast %145 : vector<32xf32> to vector<1x1x32xf32>
    %147 = vector.broadcast %146 : vector<1x1x32xf32> to vector<8x16x32xf32>
    %148 = arith.mulf %143, %147 : vector<8x16x32xf32>
    %149 = arith.addf %142, %148 : vector<8x16x32xf32>
    %150 = vector.extract_strided_slice %107 {offsets = [6, 0, 0], sizes = [8, 16, 32], strides = [1, 1, 1]} : vector<14x16x32xf32> to vector<8x16x32xf32>
    %151 = vector.extract_strided_slice %2 {offsets = [6, 2, 0], sizes = [1, 1, 32], strides = [1, 1, 1]} : vector<7x7x32xf32> to vector<1x1x32xf32>
    %152 = vector.shape_cast %151 : vector<1x1x32xf32> to vector<32xf32>
    %153 = vector.shape_cast %152 : vector<32xf32> to vector<1x1x32xf32>
    %154 = vector.broadcast %153 : vector<1x1x32xf32> to vector<8x16x32xf32>
    %155 = arith.mulf %150, %154 : vector<8x16x32xf32>
    %156 = arith.addf %149, %155 : vector<8x16x32xf32>
    %157 = vector.extract_strided_slice %1 {offsets = [0, 3, 0], sizes = [14, 16, 32], strides = [1, 1, 1]} : vector<14x22x32xf32> to vector<14x16x32xf32>
    %158 = vector.extract_strided_slice %157 {offsets = [0, 0, 0], sizes = [8, 16, 32], strides = [1, 1, 1]} : vector<14x16x32xf32> to vector<8x16x32xf32>
    %159 = vector.extract_strided_slice %2 {offsets = [0, 3, 0], sizes = [1, 1, 32], strides = [1, 1, 1]} : vector<7x7x32xf32> to vector<1x1x32xf32>
    %160 = vector.shape_cast %159 : vector<1x1x32xf32> to vector<32xf32>
    %161 = vector.shape_cast %160 : vector<32xf32> to vector<1x1x32xf32>
    %162 = vector.broadcast %161 : vector<1x1x32xf32> to vector<8x16x32xf32>
    %163 = arith.mulf %158, %162 : vector<8x16x32xf32>
    %164 = arith.addf %156, %163 : vector<8x16x32xf32>
    %165 = vector.extract_strided_slice %157 {offsets = [1, 0, 0], sizes = [8, 16, 32], strides = [1, 1, 1]} : vector<14x16x32xf32> to vector<8x16x32xf32>
    %166 = vector.extract_strided_slice %2 {offsets = [1, 3, 0], sizes = [1, 1, 32], strides = [1, 1, 1]} : vector<7x7x32xf32> to vector<1x1x32xf32>
    %167 = vector.shape_cast %166 : vector<1x1x32xf32> to vector<32xf32>
    %168 = vector.shape_cast %167 : vector<32xf32> to vector<1x1x32xf32>
    %169 = vector.broadcast %168 : vector<1x1x32xf32> to vector<8x16x32xf32>
    %170 = arith.mulf %165, %169 : vector<8x16x32xf32>
    %171 = arith.addf %164, %170 : vector<8x16x32xf32>
    %172 = vector.extract_strided_slice %157 {offsets = [2, 0, 0], sizes = [8, 16, 32], strides = [1, 1, 1]} : vector<14x16x32xf32> to vector<8x16x32xf32>
    %173 = vector.extract_strided_slice %2 {offsets = [2, 3, 0], sizes = [1, 1, 32], strides = [1, 1, 1]} : vector<7x7x32xf32> to vector<1x1x32xf32>
    %174 = vector.shape_cast %173 : vector<1x1x32xf32> to vector<32xf32>
    %175 = vector.shape_cast %174 : vector<32xf32> to vector<1x1x32xf32>
    %176 = vector.broadcast %175 : vector<1x1x32xf32> to vector<8x16x32xf32>
    %177 = arith.mulf %172, %176 : vector<8x16x32xf32>
    %178 = arith.addf %171, %177 : vector<8x16x32xf32>
    %179 = vector.extract_strided_slice %157 {offsets = [3, 0, 0], sizes = [8, 16, 32], strides = [1, 1, 1]} : vector<14x16x32xf32> to vector<8x16x32xf32>
    %180 = vector.extract_strided_slice %2 {offsets = [3, 3, 0], sizes = [1, 1, 32], strides = [1, 1, 1]} : vector<7x7x32xf32> to vector<1x1x32xf32>
    %181 = vector.shape_cast %180 : vector<1x1x32xf32> to vector<32xf32>
    %182 = vector.shape_cast %181 : vector<32xf32> to vector<1x1x32xf32>
    %183 = vector.broadcast %182 : vector<1x1x32xf32> to vector<8x16x32xf32>
    %184 = arith.mulf %179, %183 : vector<8x16x32xf32>
    %185 = arith.addf %178, %184 : vector<8x16x32xf32>
    %186 = vector.extract_strided_slice %157 {offsets = [4, 0, 0], sizes = [8, 16, 32], strides = [1, 1, 1]} : vector<14x16x32xf32> to vector<8x16x32xf32>
    %187 = vector.extract_strided_slice %2 {offsets = [4, 3, 0], sizes = [1, 1, 32], strides = [1, 1, 1]} : vector<7x7x32xf32> to vector<1x1x32xf32>
    %188 = vector.shape_cast %187 : vector<1x1x32xf32> to vector<32xf32>
    %189 = vector.shape_cast %188 : vector<32xf32> to vector<1x1x32xf32>
    %190 = vector.broadcast %189 : vector<1x1x32xf32> to vector<8x16x32xf32>
    %191 = arith.mulf %186, %190 : vector<8x16x32xf32>
    %192 = arith.addf %185, %191 : vector<8x16x32xf32>
    %193 = vector.extract_strided_slice %157 {offsets = [5, 0, 0], sizes = [8, 16, 32], strides = [1, 1, 1]} : vector<14x16x32xf32> to vector<8x16x32xf32>
    %194 = vector.extract_strided_slice %2 {offsets = [5, 3, 0], sizes = [1, 1, 32], strides = [1, 1, 1]} : vector<7x7x32xf32> to vector<1x1x32xf32>
    %195 = vector.shape_cast %194 : vector<1x1x32xf32> to vector<32xf32>
    %196 = vector.shape_cast %195 : vector<32xf32> to vector<1x1x32xf32>
    %197 = vector.broadcast %196 : vector<1x1x32xf32> to vector<8x16x32xf32>
    %198 = arith.mulf %193, %197 : vector<8x16x32xf32>
    %199 = arith.addf %192, %198 : vector<8x16x32xf32>
    %200 = vector.extract_strided_slice %157 {offsets = [6, 0, 0], sizes = [8, 16, 32], strides = [1, 1, 1]} : vector<14x16x32xf32> to vector<8x16x32xf32>
    %201 = vector.extract_strided_slice %2 {offsets = [6, 3, 0], sizes = [1, 1, 32], strides = [1, 1, 1]} : vector<7x7x32xf32> to vector<1x1x32xf32>
    %202 = vector.shape_cast %201 : vector<1x1x32xf32> to vector<32xf32>
    %203 = vector.shape_cast %202 : vector<32xf32> to vector<1x1x32xf32>
    %204 = vector.broadcast %203 : vector<1x1x32xf32> to vector<8x16x32xf32>
    %205 = arith.mulf %200, %204 : vector<8x16x32xf32>
    %206 = arith.addf %199, %205 : vector<8x16x32xf32>
    %207 = vector.extract_strided_slice %1 {offsets = [0, 4, 0], sizes = [14, 16, 32], strides = [1, 1, 1]} : vector<14x22x32xf32> to vector<14x16x32xf32>
    %208 = vector.extract_strided_slice %207 {offsets = [0, 0, 0], sizes = [8, 16, 32], strides = [1, 1, 1]} : vector<14x16x32xf32> to vector<8x16x32xf32>
    %209 = vector.extract_strided_slice %2 {offsets = [0, 4, 0], sizes = [1, 1, 32], strides = [1, 1, 1]} : vector<7x7x32xf32> to vector<1x1x32xf32>
    %210 = vector.shape_cast %209 : vector<1x1x32xf32> to vector<32xf32>
    %211 = vector.shape_cast %210 : vector<32xf32> to vector<1x1x32xf32>
    %212 = vector.broadcast %211 : vector<1x1x32xf32> to vector<8x16x32xf32>
    %213 = arith.mulf %208, %212 : vector<8x16x32xf32>
    %214 = arith.addf %206, %213 : vector<8x16x32xf32>
    %215 = vector.extract_strided_slice %207 {offsets = [1, 0, 0], sizes = [8, 16, 32], strides = [1, 1, 1]} : vector<14x16x32xf32> to vector<8x16x32xf32>
    %216 = vector.extract_strided_slice %2 {offsets = [1, 4, 0], sizes = [1, 1, 32], strides = [1, 1, 1]} : vector<7x7x32xf32> to vector<1x1x32xf32>
    %217 = vector.shape_cast %216 : vector<1x1x32xf32> to vector<32xf32>
    %218 = vector.shape_cast %217 : vector<32xf32> to vector<1x1x32xf32>
    %219 = vector.broadcast %218 : vector<1x1x32xf32> to vector<8x16x32xf32>
    %220 = arith.mulf %215, %219 : vector<8x16x32xf32>
    %221 = arith.addf %214, %220 : vector<8x16x32xf32>
    %222 = vector.extract_strided_slice %207 {offsets = [2, 0, 0], sizes = [8, 16, 32], strides = [1, 1, 1]} : vector<14x16x32xf32> to vector<8x16x32xf32>
    %223 = vector.extract_strided_slice %2 {offsets = [2, 4, 0], sizes = [1, 1, 32], strides = [1, 1, 1]} : vector<7x7x32xf32> to vector<1x1x32xf32>
    %224 = vector.shape_cast %223 : vector<1x1x32xf32> to vector<32xf32>
    %225 = vector.shape_cast %224 : vector<32xf32> to vector<1x1x32xf32>
    %226 = vector.broadcast %225 : vector<1x1x32xf32> to vector<8x16x32xf32>
    %227 = arith.mulf %222, %226 : vector<8x16x32xf32>
    %228 = arith.addf %221, %227 : vector<8x16x32xf32>
    %229 = vector.extract_strided_slice %207 {offsets = [3, 0, 0], sizes = [8, 16, 32], strides = [1, 1, 1]} : vector<14x16x32xf32> to vector<8x16x32xf32>
    %230 = vector.extract_strided_slice %2 {offsets = [3, 4, 0], sizes = [1, 1, 32], strides = [1, 1, 1]} : vector<7x7x32xf32> to vector<1x1x32xf32>
    %231 = vector.shape_cast %230 : vector<1x1x32xf32> to vector<32xf32>
    %232 = vector.shape_cast %231 : vector<32xf32> to vector<1x1x32xf32>
    %233 = vector.broadcast %232 : vector<1x1x32xf32> to vector<8x16x32xf32>
    %234 = arith.mulf %229, %233 : vector<8x16x32xf32>
    %235 = arith.addf %228, %234 : vector<8x16x32xf32>
    %236 = vector.extract_strided_slice %207 {offsets = [4, 0, 0], sizes = [8, 16, 32], strides = [1, 1, 1]} : vector<14x16x32xf32> to vector<8x16x32xf32>
    %237 = vector.extract_strided_slice %2 {offsets = [4, 4, 0], sizes = [1, 1, 32], strides = [1, 1, 1]} : vector<7x7x32xf32> to vector<1x1x32xf32>
    %238 = vector.shape_cast %237 : vector<1x1x32xf32> to vector<32xf32>
    %239 = vector.shape_cast %238 : vector<32xf32> to vector<1x1x32xf32>
    %240 = vector.broadcast %239 : vector<1x1x32xf32> to vector<8x16x32xf32>
    %241 = arith.mulf %236, %240 : vector<8x16x32xf32>
    %242 = arith.addf %235, %241 : vector<8x16x32xf32>
    %243 = vector.extract_strided_slice %207 {offsets = [5, 0, 0], sizes = [8, 16, 32], strides = [1, 1, 1]} : vector<14x16x32xf32> to vector<8x16x32xf32>
    %244 = vector.extract_strided_slice %2 {offsets = [5, 4, 0], sizes = [1, 1, 32], strides = [1, 1, 1]} : vector<7x7x32xf32> to vector<1x1x32xf32>
    %245 = vector.shape_cast %244 : vector<1x1x32xf32> to vector<32xf32>
    %246 = vector.shape_cast %245 : vector<32xf32> to vector<1x1x32xf32>
    %247 = vector.broadcast %246 : vector<1x1x32xf32> to vector<8x16x32xf32>
    %248 = arith.mulf %243, %247 : vector<8x16x32xf32>
    %249 = arith.addf %242, %248 : vector<8x16x32xf32>
    %250 = vector.extract_strided_slice %207 {offsets = [6, 0, 0], sizes = [8, 16, 32], strides = [1, 1, 1]} : vector<14x16x32xf32> to vector<8x16x32xf32>
    %251 = vector.extract_strided_slice %2 {offsets = [6, 4, 0], sizes = [1, 1, 32], strides = [1, 1, 1]} : vector<7x7x32xf32> to vector<1x1x32xf32>
    %252 = vector.shape_cast %251 : vector<1x1x32xf32> to vector<32xf32>
    %253 = vector.shape_cast %252 : vector<32xf32> to vector<1x1x32xf32>
    %254 = vector.broadcast %253 : vector<1x1x32xf32> to vector<8x16x32xf32>
    %255 = arith.mulf %250, %254 : vector<8x16x32xf32>
    %256 = arith.addf %249, %255 : vector<8x16x32xf32>
    %257 = vector.extract_strided_slice %1 {offsets = [0, 5, 0], sizes = [14, 16, 32], strides = [1, 1, 1]} : vector<14x22x32xf32> to vector<14x16x32xf32>
    %258 = vector.extract_strided_slice %257 {offsets = [0, 0, 0], sizes = [8, 16, 32], strides = [1, 1, 1]} : vector<14x16x32xf32> to vector<8x16x32xf32>
    %259 = vector.extract_strided_slice %2 {offsets = [0, 5, 0], sizes = [1, 1, 32], strides = [1, 1, 1]} : vector<7x7x32xf32> to vector<1x1x32xf32>
    %260 = vector.shape_cast %259 : vector<1x1x32xf32> to vector<32xf32>
    %261 = vector.shape_cast %260 : vector<32xf32> to vector<1x1x32xf32>
    %262 = vector.broadcast %261 : vector<1x1x32xf32> to vector<8x16x32xf32>
    %263 = arith.mulf %258, %262 : vector<8x16x32xf32>
    %264 = arith.addf %256, %263 : vector<8x16x32xf32>
    %265 = vector.extract_strided_slice %257 {offsets = [1, 0, 0], sizes = [8, 16, 32], strides = [1, 1, 1]} : vector<14x16x32xf32> to vector<8x16x32xf32>
    %266 = vector.extract_strided_slice %2 {offsets = [1, 5, 0], sizes = [1, 1, 32], strides = [1, 1, 1]} : vector<7x7x32xf32> to vector<1x1x32xf32>
    %267 = vector.shape_cast %266 : vector<1x1x32xf32> to vector<32xf32>
    %268 = vector.shape_cast %267 : vector<32xf32> to vector<1x1x32xf32>
    %269 = vector.broadcast %268 : vector<1x1x32xf32> to vector<8x16x32xf32>
    %270 = arith.mulf %265, %269 : vector<8x16x32xf32>
    %271 = arith.addf %264, %270 : vector<8x16x32xf32>
    %272 = vector.extract_strided_slice %257 {offsets = [2, 0, 0], sizes = [8, 16, 32], strides = [1, 1, 1]} : vector<14x16x32xf32> to vector<8x16x32xf32>
    %273 = vector.extract_strided_slice %2 {offsets = [2, 5, 0], sizes = [1, 1, 32], strides = [1, 1, 1]} : vector<7x7x32xf32> to vector<1x1x32xf32>
    %274 = vector.shape_cast %273 : vector<1x1x32xf32> to vector<32xf32>
    %275 = vector.shape_cast %274 : vector<32xf32> to vector<1x1x32xf32>
    %276 = vector.broadcast %275 : vector<1x1x32xf32> to vector<8x16x32xf32>
    %277 = arith.mulf %272, %276 : vector<8x16x32xf32>
    %278 = arith.addf %271, %277 : vector<8x16x32xf32>
    %279 = vector.extract_strided_slice %257 {offsets = [3, 0, 0], sizes = [8, 16, 32], strides = [1, 1, 1]} : vector<14x16x32xf32> to vector<8x16x32xf32>
    %280 = vector.extract_strided_slice %2 {offsets = [3, 5, 0], sizes = [1, 1, 32], strides = [1, 1, 1]} : vector<7x7x32xf32> to vector<1x1x32xf32>
    %281 = vector.shape_cast %280 : vector<1x1x32xf32> to vector<32xf32>
    %282 = vector.shape_cast %281 : vector<32xf32> to vector<1x1x32xf32>
    %283 = vector.broadcast %282 : vector<1x1x32xf32> to vector<8x16x32xf32>
    %284 = arith.mulf %279, %283 : vector<8x16x32xf32>
    %285 = arith.addf %278, %284 : vector<8x16x32xf32>
    %286 = vector.extract_strided_slice %257 {offsets = [4, 0, 0], sizes = [8, 16, 32], strides = [1, 1, 1]} : vector<14x16x32xf32> to vector<8x16x32xf32>
    %287 = vector.extract_strided_slice %2 {offsets = [4, 5, 0], sizes = [1, 1, 32], strides = [1, 1, 1]} : vector<7x7x32xf32> to vector<1x1x32xf32>
    %288 = vector.shape_cast %287 : vector<1x1x32xf32> to vector<32xf32>
    %289 = vector.shape_cast %288 : vector<32xf32> to vector<1x1x32xf32>
    %290 = vector.broadcast %289 : vector<1x1x32xf32> to vector<8x16x32xf32>
    %291 = arith.mulf %286, %290 : vector<8x16x32xf32>
    %292 = arith.addf %285, %291 : vector<8x16x32xf32>
    %293 = vector.extract_strided_slice %257 {offsets = [5, 0, 0], sizes = [8, 16, 32], strides = [1, 1, 1]} : vector<14x16x32xf32> to vector<8x16x32xf32>
    %294 = vector.extract_strided_slice %2 {offsets = [5, 5, 0], sizes = [1, 1, 32], strides = [1, 1, 1]} : vector<7x7x32xf32> to vector<1x1x32xf32>
    %295 = vector.shape_cast %294 : vector<1x1x32xf32> to vector<32xf32>
    %296 = vector.shape_cast %295 : vector<32xf32> to vector<1x1x32xf32>
    %297 = vector.broadcast %296 : vector<1x1x32xf32> to vector<8x16x32xf32>
    %298 = arith.mulf %293, %297 : vector<8x16x32xf32>
    %299 = arith.addf %292, %298 : vector<8x16x32xf32>
    %300 = vector.extract_strided_slice %257 {offsets = [6, 0, 0], sizes = [8, 16, 32], strides = [1, 1, 1]} : vector<14x16x32xf32> to vector<8x16x32xf32>
    %301 = vector.extract_strided_slice %2 {offsets = [6, 5, 0], sizes = [1, 1, 32], strides = [1, 1, 1]} : vector<7x7x32xf32> to vector<1x1x32xf32>
    %302 = vector.shape_cast %301 : vector<1x1x32xf32> to vector<32xf32>
    %303 = vector.shape_cast %302 : vector<32xf32> to vector<1x1x32xf32>
    %304 = vector.broadcast %303 : vector<1x1x32xf32> to vector<8x16x32xf32>
    %305 = arith.mulf %300, %304 : vector<8x16x32xf32>
    %306 = arith.addf %299, %305 : vector<8x16x32xf32>
    %307 = vector.extract_strided_slice %1 {offsets = [0, 6, 0], sizes = [14, 16, 32], strides = [1, 1, 1]} : vector<14x22x32xf32> to vector<14x16x32xf32>
    %308 = vector.extract_strided_slice %307 {offsets = [0, 0, 0], sizes = [8, 16, 32], strides = [1, 1, 1]} : vector<14x16x32xf32> to vector<8x16x32xf32>
    %309 = vector.extract_strided_slice %2 {offsets = [0, 6, 0], sizes = [1, 1, 32], strides = [1, 1, 1]} : vector<7x7x32xf32> to vector<1x1x32xf32>
    %310 = vector.shape_cast %309 : vector<1x1x32xf32> to vector<32xf32>
    %311 = vector.shape_cast %310 : vector<32xf32> to vector<1x1x32xf32>
    %312 = vector.broadcast %311 : vector<1x1x32xf32> to vector<8x16x32xf32>
    %313 = arith.mulf %308, %312 : vector<8x16x32xf32>
    %314 = arith.addf %306, %313 : vector<8x16x32xf32>
    %315 = vector.extract_strided_slice %307 {offsets = [1, 0, 0], sizes = [8, 16, 32], strides = [1, 1, 1]} : vector<14x16x32xf32> to vector<8x16x32xf32>
    %316 = vector.extract_strided_slice %2 {offsets = [1, 6, 0], sizes = [1, 1, 32], strides = [1, 1, 1]} : vector<7x7x32xf32> to vector<1x1x32xf32>
    %317 = vector.shape_cast %316 : vector<1x1x32xf32> to vector<32xf32>
    %318 = vector.shape_cast %317 : vector<32xf32> to vector<1x1x32xf32>
    %319 = vector.broadcast %318 : vector<1x1x32xf32> to vector<8x16x32xf32>
    %320 = arith.mulf %315, %319 : vector<8x16x32xf32>
    %321 = arith.addf %314, %320 : vector<8x16x32xf32>
    %322 = vector.extract_strided_slice %307 {offsets = [2, 0, 0], sizes = [8, 16, 32], strides = [1, 1, 1]} : vector<14x16x32xf32> to vector<8x16x32xf32>
    %323 = vector.extract_strided_slice %2 {offsets = [2, 6, 0], sizes = [1, 1, 32], strides = [1, 1, 1]} : vector<7x7x32xf32> to vector<1x1x32xf32>
    %324 = vector.shape_cast %323 : vector<1x1x32xf32> to vector<32xf32>
    %325 = vector.shape_cast %324 : vector<32xf32> to vector<1x1x32xf32>
    %326 = vector.broadcast %325 : vector<1x1x32xf32> to vector<8x16x32xf32>
    %327 = arith.mulf %322, %326 : vector<8x16x32xf32>
    %328 = arith.addf %321, %327 : vector<8x16x32xf32>
    %329 = vector.extract_strided_slice %307 {offsets = [3, 0, 0], sizes = [8, 16, 32], strides = [1, 1, 1]} : vector<14x16x32xf32> to vector<8x16x32xf32>
    %330 = vector.extract_strided_slice %2 {offsets = [3, 6, 0], sizes = [1, 1, 32], strides = [1, 1, 1]} : vector<7x7x32xf32> to vector<1x1x32xf32>
    %331 = vector.shape_cast %330 : vector<1x1x32xf32> to vector<32xf32>
    %332 = vector.shape_cast %331 : vector<32xf32> to vector<1x1x32xf32>
    %333 = vector.broadcast %332 : vector<1x1x32xf32> to vector<8x16x32xf32>
    %334 = arith.mulf %329, %333 : vector<8x16x32xf32>
    %335 = arith.addf %328, %334 : vector<8x16x32xf32>
    %336 = vector.extract_strided_slice %307 {offsets = [4, 0, 0], sizes = [8, 16, 32], strides = [1, 1, 1]} : vector<14x16x32xf32> to vector<8x16x32xf32>
    %337 = vector.extract_strided_slice %2 {offsets = [4, 6, 0], sizes = [1, 1, 32], strides = [1, 1, 1]} : vector<7x7x32xf32> to vector<1x1x32xf32>
    %338 = vector.shape_cast %337 : vector<1x1x32xf32> to vector<32xf32>
    %339 = vector.shape_cast %338 : vector<32xf32> to vector<1x1x32xf32>
    %340 = vector.broadcast %339 : vector<1x1x32xf32> to vector<8x16x32xf32>
    %341 = arith.mulf %336, %340 : vector<8x16x32xf32>
    %342 = arith.addf %335, %341 : vector<8x16x32xf32>
    %343 = vector.extract_strided_slice %307 {offsets = [5, 0, 0], sizes = [8, 16, 32], strides = [1, 1, 1]} : vector<14x16x32xf32> to vector<8x16x32xf32>
    %344 = vector.extract_strided_slice %2 {offsets = [5, 6, 0], sizes = [1, 1, 32], strides = [1, 1, 1]} : vector<7x7x32xf32> to vector<1x1x32xf32>
    %345 = vector.shape_cast %344 : vector<1x1x32xf32> to vector<32xf32>
    %346 = vector.shape_cast %345 : vector<32xf32> to vector<1x1x32xf32>
    %347 = vector.broadcast %346 : vector<1x1x32xf32> to vector<8x16x32xf32>
    %348 = arith.mulf %343, %347 : vector<8x16x32xf32>
    %349 = arith.addf %342, %348 : vector<8x16x32xf32>
    %350 = vector.extract_strided_slice %307 {offsets = [6, 0, 0], sizes = [8, 16, 32], strides = [1, 1, 1]} : vector<14x16x32xf32> to vector<8x16x32xf32>
    %351 = vector.extract_strided_slice %2 {offsets = [6, 6, 0], sizes = [1, 1, 32], strides = [1, 1, 1]} : vector<7x7x32xf32> to vector<1x1x32xf32>
    %352 = vector.shape_cast %351 : vector<1x1x32xf32> to vector<32xf32>
    %353 = vector.shape_cast %352 : vector<32xf32> to vector<1x1x32xf32>
    %354 = vector.broadcast %353 : vector<1x1x32xf32> to vector<8x16x32xf32>
    %355 = arith.mulf %350, %354 : vector<8x16x32xf32>
    %356 = arith.addf %349, %355 : vector<8x16x32xf32>
    %c0_7 = arith.constant 0 : index
    %c0_8 = arith.constant 0 : index
    %357 = vector.load %arg4[%c0_7, %c0_8] : memref<1x32xf32, #tpu.memory_space<vmem>>, vector<1x32xf32>
    %358 = vector.shape_cast %357 : vector<1x32xf32> to vector<1x1x32xf32>
    %359 = vector.broadcast %358 : vector<1x1x32xf32> to vector<8x16x32xf32>
    %360 = arith.addf %356, %359 : vector<8x16x32xf32>
    %361 = vector.shape_cast %360 : vector<8x16x32xf32> to vector<1x8x16x32xf32>
    %c0_9 = arith.constant 0 : index
    %c0_10 = arith.constant 0 : index
    %c0_11 = arith.constant 0 : index
    %c0_12 = arith.constant 0 : index
    %362 = vector.load %arg7[%c0_9, %c0_10, %c0_11, %c0_12] : memref<1x8x16x32xf32, #tpu.memory_space<vmem>>, vector<1x8x16x32xf32>
    tpu.vector_store %arg7[%c0_9, %c0_10, %c0_11, %c0_12], %361 {strides = array<i32>} : memref<1x8x16x32xf32, #tpu.memory_space<vmem>>, vector<1x8x16x32xf32>,
    %363 = vector.extract_strided_slice %1 {offsets = [3, 3, 0], sizes = [8, 16, 32], strides = [1, 1, 1]} : vector<14x22x32xf32> to vector<8x16x32xf32>
    %364 = vector.shape_cast %363 : vector<8x16x32xf32> to vector<1x8x16x32xf32>
    %c0_13 = arith.constant 0 : index
    %c0_14 = arith.constant 0 : index
    %c0_15 = arith.constant 0 : index
    %c0_16 = arith.constant 0 : index
    %365 = vector.load %arg8[%c0_13, %c0_14, %c0_15, %c0_16] : memref<1x8x16x32xf32, #tpu.memory_space<vmem>>, vector<1x8x16x32xf32>
    tpu.vector_store %arg8[%c0_13, %c0_14, %c0_15, %c0_16], %364 {strides = array<i32>} : memref<1x8x16x32xf32, #tpu.memory_space<vmem>>, vector<1x8x16x32xf32>,
    %c0_17 = arith.constant 0 : index
    %c0_18 = arith.constant 0 : index
    %366 = vector.load %arg10[%c0_17, %c0_18] : memref<1x32xf32, #tpu.memory_space<vmem>>, vector<1x32xf32>
    %cst_19 = arith.constant dense<0.000000e+00> : vector<32xf32>
    %367 = vector.multi_reduction <add>, %360, %cst_19 [0, 1] : vector<8x16x32xf32> to vector<32xf32>
    %368 = vector.shape_cast %367 : vector<32xf32> to vector<1x32xf32>
    %369 = arith.addf %366, %368 : vector<1x32xf32>
    %c0_20 = arith.constant 0 : index
    %c0_21 = arith.constant 0 : index
    %370 = vector.load %arg10[%c0_20, %c0_21] : memref<1x32xf32, #tpu.memory_space<vmem>>, vector<1x32xf32>
    tpu.vector_store %arg10[%c0_20, %c0_21], %369 {strides = array<i32>} : memref<1x32xf32, #tpu.memory_space<vmem>>, vector<1x32xf32>,
    %c1_i32 = arith.constant 1 : i32
    %371 = arith.cmpi eq, %arg1, %c1_i32 : i32
    %372 = arith.extui %371 : i1 to i32
    %c0_i32_22 = arith.constant 0 : i32
    %373 = arith.cmpi ne, %372, %c0_i32_22 : i32
    scf.if %373 {
      %c0_23 = arith.constant 0 : index
      %c0_24 = arith.constant 0 : index
      %374 = vector.load %arg10[%c0_23, %c0_24] : memref<1x32xf32, #tpu.memory_space<vmem>>, vector<1x32xf32>
      %cst_25 = arith.constant 3.906250e-03 : f32
      %375 = vector.broadcast %cst_25 : f32 to vector<1x32xf32>
      %376 = arith.mulf %374, %375 : vector<1x32xf32>
      %c0_26 = arith.constant 0 : index
      %c0_27 = arith.constant 0 : index
      %377 = vector.load %arg5[%c0_26, %c0_27] : memref<32x2xf32, #tpu.memory_space<vmem>>, vector<32x2xf32>
      %cst_28 = arith.constant dense<0.000000e+00> : vector<1x2xf32>
      %378 = tpu.matmul %376, %377, %cst_28 {dimension_numbers = #tpu.dot_dimension_numbers<[1], [0], [0], [1], [0, 0, 1, 1], [], []>} : vector<1x32xf32>, vector<32x2xf32>, vector<1x2xf32> -> vector<1x2xf32>
      %cst_29 = arith.constant 0.000000e+00 : f32
      %379 = vector.broadcast %cst_29 : f32 to vector<1x2xf32>
      %380 = arith.maximumf %378, %379 : vector<1x2xf32>
      %c0_30 = arith.constant 0 : index
      %c0_31 = arith.constant 0 : index
      %381 = vector.load %arg6[%c0_30, %c0_31] : memref<2x32xf32, #tpu.memory_space<vmem>>, vector<2x32xf32>
      %cst_32 = arith.constant dense<0.000000e+00> : vector<1x32xf32>
      %382 = tpu.matmul %380, %381, %cst_32 {dimension_numbers = #tpu.dot_dimension_numbers<[1], [0], [0], [1], [0, 0, 1, 1], [], []>} : vector<1x2xf32>, vector<2x32xf32>, vector<1x32xf32> -> vector<1x32xf32>
      %383 = arith.negf %382 : vector<1x32xf32>
      %384 = math.exp %383 : vector<1x32xf32>
      %cst_33 = arith.constant 1.000000e+00 : f32
      %385 = vector.broadcast %cst_33 : f32 to vector<1x32xf32>
      %386 = arith.addf %385, %384 : vector<1x32xf32>
      %387 = arith.divf %385, %386 : vector<1x32xf32>
      %388 = vector.shape_cast %387 : vector<1x32xf32> to vector<1x1x32xf32>
      %c0_34 = arith.constant 0 : index
      %c0_35 = arith.constant 0 : index
      %c0_36 = arith.constant 0 : index
      %389 = vector.load %arg9[%c0_34, %c0_35, %c0_36] : memref<1x1x32xf32, #tpu.memory_space<vmem>>, vector<1x1x32xf32>
      tpu.vector_store %arg9[%c0_34, %c0_35, %c0_36], %388 {strides = array<i32>} : memref<1x1x32xf32, #tpu.memory_space<vmem>>, vector<1x1x32xf32>,
    } else {
    }
    return
  }
  func.func @transform_0(%arg0: i32, %arg1: i32) -> (i32, i32, i32, i32) {
    %c2_i32 = arith.constant 2 : i32
    %0 = arith.muli %arg0, %c2_i32 : i32
    %1 = arith.addi %0, %arg1 : i32
    %c0_i32 = arith.constant 0 : i32
    %c0_i32_0 = arith.constant 0 : i32
    %c0_i32_1 = arith.constant 0 : i32
    %c0_i32_2 = arith.constant 0 : i32
    return %1, %c0_i32, %c0_i32_0, %c0_i32_1 : i32, i32, i32, i32
  }
  func.func @transform_1(%arg0: i32, %arg1: i32) -> (i32, i32, i32) {
    %c0_i32 = arith.constant 0 : i32
    %c0_i32_0 = arith.constant 0 : i32
    %c0_i32_1 = arith.constant 0 : i32
    %c0_i32_2 = arith.constant 0 : i32
    return %c0_i32, %c0_i32_0, %c0_i32_1 : i32, i32, i32
  }
  func.func @transform_2(%arg0: i32, %arg1: i32) -> (i32, i32) {
    %c0_i32 = arith.constant 0 : i32
    %c0_i32_0 = arith.constant 0 : i32
    %c0_i32_1 = arith.constant 0 : i32
    return %c0_i32, %c0_i32_0 : i32, i32
  }
  func.func @transform_3(%arg0: i32, %arg1: i32) -> (i32, i32) {
    %c0_i32 = arith.constant 0 : i32
    %c0_i32_0 = arith.constant 0 : i32
    %c0_i32_1 = arith.constant 0 : i32
    return %c0_i32, %c0_i32_0 : i32, i32
  }
  func.func @transform_4(%arg0: i32, %arg1: i32) -> (i32, i32) {
    %c0_i32 = arith.constant 0 : i32
    %c0_i32_0 = arith.constant 0 : i32
    %c0_i32_1 = arith.constant 0 : i32
    return %c0_i32, %c0_i32_0 : i32, i32
  }
  func.func @transform_5(%arg0: i32, %arg1: i32) -> (i32, i32, i32, i32) {
    %c2_i32 = arith.constant 2 : i32
    %0 = arith.muli %arg0, %c2_i32 : i32
    %1 = arith.addi %0, %arg1 : i32
    %c0_i32 = arith.constant 0 : i32
    %c0_i32_0 = arith.constant 0 : i32
    %c0_i32_1 = arith.constant 0 : i32
    %c0_i32_2 = arith.constant 0 : i32
    return %1, %c0_i32, %c0_i32_0, %c0_i32_1 : i32, i32, i32, i32
  }
  func.func @transform_6(%arg0: i32, %arg1: i32) -> (i32, i32, i32, i32) {
    %c2_i32 = arith.constant 2 : i32
    %0 = arith.muli %arg0, %c2_i32 : i32
    %1 = arith.addi %0, %arg1 : i32
    %c0_i32 = arith.constant 0 : i32
    %c0_i32_0 = arith.constant 0 : i32
    %c0_i32_1 = arith.constant 0 : i32
    %c0_i32_2 = arith.constant 0 : i32
    return %1, %c0_i32, %c0_i32_0, %c0_i32_1 : i32, i32, i32, i32
  }
  func.func @transform_7(%arg0: i32, %arg1: i32) -> (i32, i32, i32) {
    %c0_i32 = arith.constant 0 : i32
    %c0_i32_0 = arith.constant 0 : i32
    %c0_i32_1 = arith.constant 0 : i32
    return %arg0, %c0_i32, %c0_i32_0 : i32, i32, i32
  }
}

module attributes {stable_mosaic.version = 11 : i64} {
  func.func @_block_pointwise_kernel(%arg0: i32, %arg1: i32, %arg2: memref<1x128x32xf32, #tpu.memory_space<vmem>>, %arg3: memref<1x128x32xf32, #tpu.memory_space<vmem>>, %arg4: memref<1x1x32xf32, #tpu.memory_space<vmem>>, %arg5: memref<1x32xf32, #tpu.memory_space<vmem>>, %arg6: memref<1x32xf32, #tpu.memory_space<vmem>>, %arg7: memref<32x8xf32, #tpu.memory_space<vmem>>, %arg8: memref<8x128xf32, #tpu.memory_space<vmem>>, %arg9: memref<128x8xf32, #tpu.memory_space<vmem>>, %arg10: memref<8x32xf32, #tpu.memory_space<vmem>>, %arg11: memref<1x32xf32, #tpu.memory_space<vmem>>, %arg12: memref<1x128x32xf32, #tpu.memory_space<vmem>>) attributes {dimension_semantics = [#tpu.dimension_semantics<parallel>, #tpu.dimension_semantics<parallel>], iteration_bounds = array<i64: 2, 2>, scalar_prefetch = 0 : i64, scratch_operands = 0 : i64, tpu.core_type = #tpu.core_type<tc>, window_params = [{transform_indices = @transform_0, window_bounds = array<i64: 1, 128, 32>}, {transform_indices = @transform_1, window_bounds = array<i64: 1, 128, 32>}, {transform_indices = @transform_2, window_bounds = array<i64: 1, 1, 32>}, {pipeline_mode = #tpu.pipeline_mode<synchronous>, transform_indices = @transform_3, window_bounds = array<i64: 1, 32>}, {pipeline_mode = #tpu.pipeline_mode<synchronous>, transform_indices = @transform_4, window_bounds = array<i64: 1, 32>}, {pipeline_mode = #tpu.pipeline_mode<synchronous>, transform_indices = @transform_5, window_bounds = array<i64: 32, 8>}, {pipeline_mode = #tpu.pipeline_mode<synchronous>, transform_indices = @transform_6, window_bounds = array<i64: 8, 128>}, {pipeline_mode = #tpu.pipeline_mode<synchronous>, transform_indices = @transform_7, window_bounds = array<i64: 128, 8>}, {pipeline_mode = #tpu.pipeline_mode<synchronous>, transform_indices = @transform_8, window_bounds = array<i64: 8, 32>}, {pipeline_mode = #tpu.pipeline_mode<synchronous>, transform_indices = @transform_9, window_bounds = array<i64: 1, 32>}, {transform_indices = @transform_10, window_bounds = array<i64: 1, 128, 32>}]} {
    %c0 = arith.constant 0 : index
    %c0_0 = arith.constant 0 : index
    %c0_1 = arith.constant 0 : index
    %0 = vector.load %arg2[%c0, %c0_0, %c0_1] : memref<1x128x32xf32, #tpu.memory_space<vmem>>, vector<1x128x32xf32>
    %1 = vector.shape_cast %0 : vector<1x128x32xf32> to vector<128x32xf32>
    %c0_2 = arith.constant 0 : index
    %c0_3 = arith.constant 0 : index
    %c0_4 = arith.constant 0 : index
    %2 = vector.load %arg4[%c0_2, %c0_3, %c0_4] : memref<1x1x32xf32, #tpu.memory_space<vmem>>, vector<1x1x32xf32>
    %3 = vector.shape_cast %2 : vector<1x1x32xf32> to vector<1x32xf32>
    %4 = vector.broadcast %3 : vector<1x32xf32> to vector<128x32xf32>
    %5 = arith.mulf %1, %4 : vector<128x32xf32>
    %cst = arith.constant dense<0.000000e+00> : vector<128xf32>
    %6 = vector.multi_reduction <add>, %5, %cst [1] : vector<128x32xf32> to vector<128xf32>
    %7 = vector.shape_cast %6 : vector<128xf32> to vector<128x1xf32>
    %cst_5 = arith.constant 3.200000e+01 : f32
    %8 = vector.broadcast %cst_5 : f32 to vector<128x1xf32>
    %9 = arith.divf %7, %8 : vector<128x1xf32>
    %10 = vector.broadcast %9 : vector<128x1xf32> to vector<128x32xf32>
    %11 = arith.subf %5, %10 : vector<128x32xf32>
    %12 = arith.mulf %11, %11 : vector<128x32xf32>
    %cst_6 = arith.constant dense<0.000000e+00> : vector<128xf32>
    %13 = vector.multi_reduction <add>, %12, %cst_6 [1] : vector<128x32xf32> to vector<128xf32>
    %14 = vector.shape_cast %13 : vector<128xf32> to vector<128x1xf32>
    %cst_7 = arith.constant 3.200000e+01 : f32
    %15 = vector.broadcast %cst_7 : f32 to vector<128x1xf32>
    %16 = arith.divf %14, %15 : vector<128x1xf32>
    %cst_8 = arith.constant 9.99999997E-7 : f32
    %17 = vector.broadcast %cst_8 : f32 to vector<128x1xf32>
    %18 = arith.addf %16, %17 : vector<128x1xf32>
    %19 = math.rsqrt %18 : vector<128x1xf32>
    %20 = vector.broadcast %19 : vector<128x1xf32> to vector<128x32xf32>
    %21 = arith.mulf %11, %20 : vector<128x32xf32>
    %c0_9 = arith.constant 0 : index
    %c0_10 = arith.constant 0 : index
    %22 = vector.load %arg5[%c0_9, %c0_10] : memref<1x32xf32, #tpu.memory_space<vmem>>, vector<1x32xf32>
    %23 = vector.broadcast %22 : vector<1x32xf32> to vector<128x32xf32>
    %24 = arith.mulf %21, %23 : vector<128x32xf32>
    %c0_11 = arith.constant 0 : index
    %c0_12 = arith.constant 0 : index
    %25 = vector.load %arg6[%c0_11, %c0_12] : memref<1x32xf32, #tpu.memory_space<vmem>>, vector<1x32xf32>
    %26 = vector.broadcast %25 : vector<1x32xf32> to vector<128x32xf32>
    %27 = arith.addf %24, %26 : vector<128x32xf32>
    %c0_13 = arith.constant 0 : index
    %c0_14 = arith.constant 0 : index
    %28 = vector.load %arg7[%c0_13, %c0_14] : memref<32x8xf32, #tpu.memory_space<vmem>>, vector<32x8xf32>
    %cst_15 = arith.constant dense<0.000000e+00> : vector<128x8xf32>
    %29 = tpu.matmul %27, %28, %cst_15 {dimension_numbers = #tpu.dot_dimension_numbers<[1], [0], [0], [1], [0, 0, 1, 1], [], []>} : vector<128x32xf32>, vector<32x8xf32>, vector<128x8xf32> -> vector<128x8xf32>
    %cst_16 = arith.constant 0.000000e+00 : f32
    %30 = vector.broadcast %cst_16 : f32 to vector<128x8xf32>
    %c0_17 = arith.constant 0 : index
    %c0_18 = arith.constant 0 : index
    %31 = vector.load %arg8[%c0_17, %c0_18] : memref<8x128xf32, #tpu.memory_space<vmem>>, vector<8x128xf32>
    %cst_19 = arith.constant dense<0.000000e+00> : vector<128x128xf32>
    %32 = tpu.matmul %29, %31, %cst_19 {dimension_numbers = #tpu.dot_dimension_numbers<[1], [0], [0], [1], [0, 0, 1, 1], [], []>} : vector<128x8xf32>, vector<8x128xf32>, vector<128x128xf32> -> vector<128x128xf32>
    %cst_20 = arith.constant 5.000000e-01 : f32
    %33 = vector.broadcast %cst_20 : f32 to vector<128x128xf32>
    %34 = arith.mulf %33, %32 : vector<128x128xf32>
    %cst_21 = arith.constant 0.707106769 : f32
    %35 = vector.broadcast %cst_21 : f32 to vector<128x128xf32>
    %36 = arith.mulf %32, %35 : vector<128x128xf32>
    %cst_22 = arith.constant 0.000000e+00 : f32
    %37 = vector.broadcast %cst_22 : f32 to vector<128x128xf32>
    %38 = arith.cmpf oge, %36, %37 : vector<128x128xf32>
    %cst_23 = arith.constant 1.000000e+00 : f32
    %cst_24 = arith.constant -1.000000e+00 : f32
    %39 = vector.broadcast %cst_23 : f32 to vector<128x128xf32>
    %40 = vector.broadcast %cst_24 : f32 to vector<128x128xf32>
    %41 = arith.select %38, %39, %40 : vector<128x128xi1>, vector<128x128xf32>
    %42 = arith.mulf %36, %41 : vector<128x128xf32>
    %cst_25 = arith.constant 0.327591091 : f32
    %43 = vector.broadcast %cst_25 : f32 to vector<128x128xf32>
    %44 = arith.mulf %43, %42 : vector<128x128xf32>
    %cst_26 = arith.constant 1.000000e+00 : f32
    %45 = vector.broadcast %cst_26 : f32 to vector<128x128xf32>
    %46 = arith.addf %45, %44 : vector<128x128xf32>
    %47 = tpu.reciprocal %46 {approx = true} : vector<128x128xf32> -> vector<128x128xf32>
    %48 = arith.mulf %46, %47 : vector<128x128xf32>
    %cst_27 = arith.constant 2.000000e+00 : f32
    %49 = vector.broadcast %cst_27 : f32 to vector<128x128xf32>
    %50 = arith.subf %49, %48 : vector<128x128xf32>
    %51 = arith.mulf %47, %50 : vector<128x128xf32>
    %cst_28 = arith.constant 1.06140542 : f32
    %52 = vector.broadcast %cst_28 : f32 to vector<128x128xf32>
    %53 = arith.mulf %52, %51 : vector<128x128xf32>
    %cst_29 = arith.constant -1.45315206 : f32
    %54 = vector.broadcast %cst_29 : f32 to vector<128x128xf32>
    %55 = arith.addf %53, %54 : vector<128x128xf32>
    %56 = arith.mulf %55, %51 : vector<128x128xf32>
    %cst_30 = arith.constant 1.42141378 : f32
    %57 = vector.broadcast %cst_30 : f32 to vector<128x128xf32>
    %58 = arith.addf %56, %57 : vector<128x128xf32>
    %59 = arith.mulf %58, %51 : vector<128x128xf32>
    %cst_31 = arith.constant -0.284496725 : f32
    %60 = vector.broadcast %cst_31 : f32 to vector<128x128xf32>
    %61 = arith.addf %59, %60 : vector<128x128xf32>
    %62 = arith.mulf %61, %51 : vector<128x128xf32>
    %cst_32 = arith.constant 0.254829586 : f32
    %63 = vector.broadcast %cst_32 : f32 to vector<128x128xf32>
    %64 = arith.addf %62, %63 : vector<128x128xf32>
    %65 = arith.mulf %64, %51 : vector<128x128xf32>
    %cst_33 = arith.constant 0.000000e+00 : f32
    %66 = vector.broadcast %cst_33 : f32 to vector<128x128xf32>
    %67 = arith.subf %66, %42 : vector<128x128xf32>
    %68 = arith.mulf %67, %42 : vector<128x128xf32>
    %69 = math.exp %68 : vector<128x128xf32>
    %70 = arith.mulf %65, %69 : vector<128x128xf32>
    %cst_34 = arith.constant 1.000000e+00 : f32
    %71 = vector.broadcast %cst_34 : f32 to vector<128x128xf32>
    %72 = arith.subf %71, %70 : vector<128x128xf32>
    %73 = arith.mulf %41, %72 : vector<128x128xf32>
    %cst_35 = arith.constant 1.000000e+00 : f32
    %74 = vector.broadcast %cst_35 : f32 to vector<128x128xf32>
    %75 = arith.addf %74, %73 : vector<128x128xf32>
    %76 = arith.mulf %34, %75 : vector<128x128xf32>
    %c0_36 = arith.constant 0 : index
    %c0_37 = arith.constant 0 : index
    %77 = vector.load %arg9[%c0_36, %c0_37] : memref<128x8xf32, #tpu.memory_space<vmem>>, vector<128x8xf32>
    %cst_38 = arith.constant dense<0.000000e+00> : vector<128x8xf32>
    %78 = tpu.matmul %76, %77, %cst_38 {dimension_numbers = #tpu.dot_dimension_numbers<[1], [0], [0], [1], [0, 0, 1, 1], [], []>} : vector<128x128xf32>, vector<128x8xf32>, vector<128x8xf32> -> vector<128x8xf32>
    %79 = arith.addf %30, %78 : vector<128x8xf32>
    %c0_39 = arith.constant 0 : index
    %c0_40 = arith.constant 0 : index
    %80 = vector.load %arg10[%c0_39, %c0_40] : memref<8x32xf32, #tpu.memory_space<vmem>>, vector<8x32xf32>
    %cst_41 = arith.constant dense<0.000000e+00> : vector<128x32xf32>
    %81 = tpu.matmul %79, %80, %cst_41 {dimension_numbers = #tpu.dot_dimension_numbers<[1], [0], [0], [1], [0, 0, 1, 1], [], []>} : vector<128x8xf32>, vector<8x32xf32>, vector<128x32xf32> -> vector<128x32xf32>
    %c0_42 = arith.constant 0 : index
    %c0_43 = arith.constant 0 : index
    %c0_44 = arith.constant 0 : index
    %82 = vector.load %arg3[%c0_42, %c0_43, %c0_44] : memref<1x128x32xf32, #tpu.memory_space<vmem>>, vector<1x128x32xf32>
    %83 = vector.shape_cast %82 : vector<1x128x32xf32> to vector<128x32xf32>
    %c0_45 = arith.constant 0 : index
    %c0_46 = arith.constant 0 : index
    %84 = vector.load %arg11[%c0_45, %c0_46] : memref<1x32xf32, #tpu.memory_space<vmem>>, vector<1x32xf32>
    %85 = vector.broadcast %84 : vector<1x32xf32> to vector<128x32xf32>
    %86 = arith.mulf %85, %81 : vector<128x32xf32>
    %87 = arith.addf %83, %86 : vector<128x32xf32>
    %88 = vector.shape_cast %87 : vector<128x32xf32> to vector<1x128x32xf32>
    %c0_47 = arith.constant 0 : index
    %c0_48 = arith.constant 0 : index
    %c0_49 = arith.constant 0 : index
    %89 = vector.load %arg12[%c0_47, %c0_48, %c0_49] : memref<1x128x32xf32, #tpu.memory_space<vmem>>, vector<1x128x32xf32>
    tpu.vector_store %arg12[%c0_47, %c0_48, %c0_49], %88 {strides = array<i32>} : memref<1x128x32xf32, #tpu.memory_space<vmem>>, vector<1x128x32xf32>,
    return
  }
  func.func @transform_0(%arg0: i32, %arg1: i32) -> (i32, i32, i32) {
    %c0_i32 = arith.constant 0 : i32
    %c0_i32_0 = arith.constant 0 : i32
    return %arg0, %arg1, %c0_i32 : i32, i32, i32
  }
  func.func @transform_1(%arg0: i32, %arg1: i32) -> (i32, i32, i32) {
    %c0_i32 = arith.constant 0 : i32
    %c0_i32_0 = arith.constant 0 : i32
    return %arg0, %arg1, %c0_i32 : i32, i32, i32
  }
  func.func @transform_2(%arg0: i32, %arg1: i32) -> (i32, i32, i32) {
    %c0_i32 = arith.constant 0 : i32
    %c0_i32_0 = arith.constant 0 : i32
    %c0_i32_1 = arith.constant 0 : i32
    return %arg0, %c0_i32, %c0_i32_0 : i32, i32, i32
  }
  func.func @transform_3(%arg0: i32, %arg1: i32) -> (i32, i32) {
    %c0_i32 = arith.constant 0 : i32
    %c0_i32_0 = arith.constant 0 : i32
    %c0_i32_1 = arith.constant 0 : i32
    return %c0_i32, %c0_i32_0 : i32, i32
  }
  func.func @transform_4(%arg0: i32, %arg1: i32) -> (i32, i32) {
    %c0_i32 = arith.constant 0 : i32
    %c0_i32_0 = arith.constant 0 : i32
    %c0_i32_1 = arith.constant 0 : i32
    return %c0_i32, %c0_i32_0 : i32, i32
  }
  func.func @transform_5(%arg0: i32, %arg1: i32) -> (i32, i32) {
    %c0_i32 = arith.constant 0 : i32
    %c0_i32_0 = arith.constant 0 : i32
    %c0_i32_1 = arith.constant 0 : i32
    return %c0_i32, %c0_i32_0 : i32, i32
  }
  func.func @transform_6(%arg0: i32, %arg1: i32) -> (i32, i32) {
    %c0_i32 = arith.constant 0 : i32
    %c0_i32_0 = arith.constant 0 : i32
    %c0_i32_1 = arith.constant 0 : i32
    return %c0_i32, %c0_i32_0 : i32, i32
  }
  func.func @transform_7(%arg0: i32, %arg1: i32) -> (i32, i32) {
    %c0_i32 = arith.constant 0 : i32
    %c0_i32_0 = arith.constant 0 : i32
    %c0_i32_1 = arith.constant 0 : i32
    return %c0_i32, %c0_i32_0 : i32, i32
  }
  func.func @transform_8(%arg0: i32, %arg1: i32) -> (i32, i32) {
    %c0_i32 = arith.constant 0 : i32
    %c0_i32_0 = arith.constant 0 : i32
    %c0_i32_1 = arith.constant 0 : i32
    return %c0_i32, %c0_i32_0 : i32, i32
  }
  func.func @transform_9(%arg0: i32, %arg1: i32) -> (i32, i32) {
    %c0_i32 = arith.constant 0 : i32
    %c0_i32_0 = arith.constant 0 : i32
    %c0_i32_1 = arith.constant 0 : i32
    return %c0_i32, %c0_i32_0 : i32, i32
  }
  func.func @transform_10(%arg0: i32, %arg1: i32) -> (i32, i32, i32) {
    %c0_i32 = arith.constant 0 : i32
    %c0_i32_0 = arith.constant 0 : i32
    return %arg0, %arg1, %c0_i32 : i32, i32, i32
  }
}

</mosaic_0001>

<bundles_post_ra>
// kernel: block_forward.3
= control target key start
LH: loop header
LB: loop body
LE: loop exit
PB: predicated region body
PF: predicated region fallthrough
CT: control target
= control target key end

     0   :  { %15 = vsyncpa [#allocation3], 0  ;;  %s3705_s0 = inlined_call_operand.vmem [shape: f32[2,256,32], index: 0, kind: input, shape index: {}]   ;;  %s3706_s1 = inlined_call_operand.vmem [shape: f32[2,256,32], index: 1, kind: input, shape index: {}]   ;;  %s3707_s2 = inlined_call_operand.vmem [shape: f32[2,1,32], index: 2, kind: input, shape index: {}]   ;;  %s3708_s3 = inlined_call_operand.vmem [shape: f32[1,32], index: 3, kind: input, shape index: {}]   ;;  %s3709_s4 = inlined_call_operand.vmem [shape: f32[1,32], index: 4, kind: input, shape index: {}]   ;;  %s3710_s5 = inlined_call_operand.vmem [shape: f32[32,8], index: 5, kind: input, shape index: {}]   ;;  %s3711_s6 = inlined_call_operand.vmem [shape: f32[8,128], index: 6, kind: input, shape index: {}]   ;;  %s3712_s7 = inlined_call_operand.vmem [shape: f32[128,8], index: 7, kind: input, shape index: {}]   ;;  %s3713_s8 = inlined_call_operand.vmem [shape: f32[8,32], index: 8, kind: input, shape index: {}]   ;;  %s3714_s9 = inlined_call_operand.vmem [shape: f32[1,32], index: 9, kind: input, shape index: {}]   ;;  %s3715_s10 = inlined_call_operand.hbm [shape: f32[2,256,32], index: 10, kind: output, shape index: {}]  }
   0x1   :  { %17 = vsyncpa [#allocation3 + $0x1], 0  ;;  %s2802_s13 = smov 0   ;;  %s2804_s14 = smov 0  }
   0x2   :  { %s2806_s15 = smov 0   ;;  %s2808_s16 = smov 0  }
   0x3   :  { %s2810_s17 = smov 0   ;;  %s2812_s18 = smov 0  }
   0x4   :  { %s2814_s19 = smov 0   ;;  %s2816_s20 = smov 0  }
   0x5 LB: > { %3720 = sst [smem:[#allocation5_spill]] %s2733_s18  ;;  %s2141_s21 = sadd.s32 4294967295, %s2741_s20   ;;  %s2741_s20 = sphi %s2816_s20, %s23_s20   ;;  %s2737_s19 = sphi %s2814_s19, %s3729_s19   ;;  %s2733_s18 = sphi %s2812_s18, %s3728_s18   ;;  %s2729_s17 = sphi %s2810_s17, %s3727_s17   ;;  %s2725_s16 = sphi %s2808_s16, %s3726_s16   ;;  %s2721_s15 = sphi %s2806_s15, %s3732_s15   ;;  %s2717_s14 = sphi %s2804_s14, %s3731_s14   ;;  %s2713_s13 = sphi %s2802_s13, %s3730_s13  }
   0x6   : > { %3721 = sst [smem:[#allocation6_spill]] %s2737_s19  ;;  %s2142_s22 = sadd.s32 4294967294, %s2741_s20  }
   0x7   : > { %s32_s23 = sadd.s32 1, %s2733_s18  ;;  %s35_s24 = sadd.s32 1, %s2737_s19 }
   0x8   : > { %p33_p0 = scmp.ge.s32.totalorder %s32_s23, 2  ;;  %p283_p1 = scmp.ne.s32.totalorder %s2721_s15, %s2717_s14 }
   0x9   : > { %p284_p2 = scmp.eq.s32.totalorder %s2141_s21, 3  ;;  %p289_p5 = scmp.ne.s32.totalorder %s2717_s14, %s2713_s13 }
   0xa   : > { %s3734_s23 = smov (%p33_p0, %s32_s23), 0  ;;  %s3736_s24 = smov (!%p33_p0, %s35_s24), %s2737_s19 }
   0xb   : > { %3722 = sst [smem:[#allocation7_spill]] %s3734_s23  ;;  %s269_s25 = ssub.s32 %s2733_s18, %s3734_s23 }
   0xc   : > { %p2853_p3 = por %p284_p2, %p283_p1  ;;  %p37_p4 = scmp.ge.s32.totalorder %s3736_s24, 2 }
   0xd   : > { %p290_p6 = scmp.eq.s32.totalorder %s2142_s22, 3  ;;  %p2145_p7 = scmp.ge.s32.totalorder %s2741_s20, 1 }
   0xe   : > { %s3738_s24 = smov (%p37_p4, %s3736_s24), 0  ;;  %p361_p9 = scmp.lt.s32.totalorder %s2741_s20, 5 }
   0xf   : > { %3724 = sst [smem:[#allocation8_spill]] %s3738_s24  ;;  %p2862_p8 = por %p290_p6, %p289_p5 }
  0x10   : > { %s268_s28 = ssub.s32 %s2737_s19, %s3738_s24  ;;  %s273_s29 = sadd.s32 1, %s2721_s15 }
  0x11   : > { %s270_s30 = sor.u32 %s269_s25, %s268_s28  ;;  %p362_p10 = pnand %p2145_p7, %p361_p9 }
  0x12   : > { %p271_p11 = scmp.eq.s32.totalorder %s270_s30, 0  ;;  %s2874_s12 = sshll.u32 (!%p362_p10), %s2725_s16, 4  ;;  %vm478_vm0 = vcmask (!%p362_p10), 261120   ;;  %vm932_vm1 = vcmask (!%p362_p10), 64512  }
  0x13   : > { %365 = sbr.rel (%p362_p10) target bundleno = 1361 (0x551), region = 60  ;;  %p416_p12 = scmp.lt.s32.totalorder (!%p362_p10), %s2729_s17, 1 }
  0x14   : > { %s2871_s11 = scalar_select %p271_p11, %s2721_s15, %s273_s29  }
  0x15   : > { %p418_p13 = scmp.lt.s32.totalorder (!%p362_p10), %s2874_s12, 31  ;;  %s412_s24 = sand.u32 (!%p362_p10), 1, %s2717_s14  }
  0x16   : > { %s2744_s30 = smov (!%p362_p10), [#allocation2]  }
  0x1a   : > { %s417_s21 = scalar_select %p416_p12, %s2729_s17, 1 }
  0x1b   : > { %s419_s22 = scalar_select %p418_p13, %s2874_s12, 31 }
  0x1c   : > { %s2148_s23 = sshll.u32 %s417_s21, 5  ;;  %s437_s25 = scalar_lea.vmem %s3707_s2, %s417_s21 }
  0x1d   : > { %s2883_s28 = sadd.s32 %s2148_s23, %s419_s22  ;;  %v2153_v0 = vld [vmem:[%s437_s25] ss:$0 sm:$0xff] }
  0x1e   : > { %s2149_s29 = sshll.u32 %s2883_s28, 3 }
  0x1f   : > { %s2891_s18 = scalar_lea.vmem %s3705_s0, %s2149_s29  ;;  %s3566_s25 = scalar_lea.vmem %s3706_s1, %s2149_s29 }
  0x20   : > { %v439_v1 = vld [vmem:[%s2891_s18] sm:$0xff]  ;;  %v441_v2 = vld [vmem:[%s2891_s18 + $0x10] sm:$0xff]  ;;  %v440_v3 = vld [vmem:[%s2891_s18 + $0x8] sm:$0xff]  ;;  %s2207_s29 = sshll.u32 %s2729_s17, 5 }
  0x21   : > { %v2896_v4 = vmul.f32 %v2153_v0, %v439_v1  ;;  %v2898_v5 = vmul.f32 %v2153_v0, %v441_v2  ;;  %v2900_v6 = vmul.f32 %v2153_v0, %v440_v3  ;;  %v442_v7 = vld [vmem:[%s2891_s18 + $0x18] sm:$0xff]  ;;  %v443_v9 = vld [vmem:[%s2891_s18 + $0x20] sm:$0xff]  ;;  %v444_v10 = vld [vmem:[%s2891_s18 + $0x28] sm:$0xff]  ;;  %s2029_s19 = sadd.s32 %s2207_s29, %s2874_s12  ;;  %s3653_s12 = scalar_lea.sflag [#allocation3], %s412_s24 }
  0x22   : > { %v2903_v8 = vmul.f32 %v2153_v0, %v442_v7  ;;  %v2915_v15 = vmul.f32 %v2153_v0, %v443_v9  ;;  %v2917_v16 = vmul.f32 %v2153_v0, %v444_v10  ;;  %v445_v17 = vld [vmem:[%s2891_s18 + $0x30] sm:$0xff]  ;;  %v446_v18 = vld [vmem:[%s2891_s18 + $0x38] sm:$0xff]  ;;  %v447_v23 = vld [vmem:[%s2891_s18 + $0x40] sm:$0xff]  ;;  %s2208_s23 = sshll.u32 %s2029_s19, 7 }
  0x23   : > { %v479_v11 = vsel %vm478_vm0, %v2896_v4, 0.0  ;;  %v485_v12 = vsel %vm478_vm0, %v2898_v5, 0.0  ;;  %v482_v13 = vsel %vm478_vm0, %v2900_v6, 0.0  ;;  %v2925_v21 = vmul.f32 %v2153_v0, %v445_v17  ;;  %v448_v24 = vld [vmem:[%s2891_s18 + $0x48] sm:$0xff]  ;;  %v449_v29 = vld [vmem:[%s2891_s18 + $0x50] sm:$0xff]  ;;  %v450_v30 = vld [vmem:[%s2891_s18 + $0x58] sm:$0xff]  ;;  %s3642_s16 = scalar_lea.hbm %s3715_s10, %s2208_s23 }
  0x24   : > { %480 = vadd.xlane.f32.xlu0 %v479_v11  ;;  %486 = vadd.xlane.f32.xlu1 %v485_v12  ;;  %v488_v14 = vsel %vm478_vm0, %v2903_v8, 0.0  ;;  %v491_v19 = vsel %vm478_vm0, %v2915_v15, 0.0  ;;  %v494_v20 = vsel %vm478_vm0, %v2917_v16, 0.0  ;;  %v2927_v22 = vmul.f32 %v2153_v0, %v446_v18  ;;  %v451_v35 = vld [vmem:[%s2891_s18 + $0x60] sm:$0xff]  ;;  %v452_v36 = vld [vmem:[%s2891_s18 + $0x68] sm:$0xff]  ;;  %v453_v41 = vld [vmem:[%s2891_s18 + $0x70] sm:$0xff] }
  0x25   : > { %v497_v25 = vsel %vm478_vm0, %v2925_v21, 0.0  ;;  %v2935_v27 = vmul.f32 %v2153_v0, %v447_v23  ;;  %v2937_v28 = vmul.f32 %v2153_v0, %v448_v24  ;;  %v2945_v33 = vmul.f32 %v2153_v0, %v449_v29  ;;  %v454_v42 = vld [vmem:[%s2891_s18 + $0x78] sm:$0xff]  ;;  %s2146_s18 = sshll.u32 %s412_s24, 7 }
  0x26   : > { %v500_v26 = vsel %vm478_vm0, %v2927_v22, 0.0  ;;  %v2947_v34 = vmul.f32 %v2153_v0, %v450_v30  ;;  %v2955_v39 = vmul.f32 %v2153_v0, %v451_v35  ;;  %v2957_v40 = vmul.f32 %v2153_v0, %v452_v36  ;;  %s3580_s28 = scalar_lea.vmem [#allocation2], %s2146_s18  ;;  %s2651_s18 = sshll.u32 %s2744_s30, 4  ;;  %s2652_s18 = int_to_ptr.vmem [resolvable:$false] %s2651_s18 }
  0x27   : > { %v503_v31 = vsel %vm478_vm0, %v2935_v27, 0.0  ;;  %v506_v32 = vsel %vm478_vm0, %v2937_v28, 0.0  ;;  %v509_v37 = vsel %vm478_vm0, %v2945_v33, 0.0  ;;  %v2965_v45 = vmul.f32 %v2153_v0, %v453_v41  ;;  %s2032_s17 = sshll.u32 %s3580_s28, 4  ;;  %s2653_s29 = scalar_lea.vmem %s2652_s18, 4096  ;;  %s3645_s17 = int_to_ptr.vmem [resolvable:$true] %s2032_s17 }
  0x28   : > { %483 = vadd.xlane.f32.xlu0 %v482_v13  ;;  %489 = vadd.xlane.f32.xlu1 %v488_v14  ;;  %v512_v38 = vsel %vm478_vm0, %v2947_v34, 0.0  ;;  %v515_v43 = vsel %vm478_vm0, %v2955_v39, 0.0  ;;  %v518_v44 = vsel %vm478_vm0, %v2957_v40, 0.0  ;;  %v2967_v46 = vmul.f32 %v2153_v0, %v454_v42  ;;  %p2654_p4 = scmp.lt.s32.totalorder %s3645_s17, %s2652_s18 }
  0x29   : > { %v521_v47 = vsel %vm478_vm0, %v2965_v45, 0.0 }
  0x2a   : > { %v524_v48 = vsel %vm478_vm0, %v2967_v46, 0.0 }
  0x2c   : > { %492 = vadd.xlane.f32.xlu0 %v491_v19  ;;  %495 = vadd.xlane.f32.xlu1 %v494_v20 }
  0x30   : > { %498 = vadd.xlane.f32.xlu0 %v497_v25  ;;  %501 = vadd.xlane.f32.xlu1 %v500_v26 }
  0x34   : > { %504 = vadd.xlane.f32.xlu0 %v503_v31  ;;  %507 = vadd.xlane.f32.xlu1 %v506_v32 }
  0x38   : > { %510 = vadd.xlane.f32.xlu0 %v509_v37  ;;  %513 = vadd.xlane.f32.xlu1 %v512_v38 }
  0x3c   : > { %516 = vadd.xlane.f32.xlu0 %v515_v43  ;;  %519 = vadd.xlane.f32.xlu1 %v518_v44 }
  0x40   : > { %522 = vadd.xlane.f32.xlu0 %v521_v47  ;;  %525 = vadd.xlane.f32.xlu1 %v524_v48 }
  0xb1   : > { %v481_v49 = vpop.xlane.xlu0 %480  ;;  %v487_v50 = vpop.xlane.xlu1 %486 }
  0xb2   : > { %v528_v51 = vmul.f32 0.03125, %v481_v49  ;;  %v530_v52 = vmul.f32 0.03125, %v487_v50 }
  0xb4   : > { %v2974_v53 = vsub.f32 %v2896_v4, %v528_v51  ;;  %v2977_v54 = vsub.f32 %v2898_v5, %v530_v52 }
  0xb5   : > { %v484_v55 = vpop.xlane.xlu0 %483  ;;  %v490_v56 = vpop.xlane.xlu1 %489 }
  0xb6   : > { %v529_v57 = vmul.f32 0.03125, %v484_v55  ;;  %v531_v58 = vmul.f32 0.03125, %v490_v56  ;;  %v560_v59 = vmul.f32 %v2974_v53, %v2974_v53  ;;  %v562_v60 = vmul.f32 %v2977_v54, %v2977_v54 }
  0xb8   : > { %v2984_v61 = vsub.f32 %v2900_v6, %v529_v57  ;;  %v2987_v62 = vsub.f32 %v2903_v8, %v531_v58  ;;  %v576_v63 = vsel %vm478_vm0, %v560_v59, 0.0  ;;  %v582_v2 = vsel %vm478_vm0, %v562_v60, 0.0 }
  0xb9   : > { %577 = vadd.xlane.f32.xlu0 %v576_v63  ;;  %v493_v0 = vpop.xlane.xlu0 %492  ;;  %v496_v1 = vpop.xlane.xlu1 %495 }
  0xba   : > { %v532_v3 = vmul.f32 0.03125, %v493_v0  ;;  %v533_v4 = vmul.f32 0.03125, %v496_v1  ;;  %v561_v5 = vmul.f32 %v2984_v61, %v2984_v61  ;;  %v563_v7 = vmul.f32 %v2987_v62, %v2987_v62 }
  0xbc   : > { %v2996_v6 = vsub.f32 %v2915_v15, %v532_v3  ;;  %v2999_v8 = vsub.f32 %v2917_v16, %v533_v4  ;;  %v579_v9 = vsel %vm478_vm0, %v561_v5, 0.0  ;;  %v585_v12 = vsel %vm478_vm0, %v563_v7, 0.0  ;;  %v735_v7 = vld [vmem:[%s3710_s5 + $0x8] sm:$0xff] }
  0xbd   : > { %583 = vadd.xlane.f32.xlu0 %v582_v2  ;;  %580 = vadd.xlane.f32.xlu1 %v579_v9  ;;  %v499_v10 = vpop.xlane.xlu0 %498  ;;  %v502_v11 = vpop.xlane.xlu1 %501 }
  0xbe   : > { %v534_v13 = vmul.f32 0.03125, %v499_v10  ;;  %v535_v14 = vmul.f32 0.03125, %v502_v11  ;;  %v564_v17 = vmul.f32 %v2996_v6, %v2996_v6  ;;  %v565_v15 = vmul.f32 %v2999_v8, %v2999_v8  ;;  %v736_v10 = vld [vmem:[%s3710_s5 + $0x10] sm:$0xff]  ;;  %v737_v11 = vld [vmem:[%s3710_s5 + $0x18] sm:$0xff] }
  0xc0   : > { %v3008_v18 = vsub.f32 %v2925_v21, %v534_v13  ;;  %v3011_v16 = vsub.f32 %v2927_v22, %v535_v14  ;;  %v588_v19 = vsel %vm478_vm0, %v564_v17, 0.0  ;;  %v591_v24 = vsel %vm478_vm0, %v565_v15, 0.0 }
  0xc1   : > { %586 = vadd.xlane.f32.xlu1 %v585_v12  ;;  %589 = vadd.xlane.f32.xlu0 %v588_v19  ;;  %v505_v20 = vpop.xlane.xlu0 %504  ;;  %v508_v23 = vpop.xlane.xlu1 %507  ;;  %v2441_v12 = vpack.c.bf16 %v737_v11, %v736_v10 }
  0xc2   : > { %v536_v25 = vmul.f32 0.03125, %v505_v20  ;;  %v537_v26 = vmul.f32 0.03125, %v508_v23  ;;  %v566_v29 = vmul.f32 %v3008_v18, %v3008_v18  ;;  %v567_v21 = vmul.f32 %v3011_v16, %v3011_v16 }
  0xc4   : > { %v3020_v30 = vsub.f32 %v2935_v27, %v536_v25  ;;  %v3023_v22 = vsub.f32 %v2937_v28, %v537_v26  ;;  %v594_v31 = vsel %vm478_vm0, %v566_v29, 0.0  ;;  %v597_v36 = vsel %vm478_vm0, %v567_v21, 0.0 }
  0xc5   : > { %592 = vadd.xlane.f32.xlu1 %v591_v24  ;;  %595 = vadd.xlane.f32.xlu0 %v594_v31  ;;  %v511_v32 = vpop.xlane.xlu0 %510  ;;  %v514_v35 = vpop.xlane.xlu1 %513 }
  0xc6   : > { %v538_v37 = vmul.f32 0.03125, %v511_v32  ;;  %v539_v38 = vmul.f32 0.03125, %v514_v35  ;;  %v568_v41 = vmul.f32 %v3020_v30, %v3020_v30  ;;  %v569_v27 = vmul.f32 %v3023_v22, %v3023_v22 }
  0xc8   : > { %v3032_v42 = vsub.f32 %v2945_v33, %v538_v37  ;;  %v3035_v28 = vsub.f32 %v2947_v34, %v539_v38  ;;  %v600_v43 = vsel %vm478_vm0, %v568_v41, 0.0  ;;  %v603_v48 = vsel %vm478_vm0, %v569_v27, 0.0 }
  0xc9   : > { %598 = vadd.xlane.f32.xlu1 %v597_v36  ;;  %601 = vadd.xlane.f32.xlu0 %v600_v43  ;;  %v517_v44 = vpop.xlane.xlu0 %516  ;;  %v520_v47 = vpop.xlane.xlu1 %519 }
  0xca   : > { %v540_v49 = vmul.f32 0.03125, %v517_v44  ;;  %v541_v50 = vmul.f32 0.03125, %v520_v47  ;;  %v570_v51 = vmul.f32 %v3032_v42, %v3032_v42  ;;  %v571_v33 = vmul.f32 %v3035_v28, %v3035_v28  ;;  %v3084_v47 = vld [vmem:[%s3708_s3] ss:$0 sm:$0xff] }
  0xcc   : > { %v3044_v52 = vsub.f32 %v2955_v39, %v540_v49  ;;  %v3047_v34 = vsub.f32 %v2957_v40, %v541_v50  ;;  %v606_v55 = vsel %vm478_vm0, %v570_v51, 0.0  ;;  %v609_v58 = vsel %vm478_vm0, %v571_v33, 0.0 }
  0xcd   : > { %604 = vadd.xlane.f32.xlu1 %v603_v48  ;;  %607 = vadd.xlane.f32.xlu0 %v606_v55  ;;  %v523_v56 = vpop.xlane.xlu0 %522  ;;  %v526_v57 = vpop.xlane.xlu1 %525  ;;  %v3090_v55 = vld [vmem:[%s3709_s4] ss:$0 sm:$0xff] }
  0xce   : > { %v542_v59 = vmul.f32 0.03125, %v523_v56  ;;  %v543_v60 = vmul.f32 0.03125, %v526_v57  ;;  %v572_v63 = vmul.f32 %v3044_v52, %v3044_v52  ;;  %v573_v39 = vmul.f32 %v3047_v34, %v3047_v34 }
  0xd0   : > { %v3056_v0 = vsub.f32 %v2965_v45, %v542_v59  ;;  %v3059_v40 = vsub.f32 %v2967_v46, %v543_v60  ;;  %v612_v1 = vsel %vm478_vm0, %v572_v63, 0.0  ;;  %v615_v2 = vsel %vm478_vm0, %v573_v39, 0.0  ;;  %v734_v46 = vld [vmem:[%s3710_s5] sm:$0xff] }
  0xd1   : > { %610 = vadd.xlane.f32.xlu1 %v609_v58  ;;  %613 = vadd.xlane.f32.xlu0 %v612_v1  ;;  %v2437_v9 = vpack.c.bf16 %v735_v7, %v734_v46 }
  0xd2   : > { %v574_v3 = vmul.f32 %v3056_v0, %v3056_v0  ;;  %v575_v4 = vmul.f32 %v3059_v40, %v3059_v40 }
  0xd3   : > { %2438 = vmatprep.subr.bf16.mxu0 %v2437_v9 }
  0xd4   : > { %v618_v5 = vsel %vm478_vm0, %v574_v3, 0.0  ;;  %v621_v45 = vsel %vm478_vm0, %v575_v4, 0.0  ;;  %2440 = vmatpush3.bf16.msra.mxu0 %v2437_v9 }
  0xd5   : > { %616 = vadd.xlane.f32.xlu1 %v615_v2  ;;  %619 = vadd.xlane.f32.xlu0 %v618_v5 }
  0xd6   : > { %2442 = vmatprep.subr.bf16.mxu0 %v2441_v12 }
  0xd8   : > { %2444 = vmatpush3.bf16.msra.mxu0 %v2441_v12 }
  0xd9   : > { %622 = vadd.xlane.f32.xlu1 %v621_v45 }
 0x146   : > { %v578_v13 = vpop.xlane.xlu0 %577 }
 0x147   : > { %v624_v14 = vmul.f32 0.03125, %v578_v13 }
 0x149   : > { %v640_v17 = vadd.f32 1e-06, %v624_v14 }
 0x14a   : > { %v581_v15 = vpop.xlane.xlu1 %580  ;;  %v584_v19 = vpop.xlane.xlu0 %583 }
 0x14b   : > { %2551 = vrsqrt.f32 %v640_v17  ;;  %v625_v20 = vmul.f32 0.03125, %v581_v15  ;;  %v626_v23 = vmul.f32 0.03125, %v584_v19 }
 0x14d   : > { %v641_v24 = vadd.f32 1e-06, %v625_v20  ;;  %v642_v25 = vadd.f32 1e-06, %v626_v23 }
 0x14e   : > { %v587_v26 = vpop.xlane.xlu1 %586  ;;  %v590_v29 = vpop.xlane.xlu0 %589 }
 0x14f   : > { %2553 = vrsqrt.f32 %v641_v24  ;;  %v627_v21 = vmul.f32 0.03125, %v587_v26  ;;  %v628_v31 = vmul.f32 0.03125, %v590_v29 }
 0x150   : > { %2555 = vrsqrt.f32 %v642_v25 }
 0x151   : > { %v643_v32 = vadd.f32 1e-06, %v627_v21  ;;  %v644_v35 = vadd.f32 1e-06, %v628_v31 }
 0x152   : > { %v593_v36 = vpop.xlane.xlu1 %592  ;;  %v596_v37 = vpop.xlane.xlu0 %595 }
 0x153   : > { %2557 = vrsqrt.f32 %v643_v32  ;;  %v629_v38 = vmul.f32 0.03125, %v593_v36  ;;  %v630_v41 = vmul.f32 0.03125, %v596_v37 }
 0x154   : > { %2559 = vrsqrt.f32 %v644_v35 }
 0x155   : > { %v2552_v27 = vpop.eup %2551  ;;  %v645_v43 = vadd.f32 1e-06, %v629_v38  ;;  %v646_v44 = vadd.f32 1e-06, %v630_v41 }
 0x156   : > { %v599_v48 = vpop.xlane.xlu1 %598  ;;  %v602_v49 = vpop.xlane.xlu0 %601  ;;  %v672_v50 = vmul.f32 %v2552_v27, %v2974_v53 }
 0x157   : > { %2561 = vrsqrt.f32 %v645_v43  ;;  %v631_v51 = vmul.f32 0.03125, %v599_v48  ;;  %v632_v33 = vmul.f32 0.03125, %v602_v49 }
 0x158   : > { %2563 = vrsqrt.f32 %v646_v44  ;;  %v695_v56 = vmul.f32 %v3084_v47, %v672_v50 }
 0x159   : > { %v2554_v57 = vpop.eup %2553  ;;  %v647_v58 = vadd.f32 1e-06, %v631_v51  ;;  %v648_v59 = vadd.f32 1e-06, %v632_v33 }
 0x15a   : > { %v2556_v60 = vpop.eup %2555  ;;  %v605_v63 = vpop.xlane.xlu1 %604  ;;  %v718_v1 = vadd.f32 %v3090_v55, %v695_v56  ;;  %v673_v53 = vmul.f32 %v2554_v57, %v2984_v61 }
 0x15b   : > { %v608_v39 = vpop.xlane.xlu0 %607  ;;  %2565 = vrsqrt.f32 %v647_v58  ;;  %v633_v2 = vmul.f32 0.03125, %v605_v63  ;;  %v674_v4 = vmul.f32 %v2556_v60, %v2977_v54 }
 0x15c   : > { %v634_v3 = vmul.f32 0.03125, %v608_v39  ;;  %2567 = vrsqrt.f32 %v648_v59  ;;  %2305 = vmatprep.mubr.msk.f32.mxu0 %vm478_vm0, %v718_v1  ;;  %v696_v5 = vmul.f32 %v3084_v47, %v673_v53 }
 0x15d   : > { %v2558_v45 = vpop.eup %2557  ;;  %v649_v46 = vadd.f32 1e-06, %v633_v2  ;;  %v697_v9 = vmul.f32 %v3084_v47, %v674_v4 }
 0x15e   : > { %v650_v7 = vadd.f32 1e-06, %v634_v3  ;;  %v2560_v10 = vpop.eup %2559  ;;  %v611_v11 = vpop.xlane.xlu1 %610  ;;  %v719_v61 = vadd.f32 %v3090_v55, %v696_v5  ;;  %v675_v13 = vmul.f32 %v2558_v45, %v2987_v62 }
 0x15f   : > { %v614_v12 = vpop.xlane.xlu0 %613  ;;  %2569 = vrsqrt.f32 %v649_v46  ;;  %v635_v14 = vmul.f32 0.03125, %v611_v11  ;;  %v720_v17 = vadd.f32 %v3090_v55, %v697_v9  ;;  %v676_v19 = vmul.f32 %v2560_v10, %v2996_v6 }
 0x160   : > { %v636_v54 = vmul.f32 0.03125, %v614_v12  ;;  %2571 = vrsqrt.f32 %v650_v7  ;;  %2306 = vmatmul.mubr.msk.f32.vlgmr.msra.gmra.mrb[0].mxu0 %vm478_vm0, %v719_v61  ;;  %v698_v15 = vmul.f32 %v3084_v47, %v675_v13 }
 0x161   : > { %v2562_v20 = vpop.eup %2561  ;;  %v651_v23 = vadd.f32 1e-06, %v635_v14  ;;  %2308 = vmatprep.mubr.msk.f32.mxu0 %vm478_vm0, %v720_v17  ;;  %v699_v21 = vmul.f32 %v3084_v47, %v676_v19  ;;  %v931_v17 = vld [vmem:[%s3711_s6] sm:$0xff] }
 0x162   : > { %v652_v24 = vadd.f32 1e-06, %v636_v54  ;;  %v2564_v25 = vpop.eup %2563  ;;  %v617_v26 = vpop.xlane.xlu1 %616  ;;  %v721_v29 = vadd.f32 %v3090_v55, %v698_v15  ;;  %v677_v31 = vmul.f32 %v2562_v20, %v2999_v8  ;;  %2329 = vmatprep.subr.mxu1 %v931_v17 }
 0x163   : > { %v620_v62 = vpop.xlane.xlu0 %619  ;;  %2573 = vrsqrt.f32 %v651_v23  ;;  %v637_v32 = vmul.f32 0.03125, %v617_v26  ;;  %v678_v36 = vmul.f32 %v2564_v25, %v3008_v18  ;;  %v722_v6 = vadd.f32 %v3090_v55, %v699_v21  ;;  %2330 = vmatpush3.msra.mxu1 %v931_v17 }
 0x164   : > { %v638_v35 = vmul.f32 0.03125, %v620_v62  ;;  %2575 = vrsqrt.f32 %v652_v24  ;;  %2309 = vmatmul.mubr.msk.f32.gmra.mrb[2].mxu0 %vm478_vm0, %v721_v29  ;;  %v700_v37 = vmul.f32 %v3084_v47, %v677_v31 }
 0x165   : > { %v2566_v38 = vpop.eup %2565  ;;  %v653_v41 = vadd.f32 1e-06, %v637_v32  ;;  %v701_v43 = vmul.f32 %v3084_v47, %v678_v36  ;;  %2311 = vmatprep.mubr.msk.f32.mxu0 %vm478_vm0, %v722_v6  ;;  %v1590_v36 = vld [vmem:[%s3712_s7] sm:$0xff]  ;;  %v1591_v6 = vld [vmem:[%s3712_s7 + $0x8] sm:$0xff] }
 0x166   : > { %v654_v27 = vadd.f32 1e-06, %v638_v35  ;;  %v2568_v44 = vpop.eup %2567  ;;  %v623_v8 = vpop.xlane.xlu1 %622  ;;  %v723_v48 = vadd.f32 %v3090_v55, %v700_v37  ;;  %v679_v18 = vmul.f32 %v2566_v38, %v3011_v16  ;;  %v2445_v37 = vpack.c.bf16 %v1591_v6, %v1590_v36  ;;  %v1592_v38 = vld [vmem:[%s3712_s7 + $0x10] sm:$0xff] }
 0x167   : > { %2577 = vrsqrt.f32 %v653_v41  ;;  %v639_v49 = vmul.f32 0.03125, %v623_v8  ;;  %v724_v50 = vadd.f32 %v3090_v55, %v701_v43  ;;  %v680_v51 = vmul.f32 %v2568_v44, %v3020_v30  ;;  %v1593_v41 = vld [vmem:[%s3712_s7 + $0x18] sm:$0xff]  ;;  %v1594_v43 = vld [vmem:[%s3712_s7 + $0x20] sm:$0xff]  ;;  %v1595_v44 = vld [vmem:[%s3712_s7 + $0x28] sm:$0xff] }
 0x168   : > { %2579 = vrsqrt.f32 %v654_v27  ;;  %2312 = vmatmul.mubr.msk.f32.gmra.mrb[4].mxu0 %vm478_vm0, %v723_v48  ;;  %v702_v33 = vmul.f32 %v3084_v47, %v679_v18  ;;  %2446 = vmatprep.subr.bf16.mxu1 %v2445_v37  ;;  %v2449_v27 = vpack.c.bf16 %v1593_v41, %v1592_v38  ;;  %v2453_v8 = vpack.c.bf16 %v1595_v44, %v1594_v43  ;;  %v1596_v48 = vld [vmem:[%s3712_s7 + $0x30] sm:$0xff]  ;;  %v1597_v18 = vld [vmem:[%s3712_s7 + $0x38] sm:$0xff] }
 0x169   : > { %v2570_v56 = vpop.eup %2569  ;;  %v655_v57 = vadd.f32 1e-06, %v639_v49  ;;  %2314 = vmatprep.mubr.msk.f32.mxu0 %vm478_vm0, %v724_v50  ;;  %v703_v58 = vmul.f32 %v3084_v47, %v680_v51  ;;  %v2457_v49 = vpack.c.bf16 %v1597_v18, %v1596_v48  ;;  %v1598_v50 = vld [vmem:[%s3712_s7 + $0x40] sm:$0xff]  ;;  %v1599_v51 = vld [vmem:[%s3712_s7 + $0x48] sm:$0xff] }
 0x16a   : > { %v2572_v59 = vpop.eup %2571  ;;  %v725_v16 = vadd.f32 %v3090_v55, %v702_v33  ;;  %v681_v60 = vmul.f32 %v2570_v56, %v3023_v22  ;;  %v2461_v33 = vpack.c.bf16 %v1599_v51, %v1598_v50  ;;  %v1600_v56 = vld [vmem:[%s3712_s7 + $0x50] sm:$0xff] }
 0x16b   : > { %2581 = vrsqrt.f32 %v655_v57  ;;  %v726_v63 = vadd.f32 %v3090_v55, %v703_v58  ;;  %v682_v30 = vmul.f32 %v2572_v59, %v3032_v42  ;;  %v1601_v57 = vld [vmem:[%s3712_s7 + $0x58] sm:$0xff]  ;;  %v1602_v59 = vld [vmem:[%s3712_s7 + $0x60] sm:$0xff] }
 0x16c   : > { %2315 = vmatmul.mubr.msk.f32.gmra.mrb[6].mxu0 %vm478_vm0, %v725_v16  ;;  %v704_v39 = vmul.f32 %v3084_v47, %v681_v60  ;;  %v2465_v58 = vpack.c.bf16 %v1601_v57, %v1600_v56  ;;  %v1603_v16 = vld [vmem:[%s3712_s7 + $0x68] sm:$0xff] }
 0x16d   : > { %v2574_v1 = vpop.eup %2573  ;;  %2317 = vmatprep.mubr.msk.f32.mxu0 %vm478_vm0, %v726_v63  ;;  %v705_v53 = vmul.f32 %v3084_v47, %v682_v30  ;;  %v2469_v60 = vpack.c.bf16 %v1603_v16, %v1602_v59  ;;  %v1604_v63 = vld [vmem:[%s3712_s7 + $0x70] sm:$0xff]  ;;  %v1605_v30 = vld [vmem:[%s3712_s7 + $0x78] sm:$0xff] }
 0x16e   : > { %v2576_v2 = vpop.eup %2575  ;;  %v727_v3 = vadd.f32 %v3090_v55, %v704_v39  ;;  %v683_v4 = vmul.f32 %v2574_v1, %v3035_v28  ;;  %v2473_v39 = vpack.c.bf16 %v1605_v30, %v1604_v63 }
 0x16f   : > { %v728_v22 = vadd.f32 %v3090_v55, %v705_v53  ;;  %v684_v5 = vmul.f32 %v2576_v2, %v3044_v52 }
 0x170   : > { %2318 = vmatmul.mubr.msk.f32.gmra.mrb[8].mxu0 %vm478_vm0, %v727_v3  ;;  %v706_v42 = vmul.f32 %v3084_v47, %v683_v4  ;;  %v2743_v4 = vmov -1.0  }
 0x171   : > { %v2578_v45 = vpop.eup %2577  ;;  %2320 = vmatprep.mubr.msk.f32.mxu0 %vm478_vm0, %v728_v22  ;;  %v707_v46 = vmul.f32 %v3084_v47, %v684_v5 }
 0x172   : > { %v2580_v7 = vpop.eup %2579  ;;  %v729_v9 = vadd.f32 %v3090_v55, %v706_v42  ;;  %v685_v10 = vmul.f32 %v2578_v45, %v3047_v34 }
 0x173   : > { %v730_v28 = vadd.f32 %v3090_v55, %v707_v46  ;;  %v686_v11 = vmul.f32 %v2580_v7, %v3056_v0 }
 0x174   : > { %2321 = vmatmul.mubr.msk.f32.gmra.mrb[10].mxu0 %vm478_vm0, %v729_v9  ;;  %v708_v52 = vmul.f32 %v3084_v47, %v685_v10 }
 0x175   : > { %v2582_v12 = vpop.eup %2581  ;;  %2323 = vmatprep.mubr.msk.f32.mxu0 %vm478_vm0, %v730_v28  ;;  %v709_v61 = vmul.f32 %v3084_v47, %v686_v11 }
 0x176   : > { %v731_v13 = vadd.f32 %v3090_v55, %v708_v52  ;;  %v687_v14 = vmul.f32 %v2582_v12, %v3059_v40 }
 0x177   : > { %v732_v54 = vadd.f32 %v3090_v55, %v709_v61 }
 0x178   : > { %2324 = vmatmul.mubr.msk.f32.gmra.mrb[12].mxu0 %vm478_vm0, %v731_v13  ;;  %v710_v34 = vmul.f32 %v3084_v47, %v687_v14 }
 0x179   : > { %2326 = vmatprep.mubr.msk.f32.mxu0 %vm478_vm0, %v732_v54 }
 0x17a   : > { %v733_v0 = vadd.f32 %v3090_v55, %v710_v34 }
 0x17c   : > { %2327 = vmatmul.mubr.msk.f32.gmra.mrb[14].mxu0 %vm478_vm0, %v733_v0 }
 0x233   : > { %v2307_v40 = vpop.f32.mrb[0].mxu0 }
 0x234   : > { %v852_v15 = vpop.f32.mrb[1].mxu0 }
 0x235   : > { %2331 = vmatprep.mubr.msk.f32.mxu1 %vm932_vm1, %v852_v15 }
 0x236   : > { %2332 = vmatmul.mubr.msk.f32.vlgmr.msra.gmra.mrb[0].mxu1 %vm932_vm1, %v2307_v40 }
 0x237   : > { %v2310_v47 = vpop.f32.mrb[2].mxu0  ;;  %2448 = vmatpush3.bf16.msra.mxu1 %v2445_v37 }
 0x238   : > { %v862_v19 = vpop.f32.mrb[3].mxu0  ;;  %2450 = vmatprep.subr.bf16.mxu1 %v2449_v27 }
 0x239   : > { %2334 = vmatprep.mubr.msk.f32.mxu1 %vm932_vm1, %v862_v19 }
 0x23a   : > { %2335 = vmatmul.mubr.msk.f32.gmra.mrb[2].mxu1 %vm932_vm1, %v2310_v47 }
 0x23b   : > { %v2313_v55 = vpop.f32.mrb[4].mxu0  ;;  %2452 = vmatpush3.bf16.msra.mxu1 %v2449_v27 }
 0x23c   : > { %v872_v20 = vpop.f32.mrb[5].mxu0  ;;  %2454 = vmatprep.subr.bf16.mxu1 %v2453_v8 }
 0x23d   : > { %2337 = vmatprep.mubr.msk.f32.mxu1 %vm932_vm1, %v872_v20 }
 0x23e   : > { %2338 = vmatmul.mubr.msk.f32.gmra.mrb[4].mxu1 %vm932_vm1, %v2313_v55 }
 0x23f   : > { %v2316_v23 = vpop.f32.mrb[6].mxu0  ;;  %2456 = vmatpush3.bf16.msra.mxu1 %v2453_v8 }
 0x240   : > { %v882_v24 = vpop.f32.mrb[7].mxu0  ;;  %2458 = vmatprep.subr.bf16.mxu1 %v2457_v49 }
 0x241   : > { %2340 = vmatprep.mubr.msk.f32.mxu1 %vm932_vm1, %v882_v24 }
 0x242   : > { %2341 = vmatmul.mubr.msk.f32.gmra.mrb[6].mxu1 %vm932_vm1, %v2316_v23 }
 0x243   : > { %v2319_v25 = vpop.f32.mrb[8].mxu0  ;;  %2460 = vmatpush3.bf16.msra.mxu1 %v2457_v49 }
 0x244   : > { %v892_v26 = vpop.f32.mrb[9].mxu0  ;;  %2462 = vmatprep.subr.bf16.mxu1 %v2461_v33 }
 0x245   : > { %2343 = vmatprep.mubr.msk.f32.mxu1 %vm932_vm1, %v892_v26 }
 0x246   : > { %2344 = vmatmul.mubr.msk.f32.gmra.mrb[8].mxu1 %vm932_vm1, %v2319_v25 }
 0x247   : > { %v2322_v62 = vpop.f32.mrb[10].mxu0  ;;  %2464 = vmatpush3.bf16.msra.mxu1 %v2461_v33 }
 0x248   : > { %v902_v29 = vpop.f32.mrb[11].mxu0  ;;  %2466 = vmatprep.subr.bf16.mxu1 %v2465_v58 }
 0x249   : > { %2346 = vmatprep.mubr.msk.f32.mxu1 %vm932_vm1, %v902_v29 }
 0x24a   : > { %2347 = vmatmul.mubr.msk.f32.gmra.mrb[10].mxu1 %vm932_vm1, %v2322_v62 }
 0x24b   : > { %v2325_v21 = vpop.f32.mrb[12].mxu0  ;;  %2468 = vmatpush3.bf16.msra.mxu1 %v2465_v58 }
 0x24c   : > { %v912_v31 = vpop.f32.mrb[13].mxu0  ;;  %2470 = vmatprep.subr.bf16.mxu1 %v2469_v60 }
 0x24d   : > { %2349 = vmatprep.mubr.msk.f32.mxu1 %vm932_vm1, %v912_v31  ;;  %v1751_v31 = vld [vmem:[%s3713_s8] sm:$0xff] }
 0x24e   : > { %2350 = vmatmul.mubr.msk.f32.gmra.mrb[12].mxu1 %vm932_vm1, %v2325_v21  ;;  %2411 = vmatprep.subr.mxu0 %v1751_v31 }
 0x24f   : > { %v2328_v32 = vpop.f32.mrb[14].mxu0  ;;  %2472 = vmatpush3.bf16.msra.mxu1 %v2469_v60  ;;  %2412 = vmatpush3.msra.mxu0 %v1751_v31 }
 0x250   : > { %v922_v35 = vpop.f32.mrb[15].mxu0  ;;  %2474 = vmatprep.subr.bf16.mxu1 %v2473_v39 }
 0x251   : > { %2352 = vmatprep.mubr.msk.f32.mxu1 %vm932_vm1, %v922_v35 }
 0x252   : > { %2353 = vmatmul.mubr.msk.f32.gmra.mrb[14].mxu1 %vm932_vm1, %v2328_v32 }
 0x253   : > { %2476 = vmatpush3.bf16.msra.mxu1 %v2473_v39 }
 0x309   : > { %v2333_v1 = vpop.f32.mrb[0].mxu1 }
 0x30a   : > { %v1143_v53 = vmul.f32 0.70710677, %v2333_v1  ;;  %v1047_v2 = vpop.f32.mrb[1].mxu1  ;;  %v3249_v26 = vmul.f32 0.5, %v2333_v1 }
 0x30b   : > { %v1142_v3 = vmul.f32 0.70710677, %v1047_v2  ;;  %v3258_v36 = vmul.f32 0.5, %v1047_v2 }
 0x30c   : > { %vm1159_vm2 = vcmp.ge.f32.partialorder %v1143_v53, 0.0 }
 0x30d   : > { %v3223_v22 = vsel %vm1159_vm2, 1.0, %v2743_v4  ;;  %vm1158_vm3 = vcmp.ge.f32.partialorder %v1142_v3, 0.0  ;;  %v2336_v5 = vpop.f32.mrb[2].mxu1 }
 0x30e   : > { %v1191_v42 = vmul.f32 %v3223_v22, %v1143_v53  ;;  %v3227_v45 = vsel %vm1158_vm3, 1.0, %v2743_v4  ;;  %v1145_v46 = vmul.f32 0.70710677, %v2336_v5  ;;  %v1057_v7 = vpop.f32.mrb[3].mxu1  ;;  %v3260_v6 = vmul.f32 0.5, %v2336_v5 }
 0x30f   : > { %v1190_v9 = vmul.f32 %v3227_v45, %v1142_v3  ;;  %v1144_v10 = vmul.f32 0.70710677, %v1057_v7  ;;  %v3277_v56 = vmul.f32 0.5, %v1057_v7 }
 0x310   : > { %v1207_v28 = vmul.f32 0.3275911, %v1191_v42  ;;  %vm1161_vm4 = vcmp.ge.f32.partialorder %v1145_v46, 0.0  ;;  %v1447_v13 = vsub.f32 0.0, %v1191_v42 }
 0x311   : > { %v1206_v11 = vmul.f32 0.3275911, %v1190_v9  ;;  %v3231_v52 = vsel %vm1161_vm4, 1.0, %v2743_v4  ;;  %vm1160_vm5 = vcmp.ge.f32.partialorder %v1144_v10, 0.0  ;;  %v3233_v12 = vpop.f32.mrb[4].mxu1  ;;  %v1446_v17 = vsub.f32 0.0, %v1190_v9 }
 0x312   : > { %v1223_v61 = vadd.f32 1.0, %v1207_v28  ;;  %v1193_v14 = vmul.f32 %v3231_v52, %v1145_v46  ;;  %v3237_v54 = vsel %vm1160_vm5, 1.0, %v2743_v4  ;;  %v3239_v34 = vpop.f32.mrb[5].mxu1  ;;  %v1463_v20 = vmul.f32 %v1447_v13, %v1191_v42 }
 0x313   : > { %v1222_v0 = vadd.f32 1.0, %v1206_v11  ;;  %v1192_v40 = vmul.f32 %v3237_v54, %v1144_v10  ;;  %v1147_v24 = vmul.f32 0.70710677, %v3233_v12  ;;  %v1462_v62 = vmul.f32 %v1446_v17, %v1190_v9 }
 0x314   : > { %2583 = vrcp.f32 %v1223_v61  ;;  %v1209_v15 = vmul.f32 0.3275911, %v1193_v14  ;;  %v1449_v47 = vsub.f32 0.0, %v1193_v14  ;;  %v1146_v35 = vmul.f32 0.70710677, %v3239_v34 }
 0x315   : > { %2585 = vrcp.f32 %v1222_v0  ;;  %v1208_v19 = vmul.f32 0.3275911, %v1192_v40  ;;  %v3242_v55 = vpop.f32.mrb[6].mxu1  ;;  %v1448_v21 = vsub.f32 0.0, %v1192_v40  ;;  %vm1163_vm6 = vcmp.ge.f32.partialorder %v1147_v24, 0.0 }
 0x316   : > { %v3244_v23 = vadd.f32 1.0, %v1209_v15  ;;  %v3247_v25 = vpop.f32.mrb[7].mxu1  ;;  %v1465_v32 = vmul.f32 %v1449_v47, %v1193_v14  ;;  %v3264_v37 = vsel %vm1163_vm6, 1.0, %v2743_v4  ;;  %v1480_v41 = vmul.f32 1.442695, %v1463_v20 }
 0x317   : > { %v3251_v29 = vadd.f32 1.0, %v1208_v19  ;;  %v1195_v27 = vmul.f32 %v3264_v37, %v1147_v24  ;;  %vm1162_vm7 = vcmp.ge.f32.partialorder %v1146_v35, 0.0  ;;  %v1149_v43 = vmul.f32 0.70710677, %v3242_v55 }
 0x318   : > { %2587 = vrcp.f32 %v3244_v23  ;;  %v1478_v8 = vmul.f32 1.442695, %v1462_v62  ;;  %v1464_v48 = vmul.f32 %v1448_v21, %v1192_v40  ;;  %v3273_v18 = vsel %vm1162_vm7, 1.0, %v2743_v4 }
 0x319   : > { %2589 = vrcp.f32 %v3251_v29  ;;  %v3266_v38 = vpop.f32.mrb[8].mxu1  ;;  %v1148_v49 = vmul.f32 0.70710677, %v3247_v25  ;;  %v1484_v50 = vmul.f32 1.442695, %v1465_v32  ;;  %v1194_v33 = vmul.f32 %v3273_v18, %v1146_v35 }
 0x31a   : > { %v3270_v44 = vpop.f32.mrb[9].mxu1  ;;  %v1211_v51 = vmul.f32 0.3275911, %v1195_v27  ;;  %vm1165_vm8 = vcmp.ge.f32.partialorder %v1149_v43, 0.0  ;;  %v1151_v58 = vmul.f32 0.70710677, %v3266_v38  ;;  %2591 = vpow2.f32 %v1480_v41 }
 0x31b   : > { %v3280_v57 = vsel %vm1165_vm8, 1.0, %v2743_v4  ;;  %vm1164_vm9 = vcmp.ge.f32.partialorder %v1148_v49, 0.0  ;;  %v1451_v63 = vsub.f32 0.0, %v1195_v27  ;;  %v1210_v30 = vmul.f32 0.3275911, %v1194_v33 }
 0x31c   : > { %v3285_v60 = vadd.f32 1.0, %v1211_v51  ;;  %2593 = vpow2.f32 %v1478_v8  ;;  %v1197_v2 = vmul.f32 %v3280_v57, %v1149_v43  ;;  %v3291_v3 = vsel %vm1164_vm9, 1.0, %v2743_v4 }
 0x31d   : > { %v3283_v59 = vpop.f32.mrb[10].mxu1  ;;  %v1482_v42 = vmul.f32 1.442695, %v1464_v48  ;;  %v3294_v46 = vadd.f32 1.0, %v1210_v30  ;;  %v1450_v9 = vsub.f32 0.0, %v1194_v33  ;;  %vm1167_vm10 = vcmp.ge.f32.partialorder %v1151_v58, 0.0 }
 0x31e   : > { %v2584_v16 = vpop.eup %2583  ;;  %v3287_v39 = vpop.f32.mrb[11].mxu1  ;;  %2595 = vrcp.f32 %v3285_v60  ;;  %v1213_v10 = vmul.f32 0.3275911, %v1197_v2  ;;  %v1467_v13 = vmul.f32 %v1451_v63, %v1195_v27  ;;  %v1196_v14 = vmul.f32 %v3291_v3, %v1148_v49 }
 0x31f   : > { %v2586_v1 = vpop.eup %2585  ;;  %v1255_v53 = vmul.f32 %v2584_v16, %v1223_v61  ;;  %2597 = vpow2.f32 %v1484_v50  ;;  %v1453_v47 = vsub.f32 0.0, %v1197_v2  ;;  %v3310_v62 = vsel %vm1167_vm10, 1.0, %v2743_v4 }
 0x320   : > { %v1254_v5 = vmul.f32 %v2586_v1, %v1222_v0  ;;  %2599 = vrcp.f32 %v3294_v46  ;;  %v1229_v24 = vadd.f32 1.0, %v1213_v10  ;;  %v1466_v32 = vmul.f32 %v1450_v9, %v1194_v33 }
 0x321   : > { %v1271_v7 = vsub.f32 2.0, %v1255_v53  ;;  %v3296_v28 = vpop.f32.mrb[12].mxu1  ;;  %v1212_v35 = vmul.f32 0.3275911, %v1196_v14  ;;  %v1488_v43 = vmul.f32 1.442695, %v1467_v13  ;;  %v1469_v33 = vmul.f32 %v1453_v47, %v1197_v2 }
 0x322   : > { %v2588_v11 = vpop.eup %2587  ;;  %v1270_v61 = vsub.f32 2.0, %v1254_v5  ;;  %v3299_v17 = vpop.f32.mrb[13].mxu1  ;;  %2601 = vrcp.f32 %v1229_v24  ;;  %v1452_v50 = vsub.f32 0.0, %v1196_v14  ;;  %v3325_v30 = vmul.f32 %v3310_v62, %v1151_v58 }
 0x323   : > { %v2590_v0 = vpop.eup %2589  ;;  %v3301_v40 = vmul.f32 %v2584_v16, %v1271_v7  ;;  %v1257_v15 = vmul.f32 %v2588_v11, %v3244_v23  ;;  %v1228_v49 = vadd.f32 1.0, %v1212_v35  ;;  %v1486_v7 = vmul.f32 1.442695, %v1466_v32 }
 0x324   : > { %v3305_v19 = vmul.f32 %v2586_v1, %v1270_v61  ;;  %v1256_v20 = vmul.f32 %v2590_v0, %v3251_v29  ;;  %v3320_v51 = vpop.eup %2591  ;;  %v1468_v61 = vmul.f32 %v1452_v50, %v1196_v14 }
 0x325   : > { %v1303_v21 = vmul.f32 1.0614054, %v3301_v40  ;;  %v1273_v31 = vsub.f32 2.0, %v1257_v15  ;;  %v3313_v41 = vpop.f32.mrb[14].mxu1  ;;  %2603 = vrcp.f32 %v1228_v49 }
 0x326   : > { %v1302_v23 = vmul.f32 1.0614054, %v3305_v19  ;;  %v1272_v27 = vsub.f32 2.0, %v1256_v20  ;;  %v3316_v8 = vpop.f32.mrb[15].mxu1  ;;  %v3327_v1 = vpop.eup %2593  ;;  %2605 = vpow2.f32 %v1482_v42 }
 0x327   : > { %v1319_v29 = vadd.f32 -1.4531521, %v1303_v21  ;;  %v3318_v48 = vmul.f32 %v2588_v11, %v1273_v31  ;;  %2607 = vpow2.f32 %v1488_v43  ;;  %v1492_v21 = vmul.f32 1.442695, %v1469_v33 }
 0x328   : > { %v1318_v16 = vadd.f32 -1.4531521, %v1302_v23  ;;  %v3322_v63 = vmul.f32 %v2590_v0, %v1272_v27  ;;  %v2596_v9 = vpop.eup %2595  ;;  %v1215_v0 = vmul.f32 0.3275911, %v3325_v30  ;;  %2609 = vpow2.f32 %v1486_v7 }
 0x329   : > { %v1335_v53 = vmul.f32 %v1319_v29, %v3301_v40  ;;  %v1305_v5 = vmul.f32 1.0614054, %v3318_v48  ;;  %v1259_v58 = vmul.f32 %v2596_v9, %v3285_v60  ;;  %v3335_v15 = vpop.eup %2597  ;;  %v1490_v27 = vmul.f32 1.442695, %v1468_v61 }
 0x32a   : > { %v1334_v10 = vmul.f32 %v1318_v16, %v3305_v19  ;;  %v1304_v11 = vmul.f32 1.0614054, %v3322_v63  ;;  %v2600_v31 = vpop.eup %2599  ;;  %v3344_v43 = vadd.f32 1.0, %v1215_v0  ;;  %2611 = vpow2.f32 %v1492_v21 }
 0x32b   : > { %v1351_v13 = vadd.f32 1.4214138, %v1335_v53  ;;  %v1321_v2 = vadd.f32 -1.4531521, %v1305_v5  ;;  %v1275_v23 = vsub.f32 2.0, %v1259_v58  ;;  %v1258_v60 = vmul.f32 %v2600_v31, %v3294_v46 }
 0x32c   : > { %v1350_v47 = vadd.f32 1.4214138, %v1334_v10  ;;  %v1320_v20 = vadd.f32 -1.4531521, %v1304_v11  ;;  %v2602_v33 = vpop.eup %2601  ;;  %2613 = vpow2.f32 %v1490_v27 }
 0x32d   : > { %v1367_v32 = vmul.f32 %v1351_v13, %v3301_v40  ;;  %v1337_v35 = vmul.f32 %v1321_v2, %v3318_v48  ;;  %v3342_v16 = vmul.f32 %v2596_v9, %v1275_v23  ;;  %v1274_v10 = vsub.f32 2.0, %v1258_v60 }
 0x32e   : > { %v1366_v42 = vmul.f32 %v1350_v47, %v3305_v19  ;;  %v1336_v14 = vmul.f32 %v1320_v20, %v3322_v63  ;;  %v1261_v2 = vmul.f32 %v2602_v33, %v1229_v24  ;;  %2615 = vrcp.f32 %v3344_v43 }
 0x32f   : > { %v1383_v29 = vadd.f32 -0.28449672, %v1367_v32  ;;  %v1353_v50 = vadd.f32 1.4214138, %v1337_v35  ;;  %v1307_v13 = vmul.f32 1.0614054, %v3342_v16  ;;  %v3351_v9 = vmul.f32 %v2600_v31, %v1274_v10  ;;  %v2604_v58 = vpop.eup %2603 }
 0x330   : > { %v1382_v53 = vadd.f32 -0.28449672, %v1366_v42  ;;  %v1352_v5 = vadd.f32 1.4214138, %v1336_v14  ;;  %v2606_v21 = vpop.eup %2605  ;;  %v1260_v42 = vmul.f32 %v2604_v58, %v1228_v49  ;;  %v1277_v60 = vsub.f32 2.0, %v1261_v2 }
 0x331   : > { %v1399_v7 = vmul.f32 %v1383_v29, %v3301_v40  ;;  %v1369_v11 = vmul.f32 %v1353_v50, %v3318_v48  ;;  %v1323_v20 = vadd.f32 -1.4531521, %v1307_v13  ;;  %v1306_v23 = vmul.f32 1.0614054, %v3351_v9  ;;  %v2608_v27 = vpop.eup %2607 }
 0x332   : > { %v1398_v46 = vmul.f32 %v1382_v53, %v3305_v19  ;;  %v1368_v61 = vmul.f32 %v1352_v5, %v3322_v63  ;;  %v1276_v5 = vsub.f32 2.0, %v1260_v42  ;;  %v3360_v10 = vpop.eup %2609  ;;  %v3363_v13 = vmul.f32 %v2602_v33, %v1277_v60 }
 0x333   : > { %v1415_v0 = vadd.f32 0.2548296, %v1399_v7  ;;  %v1385_v47 = vadd.f32 -0.28449672, %v1369_v11  ;;  %v1339_v31 = vmul.f32 %v1323_v20, %v3342_v16  ;;  %v1322_v53 = vadd.f32 -1.4531521, %v1306_v23 }
 0x334   : > { %v1414_v32 = vadd.f32 0.2548296, %v1398_v46  ;;  %v1384_v35 = vadd.f32 -0.28449672, %v1368_v61  ;;  %v3367_v61 = vmul.f32 %v2604_v58, %v1276_v5  ;;  %v1309_v20 = vmul.f32 1.0614054, %v3363_v13 }
 0x335   : > { %v1431_v24 = vmul.f32 %v1415_v0, %v3301_v40  ;;  %v1401_v14 = vmul.f32 %v1385_v47, %v3318_v48  ;;  %v1355_v49 = vadd.f32 1.4214138, %v1339_v31  ;;  %v1338_v2 = vmul.f32 %v1322_v53, %v3351_v9 }
 0x336   : > { %v1430_v29 = vmul.f32 %v1414_v32, %v3305_v19  ;;  %v1400_v50 = vmul.f32 %v1384_v35, %v3322_v63  ;;  %v3372_v32 = vpop.eup %2611 }
 0x337   : > { %v1511_v7 = vmul.f32 %v3320_v51, %v1431_v24  ;;  %v1417_v11 = vadd.f32 0.2548296, %v1401_v14  ;;  %v1371_v47 = vmul.f32 %v1355_v49, %v3342_v16  ;;  %v1354_v35 = vadd.f32 1.4214138, %v1338_v2  ;;  %v3378_v14 = vpop.eup %2613 }
 0x338   : > { %v1510_v40 = vmul.f32 %v3327_v1, %v1430_v29  ;;  %v1416_v46 = vadd.f32 0.2548296, %v1400_v50  ;;  %v1308_v1 = vmul.f32 1.0614054, %v3367_v61  ;;  %v1325_v24 = vadd.f32 -1.4531521, %v1309_v20  ;;  %v2616_v50 = vpop.eup %2615 }
 0x339   : > { %v1527_v19 = vsub.f32 1.0, %v1511_v7  ;;  %v1433_v0 = vmul.f32 %v1417_v11, %v3318_v48  ;;  %v1387_v42 = vadd.f32 -0.28449672, %v1371_v47  ;;  %v1370_v60 = vmul.f32 %v1354_v35, %v3351_v9 }
 0x33a   : > { %v1526_v51 = vsub.f32 1.0, %v1510_v40  ;;  %v1432_v33 = vmul.f32 %v1416_v46, %v3322_v63  ;;  %v1324_v29 = vadd.f32 -1.4531521, %v1308_v1  ;;  %v1341_v7 = vmul.f32 %v1325_v24, %v3363_v13 }
 0x33b   : > { %v1543_v23 = vmul.f32 %v1527_v19, %v3223_v22  ;;  %v1513_v58 = vmul.f32 %v3335_v15, %v1433_v0  ;;  %v1403_v5 = vmul.f32 %v1387_v42, %v3342_v16  ;;  %v1386_v15 = vadd.f32 -0.28449672, %v1370_v60 }
 0x33c   : > { %v1542_v48 = vmul.f32 %v1526_v51, %v3227_v45  ;;  %v1512_v31 = vmul.f32 %v2606_v21, %v1432_v33  ;;  %v1340_v49 = vmul.f32 %v1324_v29, %v3367_v61  ;;  %v1357_v46 = vadd.f32 1.4214138, %v1341_v7 }
 0x33d   : > { %v1559_v53 = vadd.f32 1.0, %v1543_v23  ;;  %v1529_v63 = vsub.f32 1.0, %v1513_v58  ;;  %v1419_v21 = vadd.f32 0.2548296, %v1403_v5  ;;  %v1402_v0 = vmul.f32 %v1386_v15, %v3351_v9 }
 0x33e   : > { %v1558_v22 = vadd.f32 1.0, %v1542_v48  ;;  %v1528_v11 = vsub.f32 1.0, %v1512_v31  ;;  %v1356_v47 = vadd.f32 1.4214138, %v1340_v49  ;;  %v1373_v33 = vmul.f32 %v1357_v46, %v3363_v13 }
 0x33f   : > { %v1575_v40 = vmul.f32 %v1559_v53, %v3249_v26  ;;  %v1545_v45 = vmul.f32 %v1529_v63, %v3231_v52  ;;  %v1435_v51 = vmul.f32 %v1419_v21, %v3342_v16  ;;  %v1263_v35 = vmul.f32 %v2616_v50, %v3344_v43 }
 0x340   : > { %v1574_v2 = vmul.f32 %v1558_v22, %v3258_v36  ;;  %v1544_v19 = vmul.f32 %v1528_v11, %v3237_v54  ;;  %v1418_v26 = vadd.f32 0.2548296, %v1402_v0  ;;  %v1372_v52 = vmul.f32 %v1356_v47, %v3367_v61 }
 0x341   : > { %v1561_v20 = vadd.f32 1.0, %v1545_v45  ;;  %v1150_v23 = vmul.f32 0.70710677, %v3270_v44  ;;  %v1515_v54 = vmul.f32 %v2608_v27, %v1435_v51  ;;  %v1389_v58 = vadd.f32 -0.28449672, %v1373_v33 }
 0x342   : > { %v1560_v1 = vadd.f32 1.0, %v1544_v19  ;;  %2387 = vmatprep.mubr.f32.mxu1 %v1574_v2  ;;  %v1279_v42 = vsub.f32 2.0, %v1263_v35  ;;  %v1434_v16 = vmul.f32 %v1418_v26, %v3351_v9  ;;  %v1388_v48 = vadd.f32 -0.28449672, %v1372_v52 }
 0x343   : > { %v1577_v36 = vmul.f32 %v1561_v20, %v3260_v6  ;;  %2388 = vmatmul.mubr.f32.vlgmr.msra.gmra.mrb[16].mxu1 %v1575_v40  ;;  %vm1166_vm11 = vcmp.ge.f32.partialorder %v1150_v23, 0.0  ;;  %v1531_v43 = vsub.f32 1.0, %v1515_v54  ;;  %v1405_v31 = vmul.f32 %v1389_v58, %v3363_v13 }
 0x344   : > { %v1576_v24 = vmul.f32 %v1560_v1, %v3277_v56  ;;  %v3399_v60 = vmul.f32 %v2616_v50, %v1279_v42  ;;  %v3402_v29 = vsel %vm1166_vm11, 1.0, %v2743_v4  ;;  %v1514_v6 = vmul.f32 %v3360_v10, %v1434_v16 }
 0x345   : > { %v1404_v27 = vmul.f32 %v1388_v48, %v3367_v61  ;;  %v3407_v53 = vmul.f32 %v3402_v29, %v1150_v23  ;;  %v1547_v56 = vmul.f32 %v1531_v43, %v3264_v37  ;;  %v1421_v9 = vadd.f32 0.2548296, %v1405_v31 }
 0x346   : > { %2390 = vmatprep.mubr.f32.mxu1 %v1576_v24  ;;  %v1311_v63 = vmul.f32 1.0614054, %v3399_v60  ;;  %v1153_v5 = vmul.f32 0.70710677, %v3283_v59  ;;  %v1530_v50 = vsub.f32 1.0, %v1514_v6  ;;  %v1455_v37 = vsub.f32 0.0, %v3325_v30 }
 0x347   : > { %2391 = vmatmul.mubr.f32.gmra.mrb[18].mxu1 %v1577_v36  ;;  %v1420_v7 = vadd.f32 0.2548296, %v1404_v27  ;;  %v1214_v22 = vmul.f32 0.3275911, %v3407_v53  ;;  %v1437_v10 = vmul.f32 %v1421_v9, %v3363_v13  ;;  %v1563_v45 = vadd.f32 1.0, %v1547_v56 }
 0x348   : > { %v1327_v11 = vadd.f32 -1.4531521, %v1311_v63  ;;  %vm1169_vm12 = vcmp.ge.f32.partialorder %v1153_v5, 0.0  ;;  %v1546_v15 = vmul.f32 %v1530_v50, %v3273_v18  ;;  %v1130_v19 = vmul.f32 0.5, %v3239_v34 }
 0x349   : > { %v1436_v49 = vmul.f32 %v1420_v7, %v3367_v61  ;;  %v1230_v40 = vadd.f32 1.0, %v1214_v22  ;;  %v1517_v21 = vmul.f32 %v3372_v32, %v1437_v10  ;;  %v3420_v2 = vsel %vm1169_vm12, 1.0, %v2743_v4 }
 0x34a   : > { %v1343_v46 = vmul.f32 %v1327_v11, %v3399_v60  ;;  %v1562_v13 = vadd.f32 1.0, %v1546_v15  ;;  %v1131_v18 = vmul.f32 0.5, %v3233_v12  ;;  %v3426_v20 = vmul.f32 %v3420_v2, %v1153_v5 }
 0x34b   : > { %v1516_v0 = vmul.f32 %v3378_v14, %v1436_v49  ;;  %2617 = vrcp.f32 %v1230_v40  ;;  %v1533_v61 = vsub.f32 1.0, %v1517_v21  ;;  %v1471_v33 = vmul.f32 %v1455_v37, %v3325_v30 }
 0x34c   : > { %v1359_v47 = vadd.f32 1.4214138, %v1343_v46  ;;  %v1578_v51 = vmul.f32 %v1562_v13, %v1130_v19  ;;  %v1152_v35 = vmul.f32 0.70710677, %v3287_v39  ;;  %v1579_v1 = vmul.f32 %v1563_v45, %v1131_v18 }
 0x34d   : > { %v1532_v32 = vsub.f32 1.0, %v1516_v0  ;;  %v1549_v34 = vmul.f32 %v1533_v61, %v3280_v57  ;;  %v1217_v14 = vmul.f32 0.3275911, %v3426_v20  ;;  %v1155_v52 = vmul.f32 0.70710677, %v3296_v28 }
 0x34e   : > { %v1375_v26 = vmul.f32 %v1359_v47, %v3399_v60  ;;  %vm1168_vm13 = vcmp.ge.f32.partialorder %v1152_v35, 0.0  ;;  %2393 = vmatprep.mubr.f32.mxu1 %v1578_v51  ;;  %v1132_v36 = vmul.f32 0.5, %v3247_v25  ;;  %v1133_v57 = vmul.f32 0.5, %v3242_v55 }
 0x34f   : > { %v1548_v12 = vmul.f32 %v1532_v32, %v3291_v3  ;;  %v1565_v23 = vadd.f32 1.0, %v1549_v34  ;;  %v1233_v54 = vadd.f32 1.0, %v1217_v14  ;;  %2394 = vmatmul.mubr.f32.gmra.mrb[20].mxu1 %v1579_v1  ;;  %v3437_v42 = vsel %vm1168_vm13, 1.0, %v2743_v4 }
 0x350   : > { %v1391_v58 = vadd.f32 -0.28449672, %v1375_v26  ;;  %vm1171_vm14 = vcmp.ge.f32.partialorder %v1155_v52, 0.0  ;;  %v1496_v24 = vmul.f32 1.442695, %v1471_v33  ;;  %v1200_v16 = vmul.f32 %v3437_v42, %v1152_v35 }
 0x351   : > { %v1564_v30 = vadd.f32 1.0, %v1548_v12  ;;  %2619 = vrcp.f32 %v1233_v54  ;;  %v3442_v48 = vsel %vm1171_vm14, 1.0, %v2743_v4  ;;  %v1154_v25 = vmul.f32 0.70710677, %v3299_v17 }
 0x352   : > { %v1581_v43 = vmul.f32 %v1565_v23, %v1133_v57  ;;  %v3446_v31 = vmul.f32 %v3442_v48, %v1155_v52  ;;  %v1407_v27 = vmul.f32 %v1391_v58, %v3399_v60  ;;  %v1216_v56 = vmul.f32 0.3275911, %v1200_v16 }
 0x353   : > { %v1580_v3 = vmul.f32 %v1564_v30, %v1132_v36  ;;  %vm1170_vm15 = vcmp.ge.f32.partialorder %v1154_v25, 0.0  ;;  %v1157_v55 = vmul.f32 0.70710677, %v3313_v41  ;;  %2621 = vpow2.f32 %v1496_v24 }
 0x354   : > { %v1219_v63 = vmul.f32 0.3275911, %v3446_v31  ;;  %v1454_v5 = vsub.f32 0.0, %v3407_v53  ;;  %v1232_v50 = vadd.f32 1.0, %v1216_v56  ;;  %v3453_v7 = vsel %vm1170_vm15, 1.0, %v2743_v4 }
 0x355   : > { %v2618_v6 = vpop.eup %2617  ;;  %2396 = vmatprep.mubr.f32.mxu1 %v1580_v3  ;;  %vm1173_vm2 = vcmp.ge.f32.partialorder %v1157_v55, 0.0  ;;  %v1423_v11 = vadd.f32 0.2548296, %v1407_v27  ;;  %v3456_v15 = vmul.f32 %v3453_v7, %v1154_v25  ;;  %v1457_v51 = vsub.f32 0.0, %v3426_v20 }
 0x356   : > { %v1262_v9 = vmul.f32 %v2618_v6, %v1230_v40  ;;  %2397 = vmatmul.mubr.f32.gmra.mrb[22].mxu1 %v1581_v43  ;;  %v1235_v10 = vadd.f32 1.0, %v1219_v63  ;;  %2623 = vrcp.f32 %v1232_v50  ;;  %v3459_v49 = vsel %vm1173_vm2, 1.0, %v2743_v4 }
 0x357   : > { %v1470_v40 = vmul.f32 %v1454_v5, %v3407_v53  ;;  %v1218_v45 = vmul.f32 0.3275911, %v3456_v15  ;;  %v3466_v21 = vmul.f32 %v3459_v49, %v1157_v55  ;;  %v1439_v13 = vmul.f32 %v1423_v11, %v3399_v60 }
 0x358   : > { %v1278_v22 = vsub.f32 2.0, %v1262_v9  ;;  %2625 = vrcp.f32 %v1235_v10  ;;  %v1156_v32 = vmul.f32 0.70710677, %v3316_v8  ;;  %v1456_v26 = vsub.f32 0.0, %v1200_v16 }
 0x359   : > { %v1234_v18 = vadd.f32 1.0, %v1218_v45  ;;  %v1221_v61 = vmul.f32 0.3275911, %v3466_v21  ;;  %v1494_v53 = vmul.f32 1.442695, %v1470_v40  ;;  %v1473_v23 = vmul.f32 %v1457_v51, %v3426_v20 }
 0x35a   : > { %v3461_v37 = vmul.f32 %v2618_v6, %v1278_v22  ;;  %vm1172_vm3 = vcmp.ge.f32.partialorder %v1156_v32, 0.0  ;;  %v1459_v58 = vsub.f32 0.0, %v3446_v31  ;;  %v1472_v25 = vmul.f32 %v1456_v26, %v1200_v16 }
 0x35b   : > { %v2620_v46 = vpop.eup %2619  ;;  %2627 = vrcp.f32 %v1234_v18  ;;  %v1237_v35 = vadd.f32 1.0, %v1221_v61  ;;  %v3477_v12 = vsel %vm1172_vm3, 1.0, %v2743_v4  ;;  %v1135_v43 = vmul.f32 0.5, %v3266_v38 }
 0x35c   : > { %v1310_v19 = vmul.f32 1.0614054, %v3461_v37  ;;  %v1265_v0 = vmul.f32 %v2620_v46, %v1233_v54  ;;  %v3481_v36 = vmul.f32 %v3477_v12, %v1156_v32  ;;  %v1500_v55 = vmul.f32 1.442695, %v1473_v23 }
 0x35d   : > { %v2622_v1 = vpop.eup %2621  ;;  %2629 = vrcp.f32 %v1237_v35  ;;  %v1475_v11 = vmul.f32 %v1459_v58, %v3446_v31  ;;  %v1458_v40 = vsub.f32 0.0, %v3456_v15  ;;  %v1498_v45 = vmul.f32 1.442695, %v1472_v25 }
 0x35e   : > { %v1326_v47 = vadd.f32 -1.4531521, %v1310_v19  ;;  %v1281_v33 = vsub.f32 2.0, %v1265_v0  ;;  %v1519_v14 = vmul.f32 %v2622_v1, %v1439_v13  ;;  %2631 = vpow2.f32 %v1494_v53 }
 0x35f   : > { %v1220_v4 = vmul.f32 0.3275911, %v3481_v36  ;;  %v1504_v32 = vmul.f32 1.442695, %v1475_v11  ;;  %v1474_v53 = vmul.f32 %v1458_v40, %v3456_v15  ;;  %v1461_v58 = vsub.f32 0.0, %v3466_v21 }
 0x360   : > { %v1342_v34 = vmul.f32 %v1326_v47, %v3461_v37  ;;  %v3474_v60 = vmul.f32 %v2620_v46, %v1281_v33  ;;  %v2624_v54 = vpop.eup %2623  ;;  %v1535_v20 = vsub.f32 1.0, %v1519_v14  ;;  %v1134_v46 = vmul.f32 0.5, %v3270_v44 }
 0x361   : > { %v1264_v3 = vmul.f32 %v2624_v54, %v1232_v50  ;;  %v1236_v63 = vadd.f32 1.0, %v1220_v4 }
 0x362   : > { %v1358_v52 = vadd.f32 1.4214138, %v1342_v34  ;;  %v1313_v30 = vmul.f32 1.0614054, %v3474_v60  ;;  %v2626_v57 = vpop.eup %2625 }
 0x363   : > { %v1267_v27 = vmul.f32 %v2626_v57, %v1235_v10  ;;  %v1280_v9 = vsub.f32 2.0, %v1264_v3  ;;  %2633 = vrcp.f32 %v1236_v63  ;;  %v1551_v10 = vmul.f32 %v1535_v20, %v3310_v62 }
 0x364   : > { %v1374_v24 = vmul.f32 %v1358_v52, %v3461_v37  ;;  %v1329_v6 = vadd.f32 -1.4531521, %v1313_v30  ;;  %2635 = vpow2.f32 %v1500_v55 }
 0x365   : > { %v1283_v22 = vsub.f32 2.0, %v1267_v27  ;;  %v3492_v50 = vmul.f32 %v2624_v54, %v1280_v9  ;;  %v2628_v38 = vpop.eup %2627  ;;  %2637 = vpow2.f32 %v1498_v45  ;;  %v1567_v26 = vadd.f32 1.0, %v1551_v10 }
 0x366   : > { %v1390_v56 = vadd.f32 -0.28449672, %v1374_v24  ;;  %v1345_v5 = vmul.f32 %v1329_v6, %v3474_v60  ;;  %v1266_v61 = vmul.f32 %v2628_v38, %v1234_v18  ;;  %2639 = vpow2.f32 %v1504_v32 }
 0x367   : > { %v3496_v13 = vmul.f32 %v2626_v57, %v1283_v22  ;;  %v1312_v31 = vmul.f32 1.0614054, %v3492_v50  ;;  %v2630_v33 = vpop.eup %2629  ;;  %v1583_v20 = vmul.f32 %v1567_v26, %v1135_v43  ;;  %v1477_v22 = vmul.f32 %v1461_v58, %v3466_v21 }
 0x368   : > { %v1406_v16 = vmul.f32 %v1390_v56, %v3461_v37  ;;  %v1361_v19 = vadd.f32 1.4214138, %v1345_v5  ;;  %v1282_v44 = vsub.f32 2.0, %v1266_v61  ;;  %v2632_v34 = vpop.eup %2631  ;;  %v1269_v23 = vmul.f32 %v2630_v33, %v1237_v35 }
 0x369   : > { %v1315_v51 = vmul.f32 1.0614054, %v3496_v13  ;;  %v1328_v1 = vadd.f32 -1.4531521, %v1312_v31 }
 0x36a   : > { %v1422_v0 = vadd.f32 0.2548296, %v1406_v16  ;;  %v1377_v47 = vmul.f32 %v1361_v19, %v3474_v60  ;;  %v3504_v30 = vmul.f32 %v2628_v38, %v1282_v44  ;;  %v1285_v24 = vsub.f32 2.0, %v1269_v23 }
 0x36b   : > { %v1331_v52 = vadd.f32 -1.4531521, %v1315_v51  ;;  %v1344_v18 = vmul.f32 %v1328_v1, %v3492_v50 }
 0x36c   : > { %v1438_v62 = vmul.f32 %v1422_v0, %v3461_v37  ;;  %v1393_v14 = vadd.f32 -0.28449672, %v1377_v47  ;;  %v1502_v37 = vmul.f32 1.442695, %v1474_v53  ;;  %v1314_v4 = vmul.f32 1.0614054, %v3504_v30 }
 0x36d   : > { %v1347_v57 = vmul.f32 %v1331_v52, %v3496_v13  ;;  %v1360_v25 = vadd.f32 1.4214138, %v1344_v18  ;;  %v3510_v27 = vmul.f32 %v2630_v33, %v1285_v24  ;;  %v2634_v56 = vpop.eup %2633  ;;  %v1460_v0 = vsub.f32 0.0, %v3481_v36 }
 0x36e   : > { %v1518_v54 = vmul.f32 %v2632_v34, %v1438_v62  ;;  %v1409_v15 = vmul.f32 %v1393_v14, %v3474_v60  ;;  %v1330_v5 = vadd.f32 -1.4531521, %v1314_v4  ;;  %v1268_v45 = vmul.f32 %v2634_v56, %v1236_v63  ;;  %v2636_v43 = vpop.eup %2635 }
 0x36f   : > { %v1363_v6 = vadd.f32 1.4214138, %v1347_v57  ;;  %v1376_v9 = vmul.f32 %v1360_v25, %v3492_v50  ;;  %v1317_v16 = vmul.f32 1.0614054, %v3510_v27  ;;  %v2638_v51 = vpop.eup %2637  ;;  %v1508_v53 = vmul.f32 1.442695, %v1477_v22 }
 0x370   : > { %v1534_v3 = vsub.f32 1.0, %v1518_v54  ;;  %v1425_v35 = vadd.f32 0.2548296, %v1409_v15  ;;  %v1346_v19 = vmul.f32 %v1330_v5, %v3504_v30  ;;  %v1284_v47 = vsub.f32 2.0, %v1268_v45  ;;  %v2640_v23 = vpop.eup %2639 }
 0x371   : > { %v1379_v40 = vmul.f32 %v1363_v6, %v3496_v13  ;;  %v1392_v10 = vadd.f32 -0.28449672, %v1376_v9  ;;  %v1333_v61 = vadd.f32 -1.4531521, %v1317_v16  ;;  %2641 = vpow2.f32 %v1502_v37 }
 0x372   : > { %v1550_v55 = vmul.f32 %v1534_v3, %v3402_v29  ;;  %v1441_v11 = vmul.f32 %v1425_v35, %v3474_v60  ;;  %v1362_v32 = vadd.f32 1.4214138, %v1346_v19  ;;  %v1300_v62 = vmul.f32 %v2634_v56, %v1284_v47 }
 0x373   : > { %v1395_v31 = vadd.f32 -0.28449672, %v1379_v40  ;;  %v1408_v60 = vmul.f32 %v1392_v10, %v3492_v50  ;;  %v1349_v63 = vmul.f32 %v1333_v61, %v3510_v27  ;;  %v1476_v26 = vmul.f32 %v1460_v0, %v3481_v36 }
 0x374   : > { %v1566_v38 = vadd.f32 1.0, %v1550_v55  ;;  %v1521_v29 = vmul.f32 %v2636_v43, %v1441_v11  ;;  %v1378_v34 = vmul.f32 %v1362_v32, %v3504_v30  ;;  %2643 = vpow2.f32 %v1508_v53 }
 0x375   : > { %v1411_v33 = vmul.f32 %v1395_v31, %v3496_v13  ;;  %v1424_v44 = vadd.f32 0.2548296, %v1408_v60  ;;  %v1365_v52 = vadd.f32 1.4214138, %v1349_v63  ;;  %v1506_v3 = vmul.f32 1.442695, %v1476_v26 }
 0x376   : > { %v1582_v21 = vmul.f32 %v1566_v38, %v1134_v46  ;;  %v1537_v1 = vsub.f32 1.0, %v1521_v29  ;;  %v1316_v46 = vmul.f32 1.0614054, %v1300_v62  ;;  %v1394_v18 = vadd.f32 -0.28449672, %v1378_v34 }
 0x377   : > { %v1427_v14 = vadd.f32 0.2548296, %v1411_v33  ;;  %v1440_v54 = vmul.f32 %v1424_v44, %v3492_v50  ;;  %v1381_v15 = vmul.f32 %v1365_v52, %v3510_v27  ;;  %2645 = vpow2.f32 %v1506_v3 }
 0x378   : > { %2399 = vmatprep.mubr.f32.mxu1 %v1582_v21  ;;  %v1332_v57 = vadd.f32 -1.4531521, %v1316_v46  ;;  %v1410_v24 = vmul.f32 %v1394_v18, %v3504_v30  ;;  %v1553_v36 = vmul.f32 %v1537_v1, %v3420_v2  ;;  %v1136_v2 = vmul.f32 0.5, %v3287_v39 }
 0x379   : > { %2400 = vmatmul.mubr.f32.gmra.mrb[24].mxu1 %v1583_v20  ;;  %v1443_v58 = vmul.f32 %v1427_v14, %v3496_v13  ;;  %v1520_v37 = vmul.f32 %v2638_v51, %v1440_v54  ;;  %v1397_v4 = vadd.f32 -0.28449672, %v1381_v15  ;;  %v1137_v43 = vmul.f32 0.5, %v3283_v59 }
 0x37a   : > { %v1348_v35 = vmul.f32 %v1332_v57, %v1300_v62  ;;  %v1426_v6 = vadd.f32 0.2548296, %v1410_v24  ;;  %v1569_v22 = vadd.f32 1.0, %v1553_v36  ;;  %v1138_v21 = vmul.f32 0.5, %v3299_v17 }
 0x37b   : > { %v1523_v25 = vmul.f32 %v2640_v23, %v1443_v58  ;;  %v1536_v20 = vsub.f32 1.0, %v1520_v37  ;;  %v1413_v50 = vmul.f32 %v1397_v4, %v3510_v27  ;;  %v2642_v5 = vpop.eup %2641  ;;  %v1140_v26 = vmul.f32 0.5, %v3316_v8 }
 0x37c   : > { %v1364_v55 = vadd.f32 1.4214138, %v1348_v35  ;;  %v1442_v9 = vmul.f32 %v1426_v6, %v3504_v30  ;;  %v1585_v30 = vmul.f32 %v1569_v22, %v1137_v43  ;;  %v1141_v14 = vmul.f32 0.5, %v3313_v41  ;;  %v1946_v35 = vld [vmem:[%s3566_s25 + $0x8] sm:$0xff] }
 0x37d   : > { %v1539_v56 = vsub.f32 1.0, %v1523_v25  ;;  %v1552_v13 = vmul.f32 %v1536_v20, %v3437_v42  ;;  %v1429_v11 = vadd.f32 0.2548296, %v1413_v50  ;;  %v3571_v25 = vld [vmem:[%s3714_s9] ss:$0 sm:$0xff] }
 0x37e   : > { %v1380_v40 = vmul.f32 %v1364_v55, %v1300_v62  ;;  %v1522_v45 = vmul.f32 %v2642_v5, %v1442_v9  ;;  %v2644_v0 = vpop.eup %2643  ;;  %v1948_v5 = vld [vmem:[%s3566_s25 + $0x18] sm:$0xff] }
 0x37f   : > { %v1568_v16 = vadd.f32 1.0, %v1552_v13  ;;  %v1555_v38 = vmul.f32 %v1539_v56, %v3442_v48  ;;  %v1445_v10 = vmul.f32 %v1429_v11, %v3510_v27  ;;  %v1139_v48 = vmul.f32 0.5, %v3296_v28  ;;  %v1945_v56 = vld [vmem:[%s3566_s25] sm:$0xff] }
 0x380   : > { %v1396_v19 = vadd.f32 -0.28449672, %v1380_v40  ;;  %v1538_v29 = vsub.f32 1.0, %v1522_v45  ;;  %v1947_v40 = vld [vmem:[%s3566_s25 + $0x10] sm:$0xff] }
 0x381   : > { %v1584_v42 = vmul.f32 %v1568_v16, %v1136_v2  ;;  %v1525_v31 = vmul.f32 %v2644_v0, %v1445_v10  ;;  %v1571_v51 = vadd.f32 1.0, %v1555_v38  ;;  %v2646_v32 = vpop.eup %2645  ;;  %v1950_v38 = vld [vmem:[%s3566_s25 + $0x28] sm:$0xff]  ;;  %v1949_v0 = vld [vmem:[%s3566_s25 + $0x20] sm:$0xff] }
 0x382   : > { %v1412_v61 = vmul.f32 %v1396_v19, %v1300_v62  ;;  %v1554_v47 = vmul.f32 %v1538_v29, %v3453_v7 }
 0x383   : > { %2402 = vmatprep.mubr.f32.mxu1 %v1584_v42  ;;  %v1541_v60 = vsub.f32 1.0, %v1525_v31  ;;  %v1587_v33 = vmul.f32 %v1571_v51, %v1139_v48 }
 0x384   : > { %v1428_v39 = vadd.f32 0.2548296, %v1412_v61  ;;  %2403 = vmatmul.mubr.f32.gmra.mrb[26].mxu1 %v1585_v30  ;;  %v1570_v59 = vadd.f32 1.0, %v1554_v47  ;;  %v1952_v61 = vld [vmem:[%s3566_s25 + $0x38] sm:$0xff] }
 0x385   : > { %v1557_v1 = vmul.f32 %v1541_v60, %v3459_v49 }
 0x386   : > { %v1444_v27 = vmul.f32 %v1428_v39, %v1300_v62  ;;  %v1586_v53 = vmul.f32 %v1570_v59, %v1138_v21  ;;  %v1951_v39 = vld [vmem:[%s3566_s25 + $0x30] sm:$0xff] }
 0x387   : > { %v1573_v34 = vadd.f32 1.0, %v1557_v1 }
 0x388   : > { %v1524_v63 = vmul.f32 %v2646_v32, %v1444_v27  ;;  %2405 = vmatprep.mubr.f32.mxu1 %v1586_v53  ;;  %v1954_v27 = vld [vmem:[%s3566_s25 + $0x48] sm:$0xff] }
 0x389   : > { %2406 = vmatmul.mubr.f32.gmra.mrb[28].mxu1 %v1587_v33  ;;  %v1589_v28 = vmul.f32 %v1573_v34, %v1141_v14  ;;  %v1953_v33 = vld [vmem:[%s3566_s25 + $0x40] sm:$0xff]  ;;  %v1956_v34 = vld [vmem:[%s3566_s25 + $0x58] sm:$0xff]  ;;  %v1955_v14 = vld [vmem:[%s3566_s25 + $0x50] sm:$0xff] }
 0x38a   : > { %v1540_v44 = vsub.f32 1.0, %v1524_v63 }
 0x38c   : > { %v1556_v7 = vmul.f32 %v1540_v44, %v3477_v12 }
 0x38e   : > { %v1572_v17 = vadd.f32 1.0, %v1556_v7 }
 0x390   : > { %v1588_v52 = vmul.f32 %v1572_v17, %v1140_v26 }
 0x392   : > { %2408 = vmatprep.mubr.f32.mxu1 %v1588_v52 }
 0x393   : > { %2409 = vmatmul.mubr.f32.gmra.mrb[30].mxu1 %v1589_v28 }
 0x416   : > { %v2389_v62 = vpop.f32.mrb[16].mxu1 }
 0x417   : > { %v1672_v46 = vpop.f32.mrb[17].mxu1 }
 0x418   : > { %2413 = vmatprep.mubr.msk.f32.mxu0 %vm932_vm1, %v1672_v46 }
 0x419   : > { %2414 = vmatmul.mubr.msk.f32.vlgmr.msra.gmra.mrb[16].mxu0 %vm932_vm1, %v2389_v62 }
 0x41a   : > { %v2392_v49 = vpop.f32.mrb[18].mxu1 }
 0x41b   : > { %v1682_v23 = vpop.f32.mrb[19].mxu1 }
 0x41c   : > { %2416 = vmatprep.mubr.msk.f32.mxu0 %vm932_vm1, %v1682_v23 }
 0x41d   : > { %2417 = vmatmul.mubr.msk.f32.gmra.mrb[18].mxu0 %vm932_vm1, %v2392_v49  ;;  %v1958_v49 = vld [vmem:[%s3566_s25 + $0x68] sm:$0xff] }
 0x422   : > { %v2395_v8 = vpop.f32.mrb[20].mxu1 }
 0x423   : > { %v1692_v12 = vpop.f32.mrb[21].mxu1 }
 0x424   : > { %2419 = vmatprep.mubr.msk.f32.mxu0 %vm932_vm1, %v1692_v12  ;;  %v1957_v12 = vld [vmem:[%s3566_s25 + $0x60] sm:$0xff] }
 0x425   : > { %2420 = vmatmul.mubr.msk.f32.gmra.mrb[20].mxu0 %vm932_vm1, %v2395_v8 }
 0x429   : > { %v2398_v41 = vpop.f32.mrb[22].mxu1 }
 0x42a   : > { %v1702_v54 = vpop.f32.mrb[23].mxu1 }
 0x42b   : > { %2422 = vmatprep.mubr.msk.f32.mxu0 %vm932_vm1, %v1702_v54 }
 0x42c   : > { %2423 = vmatmul.mubr.msk.f32.gmra.mrb[22].mxu0 %vm932_vm1, %v2398_v41 }
 0x44c   : > { %v2401_v18 = vpop.f32.mrb[24].mxu1 }
 0x44d   : > { %v1712_v58 = vpop.f32.mrb[25].mxu1 }
 0x44e   : > { %2425 = vmatprep.mubr.msk.f32.mxu0 %vm932_vm1, %v1712_v58 }
 0x44f   : > { %2426 = vmatmul.mubr.msk.f32.gmra.mrb[24].mxu0 %vm932_vm1, %v2401_v18 }
 0x457   : > { %v2404_v15 = vpop.f32.mrb[26].mxu1 }
 0x458   : > { %v1722_v57 = vpop.f32.mrb[27].mxu1 }
 0x459   : > { %2428 = vmatprep.mubr.msk.f32.mxu0 %vm932_vm1, %v1722_v57 }
 0x45a   : > { %2429 = vmatmul.mubr.msk.f32.gmra.mrb[26].mxu0 %vm932_vm1, %v2404_v15  ;;  %v1960_v15 = vld [vmem:[%s3566_s25 + $0x78] sm:$0xff] }
 0x45c   : > { %v2407_v37 = vpop.f32.mrb[28].mxu1 }
 0x45d   : > { %v1732_v24 = vpop.f32.mrb[29].mxu1 }
 0x45e   : > { %2431 = vmatprep.mubr.msk.f32.mxu0 %vm932_vm1, %v1732_v24  ;;  %v1959_v24 = vld [vmem:[%s3566_s25 + $0x70] sm:$0xff]  ;;  %s2647_s25 = scalar_lea.vmem %s3645_s17, 2048 }
 0x45f   : > { %2432 = vmatmul.mubr.msk.f32.gmra.mrb[28].mxu0 %vm932_vm1, %v2407_v37  ;;  %p2648_p0 = scmp.ne.s32.totalorder %s3645_s17, %s2647_s25  ;;  %p2655_p5 = scmp.lt.s32.totalorder %s2653_s29, %s2647_s25 }
 0x461   : > { %p2649_p1 = pnand %p2648_p0, %p2853_p3  ;;  %p2656_p6 = por %p2655_p5, %p2654_p4 }
 0x463   : > { %p2650_p2 = pneg %p2649_p1 }
 0x465   : > { %p2657_p7 = pnand %p2656_p6, %p2650_p2 }
 0x466   : > { %v2410_v3 = vpop.f32.mrb[30].mxu1 }
 0x467   : > { %v1742_v36 = vpop.f32.mrb[31].mxu1 }
 0x468   : > { %2434 = vmatprep.mubr.msk.f32.mxu0 %vm932_vm1, %v1742_v36 }
 0x469   : > { %2435 = vmatmul.mubr.msk.f32.gmra.mrb[30].mxu0 %vm932_vm1, %v2410_v3 }
 0x4ec   : > { %v2415_v4 = vpop.f32.mrb[16].mxu0 }
 0x4ed   : > { %v1969_v20 = vmul.f32 %v2415_v4, %v3571_v25  ;;  %v1866_v6 = vpop.f32.mrb[17].mxu0 }
 0x4ee   : > { %v1968_v50 = vmul.f32 %v3571_v25, %v1866_v6 }
 0x4ef   : > { %v1985_v55 = vadd.f32 %v1969_v20, %v1946_v35 }
 0x4f0   : > { %v1984_v13 = vadd.f32 %v1968_v50, %v1945_v56  ;;  %v2418_v9 = vpop.f32.mrb[18].mxu0 }
 0x4f1   : > { %2001 = vst.msk [vmem:[%s3580_s28 + $0x8] sm:$0xff] %vm478_vm0, %v1985_v55  ;;  %v1971_v22 = vmul.f32 %v2418_v9, %v3571_v25  ;;  %v1876_v11 = vpop.f32.mrb[19].mxu0 }
 0x4f2   : > { %2000 = vst.msk [vmem:[%s3580_s28] sm:$0xff] %vm478_vm0, %v1984_v13  ;;  %v1970_v2 = vmul.f32 %v3571_v25, %v1876_v11 }
 0x4f3   : > { %v1987_v16 = vadd.f32 %v1971_v22, %v1948_v5 }
 0x4f4   : > { %v1986_v45 = vadd.f32 %v1970_v2, %v1947_v40 }
 0x4f5   : > { %2003 = vst.msk [vmem:[%s3580_s28 + $0x18] sm:$0xff] %vm478_vm0, %v1987_v16 }
 0x4f6   : > { %2002 = vst.msk [vmem:[%s3580_s28 + $0x10] sm:$0xff] %vm478_vm0, %v1986_v45 }
 0x4f8   : > { %v2421_v43 = vpop.f32.mrb[20].mxu0 }
 0x4f9   : > { %v1973_v10 = vmul.f32 %v2421_v43, %v3571_v25  ;;  %v1886_v19 = vpop.f32.mrb[21].mxu0 }
 0x4fa   : > { %v1972_v42 = vmul.f32 %v3571_v25, %v1886_v19 }
 0x4fb   : > { %v1989_v29 = vadd.f32 %v1973_v10, %v1950_v38 }
 0x4fc   : > { %v1988_v30 = vadd.f32 %v1972_v42, %v1949_v0 }
 0x4fd   : > { %2005 = vst.msk [vmem:[%s3580_s28 + $0x28] sm:$0xff] %vm478_vm0, %v1989_v29 }
 0x4fe   : > { %2004 = vst.msk [vmem:[%s3580_s28 + $0x20] sm:$0xff] %vm478_vm0, %v1988_v30 }
 0x4ff   : > { %v2424_v31 = vpop.f32.mrb[22].mxu0 }
 0x500   : > { %v1975_v47 = vmul.f32 %v2424_v31, %v3571_v25  ;;  %v1896_v51 = vpop.f32.mrb[23].mxu0 }
 0x501   : > { %v1974_v21 = vmul.f32 %v3571_v25, %v1896_v51 }
 0x502   : > { %v1991_v59 = vadd.f32 %v1975_v47, %v1952_v61 }
 0x503   : > { %v1990_v60 = vadd.f32 %v1974_v21, %v1951_v39 }
 0x504   : > { %2007 = vst.msk [vmem:[%s3580_s28 + $0x38] sm:$0xff] %vm478_vm0, %v1991_v59 }
 0x505   : > { %2006 = vst.msk [vmem:[%s3580_s28 + $0x30] sm:$0xff] %vm478_vm0, %v1990_v60 }
 0x522   : > { %v2427_v48 = vpop.f32.mrb[24].mxu0 }
 0x523   : > { %v1977_v32 = vmul.f32 %v2427_v48, %v3571_v25  ;;  %v1906_v53 = vpop.f32.mrb[25].mxu0 }
 0x524   : > { %v1976_v63 = vmul.f32 %v3571_v25, %v1906_v53 }
 0x525   : > { %v1993_v1 = vadd.f32 %v1977_v32, %v1954_v27 }
 0x526   : > { %v1992_v44 = vadd.f32 %v1976_v63, %v1953_v33 }
 0x527   : > { %2009 = vst.msk [vmem:[%s3580_s28 + $0x48] sm:$0xff] %vm478_vm0, %v1993_v1 }
 0x528   : > { %2008 = vst.msk [vmem:[%s3580_s28 + $0x40] sm:$0xff] %vm478_vm0, %v1992_v44 }
 0x52d   : > { %v2430_v7 = vpop.f32.mrb[26].mxu0 }
 0x52e   : > { %v1979_v26 = vmul.f32 %v2430_v7, %v3571_v25  ;;  %v1916_v17 = vpop.f32.mrb[27].mxu0 }
 0x52f   : > { %v1978_v52 = vmul.f32 %v3571_v25, %v1916_v17 }
 0x530   : > { %v1995_v28 = vadd.f32 %v1979_v26, %v1956_v34 }
 0x531   : > { %v1994_v62 = vadd.f32 %v1978_v52, %v1955_v14 }
 0x532   : > { %2011 = vst.msk [vmem:[%s3580_s28 + $0x58] sm:$0xff] %vm478_vm0, %v1995_v28  ;;  %v2433_v46 = vpop.f32.mrb[28].mxu0 }
 0x533   : > { %2010 = vst.msk [vmem:[%s3580_s28 + $0x50] sm:$0xff] %vm478_vm0, %v1994_v62  ;;  %v1981_v23 = vmul.f32 %v2433_v46, %v3571_v25  ;;  %v1926_v8 = vpop.f32.mrb[29].mxu0 }
 0x534   : > { %v1980_v41 = vmul.f32 %v3571_v25, %v1926_v8 }
 0x535   : > { %v1997_v54 = vadd.f32 %v1981_v23, %v1958_v49 }
 0x536   : > { %v1996_v18 = vadd.f32 %v1980_v41, %v1957_v12 }
 0x537   : > { %2013 = vst.msk [vmem:[%s3580_s28 + $0x68] sm:$0xff] %vm478_vm0, %v1997_v54 }
 0x538   : > { %2012 = vst.msk [vmem:[%s3580_s28 + $0x60] sm:$0xff] %vm478_vm0, %v1996_v18 }
 0x53c   : > { %v2436_v58 = vpop.f32.mrb[30].mxu0 }
 0x53d   : > { %v1983_v57 = vmul.f32 %v2436_v58, %v3571_v25  ;;  %v1936_v37 = vpop.f32.mrb[31].mxu0 }
 0x53e   : > { %v1982_v3 = vmul.f32 %v3571_v25, %v1936_v37 }
 0x53f   : > { %v1999_v36 = vadd.f32 %v1983_v57, %v1960_v15 }
 0x540   : > { %v1998_v4 = vadd.f32 %v1982_v3, %v1959_v24 }
 0x541   : > { %2015 = vst.msk [vmem:[%s3580_s28 + $0x78] sm:$0xff] %vm478_vm0, %v1999_v36 }
 0x542   : > { %2014 = vst.msk [vmem:[%s3580_s28 + $0x70] sm:$0xff] %vm478_vm0, %v1998_v4 }
 0x543   : > { %2660 = shalt.err (!%p2657_p7)
}
 0x544   : > { %s2661_s24 = scalar_lea.hbm %s3642_s16, 2048  ;;  %s2665_s23 = scalar_lea.hbm %s3715_s10, 8192 }
 0x545   : > { %p2662_p9 = scmp.ne.s32.totalorder %s3642_s16, %s2661_s24  ;;  %p2666_p12 = scmp.lt.u32.totalorder %s3642_s16, %s3715_s10 }
 0x546   : > { %p2667_p13 = scmp.lt.u32.totalorder %s2665_s23, %s2661_s24  ;;  %p2669_p1 = scmp.lt.u32.totalorder %s2661_s24, %s3642_s16 }
 0x547   : > { %p2663_p10 = pnand %p2662_p9, %p2853_p3 }
 0x548   : > { %p2668_p0 = por %p2667_p13, %p2666_p12 }
 0x549   : > { %p2664_p11 = pneg %p2663_p10 }
 0x54a   : > { %p2670_p2 = por %p2669_p1, %p2668_p0 }
 0x54c   : > { %p2671_p4 = pnand %p2670_p2, %p2664_p11 }
 0x54e   : > { %2674 = shalt.err (!%p2671_p4)
}
 0x54f   : > { %s2745_s25 = smov 128   ;;  %s2746_s30 = smov 8  }
 0x550   : > { %2477 = dma.vmem_to_hbm [thread:$0]  (%p2853_p3), %s3645_s17, 2048, %s3642_s16, %s3653_s12, %s2745_s25, %s2745_s25, %s2746_s30  }
 0x551 PF: > { %p2483_p5 = scmp.ge.s32.totalorder %s2741_s20, 2  ;;  %s2047_s18 = sand.u32 1, %s2713_s13  }
 0x552   : > { %s2048_s29 = scalar_lea.sflag [#allocation3], %s2047_s18 }
 0x553   : > { %p2480_p6 = pnand %p2483_p5, %p2862_p8 }
 0x555   : > { %2708 = dma.done.wait (!%p2480_p6), %s2048_s29, 2048  }
 0x556   : > { %2710 = vsyncadd (!%p2480_p6), %s2048_s29, 4294965248  ;;  %s23_s20 = sadd.s32 1, %s2741_s20   ;;  %s3726_s16 = sld [smem:[#allocation5_spill]] }
 0x557   : > { %p20_p7 = scmp.ge.s32.totalorder %s23_s20, 6   ;;  %s3727_s17 = sld [smem:[#allocation6_spill]] }
 0x558   : > { %s3728_s18 = sld [smem:[#allocation7_spill]]  ;;  %s3729_s19 = sld [smem:[#allocation8_spill]] }
 0x559   : > { %s3730_s13 = smov %s2717_s14  ;;  %s3731_s14 = smov %s2721_s15 }
 0x55a   : > { %s3732_s15 = smov %s2871_s11  ;;  %22 = sbr.rel (!%p20_p7) target bundleno = 5 (0x5), region = 101 }
 0x561   :  { %2053 = vsyncpa [#allocation3], 1 }
 0x562   :  { %2055 = vsyncpa [#allocation3 + $0x1], 1 }

// kernel: block_forward.2
= control target key start
LH: loop header
LB: loop body
LE: loop exit
PB: predicated region body
PF: predicated region fallthrough
CT: control target
= control target key end

     0   :  { %s6472_s24 = smov 0   ;;  %s6474_s25 = smov 0   ;;  %s11801_s0 = inlined_call_operand.vmem [shape: f32[4,14,22,32], index: 0, kind: input, shape index: {}]   ;;  %s11802_s1 = inlined_call_operand.vmem [shape: f32[7,7,32], index: 1, kind: input, shape index: {}]   ;;  %s11803_s2 = inlined_call_operand.vmem [shape: f32[1,32], index: 2, kind: input, shape index: {}]   ;;  %s11804_s3 = inlined_call_operand.vmem [shape: f32[32,2], index: 3, kind: input, shape index: {}]   ;;  %s11805_s4 = inlined_call_operand.vmem [shape: f32[2,32], index: 4, kind: input, shape index: {}]   ;;  %s11806_s5 = inlined_call_operand.vmem [shape: f32[4,8,16,32], index: 5, kind: output, shape index: {0}]   ;;  %s11807_s6 = inlined_call_operand.vmem [shape: f32[4,8,16,32], index: 6, kind: output, shape index: {1}]   ;;  %s11808_s7 = inlined_call_operand.vmem [shape: f32[2,1,32], index: 7, kind: output, shape index: {2}]  }
   0x1   :  { %s6476_s26 = smov 0   ;;  %s6478_s27 = smov 0  }
   0x2   :  { %s6480_s28 = smov 0  }
   0x3 LB: > { %s27_s29 = sadd.s32 1, %s6418_s26  ;;  %s30_s30 = sadd.s32 1, %s6422_s27  ;;  %s6426_s28 = sphi %s6480_s28, %s18_s28   ;;  %s6422_s27 = sphi %s6478_s27, %s13036_s27   ;;  %s6418_s26 = sphi %s6476_s26, %s13035_s26   ;;  %s6414_s25 = sphi %s6474_s25, %s13034_s25   ;;  %s6410_s24 = sphi %s6472_s24, %s13033_s24  }
   0x4   : > { %p28_p0 = scmp.ge.s32.totalorder %s27_s29, 2  ;;  %p6290_p1 = scmp.ge.s32.totalorder %s6426_s28, 1 }
   0x5   : > { %p270_p2 = scmp.lt.s32.totalorder %s6426_s28, 5 }
   0x6   : > { %s13038_s29 = smov (%p28_p0, %s27_s29), 0  ;;  %s13040_s30 = smov (!%p28_p0, %s30_s30), %s6422_s27 }
   0x7   : > { %p271_p3 = pnand %p6290_p1, %p270_p2  ;;  %p32_p4 = scmp.ge.s32.totalorder %s13040_s30, 2 }
   0x9   : > { %s13042_s30 = smov (%p32_p4, %s13040_s30), 0  ;;  %274 = sbr.rel (%p271_p3) target bundleno = 1472 (0x5c0), region = 40 }
  0x10   : > { %s6291_s8 = sshll.u32 %s6414_s25, 1  ;;  %p343_p5 = scmp.lt.s32.totalorder %s6414_s25, 1  ;;  %v6507_v0 = vld [vmem:[%s11802_s1] sm:$0x7f]  ;;  %v6512_v1 = vld [vmem:[%s11802_s1 + $0x8] sm:$0x7f] }
  0x11   : > { %12065 = vst [vmem:[#allocation3_spill] sm:$0xff] %v6507_v0  ;;  %12066 = vst [vmem:[#allocation4_spill] sm:$0xff] %v6512_v1  ;;  %s317_s13 = sadd.s32 %s6410_s24, %s6291_s8  ;;  %v6518_v2 = vld [vmem:[%s11802_s1 + $0x10] sm:$0x7f]  ;;  %v6523_v3 = vld [vmem:[%s11802_s1 + $0x18] sm:$0x7f] }
  0x12   : > { %12067 = vst [vmem:[#allocation5_spill] sm:$0xff] %v6518_v2  ;;  %12068 = vst [vmem:[#allocation6_spill] sm:$0xff] %v6523_v3  ;;  %v6528_v4 = vld [vmem:[%s11802_s1 + $0x20] sm:$0x7f]  ;;  %p318_p6 = scmp.lt.s32.totalorder %s317_s13, 3  ;;  %s13044_s25 = smov (!%p343_p5, %s6414_s25), 1 }
  0x13   : > { %12069 = vst [vmem:[#allocation7_spill] sm:$0xff] %v6528_v4  ;;  %v6533_v5 = vld [vmem:[%s11802_s1 + $0x28] sm:$0x7f]  ;;  %v6538_v6 = vld [vmem:[%s11802_s1 + $0x30] sm:$0x7f]  ;;  %s345_s10 = scalar_lea.vmem %s11808_s7, %s13044_s25  ;;  %p6299_p7 = scmp.ne.s32.totalorder %s6410_s24, 0 }
  0x14   : > { %12070 = vst [vmem:[#allocation8_spill] sm:$0xff] %v6533_v5  ;;  %12071 = vst [vmem:[#allocation9_spill] sm:$0xff] %v6538_v6  ;;  %s13046_s13 = smov (!%p318_p6, %s317_s13), 3  ;;  %vm399_vm0 = vcmask (!%p6299_p7), 253952   ;;  %v6428_v49 = vmov (!%p6299_p7), 0.0  }
  0x15   : > { %s6339_s11 = smul.u32 336, %s13046_s13  ;;  %s6308_s12 = sshll.u32 %s13046_s13, 7  ;;  %400 = vst.msk [vmem:[#allocation2] sm:$0x1] (!%p6299_p7), %vm399_vm0, %v6428_v49 }
  0x16   : > { %s6549_s16 = scalar_lea.vmem %s11806_s5, %s6308_s12  ;;  %s6554_s19 = scalar_lea.vmem %s11807_s6, %s6308_s12 }
  0x17   : > { %s6559_s22 = scalar_lea.vmem %s11801_s0, %s6339_s11 }
  0x18   : > { %v6562_v7 = vld [vmem:[%s6559_s22] sm:$0xff]  ;;  %v6565_v8 = vld [vmem:[%s6559_s22 + $0x8] sm:$0xff]  ;;  %v6568_v9 = vld [vmem:[%s6559_s22 + $0x10] sm:$0x3f] }
  0x19   : > { %12072 = vst [vmem:[#allocation10_spill] sm:$0xff] %v6562_v7  ;;  %12073 = vst [vmem:[#allocation11_spill] sm:$0xff] %v6565_v8  ;;  %v6571_v10 = vld [vmem:[%s6559_s22 + $0x18] sm:$0xff]  ;;  %v6574_v11 = vld [vmem:[%s6559_s22 + $0x20] sm:$0xff] }
  0x1a   : > { %12074 = vst [vmem:[#allocation12_spill] sm:$0xff] %v6568_v9  ;;  %12075 = vst [vmem:[#allocation13_spill] sm:$0xff] %v6571_v10  ;;  %v6577_v12 = vld [vmem:[%s6559_s22 + $0x28] sm:$0x3f]  ;;  %v6580_v13 = vld [vmem:[%s6559_s22 + $0x30] sm:$0xff] }
  0x1b   : > { %12076 = vst [vmem:[#allocation14_spill] sm:$0xff] %v6574_v11  ;;  %12077 = vst [vmem:[#allocation15_spill] sm:$0xff] %v6577_v12  ;;  %v6583_v14 = vld [vmem:[%s6559_s22 + $0x38] sm:$0xff]  ;;  %v6586_v15 = vld [vmem:[%s6559_s22 + $0x40] sm:$0x3f] }
  0x1c   : > { %12078 = vst [vmem:[#allocation16_spill] sm:$0xff] %v6580_v13  ;;  %12079 = vst [vmem:[#allocation17_spill] sm:$0xff] %v6583_v14  ;;  %v6589_v16 = vld [vmem:[%s6559_s22 + $0x48] sm:$0xff]  ;;  %v6592_v17 = vld [vmem:[%s6559_s22 + $0x50] sm:$0xff] }
  0x1d   : > { %12080 = vst [vmem:[#allocation18_spill] sm:$0xff] %v6586_v15  ;;  %12081 = vst [vmem:[#allocation19_spill] sm:$0xff] %v6589_v16  ;;  %v6595_v18 = vld [vmem:[%s6559_s22 + $0x58] sm:$0x3f]  ;;  %v6598_v19 = vld [vmem:[%s6559_s22 + $0x60] sm:$0xff] }
  0x1e   : > { %12082 = vst [vmem:[#allocation20_spill] sm:$0xff] %v6592_v17  ;;  %12083 = vst [vmem:[#allocation21_spill] sm:$0xff] %v6595_v18  ;;  %v6601_v20 = vld [vmem:[%s6559_s22 + $0x68] sm:$0xff]  ;;  %v6604_v21 = vld [vmem:[%s6559_s22 + $0x70] sm:$0x3f] }
  0x1f   : > { %12084 = vst [vmem:[#allocation22_spill] sm:$0xff] %v6598_v19  ;;  %12085 = vst [vmem:[#allocation23_spill] sm:$0xff] %v6601_v20  ;;  %v6607_v22 = vld [vmem:[%s6559_s22 + $0x78] sm:$0xff]  ;;  %v6610_v23 = vld [vmem:[%s6559_s22 + $0x80] sm:$0xff] }
  0x20   : > { %12086 = vst [vmem:[#allocation24_spill] sm:$0xff] %v6604_v21  ;;  %12087 = vst [vmem:[#allocation25_spill] sm:$0xff] %v6607_v22  ;;  %v6613_v24 = vld [vmem:[%s6559_s22 + $0x88] sm:$0x3f]  ;;  %v6616_v25 = vld [vmem:[%s6559_s22 + $0x90] sm:$0xff] }
  0x21   : > { %12088 = vst [vmem:[#allocation26_spill] sm:$0xff] %v6610_v23  ;;  %12089 = vst [vmem:[#allocation27_spill] sm:$0xff] %v6613_v24  ;;  %v6619_v26 = vld [vmem:[%s6559_s22 + $0x98] sm:$0xff]  ;;  %v6622_v27 = vld [vmem:[%s6559_s22 + $0xa0] sm:$0x3f] }
  0x22   : > { %12090 = vst [vmem:[#allocation28_spill] sm:$0xff] %v6616_v25  ;;  %12091 = vst [vmem:[#allocation29_spill] sm:$0xff] %v6619_v26  ;;  %v6625_v28 = vld [vmem:[%s6559_s22 + $0xa8] sm:$0xff]  ;;  %v6628_v29 = vld [vmem:[%s6559_s22 + $0xb0] sm:$0xff] }
  0x23   : > { %12092 = vst [vmem:[#allocation30_spill] sm:$0xff] %v6622_v27  ;;  %12093 = vst [vmem:[#allocation31_spill] sm:$0xff] %v6625_v28  ;;  %v6631_v30 = vld [vmem:[%s6559_s22 + $0xb8] sm:$0x3f]  ;;  %v6634_v31 = vld [vmem:[%s6559_s22 + $0xc0] sm:$0xff] }
  0x24   : > { %12094 = vst [vmem:[#allocation32_spill] sm:$0xff] %v6628_v29  ;;  %12095 = vst [vmem:[#allocation33_spill] sm:$0xff] %v6631_v30  ;;  %v6637_v32 = vld [vmem:[%s6559_s22 + $0xc8] sm:$0xff]  ;;  %v6640_v33 = vld [vmem:[%s6559_s22 + $0xd0] sm:$0x3f] }
  0x25   : > { %12096 = vst [vmem:[#allocation34_spill] sm:$0xff] %v6634_v31  ;;  %12097 = vst [vmem:[#allocation35_spill] sm:$0xff] %v6637_v32  ;;  %v6643_v34 = vld [vmem:[%s6559_s22 + $0xd8] sm:$0xff]  ;;  %v6646_v35 = vld [vmem:[%s6559_s22 + $0xe0] sm:$0xff] }
  0x26   : > { %12098 = vst [vmem:[#allocation36_spill] sm:$0xff] %v6640_v33  ;;  %12099 = vst [vmem:[#allocation37_spill] sm:$0xff] %v6643_v34  ;;  %v6649_v36 = vld [vmem:[%s6559_s22 + $0xe8] sm:$0x3f]  ;;  %v6652_v37 = vld [vmem:[%s6559_s22 + $0xf0] sm:$0xff] }
  0x27   : > { %12100 = vst [vmem:[#allocation38_spill] sm:$0xff] %v6646_v35  ;;  %12101 = vst [vmem:[#allocation39_spill] sm:$0xff] %v6649_v36  ;;  %v6655_v38 = vld [vmem:[%s6559_s22 + $0xf8] sm:$0xff]  ;;  %v6658_v39 = vld [vmem:[%s6559_s22 + $0x100] sm:$0x3f]  ;;  %398 = sbr.rel (%p6299_p7) target bundleno = 46 (0x2e), region = 44 }
  0x28   : > { %12102 = vst [vmem:[#allocation40_spill] sm:$0xff] %v6652_v37  ;;  %12103 = vst [vmem:[#allocation41_spill] sm:$0xff] %v6655_v38  ;;  %v6661_v40 = vld [vmem:[%s6559_s22 + $0x108] sm:$0xff]  ;;  %v6664_v41 = vld [vmem:[%s6559_s22 + $0x110] sm:$0xff] }
  0x29   : > { %12104 = vst [vmem:[#allocation42_spill] sm:$0xff] %v6658_v39  ;;  %12105 = vst [vmem:[#allocation43_spill] sm:$0xff] %v6661_v40  ;;  %v6667_v42 = vld [vmem:[%s6559_s22 + $0x118] sm:$0x3f]  ;;  %v6670_v43 = vld [vmem:[%s6559_s22 + $0x120] sm:$0xff] }
  0x2a   : > { %12106 = vst [vmem:[#allocation44_spill] sm:$0xff] %v6664_v41  ;;  %12107 = vst [vmem:[#allocation45_spill] sm:$0xff] %v6667_v42  ;;  %v6673_v44 = vld [vmem:[%s6559_s22 + $0x128] sm:$0xff]  ;;  %v6676_v45 = vld [vmem:[%s6559_s22 + $0x130] sm:$0x3f] }
  0x2b   : > { %12108 = vst [vmem:[#allocation46_spill] sm:$0xff] %v6670_v43  ;;  %12109 = vst [vmem:[#allocation47_spill] sm:$0xff] %v6673_v44  ;;  %v6679_v46 = vld [vmem:[%s6559_s22 + $0x138] sm:$0xff]  ;;  %v6682_v47 = vld [vmem:[%s6559_s22 + $0x140] sm:$0xff] }
  0x2c   : > { %12110 = vst [vmem:[#allocation48_spill] sm:$0xff] %v6676_v45  ;;  %12111 = vst [vmem:[#allocation49_spill] sm:$0xff] %v6679_v46  ;;  %v6685_v48 = vld [vmem:[%s6559_s22 + $0x148] sm:$0x3f] }
  0x2d   : > { %12112 = vst [vmem:[#allocation50_spill] sm:$0xff] %v6682_v47  ;;  %12113 = vst [vmem:[#allocation51_spill] sm:$0xff] %v6685_v48 }
  0x2e PF: > { %v401_v50 = vlaneseq  ;;  %vm705_vm1 = vcmask 1046528   ;;  %vm1574_vm2 = vcmask 1045504   ;;  %vm2443_vm3 = vcmask 1044480   ;;  %p6301_p8 = scmp.ne.s32.totalorder %s6410_s24, 1 }
  0x2f   : > { %vm3312_vm4 = vcmask 1043456   ;;  %vm4181_vm5 = vcmask 1042432   ;;  %vm5050_vm6 = vcmask 1041408   ;;  %vm5890_vm7 = vcmask 261120  }
  0x30   : > { %v6688_v51 = vshrl.u32 %v401_v50, 7  ;;  %vm5907_vm8 = vcmask 261123   ;;  %vm5910_vm9 = vcmask 256000   ;;  %vm5972_vm10 = vcmask 253952  }
  0x31   : > { %vm6430_vm11 = vmmov (!%p6301_p8), 0   ;;  %vm6059_vm12 = vcmask (!%p6301_p8), 15360  }
  0x32   : > { %12114 = vst [vmem:[#allocation52_spill] sm:$0xff] %v6688_v51  ;;  %v403_v52 = vsub.s32 0, %v6688_v51  ;;  %v6693_v54 = vsub.s32 1, %v6688_v51 }
  0x34   : > { %v404_v53 = vrot.slane %v6507_v0, %v403_v52  ;;  %12115 = vst [vmem:[#allocation53_spill] sm:$0xff] %v6693_v54  ;;  %v440_v55 = vrot.slane %v6512_v1, %v403_v52  ;;  %v6697_v56 = vrot.slane %v6518_v2, %v403_v52  ;;  %v6700_v57 = vrot.slane %v6523_v3, %v403_v52 }
  0x35   : > { %v6703_v58 = vrot.slane %v6528_v4, %v403_v52  ;;  %v6706_v59 = vrot.slane %v6533_v5, %v403_v52  ;;  %v6711_v62 = vrot.slane %v6538_v6, %v403_v52  ;;  %v6715_v63 = vrot.slane %v6507_v0, %v6693_v54 }
  0x36   : > { %12116 = vst [vmem:[#allocation54_spill] sm:$0xff] %v6700_v57  ;;  %v405_v60 = vmul.f32 %v404_v53, %v6562_v7  ;;  %v406_v61 = vmul.f32 %v404_v53, %v6565_v8  ;;  %v407_v49 = vmul.f32 %v404_v53, %v6571_v10  ;;  %v408_v50 = vmul.f32 %v404_v53, %v6574_v11 }
  0x37   : > { %12117 = vst [vmem:[#allocation55_spill] sm:$0xff] %v6703_v58  ;;  %12118 = vst [vmem:[#allocation56_spill] sm:$0xff] %v6706_v59  ;;  %v409_v48 = vmul.f32 %v404_v53, %v6580_v13  ;;  %v410_v45 = vmul.f32 %v404_v53, %v6583_v14  ;;  %v411_v42 = vmul.f32 %v404_v53, %v6589_v16 }
  0x38   : > { %12119 = vst [vmem:[#allocation57_spill] sm:$0xff] %v6711_v62  ;;  %12120 = vst [vmem:[#allocation58_spill] sm:$0xff] %v6715_v63  ;;  %v412_v39 = vmul.f32 %v404_v53, %v6592_v17  ;;  %v413_v36 = vmul.f32 %v404_v53, %v6598_v19  ;;  %v414_v52 = vmul.f32 %v404_v53, %v6601_v20 }
  0x39   : > { %v415_v33 = vmul.f32 %v404_v53, %v6607_v22  ;;  %v416_v0 = vmul.f32 %v404_v53, %v6610_v23  ;;  %v417_v51 = vmul.f32 %v404_v53, %v6616_v25  ;;  %v418_v6 = vmul.f32 %v404_v53, %v6619_v26 }
  0x3a   : > { %v419_v5 = vmul.f32 %v404_v53, %v6625_v28  ;;  %v420_v4 = vmul.f32 %v404_v53, %v6628_v29  ;;  %v441_v3 = vmul.f32 %v440_v55, %v6571_v10  ;;  %v442_v2 = vmul.f32 %v440_v55, %v6574_v11 }
  0x3b   : > { %v443_v1 = vmul.f32 %v440_v55, %v6580_v13  ;;  %v444_v54 = vmul.f32 %v440_v55, %v6583_v14  ;;  %v445_v30 = vmul.f32 %v440_v55, %v6589_v16  ;;  %v446_v27 = vmul.f32 %v440_v55, %v6592_v17 }
  0x3c   : > { %v447_v24 = vmul.f32 %v440_v55, %v6598_v19  ;;  %v448_v21 = vmul.f32 %v440_v55, %v6601_v20  ;;  %v449_v18 = vmul.f32 %v440_v55, %v6607_v22  ;;  %v450_v53 = vmul.f32 %v440_v55, %v6610_v23 }
  0x3d   : > { %v451_v15 = vmul.f32 %v440_v55, %v6616_v25  ;;  %v452_v12 = vmul.f32 %v440_v55, %v6619_v26  ;;  %v453_v11 = vmul.f32 %v440_v55, %v6625_v28  ;;  %v454_v10 = vmul.f32 %v440_v55, %v6628_v29 }
  0x3e   : > { %v455_v9 = vmul.f32 %v440_v55, %v6634_v31  ;;  %v456_v8 = vmul.f32 %v440_v55, %v6637_v32  ;;  %v457_v63 = vadd.f32 %v441_v3, %v405_v60  ;;  %v458_v7 = vadd.f32 %v442_v2, %v406_v61 }
  0x3f   : > { %v459_v47 = vadd.f32 %v443_v1, %v407_v49  ;;  %v460_v46 = vadd.f32 %v444_v54, %v408_v50  ;;  %v461_v62 = vadd.f32 %v445_v30, %v409_v48  ;;  %v462_v44 = vadd.f32 %v446_v27, %v410_v45  ;;  %v12123_v27 = vld [vmem:[#allocation38_spill] sm:$0xff] }
  0x40   : > { %v463_v43 = vadd.f32 %v447_v24, %v411_v42  ;;  %v464_v59 = vadd.f32 %v448_v21, %v412_v39  ;;  %v465_v41 = vadd.f32 %v449_v18, %v413_v36  ;;  %v466_v40 = vadd.f32 %v450_v53, %v414_v52  ;;  %v12122_v21 = vld [vmem:[#allocation37_spill] sm:$0xff] }
  0x41   : > { %v467_v58 = vadd.f32 %v451_v15, %v415_v33  ;;  %v468_v38 = vadd.f32 %v452_v12, %v416_v0  ;;  %v469_v37 = vadd.f32 %v453_v11, %v417_v51  ;;  %v470_v57 = vadd.f32 %v454_v10, %v418_v6  ;;  %v12121_v11 = vld [vmem:[#allocation34_spill] sm:$0xff] }
  0x42   : > { %v471_v35 = vadd.f32 %v455_v9, %v419_v5  ;;  %v472_v34 = vadd.f32 %v456_v8, %v420_v4  ;;  %v477_v31 = vmul.f32 %v6697_v56, %v6580_v13  ;;  %v478_v2 = vmul.f32 %v6697_v56, %v6583_v14  ;;  %v12124_v13 = vld [vmem:[#allocation54_spill] sm:$0xff] }
  0x43   : > { %v479_v1 = vmul.f32 %v6697_v56, %v6589_v16  ;;  %v480_v3 = vmul.f32 %v6697_v56, %v6592_v17  ;;  %v481_v15 = vmul.f32 %v6697_v56, %v6598_v19  ;;  %v482_v0 = vmul.f32 %v6697_v56, %v6601_v20 }
  0x44   : > { %v483_v4 = vmul.f32 %v6697_v56, %v6607_v22  ;;  %v484_v5 = vmul.f32 %v6697_v56, %v6610_v23  ;;  %v485_v6 = vmul.f32 %v6697_v56, %v6616_v25  ;;  %v486_v8 = vmul.f32 %v6697_v56, %v6619_v26 }
  0x45   : > { %v487_v9 = vmul.f32 %v6697_v56, %v6625_v28  ;;  %v488_v10 = vmul.f32 %v6697_v56, %v6628_v29  ;;  %v489_v12 = vmul.f32 %v6697_v56, %v12121_v11  ;;  %v490_v18 = vmul.f32 %v6697_v56, %v6637_v32 }
  0x46   : > { %v491_v24 = vmul.f32 %v6697_v56, %v12122_v21  ;;  %v492_v30 = vmul.f32 %v6697_v56, %v12123_v27  ;;  %v493_v33 = vadd.f32 %v477_v31, %v457_v63  ;;  %v494_v36 = vadd.f32 %v478_v2, %v458_v7 }
  0x47   : > { %v495_v39 = vadd.f32 %v479_v1, %v459_v47  ;;  %v496_v42 = vadd.f32 %v480_v3, %v460_v46  ;;  %v497_v45 = vadd.f32 %v481_v15, %v461_v62  ;;  %v498_v48 = vadd.f32 %v482_v0, %v462_v44  ;;  %v12125_v47 = vld [vmem:[#allocation37_spill] sm:$0xff] }
  0x48   : > { %v499_v51 = vadd.f32 %v483_v4, %v463_v43  ;;  %v500_v54 = vadd.f32 %v484_v5, %v464_v59  ;;  %v501_v55 = vadd.f32 %v485_v6, %v465_v41  ;;  %v502_v60 = vadd.f32 %v486_v8, %v466_v40  ;;  %v12127_v62 = vld [vmem:[#allocation41_spill] sm:$0xff] }
  0x49   : > { %v503_v61 = vadd.f32 %v487_v9, %v467_v58  ;;  %v504_v49 = vadd.f32 %v488_v10, %v468_v38  ;;  %v505_v50 = vadd.f32 %v489_v12, %v469_v37  ;;  %v506_v52 = vadd.f32 %v490_v18, %v470_v57  ;;  %v12126_v58 = vld [vmem:[#allocation40_spill] sm:$0xff] }
  0x4a   : > { %v507_v53 = vadd.f32 %v491_v24, %v471_v35  ;;  %v508_v14 = vadd.f32 %v492_v30, %v472_v34  ;;  %v513_v21 = vmul.f32 %v12124_v13, %v6589_v16  ;;  %v514_v7 = vmul.f32 %v12124_v13, %v6592_v17  ;;  %v12128_v16 = vld [vmem:[#allocation55_spill] sm:$0xff] }
  0x4b   : > { %v515_v31 = vmul.f32 %v12124_v13, %v6598_v19  ;;  %v516_v43 = vmul.f32 %v12124_v13, %v6601_v20  ;;  %v517_v40 = vmul.f32 %v12124_v13, %v6607_v22  ;;  %v518_v37 = vmul.f32 %v12124_v13, %v6610_v23 }
  0x4c   : > { %v519_v34 = vmul.f32 %v12124_v13, %v6616_v25  ;;  %v520_v35 = vmul.f32 %v12124_v13, %v6619_v26  ;;  %v521_v38 = vmul.f32 %v12124_v13, %v6625_v28  ;;  %v522_v41 = vmul.f32 %v12124_v13, %v6628_v29 }
  0x4d   : > { %v523_v44 = vmul.f32 %v12124_v13, %v12121_v11  ;;  %v524_v46 = vmul.f32 %v12124_v13, %v6637_v32  ;;  %v525_v56 = vmul.f32 %v12124_v13, %v12125_v47  ;;  %v526_v57 = vmul.f32 %v12124_v13, %v12123_v27 }
  0x4e   : > { %v527_v59 = vmul.f32 %v12124_v13, %v12126_v58  ;;  %v528_v63 = vmul.f32 %v12124_v13, %v12127_v62  ;;  %v529_v2 = vadd.f32 %v513_v21, %v493_v33  ;;  %v530_v1 = vadd.f32 %v514_v7, %v494_v36 }
  0x4f   : > { %v531_v3 = vadd.f32 %v515_v31, %v495_v39  ;;  %v532_v15 = vadd.f32 %v516_v43, %v496_v42  ;;  %v533_v0 = vadd.f32 %v517_v40, %v497_v45  ;;  %v534_v4 = vadd.f32 %v518_v37, %v498_v48 }
  0x50   : > { %v535_v5 = vadd.f32 %v519_v34, %v499_v51  ;;  %v536_v6 = vadd.f32 %v520_v35, %v500_v54  ;;  %v537_v8 = vadd.f32 %v521_v38, %v501_v55  ;;  %v538_v9 = vadd.f32 %v522_v41, %v502_v60  ;;  %v12129_v55 = vld [vmem:[#allocation40_spill] sm:$0xff] }
  0x51   : > { %v539_v10 = vadd.f32 %v523_v44, %v503_v61  ;;  %v540_v12 = vadd.f32 %v524_v46, %v504_v49  ;;  %v541_v18 = vadd.f32 %v525_v56, %v505_v50  ;;  %v542_v24 = vadd.f32 %v526_v57, %v506_v52  ;;  %v12130_v49 = vld [vmem:[#allocation43_spill] sm:$0xff]  ;;  %v12131_v52 = vld [vmem:[#allocation44_spill] sm:$0xff] }
  0x52   : > { %v543_v30 = vadd.f32 %v527_v59, %v507_v53  ;;  %v544_v17 = vadd.f32 %v528_v63, %v508_v14  ;;  %v549_v58 = vmul.f32 %v12128_v16, %v6598_v19  ;;  %v550_v13 = vmul.f32 %v12128_v16, %v6601_v20  ;;  %v12132_v19 = vld [vmem:[#allocation56_spill] sm:$0xff] }
  0x53   : > { %v551_v21 = vmul.f32 %v12128_v16, %v6607_v22  ;;  %v552_v33 = vmul.f32 %v12128_v16, %v6610_v23  ;;  %v553_v36 = vmul.f32 %v12128_v16, %v6616_v25  ;;  %v554_v39 = vmul.f32 %v12128_v16, %v6619_v26 }
  0x54   : > { %v555_v14 = vmul.f32 %v12128_v16, %v6625_v28  ;;  %v556_v42 = vmul.f32 %v12128_v16, %v6628_v29  ;;  %v557_v45 = vmul.f32 %v12128_v16, %v12121_v11  ;;  %v558_v48 = vmul.f32 %v12128_v16, %v6637_v32 }
  0x55   : > { %v559_v51 = vmul.f32 %v12128_v16, %v12125_v47  ;;  %v560_v54 = vmul.f32 %v12128_v16, %v12123_v27  ;;  %v561_v60 = vmul.f32 %v12128_v16, %v12129_v55  ;;  %v562_v61 = vmul.f32 %v12128_v16, %v12127_v62 }
  0x56   : > { %v563_v50 = vmul.f32 %v12128_v16, %v12130_v49  ;;  %v564_v53 = vmul.f32 %v12128_v16, %v12131_v52  ;;  %v565_v7 = vadd.f32 %v549_v58, %v529_v2  ;;  %v566_v31 = vadd.f32 %v550_v13, %v530_v1 }
  0x57   : > { %v567_v43 = vadd.f32 %v551_v21, %v531_v3  ;;  %v568_v40 = vadd.f32 %v552_v33, %v532_v15  ;;  %v569_v37 = vadd.f32 %v553_v36, %v533_v0  ;;  %v570_v34 = vadd.f32 %v554_v39, %v534_v4 }
  0x58   : > { %v571_v35 = vadd.f32 %v555_v14, %v535_v5  ;;  %v572_v38 = vadd.f32 %v556_v42, %v536_v6  ;;  %v573_v41 = vadd.f32 %v557_v45, %v537_v8  ;;  %v574_v44 = vadd.f32 %v558_v48, %v538_v9  ;;  %v12133_v8 = vld [vmem:[#allocation43_spill] sm:$0xff] }
  0x59   : > { %v575_v46 = vadd.f32 %v559_v51, %v539_v10  ;;  %v576_v56 = vadd.f32 %v560_v54, %v540_v12  ;;  %v577_v57 = vadd.f32 %v561_v60, %v541_v18  ;;  %v578_v59 = vadd.f32 %v562_v61, %v542_v24  ;;  %v12134_v12 = vld [vmem:[#allocation46_spill] sm:$0xff]  ;;  %v12135_v24 = vld [vmem:[#allocation47_spill] sm:$0xff] }
  0x5a   : > { %v579_v63 = vadd.f32 %v563_v50, %v543_v30  ;;  %v580_v20 = vadd.f32 %v564_v53, %v544_v17  ;;  %v585_v49 = vmul.f32 %v12132_v19, %v6607_v22  ;;  %v586_v16 = vmul.f32 %v12132_v19, %v6610_v23  ;;  %v12136_v22 = vld [vmem:[#allocation57_spill] sm:$0xff] }
  0x5b   : > { %v587_v58 = vmul.f32 %v12132_v19, %v6616_v25  ;;  %v588_v2 = vmul.f32 %v12132_v19, %v6619_v26  ;;  %v589_v1 = vmul.f32 %v12132_v19, %v6625_v28  ;;  %v590_v3 = vmul.f32 %v12132_v19, %v6628_v29 }
  0x5c   : > { %v591_v17 = vmul.f32 %v12132_v19, %v12121_v11  ;;  %v592_v15 = vmul.f32 %v12132_v19, %v6637_v32  ;;  %v593_v0 = vmul.f32 %v12132_v19, %v12125_v47  ;;  %v594_v4 = vmul.f32 %v12132_v19, %v12123_v27 }
  0x5d   : > { %v595_v5 = vmul.f32 %v12132_v19, %v12129_v55  ;;  %v596_v6 = vmul.f32 %v12132_v19, %v12127_v62  ;;  %v597_v9 = vmul.f32 %v12132_v19, %v12133_v8  ;;  %v598_v10 = vmul.f32 %v12132_v19, %v12131_v52 }
  0x5e   : > { %v599_v18 = vmul.f32 %v12132_v19, %v12134_v12  ;;  %v600_v30 = vmul.f32 %v12132_v19, %v12135_v24  ;;  %v601_v13 = vadd.f32 %v585_v49, %v565_v7  ;;  %v602_v21 = vadd.f32 %v586_v16, %v566_v31 }
  0x5f   : > { %v603_v33 = vadd.f32 %v587_v58, %v567_v43  ;;  %v604_v36 = vadd.f32 %v588_v2, %v568_v40  ;;  %v605_v39 = vadd.f32 %v589_v1, %v569_v37  ;;  %v606_v14 = vadd.f32 %v590_v3, %v570_v34 }
  0x60   : > { %v607_v42 = vadd.f32 %v591_v17, %v571_v35  ;;  %v608_v45 = vadd.f32 %v592_v15, %v572_v38  ;;  %v609_v48 = vadd.f32 %v593_v0, %v573_v41  ;;  %v610_v51 = vadd.f32 %v594_v4, %v574_v44  ;;  %v12137_v41 = vld [vmem:[#allocation46_spill] sm:$0xff] }
  0x61   : > { %v611_v54 = vadd.f32 %v595_v5, %v575_v46  ;;  %v612_v60 = vadd.f32 %v596_v6, %v576_v56  ;;  %v613_v61 = vadd.f32 %v597_v9, %v577_v57  ;;  %v614_v50 = vadd.f32 %v598_v10, %v578_v59  ;;  %v12138_v56 = vld [vmem:[#allocation49_spill] sm:$0xff]  ;;  %v12139_v59 = vld [vmem:[#allocation50_spill] sm:$0xff] }
  0x62   : > { %v615_v53 = vadd.f32 %v599_v18, %v579_v63  ;;  %v616_v23 = vadd.f32 %v600_v30, %v580_v20  ;;  %v621_v12 = vmul.f32 %v12136_v22, %v6616_v25  ;;  %v622_v19 = vmul.f32 %v12136_v22, %v6619_v26  ;;  %v12140_v30 = vld [vmem:[#allocation10_spill] sm:$0xff] }
  0x63   : > { %v623_v49 = vmul.f32 %v12136_v22, %v6625_v28  ;;  %v624_v7 = vmul.f32 %v12136_v22, %v6628_v29  ;;  %v625_v31 = vmul.f32 %v12136_v22, %v12121_v11  ;;  %v626_v43 = vmul.f32 %v12136_v22, %v6637_v32 }
  0x64   : > { %v627_v20 = vmul.f32 %v12136_v22, %v12125_v47  ;;  %v628_v40 = vmul.f32 %v12136_v22, %v12123_v27  ;;  %v629_v37 = vmul.f32 %v12136_v22, %v12129_v55  ;;  %v630_v34 = vmul.f32 %v12136_v22, %v12127_v62  ;;  %v12159_v62 = vld [vmem:[#allocation30_spill] sm:$0xff] }
  0x65   : > { %v631_v35 = vmul.f32 %v12136_v22, %v12133_v8  ;;  %v632_v38 = vmul.f32 %v12136_v22, %v12131_v52  ;;  %v633_v44 = vmul.f32 %v12136_v22, %v12137_v41  ;;  %v634_v46 = vmul.f32 %v12136_v22, %v12135_v24  ;;  %v12158_v24 = vld [vmem:[#allocation27_spill] sm:$0xff] }
  0x66   : > { %v635_v57 = vmul.f32 %v12136_v22, %v12138_v56  ;;  %v636_v63 = vmul.f32 %v12136_v22, %v12139_v59  ;;  %v6907_v16 = vadd.f32 %v621_v12, %v601_v13  ;;  %v6909_v58 = vadd.f32 %v622_v19, %v602_v21  ;;  %v12141_v13 = vld [vmem:[#allocation58_spill] sm:$0xff] }
  0x67   : > { %v6911_v2 = vadd.f32 %v623_v49, %v603_v33  ;;  %v6913_v1 = vadd.f32 %v624_v7, %v604_v36  ;;  %v6915_v3 = vadd.f32 %v625_v31, %v605_v39  ;;  %v6917_v17 = vadd.f32 %v626_v43, %v606_v14  ;;  %v12142_v33 = vld [vmem:[#allocation11_spill] sm:$0xff]  ;;  %v12143_v39 = vld [vmem:[#allocation12_spill] sm:$0xff]  ;;  %v12149_v19 = vld [vmem:[#allocation18_spill] sm:$0xff] }
  0x68   : > { %v6919_v15 = vadd.f32 %v627_v20, %v607_v42  ;;  %v6921_v0 = vadd.f32 %v628_v40, %v608_v45  ;;  %v6923_v4 = vadd.f32 %v629_v37, %v609_v48  ;;  %v6925_v22 = vadd.f32 %v630_v34, %v610_v51  ;;  %v12144_v42 = vld [vmem:[#allocation13_spill] sm:$0xff]  ;;  %v12145_v48 = vld [vmem:[#allocation14_spill] sm:$0xff]  ;;  %v12150_v7 = vld [vmem:[#allocation19_spill] sm:$0xff] }
  0x69   : > { %v6927_v5 = vadd.f32 %v631_v35, %v611_v54  ;;  %v6929_v6 = vadd.f32 %v632_v38, %v612_v60  ;;  %v6931_v9 = vadd.f32 %v633_v44, %v613_v61  ;;  %v6933_v10 = vadd.f32 %v634_v46, %v614_v50  ;;  %v12146_v54 = vld [vmem:[#allocation15_spill] sm:$0xff]  ;;  %v12148_v50 = vld [vmem:[#allocation17_spill] sm:$0xff]  ;;  %v12151_v43 = vld [vmem:[#allocation20_spill] sm:$0xff] }
  0x6a   : > { %v6935_v12 = vadd.f32 %v635_v57, %v615_v53  ;;  %v6937_v18 = vadd.f32 %v636_v63, %v616_v23  ;;  %v657_v21 = vmul.f32 %v12141_v13, %v12140_v30  ;;  %v658_v36 = vmul.f32 %v12141_v13, %v12142_v33  ;;  %v12147_v23 = vld [vmem:[#allocation16_spill] sm:$0xff]  ;;  %v12152_v40 = vld [vmem:[#allocation21_spill] sm:$0xff]  ;;  %v12153_v34 = vld [vmem:[#allocation22_spill] sm:$0xff] }
  0x6b   : > { %v659_v14 = vmul.f32 %v12141_v13, %v12143_v39  ;;  %v660_v45 = vmul.f32 %v12141_v13, %v12144_v42  ;;  %v661_v51 = vmul.f32 %v12141_v13, %v12145_v48  ;;  %v662_v60 = vmul.f32 %v12141_v13, %v12146_v54  ;;  %v12154_v38 = vld [vmem:[#allocation23_spill] sm:$0xff]  ;;  %v12155_v46 = vld [vmem:[#allocation24_spill] sm:$0xff]  ;;  %v12156_v63 = vld [vmem:[#allocation25_spill] sm:$0xff] }
  0x6c   : > { %v663_v61 = vmul.f32 %v12141_v13, %v12147_v23  ;;  %v664_v53 = vmul.f32 %v12141_v13, %v12148_v50  ;;  %v665_v49 = vmul.f32 %v12141_v13, %v12149_v19  ;;  %v666_v31 = vmul.f32 %v12141_v13, %v12150_v7  ;;  %v12157_v59 = vld [vmem:[#allocation26_spill] sm:$0xff] }
  0x6d   : > { %v667_v20 = vmul.f32 %v12141_v13, %v12151_v43  ;;  %v668_v37 = vmul.f32 %v12141_v13, %v12152_v40  ;;  %v669_v35 = vmul.f32 %v12141_v13, %v12153_v34  ;;  %v670_v44 = vmul.f32 %v12141_v13, %v12154_v38 }
  0x6e   : > { %v671_v57 = vmul.f32 %v12141_v13, %v12155_v46  ;;  %v672_v39 = vmul.f32 %v12141_v13, %v12156_v63  ;;  %v706_v33 = vrot.slane %v657_v21, 1  ;;  %v707_v30 = vrot.slane %v658_v36, 1  ;;  %v12160_v36 = vld [vmem:[#allocation33_spill] sm:$0xff] }
  0x6f   : > { %v673_v56 = vmul.f32 %v12141_v13, %v12157_v59  ;;  %v674_v41 = vmul.f32 %v12141_v13, %v12158_v24  ;;  %v675_v52 = vmul.f32 %v12141_v13, %v6616_v25  ;;  %v676_v8 = vmul.f32 %v12141_v13, %v6619_v26 }
  0x70   : > { %v677_v55 = vmul.f32 %v12141_v13, %v12159_v62  ;;  %v678_v27 = vmul.f32 %v12141_v13, %v6625_v28  ;;  %v679_v21 = vmul.f32 %v12141_v13, %v6628_v29  ;;  %v680_v47 = vmul.f32 %v12141_v13, %v12160_v36 }
  0x71   : > { %v709_v32 = vrot.slane %v659_v14, 1  ;;  %v711_v11 = vrot.slane %v660_v45, 1  ;;  %v712_v24 = vrot.slane %v661_v51, 1  ;;  %v714_v59 = vrot.slane %v662_v60, 1 }
  0x72   : > { %v708_v25 = vsel %vm705_vm1, %v706_v33, %v707_v30  ;;  %v716_v63 = vrot.slane %v663_v61, 1  ;;  %v717_v26 = vrot.slane %v664_v53, 1  ;;  %v719_v46 = vrot.slane %v665_v49, 1 }
  0x73   : > { %v721_v38 = vrot.slane %v666_v31, 1  ;;  %v722_v62 = vrot.slane %v667_v20, 1  ;;  %v724_v34 = vrot.slane %v668_v37, 1  ;;  %v726_v40 = vrot.slane %v669_v35, 1  ;;  %v12172_v35 = vld [vmem:[#allocation52_spill] sm:$0xff] }
  0x74   : > { %v727_v28 = vrot.slane %v670_v44, 1  ;;  %v729_v43 = vrot.slane %v671_v57, 1  ;;  %v731_v7 = vrot.slane %v672_v39, 1  ;;  %v732_v29 = vrot.slane %v673_v56, 1 }
  0x75   : > { %v734_v19 = vrot.slane %v674_v41, 1  ;;  %v736_v50 = vrot.slane %v675_v52, 1  ;;  %v737_v13 = vrot.slane %v676_v8, 1  ;;  %v739_v14 = vrot.slane %v677_v55, 1 }
  0x76   : > { %v710_v45 = vsel %vm705_vm1, %v707_v30, %v709_v32  ;;  %v741_v51 = vrot.slane %v678_v27, 1  ;;  %v742_v60 = vrot.slane %v679_v21, 1  ;;  %v744_v33 = vrot.slane %v680_v47, 1 }
  0x77   : > { %v713_v61 = vsel %vm705_vm1, %v711_v11, %v712_v24  ;;  %v715_v53 = vsel %vm705_vm1, %v712_v24, %v714_v59  ;;  %v718_v49 = vsel %vm705_vm1, %v716_v63, %v717_v26  ;;  %v720_v31 = vsel %vm705_vm1, %v717_v26, %v719_v46  ;;  %v12174_v46 = vld [vmem:[#allocation17_spill] sm:$0xff]  ;;  %v12175_v63 = vld [vmem:[#allocation18_spill] sm:$0xff] }
  0x78   : > { %v723_v39 = vsel %vm705_vm1, %v721_v38, %v722_v62  ;;  %v725_v41 = vsel %vm705_vm1, %v722_v62, %v724_v34  ;;  %v728_v52 = vsel %vm705_vm1, %v726_v40, %v727_v28  ;;  %v730_v55 = vsel %vm705_vm1, %v727_v28, %v729_v43 }
  0x79   : > { %v733_v32 = vsel %vm705_vm1, %v731_v7, %v732_v29  ;;  %v735_v27 = vsel %vm705_vm1, %v732_v29, %v734_v19  ;;  %v738_v11 = vsel %vm705_vm1, %v736_v50, %v737_v13  ;;  %v740_v47 = vsel %vm705_vm1, %v737_v13, %v739_v14  ;;  %v12176_v13 = vld [vmem:[#allocation19_spill] sm:$0xff] }
  0x7a   : > { %v743_v8 = vsel %vm705_vm1, %v741_v51, %v742_v60  ;;  %v745_v26 = vsel %vm705_vm1, %v742_v60, %v744_v33  ;;  %v7004_v24 = vadd.f32 %v708_v25, %v6907_v16  ;;  %v7007_v62 = vadd.f32 %v710_v45, %v6909_v58  ;;  %v12161_v58 = vld [vmem:[#allocation53_spill] sm:$0xff]  ;;  %v12177_v45 = vld [vmem:[#allocation20_spill] sm:$0xff] }
  0x7b   : > { %v7010_v28 = vadd.f32 %v713_v61, %v6911_v2  ;;  %v7013_v56 = vadd.f32 %v715_v53, %v6913_v1  ;;  %v7016_v29 = vadd.f32 %v718_v49, %v6915_v3  ;;  %v7019_v59 = vadd.f32 %v720_v31, %v6917_v17  ;;  %v12162_v2 = vld [vmem:[#allocation4_spill] sm:$0xff]  ;;  %v12178_v60 = vld [vmem:[#allocation21_spill] sm:$0xff]  ;;  %v12179_v61 = vld [vmem:[#allocation22_spill] sm:$0xff] }
  0x7c   : > { %v7022_v30 = vadd.f32 %v723_v39, %v6919_v15  ;;  %v7025_v25 = vadd.f32 %v725_v41, %v6921_v0  ;;  %v7028_v16 = vadd.f32 %v728_v52, %v6923_v4  ;;  %v781_v50 = vrot.slane %v12162_v2, %v12161_v58  ;;  %v12180_v49 = vld [vmem:[#allocation23_spill] sm:$0xff]  ;;  %v12181_v39 = vld [vmem:[#allocation24_spill] sm:$0xff]  ;;  %v12182_v52 = vld [vmem:[#allocation25_spill] sm:$0xff] }
  0x7d   : > { %v7033_v1 = vadd.f32 %v730_v55, %v6925_v22  ;;  %v7036_v3 = vadd.f32 %v733_v32, %v6927_v5  ;;  %v7039_v17 = vadd.f32 %v735_v27, %v6929_v6  ;;  %v7042_v15 = vadd.f32 %v738_v11, %v6931_v9  ;;  %v12163_v22 = vld [vmem:[#allocation5_spill] sm:$0xff]  ;;  %v12164_v5 = vld [vmem:[#allocation6_spill] sm:$0xff]  ;;  %v12166_v9 = vld [vmem:[#allocation7_spill] sm:$0xff] }
  0x7e   : > { %v7045_v0 = vadd.f32 %v740_v47, %v6933_v10  ;;  %v7048_v4 = vadd.f32 %v743_v8, %v6935_v12  ;;  %v7051_v19 = vadd.f32 %v745_v26, %v6937_v18  ;;  %v7055_v7 = vrot.slane %v12163_v22, %v12161_v58  ;;  %v12168_v10 = vld [vmem:[#allocation8_spill] sm:$0xff]  ;;  %v12170_v12 = vld [vmem:[#allocation9_spill] sm:$0xff]  ;;  %v12183_v32 = vld [vmem:[#allocation26_spill] sm:$0xff] }
  0x7f   : > { %v7059_v6 = vrot.slane %v12164_v5, %v12161_v58  ;;  %v7063_v43 = vrot.slane %v12166_v9, %v12161_v58  ;;  %v7067_v20 = vrot.slane %v12168_v10, %v12161_v58  ;;  %v7071_v18 = vrot.slane %v12170_v12, %v12161_v58  ;;  %v12184_v11 = vld [vmem:[#allocation27_spill] sm:$0xff]  ;;  %v12185_v8 = vld [vmem:[#allocation28_spill] sm:$0xff]  ;;  %v12187_v12 = vld [vmem:[#allocation30_spill] sm:$0xff] }
  0x80   : > { %v782_v40 = vmul.f32 %v781_v50, %v12144_v42  ;;  %v783_v37 = vmul.f32 %v781_v50, %v12145_v48  ;;  %v784_v34 = vmul.f32 %v781_v50, %v12146_v54  ;;  %v7077_v38 = vsub.s32 2, %v12172_v35  ;;  %v12186_v48 = vld [vmem:[#allocation29_spill] sm:$0xff]  ;;  %v12188_v9 = vld [vmem:[#allocation31_spill] sm:$0xff]  ;;  %v12189_v22 = vld [vmem:[#allocation32_spill] sm:$0xff] }
  0x81   : > { %12165 = vst [vmem:[#allocation54_spill] sm:$0xff] %v7059_v6  ;;  %12167 = vst [vmem:[#allocation55_spill] sm:$0xff] %v7063_v43  ;;  %v785_v44 = vmul.f32 %v781_v50, %v12147_v23  ;;  %v786_v57 = vmul.f32 %v781_v50, %v12174_v46  ;;  %v787_v21 = vmul.f32 %v781_v50, %v12175_v63  ;;  %v12191_v43 = vld [vmem:[#allocation35_spill] sm:$0xff] }
  0x82   : > { %12169 = vst [vmem:[#allocation56_spill] sm:$0xff] %v7067_v20  ;;  %12171 = vst [vmem:[#allocation57_spill] sm:$0xff] %v7071_v18  ;;  %v788_v14 = vmul.f32 %v781_v50, %v12176_v13  ;;  %v789_v51 = vmul.f32 %v781_v50, %v12177_v45  ;;  %v790_v33 = vmul.f32 %v781_v50, %v12178_v60  ;;  %v830_v58 = vrot.slane %v782_v40, 1  ;;  %v12190_v18 = vld [vmem:[#allocation34_spill] sm:$0xff] }
  0x83   : > { %12173 = vst [vmem:[#allocation58_spill] sm:$0xff] %v7077_v38  ;;  %v791_v53 = vmul.f32 %v781_v50, %v12179_v61  ;;  %v792_v31 = vmul.f32 %v781_v50, %v12180_v49  ;;  %v793_v41 = vmul.f32 %v781_v50, %v12181_v39  ;;  %v794_v55 = vmul.f32 %v781_v50, %v12182_v52 }
  0x84   : > { %v795_v27 = vmul.f32 %v781_v50, %v12183_v32  ;;  %v796_v47 = vmul.f32 %v781_v50, %v12184_v11  ;;  %v797_v26 = vmul.f32 %v781_v50, %v12185_v8  ;;  %v831_v35 = vrot.slane %v783_v37, 1  ;;  %v12192_v11 = vld [vmem:[#allocation36_spill] sm:$0xff] }
  0x85   : > { %v833_v54 = vrot.slane %v784_v34, 1  ;;  %v798_v42 = vmul.f32 %v781_v50, %v12186_v48  ;;  %v799_v10 = vmul.f32 %v781_v50, %v12187_v12  ;;  %v800_v5 = vmul.f32 %v781_v50, %v12188_v9 }
  0x86   : > { %v801_v2 = vmul.f32 %v781_v50, %v12189_v22  ;;  %v802_v38 = vmul.f32 %v781_v50, %v12160_v36  ;;  %v803_v20 = vmul.f32 %v781_v50, %v12190_v18  ;;  %v804_v6 = vmul.f32 %v781_v50, %v12191_v43 }
  0x87   : > { %v805_v32 = vmul.f32 %v781_v50, %v12192_v11  ;;  %v835_v8 = vrot.slane %v785_v44, 1  ;;  %v836_v40 = vrot.slane %v786_v57, 1  ;;  %v838_v37 = vrot.slane %v787_v21, 1 }
  0x88   : > { %v840_v34 = vrot.slane %v788_v14, 1  ;;  %v832_v48 = vsel %vm705_vm1, %v830_v58, %v831_v35  ;;  %v834_v12 = vsel %vm705_vm1, %v831_v35, %v833_v54  ;;  %v841_v52 = vrot.slane %v789_v51, 1 }
  0x89   : > { %v843_v9 = vrot.slane %v790_v33, 1  ;;  %v845_v39 = vrot.slane %v791_v53, 1  ;;  %v846_v22 = vrot.slane %v792_v31, 1  ;;  %v848_v49 = vrot.slane %v793_v41, 1  ;;  %v12197_v41 = vld [vmem:[#allocation24_spill] sm:$0xff] }
  0x8a   : > { %v850_v36 = vrot.slane %v794_v55, 1  ;;  %v851_v61 = vrot.slane %v795_v27, 1  ;;  %v853_v18 = vrot.slane %v796_v47, 1  ;;  %v855_v60 = vrot.slane %v797_v26, 1  ;;  %v12198_v55 = vld [vmem:[#allocation25_spill] sm:$0xff]  ;;  %v12199_v27 = vld [vmem:[#allocation26_spill] sm:$0xff] }
  0x8b   : > { %v856_v43 = vrot.slane %v798_v42, 1  ;;  %v858_v45 = vrot.slane %v799_v10, 1  ;;  %v860_v50 = vrot.slane %v800_v5, 1  ;;  %v861_v44 = vrot.slane %v801_v2, 1  ;;  %v12200_v47 = vld [vmem:[#allocation27_spill] sm:$0xff]  ;;  %v12201_v26 = vld [vmem:[#allocation28_spill] sm:$0xff] }
  0x8c   : > { %v863_v57 = vrot.slane %v802_v38, 1  ;;  %v837_v21 = vsel %vm705_vm1, %v835_v8, %v836_v40  ;;  %v865_v14 = vrot.slane %v803_v20, 1  ;;  %v866_v58 = vrot.slane %v804_v6, 1 }
  0x8d   : > { %v868_v11 = vrot.slane %v805_v32, 1  ;;  %v839_v54 = vsel %vm705_vm1, %v836_v40, %v838_v37  ;;  %v842_v35 = vsel %vm705_vm1, %v840_v34, %v841_v52  ;;  %v844_v51 = vsel %vm705_vm1, %v841_v52, %v843_v9  ;;  %v12202_v37 = vld [vmem:[#allocation29_spill] sm:$0xff] }
  0x8e   : > { %v847_v33 = vsel %vm705_vm1, %v845_v39, %v846_v22  ;;  %v849_v53 = vsel %vm705_vm1, %v846_v22, %v848_v49  ;;  %v852_v42 = vsel %vm705_vm1, %v850_v36, %v851_v61  ;;  %v854_v2 = vsel %vm705_vm1, %v851_v61, %v853_v18  ;;  %v12196_v49 = vld [vmem:[#allocation23_spill] sm:$0xff] }
  0x8f   : > { %v857_v5 = vsel %vm705_vm1, %v855_v60, %v856_v43  ;;  %v859_v10 = vsel %vm705_vm1, %v856_v43, %v858_v45  ;;  %v862_v6 = vsel %vm705_vm1, %v860_v50, %v861_v44  ;;  %v864_v20 = vsel %vm705_vm1, %v861_v44, %v863_v57  ;;  %v12203_v50 = vld [vmem:[#allocation30_spill] sm:$0xff]  ;;  %v12204_v57 = vld [vmem:[#allocation31_spill] sm:$0xff] }
  0x90   : > { %v7115_v38 = vadd.f32 %v832_v48, %v7004_v24  ;;  %v867_v9 = vsel %vm705_vm1, %v865_v14, %v866_v58  ;;  %v869_v31 = vsel %vm705_vm1, %v866_v58, %v868_v11  ;;  %v7120_v22 = vadd.f32 %v834_v12, %v7007_v62 }
  0x91   : > { %v7123_v36 = vadd.f32 %v837_v21, %v7010_v28  ;;  %v7126_v18 = vadd.f32 %v839_v54, %v7013_v56  ;;  %v7129_v43 = vadd.f32 %v842_v35, %v7016_v29  ;;  %v7132_v45 = vadd.f32 %v844_v51, %v7019_v59  ;;  %v12205_v35 = vld [vmem:[#allocation32_spill] sm:$0xff] }
  0x92   : > { %v7135_v48 = vadd.f32 %v847_v33, %v7022_v30  ;;  %v7138_v24 = vadd.f32 %v849_v53, %v7025_v25  ;;  %v7141_v62 = vadd.f32 %v852_v42, %v7028_v16  ;;  %v7144_v28 = vadd.f32 %v854_v2, %v7033_v1  ;;  %v12206_v33 = vld [vmem:[#allocation33_spill] sm:$0xff]  ;;  %v12207_v42 = vld [vmem:[#allocation34_spill] sm:$0xff] }
  0x93   : > { %v7147_v56 = vadd.f32 %v857_v5, %v7036_v3  ;;  %v7150_v29 = vadd.f32 %v859_v10, %v7039_v17  ;;  %v7153_v59 = vadd.f32 %v862_v6, %v7042_v15  ;;  %v7156_v30 = vadd.f32 %v864_v20, %v7045_v0  ;;  %v12193_v0 = vld [vmem:[#allocation20_spill] sm:$0xff]  ;;  %v12208_v5 = vld [vmem:[#allocation35_spill] sm:$0xff] }
  0x94   : > { %v7159_v25 = vadd.f32 %v867_v9, %v7048_v4  ;;  %v7162_v16 = vadd.f32 %v869_v31, %v7051_v19  ;;  %v906_v1 = vmul.f32 %v7055_v7, %v12147_v23  ;;  %v907_v3 = vmul.f32 %v7055_v7, %v12174_v46  ;;  %v12194_v4 = vld [vmem:[#allocation21_spill] sm:$0xff]  ;;  %v12195_v19 = vld [vmem:[#allocation22_spill] sm:$0xff]  ;;  %v12209_v6 = vld [vmem:[#allocation36_spill] sm:$0xff] }
  0x95   : > { %v908_v17 = vmul.f32 %v7055_v7, %v12175_v63  ;;  %v909_v15 = vmul.f32 %v7055_v7, %v12176_v13  ;;  %v910_v12 = vmul.f32 %v7055_v7, %v12193_v0  ;;  %v911_v60 = vmul.f32 %v7055_v7, %v12194_v4  ;;  %v12210_v9 = vld [vmem:[#allocation37_spill] sm:$0xff] }
  0x96   : > { %v912_v61 = vmul.f32 %v7055_v7, %v12195_v19  ;;  %v913_v39 = vmul.f32 %v7055_v7, %v12196_v49  ;;  %v914_v52 = vmul.f32 %v7055_v7, %v12197_v41  ;;  %v915_v32 = vmul.f32 %v7055_v7, %v12198_v55 }
  0x97   : > { %v916_v11 = vmul.f32 %v7055_v7, %v12199_v27  ;;  %v917_v8 = vmul.f32 %v7055_v7, %v12200_v47  ;;  %v918_v40 = vmul.f32 %v7055_v7, %v12201_v26  ;;  %v919_v34 = vmul.f32 %v7055_v7, %v12202_v37 }
  0x98   : > { %v920_v44 = vmul.f32 %v7055_v7, %v12203_v50  ;;  %v921_v21 = vmul.f32 %v7055_v7, %v12204_v57  ;;  %v954_v14 = vrot.slane %v906_v1, 1  ;;  %v955_v58 = vrot.slane %v907_v3, 1  ;;  %v12211_v1 = vld [vmem:[#allocation38_spill] sm:$0xff] }
  0x99   : > { %v957_v54 = vrot.slane %v908_v17, 1  ;;  %v922_v51 = vmul.f32 %v7055_v7, %v12205_v35  ;;  %v923_v53 = vmul.f32 %v7055_v7, %v12206_v33  ;;  %v924_v2 = vmul.f32 %v7055_v7, %v12207_v42  ;;  %v12212_v17 = vld [vmem:[#allocation39_spill] sm:$0xff] }
  0x9a   : > { %v925_v10 = vmul.f32 %v7055_v7, %v12208_v5  ;;  %v926_v20 = vmul.f32 %v7055_v7, %v12209_v6  ;;  %v927_v31 = vmul.f32 %v7055_v7, %v12210_v9  ;;  %v928_v3 = vmul.f32 %v7055_v7, %v12211_v1 }
  0x9b   : > { %v929_v63 = vmul.f32 %v7055_v7, %v12212_v17  ;;  %v959_v46 = vrot.slane %v909_v15, 1  ;;  %v960_v23 = vrot.slane %v910_v12, 1  ;;  %v962_v33 = vrot.slane %v911_v60, 1 }
  0x9c   : > { %v964_v35 = vrot.slane %v912_v61, 1  ;;  %v956_v42 = vsel %vm705_vm1, %v954_v14, %v955_v58  ;;  %v958_v5 = vsel %vm705_vm1, %v955_v58, %v957_v54  ;;  %v965_v57 = vrot.slane %v913_v39, 1 }
  0x9d   : > { %v967_v50 = vrot.slane %v914_v52, 1  ;;  %v969_v6 = vrot.slane %v915_v32, 1  ;;  %v970_v37 = vrot.slane %v916_v11, 1  ;;  %v972_v26 = vrot.slane %v917_v8, 1 }
  0x9e   : > { %v974_v9 = vrot.slane %v918_v40, 1  ;;  %v975_v47 = vrot.slane %v919_v34, 1  ;;  %v977_v27 = vrot.slane %v920_v44, 1  ;;  %v979_v1 = vrot.slane %v921_v21, 1 }
  0x9f   : > { %v980_v55 = vrot.slane %v922_v51, 1  ;;  %v982_v41 = vrot.slane %v923_v53, 1  ;;  %v984_v7 = vrot.slane %v924_v2, 1  ;;  %v985_v15 = vrot.slane %v925_v10, 1  ;;  %v12216_v51 = vld [vmem:[#allocation26_spill] sm:$0xff]  ;;  %v12217_v53 = vld [vmem:[#allocation27_spill] sm:$0xff] }
  0xa0   : > { %v987_v12 = vrot.slane %v926_v20, 1  ;;  %v961_v60 = vsel %vm705_vm1, %v959_v46, %v960_v23  ;;  %v989_v61 = vrot.slane %v927_v31, 1  ;;  %v990_v14 = vrot.slane %v928_v3, 1  ;;  %v12218_v2 = vld [vmem:[#allocation28_spill] sm:$0xff]  ;;  %v12219_v10 = vld [vmem:[#allocation29_spill] sm:$0xff]  ;;  %v12220_v20 = vld [vmem:[#allocation30_spill] sm:$0xff] }
  0xa1   : > { %v992_v17 = vrot.slane %v929_v63, 1  ;;  %v963_v39 = vsel %vm705_vm1, %v960_v23, %v962_v33  ;;  %v966_v52 = vsel %vm705_vm1, %v964_v35, %v965_v57  ;;  %v968_v32 = vsel %vm705_vm1, %v965_v57, %v967_v50  ;;  %v12221_v31 = vld [vmem:[#allocation31_spill] sm:$0xff]  ;;  %v12222_v3 = vld [vmem:[#allocation32_spill] sm:$0xff] }
  0xa2   : > { %v971_v11 = vsel %vm705_vm1, %v969_v6, %v970_v37  ;;  %v973_v8 = vsel %vm705_vm1, %v970_v37, %v972_v26  ;;  %v976_v40 = vsel %vm705_vm1, %v974_v9, %v975_v47  ;;  %v978_v34 = vsel %vm705_vm1, %v975_v47, %v977_v27 }
  0xa3   : > { %v981_v44 = vsel %vm705_vm1, %v979_v1, %v980_v55  ;;  %v983_v46 = vsel %vm705_vm1, %v980_v55, %v982_v41  ;;  %v986_v63 = vsel %vm705_vm1, %v984_v7, %v985_v15  ;;  %v988_v23 = vsel %vm705_vm1, %v985_v15, %v987_v12  ;;  %v12223_v7 = vld [vmem:[#allocation33_spill] sm:$0xff]  ;;  %v12224_v12 = vld [vmem:[#allocation34_spill] sm:$0xff] }
  0xa4   : > { %v7227_v21 = vadd.f32 %v956_v42, %v7115_v38  ;;  %v991_v50 = vsel %vm705_vm1, %v989_v61, %v990_v14  ;;  %v993_v57 = vsel %vm705_vm1, %v990_v14, %v992_v17  ;;  %v7232_v26 = vadd.f32 %v958_v5, %v7120_v22 }
  0xa5   : > { %v7235_v27 = vadd.f32 %v961_v60, %v7123_v36  ;;  %v7238_v47 = vadd.f32 %v963_v39, %v7126_v18  ;;  %v7241_v41 = vadd.f32 %v966_v52, %v7129_v43  ;;  %v7244_v55 = vadd.f32 %v968_v32, %v7132_v45  ;;  %v12225_v52 = vld [vmem:[#allocation35_spill] sm:$0xff] }
  0xa6   : > { %v7247_v38 = vadd.f32 %v971_v11, %v7135_v48  ;;  %v7250_v37 = vadd.f32 %v973_v8, %v7138_v24  ;;  %v7253_v22 = vadd.f32 %v976_v40, %v7141_v62  ;;  %v7256_v36 = vadd.f32 %v978_v34, %v7144_v28  ;;  %v12213_v28 = vld [vmem:[#allocation54_spill] sm:$0xff]  ;;  %v12226_v11 = vld [vmem:[#allocation36_spill] sm:$0xff]  ;;  %v12227_v40 = vld [vmem:[#allocation37_spill] sm:$0xff] }
  0xa7   : > { %v7259_v18 = vadd.f32 %v981_v44, %v7147_v56  ;;  %v7262_v43 = vadd.f32 %v983_v46, %v7150_v29  ;;  %v7265_v45 = vadd.f32 %v986_v63, %v7153_v59  ;;  %v7268_v48 = vadd.f32 %v988_v23, %v7156_v30  ;;  %v12228_v44 = vld [vmem:[#allocation38_spill] sm:$0xff]  ;;  %v12229_v63 = vld [vmem:[#allocation39_spill] sm:$0xff] }
  0xa8   : > { %v7271_v24 = vadd.f32 %v991_v50, %v7159_v25  ;;  %v7274_v62 = vadd.f32 %v993_v57, %v7162_v16  ;;  %v1030_v58 = vmul.f32 %v12213_v28, %v12176_v13  ;;  %v1031_v56 = vmul.f32 %v12213_v28, %v12193_v0  ;;  %v12214_v25 = vld [vmem:[#allocation24_spill] sm:$0xff]  ;;  %v12215_v16 = vld [vmem:[#allocation25_spill] sm:$0xff] }
  0xa9   : > { %v1032_v29 = vmul.f32 %v12213_v28, %v12194_v4  ;;  %v1033_v59 = vmul.f32 %v12213_v28, %v12195_v19  ;;  %v1034_v30 = vmul.f32 %v12213_v28, %v12196_v49  ;;  %v1035_v54 = vmul.f32 %v12213_v28, %v12214_v25  ;;  %v12230_v50 = vld [vmem:[#allocation40_spill] sm:$0xff] }
  0xaa   : > { %v1036_v35 = vmul.f32 %v12213_v28, %v12215_v16  ;;  %v1037_v33 = vmul.f32 %v12213_v28, %v12216_v51  ;;  %v1038_v42 = vmul.f32 %v12213_v28, %v12217_v53  ;;  %v1039_v5 = vmul.f32 %v12213_v28, %v12218_v2 }
  0xab   : > { %v1040_v6 = vmul.f32 %v12213_v28, %v12219_v10  ;;  %v1041_v9 = vmul.f32 %v12213_v28, %v12220_v20  ;;  %v1042_v1 = vmul.f32 %v12213_v28, %v12221_v31  ;;  %v1043_v17 = vmul.f32 %v12213_v28, %v12222_v3 }
  0xac   : > { %v1044_v15 = vmul.f32 %v12213_v28, %v12223_v7  ;;  %v1045_v60 = vmul.f32 %v12213_v28, %v12224_v12  ;;  %v1078_v61 = vrot.slane %v1030_v58, 1  ;;  %v1079_v14 = vrot.slane %v1031_v56, 1  ;;  %v12231_v58 = vld [vmem:[#allocation41_spill] sm:$0xff] }
  0xad   : > { %v1081_v39 = vrot.slane %v1032_v29, 1  ;;  %v1046_v32 = vmul.f32 %v12213_v28, %v12225_v52  ;;  %v1047_v8 = vmul.f32 %v12213_v28, %v12226_v11  ;;  %v1048_v34 = vmul.f32 %v12213_v28, %v12227_v40  ;;  %v12232_v29 = vld [vmem:[#allocation42_spill] sm:$0xff] }
  0xae   : > { %v1049_v46 = vmul.f32 %v12213_v28, %v12228_v44  ;;  %v1050_v23 = vmul.f32 %v12213_v28, %v12229_v63  ;;  %v1051_v57 = vmul.f32 %v12213_v28, %v12230_v50  ;;  %v1052_v56 = vmul.f32 %v12213_v28, %v12231_v58 }
  0xaf   : > { %v1053_v4 = vmul.f32 %v12213_v28, %v12232_v29  ;;  %v1083_v0 = vrot.slane %v1033_v59, 1  ;;  %v1084_v13 = vrot.slane %v1034_v30, 1  ;;  %v1086_v11 = vrot.slane %v1035_v54, 1 }
  0xb0   : > { %v1088_v52 = vrot.slane %v1036_v35, 1  ;;  %v1080_v40 = vsel %vm705_vm1, %v1078_v61, %v1079_v14  ;;  %v1082_v44 = vsel %vm705_vm1, %v1079_v14, %v1081_v39  ;;  %v1089_v12 = vrot.slane %v1037_v33, 1 }
  0xb1   : > { %v1091_v7 = vrot.slane %v1038_v42, 1  ;;  %v1093_v63 = vrot.slane %v1039_v5, 1  ;;  %v1094_v3 = vrot.slane %v1040_v6, 1  ;;  %v1096_v31 = vrot.slane %v1041_v9, 1 }
  0xb2   : > { %v1098_v50 = vrot.slane %v1042_v1, 1  ;;  %v1099_v20 = vrot.slane %v1043_v17, 1  ;;  %v1101_v10 = vrot.slane %v1044_v15, 1  ;;  %v1103_v58 = vrot.slane %v1045_v60, 1 }
  0xb3   : > { %v1104_v2 = vrot.slane %v1046_v32, 1  ;;  %v1106_v53 = vrot.slane %v1047_v8, 1  ;;  %v1108_v28 = vrot.slane %v1048_v34, 1  ;;  %v1109_v59 = vrot.slane %v1049_v46, 1  ;;  %v12236_v32 = vld [vmem:[#allocation29_spill] sm:$0xff]  ;;  %v12237_v8 = vld [vmem:[#allocation30_spill] sm:$0xff] }
  0xb4   : > { %v1111_v30 = vrot.slane %v1050_v23, 1  ;;  %v1085_v54 = vsel %vm705_vm1, %v1083_v0, %v1084_v13  ;;  %v1113_v35 = vrot.slane %v1051_v57, 1  ;;  %v1114_v61 = vrot.slane %v1052_v56, 1  ;;  %v12238_v34 = vld [vmem:[#allocation31_spill] sm:$0xff]  ;;  %v12239_v46 = vld [vmem:[#allocation32_spill] sm:$0xff]  ;;  %v12240_v23 = vld [vmem:[#allocation33_spill] sm:$0xff] }
  0xb5   : > { %v1116_v29 = vrot.slane %v1053_v4, 1  ;;  %v1087_v33 = vsel %vm705_vm1, %v1084_v13, %v1086_v11  ;;  %v1090_v42 = vsel %vm705_vm1, %v1088_v52, %v1089_v12  ;;  %v1092_v5 = vsel %vm705_vm1, %v1089_v12, %v1091_v7  ;;  %v12241_v57 = vld [vmem:[#allocation34_spill] sm:$0xff]  ;;  %v12242_v56 = vld [vmem:[#allocation35_spill] sm:$0xff] }
  0xb6   : > { %v1095_v6 = vsel %vm705_vm1, %v1093_v63, %v1094_v3  ;;  %v1097_v9 = vsel %vm705_vm1, %v1094_v3, %v1096_v31  ;;  %v1100_v1 = vsel %vm705_vm1, %v1098_v50, %v1099_v20  ;;  %v1102_v17 = vsel %vm705_vm1, %v1099_v20, %v1101_v10 }
  0xb7   : > { %v1105_v15 = vsel %vm705_vm1, %v1103_v58, %v1104_v2  ;;  %v1107_v0 = vsel %vm705_vm1, %v1104_v2, %v1106_v53  ;;  %v1110_v4 = vsel %vm705_vm1, %v1108_v28, %v1109_v59  ;;  %v1112_v13 = vsel %vm705_vm1, %v1109_v59, %v1111_v30  ;;  %v12243_v28 = vld [vmem:[#allocation36_spill] sm:$0xff]  ;;  %v12244_v30 = vld [vmem:[#allocation37_spill] sm:$0xff] }
  0xb8   : > { %v7339_v60 = vadd.f32 %v1080_v40, %v7227_v21  ;;  %v1115_v7 = vsel %vm705_vm1, %v1113_v35, %v1114_v61  ;;  %v1117_v12 = vsel %vm705_vm1, %v1114_v61, %v1116_v29  ;;  %v7344_v31 = vadd.f32 %v1082_v44, %v7232_v26 }
  0xb9   : > { %v7347_v10 = vadd.f32 %v1085_v54, %v7235_v27  ;;  %v7350_v20 = vadd.f32 %v1087_v33, %v7238_v47  ;;  %v7353_v53 = vadd.f32 %v1090_v42, %v7241_v41  ;;  %v7356_v2 = vadd.f32 %v1092_v5, %v7244_v55  ;;  %v12245_v42 = vld [vmem:[#allocation38_spill] sm:$0xff] }
  0xba   : > { %v7359_v21 = vadd.f32 %v1095_v6, %v7247_v38  ;;  %v7362_v3 = vadd.f32 %v1097_v9, %v7250_v37  ;;  %v7365_v26 = vadd.f32 %v1100_v1, %v7253_v22  ;;  %v7368_v27 = vadd.f32 %v1102_v17, %v7256_v36  ;;  %v12233_v36 = vld [vmem:[#allocation55_spill] sm:$0xff]  ;;  %v12247_v1 = vld [vmem:[#allocation40_spill] sm:$0xff] }
  0xbb   : > { %v7371_v47 = vadd.f32 %v1105_v15, %v7259_v18  ;;  %v7374_v41 = vadd.f32 %v1107_v0, %v7262_v43  ;;  %v7377_v55 = vadd.f32 %v1110_v4, %v7265_v45  ;;  %v7380_v38 = vadd.f32 %v1112_v13, %v7268_v48  ;;  %v12246_v6 = vld [vmem:[#allocation39_spill] sm:$0xff]  ;;  %v12248_v15 = vld [vmem:[#allocation41_spill] sm:$0xff]  ;;  %v12249_v4 = vld [vmem:[#allocation42_spill] sm:$0xff] }
  0xbc   : > { %v7383_v37 = vadd.f32 %v1115_v7, %v7271_v24  ;;  %v7386_v22 = vadd.f32 %v1117_v12, %v7274_v62  ;;  %v1154_v14 = vmul.f32 %v12233_v36, %v12195_v19  ;;  %v1155_v18 = vmul.f32 %v12233_v36, %v12196_v49  ;;  %v12234_v24 = vld [vmem:[#allocation27_spill] sm:$0xff]  ;;  %v12235_v62 = vld [vmem:[#allocation28_spill] sm:$0xff] }
  0xbd   : > { %v1156_v43 = vmul.f32 %v12233_v36, %v12214_v25  ;;  %v1157_v45 = vmul.f32 %v12233_v36, %v12215_v16  ;;  %v1158_v48 = vmul.f32 %v12233_v36, %v12216_v51  ;;  %v1159_v39 = vmul.f32 %v12233_v36, %v12234_v24  ;;  %v12250_v7 = vld [vmem:[#allocation43_spill] sm:$0xff] }
  0xbe   : > { %v1160_v52 = vmul.f32 %v12233_v36, %v12235_v62  ;;  %v1161_v11 = vmul.f32 %v12233_v36, %v12236_v32  ;;  %v1162_v40 = vmul.f32 %v12233_v36, %v12237_v8  ;;  %v1163_v44 = vmul.f32 %v12233_v36, %v12238_v34 }
  0xbf   : > { %v1164_v63 = vmul.f32 %v12233_v36, %v12239_v46  ;;  %v1165_v50 = vmul.f32 %v12233_v36, %v12240_v23  ;;  %v1166_v58 = vmul.f32 %v12233_v36, %v12241_v57  ;;  %v1167_v29 = vmul.f32 %v12233_v36, %v12242_v56 }
  0xc0   : > { %v1168_v59 = vmul.f32 %v12233_v36, %v12243_v28  ;;  %v1169_v54 = vmul.f32 %v12233_v36, %v12244_v30  ;;  %v1202_v35 = vrot.slane %v1154_v14, 1  ;;  %v1203_v61 = vrot.slane %v1155_v18, 1  ;;  %v12251_v14 = vld [vmem:[#allocation44_spill] sm:$0xff] }
  0xc1   : > { %v1205_v33 = vrot.slane %v1156_v43, 1  ;;  %v1170_v5 = vmul.f32 %v12233_v36, %v12245_v42  ;;  %v1171_v9 = vmul.f32 %v12233_v36, %v12246_v6  ;;  %v1172_v17 = vmul.f32 %v12233_v36, %v12247_v1  ;;  %v12252_v43 = vld [vmem:[#allocation45_spill] sm:$0xff] }
  0xc2   : > { %v1173_v0 = vmul.f32 %v12233_v36, %v12248_v15  ;;  %v1174_v13 = vmul.f32 %v12233_v36, %v12249_v4  ;;  %v1175_v12 = vmul.f32 %v12233_v36, %v12250_v7  ;;  %v1176_v18 = vmul.f32 %v12233_v36, %v12251_v14 }
  0xc3   : > { %v1177_v25 = vmul.f32 %v12233_v36, %v12252_v43  ;;  %v1207_v49 = vrot.slane %v1157_v45, 1  ;;  %v1208_v19 = vrot.slane %v1158_v48, 1  ;;  %v1210_v6 = vrot.slane %v1159_v39, 1 }
  0xc4   : > { %v1212_v42 = vrot.slane %v1160_v52, 1  ;;  %v1204_v1 = vsel %vm705_vm1, %v1202_v35, %v1203_v61  ;;  %v1206_v15 = vsel %vm705_vm1, %v1203_v61, %v1205_v33  ;;  %v1213_v30 = vrot.slane %v1161_v11, 1 }
  0xc5   : > { %v1215_v28 = vrot.slane %v1162_v40, 1  ;;  %v1217_v4 = vrot.slane %v1163_v44, 1  ;;  %v1218_v56 = vrot.slane %v1164_v63, 1  ;;  %v1220_v57 = vrot.slane %v1165_v50, 1 }
  0xc6   : > { %v1222_v7 = vrot.slane %v1166_v58, 1  ;;  %v1223_v23 = vrot.slane %v1167_v29, 1  ;;  %v1225_v46 = vrot.slane %v1168_v59, 1  ;;  %v1227_v14 = vrot.slane %v1169_v54, 1 }
  0xc7   : > { %v1228_v34 = vrot.slane %v1170_v5, 1  ;;  %v1230_v8 = vrot.slane %v1171_v9, 1  ;;  %v1232_v36 = vrot.slane %v1172_v17, 1  ;;  %v1233_v45 = vrot.slane %v1173_v0, 1  ;;  %v12256_v5 = vld [vmem:[#allocation32_spill] sm:$0xff]  ;;  %v12257_v9 = vld [vmem:[#allocation33_spill] sm:$0xff] }
  0xc8   : > { %v1235_v48 = vrot.slane %v1174_v13, 1  ;;  %v1209_v39 = vsel %vm705_vm1, %v1207_v49, %v1208_v19  ;;  %v1237_v52 = vrot.slane %v1175_v12, 1  ;;  %v1238_v35 = vrot.slane %v1176_v18, 1  ;;  %v12258_v17 = vld [vmem:[#allocation34_spill] sm:$0xff]  ;;  %v12259_v0 = vld [vmem:[#allocation35_spill] sm:$0xff]  ;;  %v12260_v13 = vld [vmem:[#allocation36_spill] sm:$0xff] }
  0xc9   : > { %v1240_v43 = vrot.slane %v1177_v25, 1  ;;  %v1211_v11 = vsel %vm705_vm1, %v1208_v19, %v1210_v6  ;;  %v1214_v40 = vsel %vm705_vm1, %v1212_v42, %v1213_v30  ;;  %v1216_v44 = vsel %vm705_vm1, %v1213_v30, %v1215_v28  ;;  %v12261_v12 = vld [vmem:[#allocation37_spill] sm:$0xff]  ;;  %v12262_v18 = vld [vmem:[#allocation38_spill] sm:$0xff] }
  0xca   : > { %v1219_v63 = vsel %vm705_vm1, %v1217_v4, %v1218_v56  ;;  %v1221_v50 = vsel %vm705_vm1, %v1218_v56, %v1220_v57  ;;  %v1224_v58 = vsel %vm705_vm1, %v1222_v7, %v1223_v23  ;;  %v1226_v29 = vsel %vm705_vm1, %v1223_v23, %v1225_v46 }
  0xcb   : > { %v1229_v59 = vsel %vm705_vm1, %v1227_v14, %v1228_v34  ;;  %v1231_v49 = vsel %vm705_vm1, %v1228_v34, %v1230_v8  ;;  %v1234_v25 = vsel %vm705_vm1, %v1232_v36, %v1233_v45  ;;  %v1236_v19 = vsel %vm705_vm1, %v1233_v45, %v1235_v48  ;;  %v12263_v36 = vld [vmem:[#allocation39_spill] sm:$0xff]  ;;  %v12264_v48 = vld [vmem:[#allocation40_spill] sm:$0xff] }
  0xcc   : > { %v7451_v54 = vadd.f32 %v1204_v1, %v7339_v60  ;;  %v1239_v28 = vsel %vm705_vm1, %v1237_v52, %v1238_v35  ;;  %v1241_v30 = vsel %vm705_vm1, %v1238_v35, %v1240_v43  ;;  %v7456_v57 = vadd.f32 %v1206_v15, %v7344_v31 }
  0xcd   : > { %v7459_v46 = vadd.f32 %v1209_v39, %v7347_v10  ;;  %v7462_v23 = vadd.f32 %v1211_v11, %v7350_v20  ;;  %v7465_v8 = vadd.f32 %v1214_v40, %v7353_v53  ;;  %v7468_v34 = vadd.f32 %v1216_v44, %v7356_v2  ;;  %v12265_v40 = vld [vmem:[#allocation41_spill] sm:$0xff] }
  0xce   : > { %v7471_v60 = vadd.f32 %v1219_v63, %v7359_v21  ;;  %v7474_v56 = vadd.f32 %v1221_v50, %v7362_v3  ;;  %v7477_v31 = vadd.f32 %v1224_v58, %v7365_v26  ;;  %v7480_v10 = vadd.f32 %v1226_v29, %v7368_v27  ;;  %v12253_v27 = vld [vmem:[#allocation56_spill] sm:$0xff]  ;;  %v12266_v63 = vld [vmem:[#allocation42_spill] sm:$0xff]  ;;  %v12267_v58 = vld [vmem:[#allocation43_spill] sm:$0xff] }
  0xcf   : > { %v7483_v20 = vadd.f32 %v1229_v59, %v7371_v47  ;;  %v7486_v53 = vadd.f32 %v1231_v49, %v7374_v41  ;;  %v7489_v2 = vadd.f32 %v1234_v25, %v7377_v55  ;;  %v7492_v21 = vadd.f32 %v1236_v19, %v7380_v38  ;;  %v12268_v59 = vld [vmem:[#allocation44_spill] sm:$0xff]  ;;  %v12269_v25 = vld [vmem:[#allocation45_spill] sm:$0xff] }
  0xd0   : > { %v7495_v3 = vadd.f32 %v1239_v28, %v7383_v37  ;;  %v7498_v26 = vadd.f32 %v1241_v30, %v7386_v22  ;;  %v1278_v61 = vmul.f32 %v12253_v27, %v12215_v16  ;;  %v1279_v47 = vmul.f32 %v12253_v27, %v12216_v51  ;;  %v12254_v37 = vld [vmem:[#allocation30_spill] sm:$0xff]  ;;  %v12255_v22 = vld [vmem:[#allocation31_spill] sm:$0xff] }
  0xd1   : > { %v1280_v41 = vmul.f32 %v12253_v27, %v12234_v24  ;;  %v1281_v55 = vmul.f32 %v12253_v27, %v12235_v62  ;;  %v1282_v38 = vmul.f32 %v12253_v27, %v12236_v32  ;;  %v1283_v33 = vmul.f32 %v12253_v27, %v12254_v37  ;;  %v12270_v28 = vld [vmem:[#allocation46_spill] sm:$0xff] }
  0xd2   : > { %v1284_v42 = vmul.f32 %v12253_v27, %v12255_v22  ;;  %v1285_v6 = vmul.f32 %v12253_v27, %v12256_v5  ;;  %v1286_v1 = vmul.f32 %v12253_v27, %v12257_v9  ;;  %v1287_v15 = vmul.f32 %v12253_v27, %v12258_v17 }
  0xd3   : > { %v1288_v4 = vmul.f32 %v12253_v27, %v12259_v0  ;;  %v1289_v7 = vmul.f32 %v12253_v27, %v12260_v13  ;;  %v1290_v14 = vmul.f32 %v12253_v27, %v12261_v12  ;;  %v1291_v43 = vmul.f32 %v12253_v27, %v12262_v18 }
  0xd4   : > { %v1292_v45 = vmul.f32 %v12253_v27, %v12263_v36  ;;  %v1293_v39 = vmul.f32 %v12253_v27, %v12264_v48  ;;  %v1326_v52 = vrot.slane %v1278_v61, 1  ;;  %v1327_v35 = vrot.slane %v1279_v47, 1  ;;  %v12271_v61 = vld [vmem:[#allocation47_spill] sm:$0xff] }
  0xd5   : > { %v1329_v11 = vrot.slane %v1280_v41, 1  ;;  %v1294_v44 = vmul.f32 %v12253_v27, %v12265_v40  ;;  %v1295_v50 = vmul.f32 %v12253_v27, %v12266_v63  ;;  %v1296_v29 = vmul.f32 %v12253_v27, %v12267_v58  ;;  %v12272_v41 = vld [vmem:[#allocation48_spill] sm:$0xff] }
  0xd6   : > { %v1297_v49 = vmul.f32 %v12253_v27, %v12268_v59  ;;  %v1298_v19 = vmul.f32 %v12253_v27, %v12269_v25  ;;  %v1299_v30 = vmul.f32 %v12253_v27, %v12270_v28  ;;  %v1300_v47 = vmul.f32 %v12253_v27, %v12271_v61 }
  0xd7   : > { %v1301_v24 = vmul.f32 %v12253_v27, %v12272_v41  ;;  %v1331_v51 = vrot.slane %v1281_v55, 1  ;;  %v1332_v16 = vrot.slane %v1282_v38, 1  ;;  %v1334_v63 = vrot.slane %v1283_v33, 1 }
  0xd8   : > { %v1336_v40 = vrot.slane %v1284_v42, 1  ;;  %v1328_v58 = vsel %vm705_vm1, %v1326_v52, %v1327_v35  ;;  %v1330_v59 = vsel %vm705_vm1, %v1327_v35, %v1329_v11  ;;  %v1337_v48 = vrot.slane %v1285_v6, 1 }
  0xd9   : > { %v1339_v36 = vrot.slane %v1286_v1, 1  ;;  %v1341_v25 = vrot.slane %v1287_v15, 1  ;;  %v1342_v18 = vrot.slane %v1288_v4, 1  ;;  %v1344_v12 = vrot.slane %v1289_v7, 1 }
  0xda   : > { %v1346_v28 = vrot.slane %v1290_v14, 1  ;;  %v1347_v13 = vrot.slane %v1291_v43, 1  ;;  %v1349_v0 = vrot.slane %v1292_v45, 1  ;;  %v1351_v61 = vrot.slane %v1293_v39, 1 }
  0xdb   : > { %v1352_v17 = vrot.slane %v1294_v44, 1  ;;  %v1354_v9 = vrot.slane %v1295_v50, 1  ;;  %v1356_v27 = vrot.slane %v1296_v29, 1  ;;  %v1357_v55 = vrot.slane %v1297_v49, 1  ;;  %v12276_v44 = vld [vmem:[#allocation35_spill] sm:$0xff]  ;;  %v12277_v50 = vld [vmem:[#allocation36_spill] sm:$0xff] }
  0xdc   : > { %v1359_v38 = vrot.slane %v1298_v19, 1  ;;  %v1333_v33 = vsel %vm705_vm1, %v1331_v51, %v1332_v16  ;;  %v1361_v42 = vrot.slane %v1299_v30, 1  ;;  %v1362_v52 = vrot.slane %v1300_v47, 1  ;;  %v12278_v29 = vld [vmem:[#allocation37_spill] sm:$0xff]  ;;  %v12279_v49 = vld [vmem:[#allocation38_spill] sm:$0xff]  ;;  %v12280_v19 = vld [vmem:[#allocation39_spill] sm:$0xff] }
  0xdd   : > { %v1364_v41 = vrot.slane %v1301_v24, 1  ;;  %v1335_v6 = vsel %vm705_vm1, %v1332_v16, %v1334_v63  ;;  %v1338_v1 = vsel %vm705_vm1, %v1336_v40, %v1337_v48  ;;  %v1340_v15 = vsel %vm705_vm1, %v1337_v48, %v1339_v36  ;;  %v12281_v30 = vld [vmem:[#allocation40_spill] sm:$0xff]  ;;  %v12282_v47 = vld [vmem:[#allocation41_spill] sm:$0xff] }
  0xde   : > { %v1343_v4 = vsel %vm705_vm1, %v1341_v25, %v1342_v18  ;;  %v1345_v7 = vsel %vm705_vm1, %v1342_v18, %v1344_v12  ;;  %v1348_v14 = vsel %vm705_vm1, %v1346_v28, %v1347_v13  ;;  %v1350_v43 = vsel %vm705_vm1, %v1347_v13, %v1349_v0 }
  0xdf   : > { %v1353_v45 = vsel %vm705_vm1, %v1351_v61, %v1352_v17  ;;  %v1355_v51 = vsel %vm705_vm1, %v1352_v17, %v1354_v9  ;;  %v1358_v24 = vsel %vm705_vm1, %v1356_v27, %v1357_v55  ;;  %v1360_v16 = vsel %vm705_vm1, %v1357_v55, %v1359_v38  ;;  %v12283_v27 = vld [vmem:[#allocation42_spill] sm:$0xff]  ;;  %v12284_v38 = vld [vmem:[#allocation43_spill] sm:$0xff] }
  0xe0   : > { %v7563_v39 = vadd.f32 %v1328_v58, %v7451_v54  ;;  %v1363_v36 = vsel %vm705_vm1, %v1361_v42, %v1362_v52  ;;  %v1365_v48 = vsel %vm705_vm1, %v1362_v52, %v1364_v41  ;;  %v7568_v12 = vadd.f32 %v1330_v59, %v7456_v57 }
  0xe1   : > { %v7571_v0 = vadd.f32 %v1333_v33, %v7459_v46  ;;  %v7574_v13 = vadd.f32 %v1335_v6, %v7462_v23  ;;  %v7577_v9 = vadd.f32 %v1338_v1, %v7465_v8  ;;  %v7580_v17 = vadd.f32 %v1340_v15, %v7468_v34  ;;  %v12285_v1 = vld [vmem:[#allocation44_spill] sm:$0xff] }
  0xe2   : > { %v7583_v54 = vadd.f32 %v1343_v4, %v7471_v60  ;;  %v7586_v18 = vadd.f32 %v1345_v7, %v7474_v56  ;;  %v7589_v57 = vadd.f32 %v1348_v14, %v7477_v31  ;;  %v7592_v46 = vadd.f32 %v1350_v43, %v7480_v10  ;;  %v12273_v10 = vld [vmem:[#allocation57_spill] sm:$0xff]  ;;  %v12287_v14 = vld [vmem:[#allocation46_spill] sm:$0xff] }
  0xe3   : > { %v7595_v23 = vadd.f32 %v1353_v45, %v7483_v20  ;;  %v7598_v8 = vadd.f32 %v1355_v51, %v7486_v53  ;;  %v7601_v34 = vadd.f32 %v1358_v24, %v7489_v2  ;;  %v7604_v60 = vadd.f32 %v1360_v16, %v7492_v21  ;;  %v12286_v4 = vld [vmem:[#allocation45_spill] sm:$0xff]  ;;  %v12288_v45 = vld [vmem:[#allocation47_spill] sm:$0xff]  ;;  %v12289_v24 = vld [vmem:[#allocation48_spill] sm:$0xff] }
  0xe4   : > { %v7607_v56 = vadd.f32 %v1363_v36, %v7495_v3  ;;  %v7610_v31 = vadd.f32 %v1365_v48, %v7498_v26  ;;  %v1402_v35 = vmul.f32 %v12273_v10, %v12235_v62  ;;  %v1403_v20 = vmul.f32 %v12273_v10, %v12236_v32  ;;  %v12274_v3 = vld [vmem:[#allocation33_spill] sm:$0xff]  ;;  %v12275_v26 = vld [vmem:[#allocation34_spill] sm:$0xff] }
  0xe5   : > { %v1404_v53 = vmul.f32 %v12273_v10, %v12254_v37  ;;  %v1405_v2 = vmul.f32 %v12273_v10, %v12255_v22  ;;  %v1406_v21 = vmul.f32 %v12273_v10, %v12256_v5  ;;  %v1407_v11 = vmul.f32 %v12273_v10, %v12274_v3  ;;  %v12290_v36 = vld [vmem:[#allocation49_spill] sm:$0xff] }
  0xe6   : > { %v1408_v40 = vmul.f32 %v12273_v10, %v12275_v26  ;;  %v1409_v63 = vmul.f32 %v12273_v10, %v12276_v44  ;;  %v1410_v58 = vmul.f32 %v12273_v10, %v12277_v50  ;;  %v1411_v59 = vmul.f32 %v12273_v10, %v12278_v29 }
  0xe7   : > { %v1412_v25 = vmul.f32 %v12273_v10, %v12279_v49  ;;  %v1413_v28 = vmul.f32 %v12273_v10, %v12280_v19  ;;  %v1414_v61 = vmul.f32 %v12273_v10, %v12281_v30  ;;  %v1415_v41 = vmul.f32 %v12273_v10, %v12282_v47 }
  0xe8   : > { %v1416_v55 = vmul.f32 %v12273_v10, %v12283_v27  ;;  %v1417_v33 = vmul.f32 %v12273_v10, %v12284_v38  ;;  %v1450_v42 = vrot.slane %v1402_v35, 1  ;;  %v1451_v52 = vrot.slane %v1403_v20, 1  ;;  %v12291_v35 = vld [vmem:[#allocation50_spill] sm:$0xff] }
  0xe9   : > { %v1453_v6 = vrot.slane %v1404_v53, 1  ;;  %v1418_v15 = vmul.f32 %v12273_v10, %v12285_v1  ;;  %v1419_v7 = vmul.f32 %v12273_v10, %v12286_v4  ;;  %v1420_v43 = vmul.f32 %v12273_v10, %v12287_v14  ;;  %v12292_v53 = vld [vmem:[#allocation51_spill] sm:$0xff] }
  0xea   : > { %v1421_v51 = vmul.f32 %v12273_v10, %v12288_v45  ;;  %v1422_v16 = vmul.f32 %v12273_v10, %v12289_v24  ;;  %v1423_v48 = vmul.f32 %v12273_v10, %v12290_v36  ;;  %v1424_v20 = vmul.f32 %v12273_v10, %v12291_v35 }
  0xeb   : > { %v1425_v1 = vmul.f32 %v12273_v10, %v12292_v53  ;;  %v1455_v38 = vrot.slane %v1405_v2, 1  ;;  %v1456_v4 = vrot.slane %v1406_v21, 1  ;;  %v1458_v27 = vrot.slane %v1407_v11, 1 }
  0xec   : > { %v1460_v47 = vrot.slane %v1408_v40, 1  ;;  %v1452_v14 = vsel %vm705_vm1, %v1450_v42, %v1451_v52  ;;  %v1454_v45 = vsel %vm705_vm1, %v1451_v52, %v1453_v6  ;;  %v1461_v30 = vrot.slane %v1409_v63, 1  ;;  %v12294_v52 = vld [vmem:[#allocation3_spill] sm:$0xff] }
  0xed   : > { %v1463_v19 = vrot.slane %v1410_v58, 1  ;;  %v1465_v24 = vrot.slane %v1411_v59, 1  ;;  %v1466_v49 = vrot.slane %v1412_v25, 1  ;;  %v1468_v29 = vrot.slane %v1413_v28, 1 }
  0xee   : > { %v1470_v36 = vrot.slane %v1414_v61, 1  ;;  %v1471_v50 = vrot.slane %v1415_v41, 1  ;;  %v1473_v44 = vrot.slane %v1416_v55, 1  ;;  %v1475_v35 = vrot.slane %v1417_v33, 1 }
  0xef   : > { %v1476_v26 = vrot.slane %v1418_v15, 1  ;;  %v1478_v3 = vrot.slane %v1419_v7, 1  ;;  %v1480_v10 = vrot.slane %v1420_v43, 1  ;;  %v1481_v2 = vrot.slane %v1421_v51, 1 }
  0xf0   : > { %v1483_v21 = vrot.slane %v1422_v16, 1  ;;  %v1457_v11 = vsel %vm705_vm1, %v1455_v38, %v1456_v4  ;;  %v1485_v40 = vrot.slane %v1423_v48, 1  ;;  %v1486_v42 = vrot.slane %v1424_v20, 1 }
  0xf1   : > { %v1488_v53 = vrot.slane %v1425_v1, 1  ;;  %v1459_v63 = vsel %vm705_vm1, %v1456_v4, %v1458_v27  ;;  %v1462_v58 = vsel %vm705_vm1, %v1460_v47, %v1461_v30  ;;  %v1464_v59 = vsel %vm705_vm1, %v1461_v30, %v1463_v19  ;;  %v12295_v1 = vld [vmem:[#allocation4_spill] sm:$0xff] }
  0xf2   : > { %v1467_v25 = vsel %vm705_vm1, %v1465_v24, %v1466_v49  ;;  %v1469_v28 = vsel %vm705_vm1, %v1466_v49, %v1468_v29  ;;  %v1472_v61 = vsel %vm705_vm1, %v1470_v36, %v1471_v50  ;;  %v1474_v41 = vsel %vm705_vm1, %v1471_v50, %v1473_v44  ;;  %v12307_v24 = vld [vmem:[#allocation11_spill] sm:$0xff]  ;;  %v12308_v36 = vld [vmem:[#allocation12_spill] sm:$0xff] }
  0xf3   : > { %v1477_v55 = vsel %vm705_vm1, %v1475_v35, %v1476_v26  ;;  %v1479_v38 = vsel %vm705_vm1, %v1476_v26, %v1478_v3  ;;  %v1482_v33 = vsel %vm705_vm1, %v1480_v10, %v1481_v2  ;;  %v1484_v27 = vsel %vm705_vm1, %v1481_v2, %v1483_v21  ;;  %v12309_v35 = vld [vmem:[#allocation13_spill] sm:$0xff]  ;;  %v12311_v2 = vld [vmem:[#allocation15_spill] sm:$0xff] }
  0xf4   : > { %v7675_v47 = vadd.f32 %v1452_v14, %v7563_v39  ;;  %v1487_v19 = vsel %vm705_vm1, %v1485_v40, %v1486_v42  ;;  %v1489_v30 = vsel %vm705_vm1, %v1486_v42, %v1488_v53  ;;  %v7680_v29 = vadd.f32 %v1454_v45, %v7568_v12  ;;  %v12304_v14 = vld [vmem:[#allocation9_spill] sm:$0xff]  ;;  %v12306_v45 = vld [vmem:[#allocation10_spill] sm:$0xff] }
  0xf5   : > { %v7683_v44 = vadd.f32 %v1457_v11, %v7571_v0  ;;  %v7686_v50 = vadd.f32 %v1459_v63, %v7574_v13  ;;  %v7689_v3 = vadd.f32 %v1462_v58, %v7577_v9  ;;  %v7692_v26 = vadd.f32 %v1464_v59, %v7580_v17  ;;  %v12293_v13 = vld [vmem:[#allocation58_spill] sm:$0xff]  ;;  %v12312_v11 = vld [vmem:[#allocation16_spill] sm:$0xff]  ;;  %v12313_v42 = vld [vmem:[#allocation17_spill] sm:$0xff] }
  0xf6   : > { %v7695_v39 = vadd.f32 %v1467_v25, %v7583_v54  ;;  %v7698_v49 = vadd.f32 %v1469_v28, %v7586_v18  ;;  %v7701_v12 = vadd.f32 %v1472_v61, %v7589_v57  ;;  %v7704_v0 = vadd.f32 %v1474_v41, %v7592_v46  ;;  %v12310_v53 = vld [vmem:[#allocation14_spill] sm:$0xff]  ;;  %v12315_v25 = vld [vmem:[#allocation19_spill] sm:$0xff]  ;;  %v12316_v61 = vld [vmem:[#allocation20_spill] sm:$0xff] }
  0xf7   : > { %v1525_v6 = vrot.slane %v12294_v52, %v12293_v13  ;;  %v7709_v9 = vadd.f32 %v1477_v55, %v7595_v23  ;;  %v7712_v17 = vadd.f32 %v1479_v38, %v7598_v8  ;;  %v7715_v54 = vadd.f32 %v1482_v33, %v7601_v34  ;;  %v12296_v8 = vld [vmem:[#allocation5_spill] sm:$0xff]  ;;  %v12298_v34 = vld [vmem:[#allocation6_spill] sm:$0xff] }
  0xf8   : > { %v7718_v18 = vadd.f32 %v1484_v27, %v7604_v60  ;;  %v7721_v57 = vadd.f32 %v1487_v19, %v7607_v56  ;;  %v7724_v46 = vadd.f32 %v1489_v30, %v7610_v31  ;;  %v7728_v23 = vrot.slane %v12295_v1, %v12293_v13  ;;  %v12300_v60 = vld [vmem:[#allocation7_spill] sm:$0xff]  ;;  %v12302_v56 = vld [vmem:[#allocation8_spill] sm:$0xff]  ;;  %v12314_v58 = vld [vmem:[#allocation18_spill] sm:$0xff] }
  0xf9   : > { %v7732_v15 = vrot.slane %v12296_v8, %v12293_v13  ;;  %v7736_v4 = vrot.slane %v12298_v34, %v12293_v13  ;;  %v7740_v7 = vrot.slane %v12300_v60, %v12293_v13  ;;  %v7744_v31 = vrot.slane %v12302_v56, %v12293_v13  ;;  %v12317_v55 = vld [vmem:[#allocation21_spill] sm:$0xff]  ;;  %v12318_v33 = vld [vmem:[#allocation22_spill] sm:$0xff]  ;;  %v12319_v19 = vld [vmem:[#allocation23_spill] sm:$0xff] }
  0xfa   : > { %v7748_v43 = vrot.slane %v12304_v14, %v12293_v13  ;;  %v1526_v51 = vmul.f32 %v1525_v6, %v12306_v45  ;;  %v1527_v16 = vmul.f32 %v1525_v6, %v12307_v24  ;;  %v1528_v48 = vmul.f32 %v1525_v6, %v12308_v36  ;;  %v12320_v13 = vld [vmem:[#allocation24_spill] sm:$0xff]  ;;  %v12321_v36 = vld [vmem:[#allocation25_spill] sm:$0xff]  ;;  %v12322_v45 = vld [vmem:[#allocation26_spill] sm:$0xff] }
  0xfb   : > { %12297 = vst [vmem:[#allocation53_spill] sm:$0xff] %v7732_v15  ;;  %12299 = vst [vmem:[#allocation54_spill] sm:$0xff] %v7736_v4  ;;  %v1529_v20 = vmul.f32 %v1525_v6, %v12309_v35  ;;  %v1530_v10 = vmul.f32 %v1525_v6, %v12310_v53  ;;  %v1531_v21 = vmul.f32 %v1525_v6, %v12311_v2  ;;  %v12323_v1 = vld [vmem:[#allocation27_spill] sm:$0xff] }
  0xfc   : > { %12301 = vst [vmem:[#allocation55_spill] sm:$0xff] %v7740_v7  ;;  %12303 = vst [vmem:[#allocation56_spill] sm:$0xff] %v7744_v31  ;;  %v1532_v40 = vmul.f32 %v1525_v6, %v12312_v11  ;;  %v1533_v63 = vmul.f32 %v1525_v6, %v12313_v42  ;;  %v1534_v59 = vmul.f32 %v1525_v6, %v12314_v58  ;;  %v1575_v60 = vrot.slane %v1526_v51, 2 }
  0xfd   : > { %12305 = vst [vmem:[#allocation57_spill] sm:$0xff] %v7748_v43  ;;  %v1535_v28 = vmul.f32 %v1525_v6, %v12315_v25  ;;  %v1536_v41 = vmul.f32 %v1525_v6, %v12316_v61  ;;  %v1537_v38 = vmul.f32 %v1525_v6, %v12317_v55  ;;  %v1538_v27 = vmul.f32 %v1525_v6, %v12318_v33 }
  0xfe   : > { %v1539_v30 = vmul.f32 %v1525_v6, %v12319_v19  ;;  %v1540_v14 = vmul.f32 %v1525_v6, %v12320_v13  ;;  %v1541_v24 = vmul.f32 %v1525_v6, %v12321_v36  ;;  %v1542_v56 = vmul.f32 %v1525_v6, %v12322_v45  ;;  %v12324_v13 = vld [vmem:[#allocation33_spill] sm:$0xff] }
  0xff   : > { %v1576_v34 = vrot.slane %v1527_v16, 2  ;;  %v1578_v8 = vrot.slane %v1528_v48, 2  ;;  %v1543_v52 = vmul.f32 %v1525_v6, %v12323_v1  ;;  %v1544_v43 = vmul.f32 %v1525_v6, %v12235_v62 }
 0x100   : > { %v1545_v31 = vmul.f32 %v1525_v6, %v12236_v32  ;;  %v1546_v7 = vmul.f32 %v1525_v6, %v12254_v37  ;;  %v1547_v4 = vmul.f32 %v1525_v6, %v12255_v22  ;;  %v1548_v15 = vmul.f32 %v1525_v6, %v12256_v5 }
 0x101   : > { %v1549_v19 = vmul.f32 %v1525_v6, %v12324_v13  ;;  %v1580_v36 = vrot.slane %v1529_v20, 2  ;;  %v1581_v33 = vrot.slane %v1530_v10, 2  ;;  %v1583_v45 = vrot.slane %v1531_v21, 2 }
 0x102   : > { %v1585_v51 = vrot.slane %v1532_v40, 2  ;;  %v1586_v16 = vrot.slane %v1533_v63, 2  ;;  %v1577_v48 = vsel %vm1574_vm2, %v1575_v60, %v1576_v34  ;;  %v1579_v1 = vsel %vm1574_vm2, %v1576_v34, %v1578_v8 }
 0x103   : > { %v1588_v62 = vrot.slane %v1534_v59, 2  ;;  %v1590_v55 = vrot.slane %v1535_v28, 2  ;;  %v1591_v32 = vrot.slane %v1536_v41, 2  ;;  %v1593_v61 = vrot.slane %v1537_v38, 2  ;;  %v12329_v41 = vld [vmem:[#allocation21_spill] sm:$0xff]  ;;  %v12330_v38 = vld [vmem:[#allocation22_spill] sm:$0xff] }
 0x104   : > { %v1595_v37 = vrot.slane %v1538_v27, 2  ;;  %v1596_v25 = vrot.slane %v1539_v30, 2  ;;  %v1598_v22 = vrot.slane %v1540_v14, 2  ;;  %v1600_v58 = vrot.slane %v1541_v24, 2  ;;  %v12331_v27 = vld [vmem:[#allocation23_spill] sm:$0xff]  ;;  %v12332_v30 = vld [vmem:[#allocation24_spill] sm:$0xff] }
 0x105   : > { %v1601_v5 = vrot.slane %v1542_v56, 2  ;;  %v1603_v42 = vrot.slane %v1543_v52, 2  ;;  %v1582_v6 = vsel %vm1574_vm2, %v1580_v36, %v1581_v33  ;;  %v1605_v20 = vrot.slane %v1544_v43, 2 }
 0x106   : > { %v1606_v10 = vrot.slane %v1545_v31, 2  ;;  %v1608_v21 = vrot.slane %v1546_v7, 2  ;;  %v1584_v40 = vsel %vm1574_vm2, %v1581_v33, %v1583_v45  ;;  %v1610_v60 = vrot.slane %v1547_v4, 2 }
 0x107   : > { %v1611_v63 = vrot.slane %v1548_v15, 2  ;;  %v1613_v8 = vrot.slane %v1549_v19, 2  ;;  %v1587_v34 = vsel %vm1574_vm2, %v1585_v51, %v1586_v16  ;;  %v1589_v59 = vsel %vm1574_vm2, %v1586_v16, %v1588_v62  ;;  %v12333_v16 = vld [vmem:[#allocation25_spill] sm:$0xff] }
 0x108   : > { %v1592_v28 = vsel %vm1574_vm2, %v1590_v55, %v1591_v32  ;;  %v1594_v14 = vsel %vm1574_vm2, %v1591_v32, %v1593_v61  ;;  %v1597_v52 = vsel %vm1574_vm2, %v1595_v37, %v1596_v25  ;;  %v1599_v56 = vsel %vm1574_vm2, %v1596_v25, %v1598_v22  ;;  %v12328_v25 = vld [vmem:[#allocation20_spill] sm:$0xff] }
 0x109   : > { %v1602_v31 = vsel %vm1574_vm2, %v1600_v58, %v1601_v5  ;;  %v1604_v7 = vsel %vm1574_vm2, %v1601_v5, %v1603_v42  ;;  %v1607_v4 = vsel %vm1574_vm2, %v1605_v20, %v1606_v10  ;;  %v1609_v15 = vsel %vm1574_vm2, %v1606_v10, %v1608_v21  ;;  %v12335_v10 = vld [vmem:[#allocation27_spill] sm:$0xff] }
 0x10a   : > { %v7789_v43 = vadd.f32 %v1577_v48, %v7675_v47  ;;  %v7792_v62 = vadd.f32 %v1579_v1, %v7680_v29  ;;  %v1612_v32 = vsel %vm1574_vm2, %v1610_v60, %v1611_v63  ;;  %v1614_v37 = vsel %vm1574_vm2, %v1611_v63, %v1613_v8  ;;  %v12337_v63 = vld [vmem:[#allocation29_spill] sm:$0xff] }
 0x10b   : > { %v7797_v22 = vadd.f32 %v1582_v6, %v7683_v44  ;;  %v7800_v45 = vadd.f32 %v1584_v40, %v7686_v50  ;;  %v7803_v5 = vadd.f32 %v1587_v34, %v7689_v3  ;;  %v7806_v24 = vadd.f32 %v1589_v59, %v7692_v26  ;;  %v12334_v6 = vld [vmem:[#allocation26_spill] sm:$0xff]  ;;  %v12336_v40 = vld [vmem:[#allocation28_spill] sm:$0xff] }
 0x10c   : > { %v7809_v47 = vadd.f32 %v1592_v28, %v7695_v39  ;;  %v7812_v29 = vadd.f32 %v1594_v14, %v7698_v49  ;;  %v7815_v1 = vadd.f32 %v1597_v52, %v7701_v12  ;;  %v7818_v44 = vadd.f32 %v1599_v56, %v7704_v0  ;;  %v12338_v14 = vld [vmem:[#allocation30_spill] sm:$0xff]  ;;  %v12339_v56 = vld [vmem:[#allocation31_spill] sm:$0xff] }
 0x10d   : > { %v7821_v50 = vadd.f32 %v1602_v31, %v7709_v9  ;;  %v7824_v3 = vadd.f32 %v1604_v7, %v7712_v17  ;;  %v7827_v26 = vadd.f32 %v1607_v4, %v7715_v54  ;;  %v7830_v39 = vadd.f32 %v1609_v15, %v7718_v18  ;;  %v12325_v18 = vld [vmem:[#allocation17_spill] sm:$0xff]  ;;  %v12340_v7 = vld [vmem:[#allocation32_spill] sm:$0xff] }
 0x10e   : > { %v7833_v49 = vadd.f32 %v1612_v32, %v7721_v57  ;;  %v7836_v12 = vadd.f32 %v1614_v37, %v7724_v46  ;;  %v1651_v0 = vmul.f32 %v7728_v23, %v12309_v35  ;;  %v1652_v9 = vmul.f32 %v7728_v23, %v12310_v53  ;;  %v12326_v57 = vld [vmem:[#allocation18_spill] sm:$0xff]  ;;  %v12327_v46 = vld [vmem:[#allocation19_spill] sm:$0xff] }
 0x10f   : > { %v1653_v17 = vmul.f32 %v7728_v23, %v12311_v2  ;;  %v1654_v54 = vmul.f32 %v7728_v23, %v12312_v11  ;;  %v1655_v36 = vmul.f32 %v7728_v23, %v12325_v18  ;;  %v1656_v42 = vmul.f32 %v7728_v23, %v12326_v57  ;;  %v12341_v32 = vld [vmem:[#allocation34_spill] sm:$0xff]  ;;  %v12342_v2 = vld [vmem:[#allocation35_spill] sm:$0xff] }
 0x110   : > { %v1657_v58 = vmul.f32 %v7728_v23, %v12327_v46  ;;  %v1658_v61 = vmul.f32 %v7728_v23, %v12328_v25  ;;  %v1659_v55 = vmul.f32 %v7728_v23, %v12329_v41  ;;  %v1660_v33 = vmul.f32 %v7728_v23, %v12330_v38 }
 0x111   : > { %v1661_v19 = vmul.f32 %v7728_v23, %v12331_v27  ;;  %v1662_v51 = vmul.f32 %v7728_v23, %v12332_v30  ;;  %v1663_v48 = vmul.f32 %v7728_v23, %v12333_v16  ;;  %v1664_v20 = vmul.f32 %v7728_v23, %v12334_v6 }
 0x112   : > { %v1665_v21 = vmul.f32 %v7728_v23, %v12335_v10  ;;  %v1666_v60 = vmul.f32 %v7728_v23, %v12336_v40  ;;  %v1667_v8 = vmul.f32 %v7728_v23, %v12337_v63  ;;  %v1699_v34 = vrot.slane %v1651_v0, 2 }
 0x113   : > { %v1700_v59 = vrot.slane %v1652_v9, 2  ;;  %v1702_v28 = vrot.slane %v1653_v17, 2  ;;  %v1668_v52 = vmul.f32 %v7728_v23, %v12338_v14  ;;  %v1669_v31 = vmul.f32 %v7728_v23, %v12339_v56  ;;  %v12343_v9 = vld [vmem:[#allocation36_spill] sm:$0xff] }
 0x114   : > { %v1670_v4 = vmul.f32 %v7728_v23, %v12340_v7  ;;  %v1671_v15 = vmul.f32 %v7728_v23, %v12324_v13  ;;  %v1672_v37 = vmul.f32 %v7728_v23, %v12341_v32  ;;  %v1673_v0 = vmul.f32 %v7728_v23, %v12342_v2 }
 0x115   : > { %v1674_v17 = vmul.f32 %v7728_v23, %v12343_v9  ;;  %v1704_v53 = vrot.slane %v1654_v54, 2  ;;  %v1705_v35 = vrot.slane %v1655_v36, 2  ;;  %v1707_v14 = vrot.slane %v1656_v42, 2 }
 0x116   : > { %v1709_v63 = vrot.slane %v1657_v58, 2  ;;  %v1710_v56 = vrot.slane %v1658_v61, 2  ;;  %v1701_v40 = vsel %vm1574_vm2, %v1699_v34, %v1700_v59  ;;  %v1703_v7 = vsel %vm1574_vm2, %v1700_v59, %v1702_v28  ;;  %v12347_v28 = vld [vmem:[#allocation23_spill] sm:$0xff] }
 0x117   : > { %v1712_v10 = vrot.slane %v1659_v55, 2  ;;  %v1714_v13 = vrot.slane %v1660_v33, 2  ;;  %v1715_v6 = vrot.slane %v1661_v19, 2  ;;  %v1717_v16 = vrot.slane %v1662_v51, 2 }
 0x118   : > { %v1719_v32 = vrot.slane %v1663_v48, 2  ;;  %v1720_v30 = vrot.slane %v1664_v20, 2  ;;  %v1722_v27 = vrot.slane %v1665_v21, 2  ;;  %v1724_v2 = vrot.slane %v1666_v60, 2 }
 0x119   : > { %v1725_v38 = vrot.slane %v1667_v8, 2  ;;  %v1727_v41 = vrot.slane %v1668_v52, 2  ;;  %v1706_v23 = vsel %vm1574_vm2, %v1704_v53, %v1705_v35  ;;  %v1729_v54 = vrot.slane %v1669_v31, 2  ;;  %v12348_v52 = vld [vmem:[#allocation24_spill] sm:$0xff]  ;;  %v12349_v31 = vld [vmem:[#allocation25_spill] sm:$0xff] }
 0x11a   : > { %v1730_v36 = vrot.slane %v1670_v4, 2  ;;  %v1732_v42 = vrot.slane %v1671_v15, 2  ;;  %v1708_v58 = vsel %vm1574_vm2, %v1705_v35, %v1707_v14  ;;  %v1734_v61 = vrot.slane %v1672_v37, 2  ;;  %v12350_v4 = vld [vmem:[#allocation26_spill] sm:$0xff] }
 0x11b   : > { %v1735_v34 = vrot.slane %v1673_v0, 2  ;;  %v1737_v59 = vrot.slane %v1674_v17, 2  ;;  %v1711_v55 = vsel %vm1574_vm2, %v1709_v63, %v1710_v56  ;;  %v1713_v33 = vsel %vm1574_vm2, %v1710_v56, %v1712_v10  ;;  %v12352_v0 = vld [vmem:[#allocation28_spill] sm:$0xff] }
 0x11c   : > { %v1716_v19 = vsel %vm1574_vm2, %v1714_v13, %v1715_v6  ;;  %v1718_v51 = vsel %vm1574_vm2, %v1715_v6, %v1717_v16  ;;  %v1721_v48 = vsel %vm1574_vm2, %v1719_v32, %v1720_v30  ;;  %v1723_v53 = vsel %vm1574_vm2, %v1720_v30, %v1722_v27  ;;  %v12351_v32 = vld [vmem:[#allocation27_spill] sm:$0xff] }
 0x11d   : > { %v1726_v20 = vsel %vm1574_vm2, %v1724_v2, %v1725_v38  ;;  %v1728_v21 = vsel %vm1574_vm2, %v1725_v38, %v1727_v41  ;;  %v1731_v35 = vsel %vm1574_vm2, %v1729_v54, %v1730_v36  ;;  %v1733_v60 = vsel %vm1574_vm2, %v1730_v36, %v1732_v42  ;;  %v12354_v36 = vld [vmem:[#allocation30_spill] sm:$0xff] }
 0x11e   : > { %v7901_v63 = vadd.f32 %v1701_v40, %v7789_v43  ;;  %v7904_v10 = vadd.f32 %v1703_v7, %v7792_v62  ;;  %v1736_v13 = vsel %vm1574_vm2, %v1734_v61, %v1735_v34  ;;  %v1738_v16 = vsel %vm1574_vm2, %v1735_v34, %v1737_v59  ;;  %v12356_v34 = vld [vmem:[#allocation32_spill] sm:$0xff] }
 0x11f   : > { %v7909_v27 = vadd.f32 %v1706_v23, %v7797_v22  ;;  %v7912_v2 = vadd.f32 %v1708_v58, %v7800_v45  ;;  %v7915_v41 = vadd.f32 %v1711_v55, %v7803_v5  ;;  %v7918_v38 = vadd.f32 %v1713_v33, %v7806_v24  ;;  %v12353_v23 = vld [vmem:[#allocation29_spill] sm:$0xff]  ;;  %v12355_v58 = vld [vmem:[#allocation31_spill] sm:$0xff] }
 0x120   : > { %v7921_v43 = vadd.f32 %v1716_v19, %v7809_v47  ;;  %v7924_v62 = vadd.f32 %v1718_v51, %v7812_v29  ;;  %v7927_v30 = vadd.f32 %v1721_v48, %v7815_v1  ;;  %v7930_v22 = vadd.f32 %v1723_v53, %v7818_v44  ;;  %v12344_v44 = vld [vmem:[#allocation53_spill] sm:$0xff]  ;;  %v12358_v53 = vld [vmem:[#allocation34_spill] sm:$0xff] }
 0x121   : > { %v7933_v45 = vadd.f32 %v1726_v20, %v7821_v50  ;;  %v7936_v5 = vadd.f32 %v1728_v21, %v7824_v3  ;;  %v7939_v24 = vadd.f32 %v1731_v35, %v7827_v26  ;;  %v7942_v47 = vadd.f32 %v1733_v60, %v7830_v39  ;;  %v12357_v51 = vld [vmem:[#allocation33_spill] sm:$0xff]  ;;  %v12359_v21 = vld [vmem:[#allocation35_spill] sm:$0xff] }
 0x122   : > { %v7945_v29 = vadd.f32 %v1736_v13, %v7833_v49  ;;  %v7948_v1 = vadd.f32 %v1738_v16, %v7836_v12  ;;  %v1775_v6 = vmul.f32 %v12344_v44, %v12312_v11  ;;  %v1776_v50 = vmul.f32 %v12344_v44, %v12325_v18  ;;  %v12345_v49 = vld [vmem:[#allocation21_spill] sm:$0xff]  ;;  %v12346_v12 = vld [vmem:[#allocation22_spill] sm:$0xff] }
 0x123   : > { %v1777_v3 = vmul.f32 %v12344_v44, %v12326_v57  ;;  %v1778_v26 = vmul.f32 %v12344_v44, %v12327_v46  ;;  %v1779_v39 = vmul.f32 %v12344_v44, %v12328_v25  ;;  %v1780_v40 = vmul.f32 %v12344_v44, %v12345_v49  ;;  %v12360_v13 = vld [vmem:[#allocation37_spill] sm:$0xff]  ;;  %v12361_v57 = vld [vmem:[#allocation38_spill] sm:$0xff] }
 0x124   : > { %v1781_v8 = vmul.f32 %v12344_v44, %v12346_v12  ;;  %v1782_v14 = vmul.f32 %v12344_v44, %v12347_v28  ;;  %v1783_v56 = vmul.f32 %v12344_v44, %v12348_v52  ;;  %v1784_v7 = vmul.f32 %v12344_v44, %v12349_v31 }
 0x125   : > { %v1785_v15 = vmul.f32 %v12344_v44, %v12350_v4  ;;  %v1786_v37 = vmul.f32 %v12344_v44, %v12351_v32  ;;  %v1787_v17 = vmul.f32 %v12344_v44, %v12352_v0  ;;  %v1788_v54 = vmul.f32 %v12344_v44, %v12353_v23 }
 0x126   : > { %v1789_v42 = vmul.f32 %v12344_v44, %v12354_v36  ;;  %v1790_v61 = vmul.f32 %v12344_v44, %v12355_v58  ;;  %v1791_v59 = vmul.f32 %v12344_v44, %v12356_v34  ;;  %v1823_v55 = vrot.slane %v1775_v6, 2 }
 0x127   : > { %v1824_v33 = vrot.slane %v1776_v50, 2  ;;  %v1826_v19 = vrot.slane %v1777_v3, 2  ;;  %v1792_v48 = vmul.f32 %v12344_v44, %v12357_v51  ;;  %v1793_v20 = vmul.f32 %v12344_v44, %v12358_v53  ;;  %v12362_v50 = vld [vmem:[#allocation39_spill] sm:$0xff] }
 0x128   : > { %v1794_v35 = vmul.f32 %v12344_v44, %v12359_v21  ;;  %v1795_v60 = vmul.f32 %v12344_v44, %v12343_v9  ;;  %v1796_v16 = vmul.f32 %v12344_v44, %v12360_v13  ;;  %v1797_v6 = vmul.f32 %v12344_v44, %v12361_v57 }
 0x129   : > { %v1798_v3 = vmul.f32 %v12344_v44, %v12362_v50  ;;  %v1828_v18 = vrot.slane %v1778_v26, 2  ;;  %v1829_v11 = vrot.slane %v1779_v39, 2  ;;  %v1831_v51 = vrot.slane %v1780_v40, 2 }
 0x12a   : > { %v1833_v34 = vrot.slane %v1781_v8, 2  ;;  %v1834_v53 = vrot.slane %v1782_v14, 2  ;;  %v1825_v58 = vsel %vm1574_vm2, %v1823_v55, %v1824_v33  ;;  %v1827_v21 = vsel %vm1574_vm2, %v1824_v33, %v1826_v19  ;;  %v12366_v19 = vld [vmem:[#allocation26_spill] sm:$0xff] }
 0x12b   : > { %v1836_v36 = vrot.slane %v1783_v56, 2  ;;  %v1838_v9 = vrot.slane %v1784_v7, 2  ;;  %v1839_v23 = vrot.slane %v1785_v15, 2  ;;  %v1841_v0 = vrot.slane %v1786_v37, 2 }
 0x12c   : > { %v1843_v13 = vrot.slane %v1787_v17, 2  ;;  %v1844_v32 = vrot.slane %v1788_v54, 2  ;;  %v1846_v4 = vrot.slane %v1789_v42, 2  ;;  %v1848_v57 = vrot.slane %v1790_v61, 2 }
 0x12d   : > { %v1849_v31 = vrot.slane %v1791_v59, 2  ;;  %v1851_v52 = vrot.slane %v1792_v48, 2  ;;  %v1830_v44 = vsel %vm1574_vm2, %v1828_v18, %v1829_v11  ;;  %v1853_v26 = vrot.slane %v1793_v20, 2  ;;  %v12367_v48 = vld [vmem:[#allocation27_spill] sm:$0xff]  ;;  %v12368_v20 = vld [vmem:[#allocation28_spill] sm:$0xff] }
 0x12e   : > { %v1854_v39 = vrot.slane %v1794_v35, 2  ;;  %v1856_v40 = vrot.slane %v1795_v60, 2  ;;  %v1832_v8 = vsel %vm1574_vm2, %v1829_v11, %v1831_v51  ;;  %v1858_v14 = vrot.slane %v1796_v16, 2  ;;  %v12369_v35 = vld [vmem:[#allocation29_spill] sm:$0xff] }
 0x12f   : > { %v1859_v55 = vrot.slane %v1797_v6, 2  ;;  %v1861_v33 = vrot.slane %v1798_v3, 2  ;;  %v1835_v56 = vsel %vm1574_vm2, %v1833_v34, %v1834_v53  ;;  %v1837_v7 = vsel %vm1574_vm2, %v1834_v53, %v1836_v36  ;;  %v12371_v6 = vld [vmem:[#allocation31_spill] sm:$0xff] }
 0x130   : > { %v1840_v15 = vsel %vm1574_vm2, %v1838_v9, %v1839_v23  ;;  %v1842_v37 = vsel %vm1574_vm2, %v1839_v23, %v1841_v0  ;;  %v1845_v17 = vsel %vm1574_vm2, %v1843_v13, %v1844_v32  ;;  %v1847_v18 = vsel %vm1574_vm2, %v1844_v32, %v1846_v4  ;;  %v12370_v13 = vld [vmem:[#allocation30_spill] sm:$0xff] }
 0x131   : > { %v1850_v54 = vsel %vm1574_vm2, %v1848_v57, %v1849_v31  ;;  %v1852_v42 = vsel %vm1574_vm2, %v1849_v31, %v1851_v52  ;;  %v1855_v11 = vsel %vm1574_vm2, %v1853_v26, %v1854_v39  ;;  %v1857_v61 = vsel %vm1574_vm2, %v1854_v39, %v1856_v40  ;;  %v12373_v39 = vld [vmem:[#allocation33_spill] sm:$0xff] }
 0x132   : > { %v8013_v34 = vadd.f32 %v1825_v58, %v7901_v63  ;;  %v8016_v36 = vadd.f32 %v1827_v21, %v7904_v10  ;;  %v1860_v9 = vsel %vm1574_vm2, %v1858_v14, %v1859_v55  ;;  %v1862_v0 = vsel %vm1574_vm2, %v1859_v55, %v1861_v33  ;;  %v12375_v55 = vld [vmem:[#allocation35_spill] sm:$0xff] }
 0x133   : > { %v8021_v4 = vadd.f32 %v1830_v44, %v7909_v27  ;;  %v8024_v57 = vadd.f32 %v1832_v8, %v7912_v2  ;;  %v8027_v52 = vadd.f32 %v1835_v56, %v7915_v41  ;;  %v8030_v31 = vadd.f32 %v1837_v7, %v7918_v38  ;;  %v12372_v44 = vld [vmem:[#allocation32_spill] sm:$0xff]  ;;  %v12374_v8 = vld [vmem:[#allocation34_spill] sm:$0xff] }
 0x134   : > { %v8033_v63 = vadd.f32 %v1840_v15, %v7921_v43  ;;  %v8036_v10 = vadd.f32 %v1842_v37, %v7924_v62  ;;  %v8039_v32 = vadd.f32 %v1845_v17, %v7927_v30  ;;  %v8042_v27 = vadd.f32 %v1847_v18, %v7930_v22  ;;  %v12363_v22 = vld [vmem:[#allocation54_spill] sm:$0xff]  ;;  %v12376_v37 = vld [vmem:[#allocation36_spill] sm:$0xff]  ;;  %v12377_v18 = vld [vmem:[#allocation37_spill] sm:$0xff] }
 0x135   : > { %v8045_v2 = vadd.f32 %v1850_v54, %v7933_v45  ;;  %v8048_v41 = vadd.f32 %v1852_v42, %v7936_v5  ;;  %v8051_v38 = vadd.f32 %v1855_v11, %v7939_v24  ;;  %v8054_v43 = vadd.f32 %v1857_v61, %v7942_v47  ;;  %v12378_v42 = vld [vmem:[#allocation38_spill] sm:$0xff] }
 0x136   : > { %v8057_v62 = vadd.f32 %v1860_v9, %v7945_v29  ;;  %v8060_v30 = vadd.f32 %v1862_v0, %v7948_v1  ;;  %v1899_v23 = vmul.f32 %v12363_v22, %v12327_v46  ;;  %v1900_v45 = vmul.f32 %v12363_v22, %v12328_v25  ;;  %v12364_v29 = vld [vmem:[#allocation24_spill] sm:$0xff]  ;;  %v12365_v1 = vld [vmem:[#allocation25_spill] sm:$0xff] }
 0x137   : > { %v1901_v5 = vmul.f32 %v12363_v22, %v12345_v49  ;;  %v1902_v24 = vmul.f32 %v12363_v22, %v12346_v12  ;;  %v1903_v47 = vmul.f32 %v12363_v22, %v12347_v28  ;;  %v1904_v58 = vmul.f32 %v12363_v22, %v12364_v29  ;;  %v12379_v9 = vld [vmem:[#allocation40_spill] sm:$0xff]  ;;  %v12380_v49 = vld [vmem:[#allocation41_spill] sm:$0xff] }
 0x138   : > { %v1905_v59 = vmul.f32 %v12363_v22, %v12365_v1  ;;  %v1906_v51 = vmul.f32 %v12363_v22, %v12366_v19  ;;  %v1907_v53 = vmul.f32 %v12363_v22, %v12367_v48  ;;  %v1908_v21 = vmul.f32 %v12363_v22, %v12368_v20 }
 0x139   : > { %v1909_v60 = vmul.f32 %v12363_v22, %v12369_v35  ;;  %v1910_v16 = vmul.f32 %v12363_v22, %v12370_v13  ;;  %v1911_v3 = vmul.f32 %v12363_v22, %v12371_v6  ;;  %v1912_v26 = vmul.f32 %v12363_v22, %v12372_v44 }
 0x13a   : > { %v1913_v40 = vmul.f32 %v12363_v22, %v12373_v39  ;;  %v1914_v14 = vmul.f32 %v12363_v22, %v12374_v8  ;;  %v1915_v33 = vmul.f32 %v12363_v22, %v12375_v55  ;;  %v1947_v56 = vrot.slane %v1899_v23, 2 }
 0x13b   : > { %v1948_v7 = vrot.slane %v1900_v45, 2  ;;  %v1950_v15 = vrot.slane %v1901_v5, 2  ;;  %v1916_v17 = vmul.f32 %v12363_v22, %v12376_v37  ;;  %v1917_v54 = vmul.f32 %v12363_v22, %v12377_v18  ;;  %v12381_v45 = vld [vmem:[#allocation42_spill] sm:$0xff] }
 0x13c   : > { %v1918_v11 = vmul.f32 %v12363_v22, %v12378_v42  ;;  %v1919_v61 = vmul.f32 %v12363_v22, %v12362_v50  ;;  %v1920_v0 = vmul.f32 %v12363_v22, %v12379_v9  ;;  %v1921_v23 = vmul.f32 %v12363_v22, %v12380_v49 }
 0x13d   : > { %v1922_v5 = vmul.f32 %v12363_v22, %v12381_v45  ;;  %v1952_v25 = vrot.slane %v1902_v24, 2  ;;  %v1953_v46 = vrot.slane %v1903_v47, 2  ;;  %v1955_v37 = vrot.slane %v1904_v58, 2 }
 0x13e   : > { %v1957_v55 = vrot.slane %v1905_v59, 2  ;;  %v1958_v18 = vrot.slane %v1906_v51, 2  ;;  %v1949_v8 = vsel %vm1574_vm2, %v1947_v56, %v1948_v7  ;;  %v1951_v42 = vsel %vm1574_vm2, %v1948_v7, %v1950_v15  ;;  %v12385_v15 = vld [vmem:[#allocation29_spill] sm:$0xff] }
 0x13f   : > { %v1960_v39 = vrot.slane %v1907_v53, 2  ;;  %v1962_v50 = vrot.slane %v1908_v21, 2  ;;  %v1963_v44 = vrot.slane %v1909_v60, 2  ;;  %v1965_v6 = vrot.slane %v1910_v16, 2 }
 0x140   : > { %v1967_v9 = vrot.slane %v1911_v3, 2  ;;  %v1968_v13 = vrot.slane %v1912_v26, 2  ;;  %v1970_v35 = vrot.slane %v1913_v40, 2  ;;  %v1972_v49 = vrot.slane %v1914_v14, 2 }
 0x141   : > { %v1973_v20 = vrot.slane %v1915_v33, 2  ;;  %v1975_v48 = vrot.slane %v1916_v17, 2  ;;  %v1954_v22 = vsel %vm1574_vm2, %v1952_v25, %v1953_v46  ;;  %v1977_v24 = vrot.slane %v1917_v54, 2  ;;  %v12386_v17 = vld [vmem:[#allocation30_spill] sm:$0xff]  ;;  %v12387_v54 = vld [vmem:[#allocation31_spill] sm:$0xff] }
 0x142   : > { %v1978_v47 = vrot.slane %v1918_v11, 2  ;;  %v1980_v58 = vrot.slane %v1919_v61, 2  ;;  %v1956_v59 = vsel %vm1574_vm2, %v1953_v46, %v1955_v37  ;;  %v1982_v51 = vrot.slane %v1920_v0, 2  ;;  %v12388_v11 = vld [vmem:[#allocation32_spill] sm:$0xff] }
 0x143   : > { %v1983_v56 = vrot.slane %v1921_v23, 2  ;;  %v1985_v7 = vrot.slane %v1922_v5, 2  ;;  %v1959_v53 = vsel %vm1574_vm2, %v1957_v55, %v1958_v18  ;;  %v1961_v21 = vsel %vm1574_vm2, %v1958_v18, %v1960_v39  ;;  %v12390_v23 = vld [vmem:[#allocation34_spill] sm:$0xff] }
 0x144   : > { %v1964_v60 = vsel %vm1574_vm2, %v1962_v50, %v1963_v44  ;;  %v1966_v16 = vsel %vm1574_vm2, %v1963_v44, %v1965_v6  ;;  %v1969_v3 = vsel %vm1574_vm2, %v1967_v9, %v1968_v13  ;;  %v1971_v25 = vsel %vm1574_vm2, %v1968_v13, %v1970_v35  ;;  %v12389_v9 = vld [vmem:[#allocation33_spill] sm:$0xff] }
 0x145   : > { %v1974_v26 = vsel %vm1574_vm2, %v1972_v49, %v1973_v20  ;;  %v1976_v40 = vsel %vm1574_vm2, %v1973_v20, %v1975_v48  ;;  %v1979_v46 = vsel %vm1574_vm2, %v1977_v24, %v1978_v47  ;;  %v1981_v14 = vsel %vm1574_vm2, %v1978_v47, %v1980_v58  ;;  %v12392_v47 = vld [vmem:[#allocation36_spill] sm:$0xff] }
 0x146   : > { %v8125_v55 = vadd.f32 %v1949_v8, %v8013_v34  ;;  %v8128_v39 = vadd.f32 %v1951_v42, %v8016_v36  ;;  %v1984_v50 = vsel %vm1574_vm2, %v1982_v51, %v1983_v56  ;;  %v1986_v6 = vsel %vm1574_vm2, %v1983_v56, %v1985_v7  ;;  %v12394_v56 = vld [vmem:[#allocation38_spill] sm:$0xff] }
 0x147   : > { %v8133_v35 = vadd.f32 %v1954_v22, %v8021_v4  ;;  %v8136_v49 = vadd.f32 %v1956_v59, %v8024_v57  ;;  %v8139_v48 = vadd.f32 %v1959_v53, %v8027_v52  ;;  %v8142_v20 = vadd.f32 %v1961_v21, %v8030_v31  ;;  %v12391_v22 = vld [vmem:[#allocation35_spill] sm:$0xff]  ;;  %v12393_v59 = vld [vmem:[#allocation37_spill] sm:$0xff] }
 0x148   : > { %v8145_v34 = vadd.f32 %v1964_v60, %v8033_v63  ;;  %v8148_v36 = vadd.f32 %v1966_v16, %v8036_v10  ;;  %v8151_v13 = vadd.f32 %v1969_v3, %v8039_v32  ;;  %v8154_v4 = vadd.f32 %v1971_v25, %v8042_v27  ;;  %v12382_v27 = vld [vmem:[#allocation55_spill] sm:$0xff]  ;;  %v12396_v25 = vld [vmem:[#allocation40_spill] sm:$0xff] }
 0x149   : > { %v8157_v57 = vadd.f32 %v1974_v26, %v8045_v2  ;;  %v8160_v52 = vadd.f32 %v1976_v40, %v8048_v41  ;;  %v8163_v31 = vadd.f32 %v1979_v46, %v8051_v38  ;;  %v8166_v63 = vadd.f32 %v1981_v14, %v8054_v43  ;;  %v12395_v16 = vld [vmem:[#allocation39_spill] sm:$0xff]  ;;  %v12397_v40 = vld [vmem:[#allocation41_spill] sm:$0xff] }
 0x14a   : > { %v8169_v10 = vadd.f32 %v1984_v50, %v8057_v62  ;;  %v8172_v32 = vadd.f32 %v1986_v6, %v8060_v30  ;;  %v2023_v44 = vmul.f32 %v12382_v27, %v12346_v12  ;;  %v2024_v2 = vmul.f32 %v12382_v27, %v12347_v28  ;;  %v12383_v62 = vld [vmem:[#allocation27_spill] sm:$0xff]  ;;  %v12384_v30 = vld [vmem:[#allocation28_spill] sm:$0xff] }
 0x14b   : > { %v2025_v41 = vmul.f32 %v12382_v27, %v12364_v29  ;;  %v2026_v38 = vmul.f32 %v12382_v27, %v12365_v1  ;;  %v2027_v43 = vmul.f32 %v12382_v27, %v12366_v19  ;;  %v2028_v8 = vmul.f32 %v12382_v27, %v12383_v62  ;;  %v12398_v50 = vld [vmem:[#allocation43_spill] sm:$0xff]  ;;  %v12399_v29 = vld [vmem:[#allocation44_spill] sm:$0xff] }
 0x14c   : > { %v2029_v33 = vmul.f32 %v12382_v27, %v12384_v30  ;;  %v2030_v37 = vmul.f32 %v12382_v27, %v12385_v15  ;;  %v2031_v18 = vmul.f32 %v12382_v27, %v12386_v17  ;;  %v2032_v42 = vmul.f32 %v12382_v27, %v12387_v54 }
 0x14d   : > { %v2033_v61 = vmul.f32 %v12382_v27, %v12388_v11  ;;  %v2034_v0 = vmul.f32 %v12382_v27, %v12389_v9  ;;  %v2035_v5 = vmul.f32 %v12382_v27, %v12390_v23  ;;  %v2036_v24 = vmul.f32 %v12382_v27, %v12391_v22 }
 0x14e   : > { %v2037_v58 = vmul.f32 %v12382_v27, %v12392_v47  ;;  %v2038_v51 = vmul.f32 %v12382_v27, %v12393_v59  ;;  %v2039_v7 = vmul.f32 %v12382_v27, %v12394_v56  ;;  %v2071_v53 = vrot.slane %v2023_v44, 2 }
 0x14f   : > { %v2072_v21 = vrot.slane %v2024_v2, 2  ;;  %v2074_v60 = vrot.slane %v2025_v41, 2  ;;  %v2040_v3 = vmul.f32 %v12382_v27, %v12395_v16  ;;  %v2041_v26 = vmul.f32 %v12382_v27, %v12396_v25  ;;  %v12400_v2 = vld [vmem:[#allocation45_spill] sm:$0xff] }
 0x150   : > { %v2042_v46 = vmul.f32 %v12382_v27, %v12397_v40  ;;  %v2043_v14 = vmul.f32 %v12382_v27, %v12381_v45  ;;  %v2044_v6 = vmul.f32 %v12382_v27, %v12398_v50  ;;  %v2045_v44 = vmul.f32 %v12382_v27, %v12399_v29 }
 0x151   : > { %v2046_v41 = vmul.f32 %v12382_v27, %v12400_v2  ;;  %v2076_v28 = vrot.slane %v2026_v38, 2  ;;  %v2077_v12 = vrot.slane %v2027_v43, 2  ;;  %v2079_v16 = vrot.slane %v2028_v8, 2 }
 0x152   : > { %v2081_v56 = vrot.slane %v2029_v33, 2  ;;  %v2082_v25 = vrot.slane %v2030_v37, 2  ;;  %v2073_v59 = vsel %vm1574_vm2, %v2071_v53, %v2072_v21  ;;  %v2075_v40 = vsel %vm1574_vm2, %v2072_v21, %v2074_v60  ;;  %v12404_v60 = vld [vmem:[#allocation32_spill] sm:$0xff] }
 0x153   : > { %v2084_v47 = vrot.slane %v2031_v18, 2  ;;  %v2086_v45 = vrot.slane %v2032_v42, 2  ;;  %v2087_v22 = vrot.slane %v2033_v61, 2  ;;  %v2089_v23 = vrot.slane %v2034_v0, 2 }
 0x154   : > { %v2091_v50 = vrot.slane %v2035_v5, 2  ;;  %v2092_v9 = vrot.slane %v2036_v24, 2  ;;  %v2094_v11 = vrot.slane %v2037_v58, 2  ;;  %v2096_v29 = vrot.slane %v2038_v51, 2 }
 0x155   : > { %v2097_v54 = vrot.slane %v2039_v7, 2  ;;  %v2099_v17 = vrot.slane %v2040_v3, 2  ;;  %v2078_v27 = vsel %vm1574_vm2, %v2076_v28, %v2077_v12  ;;  %v2101_v38 = vrot.slane %v2041_v26, 2  ;;  %v12405_v3 = vld [vmem:[#allocation33_spill] sm:$0xff]  ;;  %v12406_v26 = vld [vmem:[#allocation34_spill] sm:$0xff] }
 0x156   : > { %v2102_v43 = vrot.slane %v2042_v46, 2  ;;  %v2104_v8 = vrot.slane %v2043_v14, 2  ;;  %v2080_v33 = vsel %vm1574_vm2, %v2077_v12, %v2079_v16  ;;  %v2106_v37 = vrot.slane %v2044_v6, 2  ;;  %v12407_v46 = vld [vmem:[#allocation35_spill] sm:$0xff] }
 0x157   : > { %v2107_v53 = vrot.slane %v2045_v44, 2  ;;  %v2109_v21 = vrot.slane %v2046_v41, 2  ;;  %v2083_v18 = vsel %vm1574_vm2, %v2081_v56, %v2082_v25  ;;  %v2085_v42 = vsel %vm1574_vm2, %v2082_v25, %v2084_v47  ;;  %v12409_v44 = vld [vmem:[#allocation37_spill] sm:$0xff] }
 0x158   : > { %v2088_v61 = vsel %vm1574_vm2, %v2086_v45, %v2087_v22  ;;  %v2090_v0 = vsel %vm1574_vm2, %v2087_v22, %v2089_v23  ;;  %v2093_v5 = vsel %vm1574_vm2, %v2091_v50, %v2092_v9  ;;  %v2095_v28 = vsel %vm1574_vm2, %v2092_v9, %v2094_v11  ;;  %v12408_v50 = vld [vmem:[#allocation36_spill] sm:$0xff] }
 0x159   : > { %v2098_v24 = vsel %vm1574_vm2, %v2096_v29, %v2097_v54  ;;  %v2100_v58 = vsel %vm1574_vm2, %v2097_v54, %v2099_v17  ;;  %v2103_v12 = vsel %vm1574_vm2, %v2101_v38, %v2102_v43  ;;  %v2105_v51 = vsel %vm1574_vm2, %v2102_v43, %v2104_v8  ;;  %v12411_v43 = vld [vmem:[#allocation39_spill] sm:$0xff] }
 0x15a   : > { %v8237_v56 = vadd.f32 %v2073_v59, %v8125_v55  ;;  %v8240_v47 = vadd.f32 %v2075_v40, %v8128_v39  ;;  %v2108_v45 = vsel %vm1574_vm2, %v2106_v37, %v2107_v53  ;;  %v2110_v23 = vsel %vm1574_vm2, %v2107_v53, %v2109_v21  ;;  %v12413_v53 = vld [vmem:[#allocation41_spill] sm:$0xff] }
 0x15b   : > { %v8245_v11 = vadd.f32 %v2078_v27, %v8133_v35  ;;  %v8248_v29 = vadd.f32 %v2080_v33, %v8136_v49  ;;  %v8251_v17 = vadd.f32 %v2083_v18, %v8139_v48  ;;  %v8254_v54 = vadd.f32 %v2085_v42, %v8142_v20  ;;  %v12410_v27 = vld [vmem:[#allocation38_spill] sm:$0xff]  ;;  %v12412_v33 = vld [vmem:[#allocation40_spill] sm:$0xff] }
 0x15c   : > { %v8257_v55 = vadd.f32 %v2088_v61, %v8145_v34  ;;  %v8260_v39 = vadd.f32 %v2090_v0, %v8148_v36  ;;  %v8263_v9 = vadd.f32 %v2093_v5, %v8151_v13  ;;  %v8266_v35 = vadd.f32 %v2095_v28, %v8154_v4  ;;  %v12401_v4 = vld [vmem:[#allocation56_spill] sm:$0xff]  ;;  %v12414_v0 = vld [vmem:[#allocation42_spill] sm:$0xff]  ;;  %v12415_v28 = vld [vmem:[#allocation43_spill] sm:$0xff] }
 0x15d   : > { %v8269_v49 = vadd.f32 %v2098_v24, %v8157_v57  ;;  %v8272_v48 = vadd.f32 %v2100_v58, %v8160_v52  ;;  %v8275_v20 = vadd.f32 %v2103_v12, %v8163_v31  ;;  %v8278_v34 = vadd.f32 %v2105_v51, %v8166_v63  ;;  %v12416_v58 = vld [vmem:[#allocation44_spill] sm:$0xff] }
 0x15e   : > { %v8281_v36 = vadd.f32 %v2108_v45, %v8169_v10  ;;  %v8284_v13 = vadd.f32 %v2110_v23, %v8172_v32  ;;  %v2147_v22 = vmul.f32 %v12401_v4, %v12365_v1  ;;  %v2148_v57 = vmul.f32 %v12401_v4, %v12366_v19  ;;  %v12402_v10 = vld [vmem:[#allocation30_spill] sm:$0xff]  ;;  %v12403_v32 = vld [vmem:[#allocation31_spill] sm:$0xff] }
 0x15f   : > { %v2149_v52 = vmul.f32 %v12401_v4, %v12383_v62  ;;  %v2150_v31 = vmul.f32 %v12401_v4, %v12384_v30  ;;  %v2151_v63 = vmul.f32 %v12401_v4, %v12385_v15  ;;  %v2152_v59 = vmul.f32 %v12401_v4, %v12402_v10  ;;  %v12417_v45 = vld [vmem:[#allocation46_spill] sm:$0xff]  ;;  %v12418_v62 = vld [vmem:[#allocation47_spill] sm:$0xff] }
 0x160   : > { %v2153_v7 = vmul.f32 %v12401_v4, %v12403_v32  ;;  %v2154_v16 = vmul.f32 %v12401_v4, %v12404_v60  ;;  %v2155_v25 = vmul.f32 %v12401_v4, %v12405_v3  ;;  %v2156_v40 = vmul.f32 %v12401_v4, %v12406_v26 }
 0x161   : > { %v2157_v14 = vmul.f32 %v12401_v4, %v12407_v46  ;;  %v2158_v6 = vmul.f32 %v12401_v4, %v12408_v50  ;;  %v2159_v41 = vmul.f32 %v12401_v4, %v12409_v44  ;;  %v2160_v38 = vmul.f32 %v12401_v4, %v12410_v27 }
 0x162   : > { %v2161_v8 = vmul.f32 %v12401_v4, %v12411_v43  ;;  %v2162_v37 = vmul.f32 %v12401_v4, %v12412_v33  ;;  %v2163_v21 = vmul.f32 %v12401_v4, %v12413_v53  ;;  %v2195_v18 = vrot.slane %v2147_v22, 2 }
 0x163   : > { %v2196_v42 = vrot.slane %v2148_v57, 2  ;;  %v2198_v61 = vrot.slane %v2149_v52, 2  ;;  %v2164_v5 = vmul.f32 %v12401_v4, %v12414_v0  ;;  %v2165_v24 = vmul.f32 %v12401_v4, %v12415_v28  ;;  %v12419_v57 = vld [vmem:[#allocation48_spill] sm:$0xff] }
 0x164   : > { %v2166_v12 = vmul.f32 %v12401_v4, %v12416_v58  ;;  %v2167_v51 = vmul.f32 %v12401_v4, %v12400_v2  ;;  %v2168_v23 = vmul.f32 %v12401_v4, %v12417_v45  ;;  %v2169_v22 = vmul.f32 %v12401_v4, %v12418_v62 }
 0x165   : > { %v2170_v52 = vmul.f32 %v12401_v4, %v12419_v57  ;;  %v2200_v19 = vrot.slane %v2150_v31, 2  ;;  %v2201_v1 = vrot.slane %v2151_v63, 2  ;;  %v2203_v0 = vrot.slane %v2152_v59, 2 }
 0x166   : > { %v2205_v53 = vrot.slane %v2153_v7, 2  ;;  %v2206_v28 = vrot.slane %v2154_v16, 2  ;;  %v2197_v33 = vsel %vm1574_vm2, %v2195_v18, %v2196_v42  ;;  %v2199_v58 = vsel %vm1574_vm2, %v2196_v42, %v2198_v61  ;;  %v12423_v61 = vld [vmem:[#allocation35_spill] sm:$0xff] }
 0x167   : > { %v2208_v43 = vrot.slane %v2155_v25, 2  ;;  %v2210_v2 = vrot.slane %v2156_v40, 2  ;;  %v2211_v27 = vrot.slane %v2157_v14, 2  ;;  %v2213_v44 = vrot.slane %v2158_v6, 2 }
 0x168   : > { %v2215_v45 = vrot.slane %v2159_v41, 2  ;;  %v2216_v50 = vrot.slane %v2160_v38, 2  ;;  %v2218_v46 = vrot.slane %v2161_v8, 2  ;;  %v2220_v62 = vrot.slane %v2162_v37, 2 }
 0x169   : > { %v2221_v26 = vrot.slane %v2163_v21, 2  ;;  %v2223_v3 = vrot.slane %v2164_v5, 2  ;;  %v2202_v4 = vsel %vm1574_vm2, %v2200_v19, %v2201_v1  ;;  %v2225_v31 = vrot.slane %v2165_v24, 2  ;;  %v12424_v5 = vld [vmem:[#allocation36_spill] sm:$0xff]  ;;  %v12425_v24 = vld [vmem:[#allocation37_spill] sm:$0xff] }
 0x16a   : > { %v2226_v63 = vrot.slane %v2166_v12, 2  ;;  %v2228_v59 = vrot.slane %v2167_v51, 2  ;;  %v2204_v7 = vsel %vm1574_vm2, %v2201_v1, %v2203_v0  ;;  %v2230_v16 = vrot.slane %v2168_v23, 2  ;;  %v12426_v12 = vld [vmem:[#allocation38_spill] sm:$0xff] }
 0x16b   : > { %v2231_v18 = vrot.slane %v2169_v22, 2  ;;  %v2233_v42 = vrot.slane %v2170_v52, 2  ;;  %v2207_v25 = vsel %vm1574_vm2, %v2205_v53, %v2206_v28  ;;  %v2209_v40 = vsel %vm1574_vm2, %v2206_v28, %v2208_v43  ;;  %v12428_v22 = vld [vmem:[#allocation40_spill] sm:$0xff] }
 0x16c   : > { %v2212_v14 = vsel %vm1574_vm2, %v2210_v2, %v2211_v27  ;;  %v2214_v6 = vsel %vm1574_vm2, %v2211_v27, %v2213_v44  ;;  %v2217_v41 = vsel %vm1574_vm2, %v2215_v45, %v2216_v50  ;;  %v2219_v19 = vsel %vm1574_vm2, %v2216_v50, %v2218_v46  ;;  %v12427_v45 = vld [vmem:[#allocation39_spill] sm:$0xff] }
 0x16d   : > { %v2222_v38 = vsel %vm1574_vm2, %v2220_v62, %v2221_v26  ;;  %v2224_v8 = vsel %vm1574_vm2, %v2221_v26, %v2223_v3  ;;  %v2227_v1 = vsel %vm1574_vm2, %v2225_v31, %v2226_v63  ;;  %v2229_v37 = vsel %vm1574_vm2, %v2226_v63, %v2228_v59  ;;  %v12430_v63 = vld [vmem:[#allocation42_spill] sm:$0xff] }
 0x16e   : > { %v8349_v53 = vadd.f32 %v2197_v33, %v8237_v56  ;;  %v8352_v43 = vadd.f32 %v2199_v58, %v8240_v47  ;;  %v2232_v2 = vsel %vm1574_vm2, %v2230_v16, %v2231_v18  ;;  %v2234_v44 = vsel %vm1574_vm2, %v2231_v18, %v2233_v42  ;;  %v12432_v18 = vld [vmem:[#allocation44_spill] sm:$0xff] }
 0x16f   : > { %v8357_v46 = vadd.f32 %v2202_v4, %v8245_v11  ;;  %v8360_v62 = vadd.f32 %v2204_v7, %v8248_v29  ;;  %v8363_v3 = vadd.f32 %v2207_v25, %v8251_v17  ;;  %v8366_v26 = vadd.f32 %v2209_v40, %v8254_v54  ;;  %v12429_v4 = vld [vmem:[#allocation41_spill] sm:$0xff]  ;;  %v12431_v7 = vld [vmem:[#allocation43_spill] sm:$0xff] }
 0x170   : > { %v8369_v56 = vadd.f32 %v2212_v14, %v8257_v55  ;;  %v8372_v47 = vadd.f32 %v2214_v6, %v8260_v39  ;;  %v8375_v50 = vadd.f32 %v2217_v41, %v8263_v9  ;;  %v8378_v11 = vadd.f32 %v2219_v19, %v8266_v35  ;;  %v12420_v35 = vld [vmem:[#allocation57_spill] sm:$0xff]  ;;  %v12434_v19 = vld [vmem:[#allocation46_spill] sm:$0xff] }
 0x171   : > { %v8381_v29 = vadd.f32 %v2222_v38, %v8269_v49  ;;  %v8384_v17 = vadd.f32 %v2224_v8, %v8272_v48  ;;  %v8387_v54 = vadd.f32 %v2227_v1, %v8275_v20  ;;  %v8390_v55 = vadd.f32 %v2229_v37, %v8278_v34  ;;  %v12433_v6 = vld [vmem:[#allocation45_spill] sm:$0xff]  ;;  %v12435_v37 = vld [vmem:[#allocation47_spill] sm:$0xff] }
 0x172   : > { %v8393_v39 = vadd.f32 %v2232_v2, %v8281_v36  ;;  %v8396_v9 = vadd.f32 %v2234_v44, %v8284_v13  ;;  %v2271_v27 = vmul.f32 %v12420_v35, %v12384_v30  ;;  %v2272_v49 = vmul.f32 %v12420_v35, %v12385_v15  ;;  %v12421_v36 = vld [vmem:[#allocation33_spill] sm:$0xff]  ;;  %v12422_v13 = vld [vmem:[#allocation34_spill] sm:$0xff] }
 0x173   : > { %v2273_v48 = vmul.f32 %v12420_v35, %v12402_v10  ;;  %v2274_v20 = vmul.f32 %v12420_v35, %v12403_v32  ;;  %v2275_v34 = vmul.f32 %v12420_v35, %v12404_v60  ;;  %v2276_v33 = vmul.f32 %v12420_v35, %v12421_v36 }
 0x174   : > { %v2277_v21 = vmul.f32 %v12420_v35, %v12422_v13  ;;  %v2278_v0 = vmul.f32 %v12420_v35, %v12423_v61  ;;  %v2279_v28 = vmul.f32 %v12420_v35, %v12424_v5  ;;  %v2280_v58 = vmul.f32 %v12420_v35, %v12425_v24 }
 0x175   : > { %v2281_v51 = vmul.f32 %v12420_v35, %v12426_v12  ;;  %v2282_v23 = vmul.f32 %v12420_v35, %v12427_v45  ;;  %v2283_v52 = vmul.f32 %v12420_v35, %v12428_v22  ;;  %v2284_v31 = vmul.f32 %v12420_v35, %v12429_v4 }
 0x176   : > { %v2285_v59 = vmul.f32 %v12420_v35, %v12430_v63  ;;  %v2286_v16 = vmul.f32 %v12420_v35, %v12431_v7  ;;  %v2287_v42 = vmul.f32 %v12420_v35, %v12432_v18  ;;  %v2319_v25 = vrot.slane %v2271_v27, 2  ;;  %v12436_v7 = vld [vmem:[#allocation49_spill] sm:$0xff]  ;;  %v12437_v27 = vld [vmem:[#allocation50_spill] sm:$0xff] }
 0x177   : > { %v2320_v40 = vrot.slane %v2272_v49, 2  ;;  %v2322_v14 = vrot.slane %v2273_v48, 2  ;;  %v2288_v41 = vmul.f32 %v12420_v35, %v12433_v6  ;;  %v2289_v38 = vmul.f32 %v12420_v35, %v12434_v19  ;;  %v12438_v48 = vld [vmem:[#allocation51_spill] sm:$0xff] }
 0x178   : > { %v2324_v8 = vrot.slane %v2274_v20, 2  ;;  %v2325_v1 = vrot.slane %v2275_v34, 2  ;;  %v2290_v2 = vmul.f32 %v12420_v35, %v12435_v37  ;;  %v2291_v44 = vmul.f32 %v12420_v35, %v12419_v57 }
 0x179   : > { %v2292_v18 = vmul.f32 %v12420_v35, %v12436_v7  ;;  %v2293_v49 = vmul.f32 %v12420_v35, %v12437_v27  ;;  %v2294_v6 = vmul.f32 %v12420_v35, %v12438_v48  ;;  %v2327_v63 = vrot.slane %v2276_v33, 2 }
 0x17a   : > { %v2329_v4 = vrot.slane %v2277_v21, 2  ;;  %v2330_v19 = vrot.slane %v2278_v0, 2  ;;  %v2321_v20 = vsel %vm1574_vm2, %v2319_v25, %v2320_v40  ;;  %v2323_v34 = vsel %vm1574_vm2, %v2320_v40, %v2322_v14 }
 0x17b   : > { %v2332_v37 = vrot.slane %v2279_v28, 2  ;;  %v2334_v22 = vrot.slane %v2280_v58, 2  ;;  %v2326_v57 = vsel %vm1574_vm2, %v2324_v8, %v2325_v1  ;;  %v2335_v45 = vrot.slane %v2281_v51, 2 }
 0x17c   : > { %v2337_v12 = vrot.slane %v2282_v23, 2  ;;  %v2339_v7 = vrot.slane %v2283_v52, 2  ;;  %v2340_v24 = vrot.slane %v2284_v31, 2  ;;  %v2342_v5 = vrot.slane %v2285_v59, 2 }
 0x17d   : > { %v2344_v27 = vrot.slane %v2286_v16, 2  ;;  %v2345_v61 = vrot.slane %v2287_v42, 2  ;;  %v2347_v13 = vrot.slane %v2288_v41, 2  ;;  %v2349_v35 = vrot.slane %v2289_v38, 2  ;;  %v12439_v16 = vld [vmem:[#allocation52_spill] sm:$0xff] }
 0x17e   : > { %v2350_v33 = vrot.slane %v2290_v2, 2  ;;  %v2352_v21 = vrot.slane %v2291_v44, 2  ;;  %v2328_v0 = vsel %vm1574_vm2, %v2325_v1, %v2327_v63  ;;  %v2354_v25 = vrot.slane %v2292_v18, 2  ;;  %v12452_v44 = vld [vmem:[#allocation12_spill] sm:$0xff] }
 0x17f   : > { %v2355_v48 = vrot.slane %v2293_v49, 2  ;;  %v2357_v40 = vrot.slane %v2294_v6, 2  ;;  %v2331_v28 = vsel %vm1574_vm2, %v2329_v4, %v2330_v19  ;;  %v2333_v58 = vsel %vm1574_vm2, %v2330_v19, %v2332_v37  ;;  %v12441_v6 = vld [vmem:[#allocation4_spill] sm:$0xff]  ;;  %v12453_v49 = vld [vmem:[#allocation9_spill] sm:$0xff] }
 0x180   : > { %v2336_v51 = vsel %vm1574_vm2, %v2334_v22, %v2335_v45  ;;  %v2338_v23 = vsel %vm1574_vm2, %v2335_v45, %v2337_v12  ;;  %v2341_v52 = vsel %vm1574_vm2, %v2339_v7, %v2340_v24  ;;  %v2343_v31 = vsel %vm1574_vm2, %v2340_v24, %v2342_v5 }
 0x181   : > { %v2346_v59 = vsel %vm1574_vm2, %v2344_v27, %v2345_v61  ;;  %v2393_v42 = vsub.s32 3, %v12439_v16  ;;  %v2348_v63 = vsel %vm1574_vm2, %v2345_v61, %v2347_v13  ;;  %v2351_v18 = vsel %vm1574_vm2, %v2349_v35, %v2350_v33  ;;  %v12456_v35 = vld [vmem:[#allocation14_spill] sm:$0xff]  ;;  %v12469_v16 = vld [vmem:[#allocation27_spill] sm:$0xff] }
 0x182   : > { %v2353_v4 = vsel %vm1574_vm2, %v2350_v33, %v2352_v21  ;;  %v8462_v14 = vadd.f32 %v2321_v20, %v8349_v53  ;;  %v2356_v22 = vsel %vm1574_vm2, %v2354_v25, %v2355_v48  ;;  %v2358_v12 = vsel %vm1574_vm2, %v2355_v48, %v2357_v40  ;;  %v12455_v20 = vld [vmem:[#allocation13_spill] sm:$0xff]  ;;  %v12457_v21 = vld [vmem:[#allocation15_spill] sm:$0xff]  ;;  %v12458_v25 = vld [vmem:[#allocation16_spill] sm:$0xff] }
 0x183   : > { %v8467_v45 = vadd.f32 %v2323_v34, %v8352_v43  ;;  %v8470_v5 = vadd.f32 %v2326_v57, %v8357_v46  ;;  %v8473_v24 = vadd.f32 %v2328_v0, %v8360_v62  ;;  %v8476_v13 = vadd.f32 %v2331_v28, %v8363_v3  ;;  %v12440_v46 = vld [vmem:[#allocation3_spill] sm:$0xff]  ;;  %v12459_v28 = vld [vmem:[#allocation17_spill] sm:$0xff] }
 0x184   : > { %v8479_v61 = vadd.f32 %v2333_v58, %v8366_v26  ;;  %v8482_v53 = vadd.f32 %v2336_v51, %v8369_v56  ;;  %v8485_v7 = vadd.f32 %v2338_v23, %v8372_v47  ;;  %v8488_v43 = vadd.f32 %v2341_v52, %v8375_v50  ;;  %v12460_v51 = vld [vmem:[#allocation18_spill] sm:$0xff]  ;;  %v12461_v52 = vld [vmem:[#allocation19_spill] sm:$0xff] }
 0x185   : > { %v8491_v57 = vadd.f32 %v2343_v31, %v8378_v11  ;;  %v2394_v62 = vrot.slane %v12440_v46, %v2393_v42  ;;  %v8495_v3 = vadd.f32 %v2346_v59, %v8381_v29  ;;  %v8498_v26 = vadd.f32 %v2348_v63, %v8384_v17  ;;  %v12442_v29 = vld [vmem:[#allocation5_spill] sm:$0xff]  ;;  %v12444_v17 = vld [vmem:[#allocation6_spill] sm:$0xff]  ;;  %v12462_v59 = vld [vmem:[#allocation20_spill] sm:$0xff] }
 0x186   : > { %v8501_v56 = vadd.f32 %v2351_v18, %v8387_v54  ;;  %v8504_v47 = vadd.f32 %v2353_v4, %v8390_v55  ;;  %v8507_v50 = vadd.f32 %v2356_v22, %v8393_v39  ;;  %v8510_v11 = vadd.f32 %v2358_v12, %v8396_v9  ;;  %v12446_v54 = vld [vmem:[#allocation7_spill] sm:$0xff]  ;;  %v12448_v55 = vld [vmem:[#allocation8_spill] sm:$0xff]  ;;  %v12450_v39 = vld [vmem:[#allocation10_spill] sm:$0xff] }
 0x187   : > { %v8513_v41 = vrot.slane %v12441_v6, %v2393_v42  ;;  %v8516_v19 = vrot.slane %v12442_v29, %v2393_v42  ;;  %v8519_v38 = vrot.slane %v12444_v17, %v2393_v42  ;;  %v8522_v8 = vrot.slane %v12446_v54, %v2393_v42  ;;  %v12451_v9 = vld [vmem:[#allocation11_spill] sm:$0xff]  ;;  %v12463_v18 = vld [vmem:[#allocation21_spill] sm:$0xff]  ;;  %v12468_v6 = vld [vmem:[#allocation26_spill] sm:$0xff] }
 0x188   : > { %v8525_v1 = vrot.slane %v12448_v55, %v2393_v42  ;;  %v2395_v37 = vmul.f32 %v2394_v62, %v12450_v39  ;;  %v2396_v2 = vmul.f32 %v2394_v62, %v12451_v9  ;;  %v2397_v27 = vmul.f32 %v2394_v62, %v12452_v44  ;;  %v12465_v12 = vld [vmem:[#allocation23_spill] sm:$0xff]  ;;  %v12467_v9 = vld [vmem:[#allocation25_spill] sm:$0xff] }
 0x189   : > { %12443 = vst [vmem:[#allocation58_spill] sm:$0xff] %v8516_v19  ;;  %12445 = vst [vmem:[#allocation53_spill] sm:$0xff] %v8519_v38  ;;  %v8531_v48 = vrot.slane %v12453_v49, %v2393_v42  ;;  %v2398_v34 = vmul.f32 %v2394_v62, %v12455_v20  ;;  %v2399_v33 = vmul.f32 %v2394_v62, %v12456_v35  ;;  %v12464_v42 = vld [vmem:[#allocation22_spill] sm:$0xff]  ;;  %v12466_v49 = vld [vmem:[#allocation24_spill] sm:$0xff] }
 0x18a   : > { %12447 = vst [vmem:[#allocation54_spill] sm:$0xff] %v8522_v8  ;;  %12449 = vst [vmem:[#allocation55_spill] sm:$0xff] %v8525_v1  ;;  %v2400_v0 = vmul.f32 %v2394_v62, %v12457_v21  ;;  %v2401_v40 = vmul.f32 %v2394_v62, %v12458_v25  ;;  %v2402_v58 = vmul.f32 %v2394_v62, %v12459_v28  ;;  %v2444_v54 = vrot.slane %v2395_v37, 3 }
 0x18b   : > { %12454 = vst [vmem:[#allocation56_spill] sm:$0xff] %v8531_v48  ;;  %v2403_v23 = vmul.f32 %v2394_v62, %v12460_v51  ;;  %v2404_v31 = vmul.f32 %v2394_v62, %v12461_v52  ;;  %v2405_v63 = vmul.f32 %v2394_v62, %v12462_v59  ;;  %v2406_v4 = vmul.f32 %v2394_v62, %v12463_v18 }
 0x18c   : > { %v2407_v22 = vmul.f32 %v2394_v62, %v12464_v42  ;;  %v2408_v44 = vmul.f32 %v2394_v62, %v12465_v12  ;;  %v2409_v55 = vmul.f32 %v2394_v62, %v12466_v49  ;;  %v2410_v39 = vmul.f32 %v2394_v62, %v12467_v9 }
 0x18d   : > { %v2445_v17 = vrot.slane %v2396_v2, 3  ;;  %v2447_v29 = vrot.slane %v2397_v27, 3  ;;  %v2411_v46 = vmul.f32 %v2394_v62, %v12468_v6  ;;  %v2412_v48 = vmul.f32 %v2394_v62, %v12469_v16 }
 0x18e   : > { %v2413_v1 = vmul.f32 %v2394_v62, %v12384_v30  ;;  %v2414_v8 = vmul.f32 %v2394_v62, %v12385_v15  ;;  %v2415_v38 = vmul.f32 %v2394_v62, %v12402_v10  ;;  %v2416_v19 = vmul.f32 %v2394_v62, %v12403_v32 }
 0x18f   : > { %v2417_v12 = vmul.f32 %v2394_v62, %v12404_v60  ;;  %v2418_v49 = vmul.f32 %v2394_v62, %v12421_v36  ;;  %v2449_v9 = vrot.slane %v2398_v34, 3  ;;  %v2450_v37 = vrot.slane %v2399_v33, 3 }
 0x190   : > { %v2452_v2 = vrot.slane %v2400_v0, 3  ;;  %v2454_v27 = vrot.slane %v2401_v40, 3  ;;  %v2446_v6 = vsel %vm2443_vm3, %v2444_v54, %v2445_v17  ;;  %v2448_v16 = vsel %vm2443_vm3, %v2445_v17, %v2447_v29 }
 0x191   : > { %v2455_v42 = vrot.slane %v2402_v58, 3  ;;  %v2457_v30 = vrot.slane %v2403_v23, 3  ;;  %v2459_v18 = vrot.slane %v2404_v31, 3  ;;  %v2460_v15 = vrot.slane %v2405_v63, 3 }
 0x192   : > { %v2462_v59 = vrot.slane %v2406_v4, 3  ;;  %v2464_v10 = vrot.slane %v2407_v22, 3  ;;  %v2465_v52 = vrot.slane %v2408_v44, 3  ;;  %v2467_v32 = vrot.slane %v2409_v55, 3 }
 0x193   : > { %v2469_v51 = vrot.slane %v2410_v39, 3  ;;  %v2470_v60 = vrot.slane %v2411_v46, 3  ;;  %v2472_v28 = vrot.slane %v2412_v48, 3  ;;  %v2474_v62 = vrot.slane %v2413_v1, 3 }
 0x194   : > { %v2475_v34 = vrot.slane %v2414_v8, 3  ;;  %v2477_v33 = vrot.slane %v2415_v38, 3  ;;  %v2451_v0 = vsel %vm2443_vm3, %v2449_v9, %v2450_v37  ;;  %v2479_v40 = vrot.slane %v2416_v19, 3 }
 0x195   : > { %v2480_v54 = vrot.slane %v2417_v12, 3  ;;  %v2482_v36 = vrot.slane %v2418_v49, 3  ;;  %v2453_v29 = vsel %vm2443_vm3, %v2450_v37, %v2452_v2  ;;  %v2456_v17 = vsel %vm2443_vm3, %v2454_v27, %v2455_v42  ;;  %v12478_v12 = vld [vmem:[#allocation25_spill] sm:$0xff]  ;;  %v12479_v2 = vld [vmem:[#allocation26_spill] sm:$0xff] }
 0x196   : > { %v2458_v58 = vsel %vm2443_vm3, %v2455_v42, %v2457_v30  ;;  %v2461_v44 = vsel %vm2443_vm3, %v2459_v18, %v2460_v15  ;;  %v2463_v55 = vsel %vm2443_vm3, %v2460_v15, %v2462_v59  ;;  %v2466_v46 = vsel %vm2443_vm3, %v2464_v10, %v2465_v52  ;;  %v12475_v59 = vld [vmem:[#allocation22_spill] sm:$0xff]  ;;  %v12476_v18 = vld [vmem:[#allocation23_spill] sm:$0xff]  ;;  %v12477_v42 = vld [vmem:[#allocation24_spill] sm:$0xff] }
 0x197   : > { %v2468_v8 = vsel %vm2443_vm3, %v2465_v52, %v2467_v32  ;;  %v2471_v38 = vsel %vm2443_vm3, %v2469_v51, %v2470_v60  ;;  %v2473_v19 = vsel %vm2443_vm3, %v2470_v60, %v2472_v28  ;;  %v2476_v1 = vsel %vm2443_vm3, %v2474_v62, %v2475_v34  ;;  %v12473_v51 = vld [vmem:[#allocation20_spill] sm:$0xff]  ;;  %v12474_v52 = vld [vmem:[#allocation21_spill] sm:$0xff]  ;;  %v12480_v62 = vld [vmem:[#allocation27_spill] sm:$0xff] }
 0x198   : > { %v2478_v39 = vsel %vm2443_vm3, %v2475_v34, %v2477_v33  ;;  %v8569_v9 = vadd.f32 %v2446_v6, %v8462_v14  ;;  %v2481_v30 = vsel %vm2443_vm3, %v2479_v40, %v2480_v54  ;;  %v2483_v49 = vsel %vm2443_vm3, %v2480_v54, %v2482_v36  ;;  %v12481_v33 = vld [vmem:[#allocation28_spill] sm:$0xff] }
 0x199   : > { %v8574_v15 = vadd.f32 %v2448_v16, %v8467_v45  ;;  %v8577_v10 = vadd.f32 %v2451_v0, %v8470_v5  ;;  %v8580_v32 = vadd.f32 %v2453_v29, %v8473_v24  ;;  %v8583_v60 = vadd.f32 %v2456_v17, %v8476_v13  ;;  %v12482_v17 = vld [vmem:[#allocation29_spill] sm:$0xff] }
 0x19a   : > { %v8586_v48 = vadd.f32 %v2458_v58, %v8479_v61  ;;  %v8589_v14 = vadd.f32 %v2461_v44, %v8482_v53  ;;  %v8592_v36 = vadd.f32 %v2463_v55, %v8485_v7  ;;  %v8595_v16 = vadd.f32 %v2466_v46, %v8488_v43  ;;  %v12483_v44 = vld [vmem:[#allocation30_spill] sm:$0xff]  ;;  %v12484_v46 = vld [vmem:[#allocation31_spill] sm:$0xff] }
 0x19b   : > { %v8598_v45 = vadd.f32 %v2468_v8, %v8491_v57  ;;  %v8601_v5 = vadd.f32 %v2471_v38, %v8495_v3  ;;  %v8604_v24 = vadd.f32 %v2473_v19, %v8498_v26  ;;  %v8607_v13 = vadd.f32 %v2476_v1, %v8501_v56  ;;  %v12470_v56 = vld [vmem:[#allocation17_spill] sm:$0xff]  ;;  %v12485_v38 = vld [vmem:[#allocation32_spill] sm:$0xff] }
 0x19c   : > { %v8610_v61 = vadd.f32 %v2478_v39, %v8504_v47  ;;  %v8613_v53 = vadd.f32 %v2481_v30, %v8507_v50  ;;  %v8616_v7 = vadd.f32 %v2483_v49, %v8510_v11  ;;  %v2520_v43 = vmul.f32 %v8513_v41, %v12455_v20  ;;  %v12471_v50 = vld [vmem:[#allocation18_spill] sm:$0xff]  ;;  %v12472_v11 = vld [vmem:[#allocation19_spill] sm:$0xff]  ;;  %v12486_v1 = vld [vmem:[#allocation33_spill] sm:$0xff] }
 0x19d   : > { %v2521_v57 = vmul.f32 %v8513_v41, %v12456_v35  ;;  %v2522_v3 = vmul.f32 %v8513_v41, %v12457_v21  ;;  %v2523_v26 = vmul.f32 %v8513_v41, %v12458_v25  ;;  %v2524_v47 = vmul.f32 %v8513_v41, %v12470_v56  ;;  %v12487_v30 = vld [vmem:[#allocation34_spill] sm:$0xff] }
 0x19e   : > { %v2525_v6 = vmul.f32 %v8513_v41, %v12471_v50  ;;  %v2526_v28 = vmul.f32 %v8513_v41, %v12472_v11  ;;  %v2527_v23 = vmul.f32 %v8513_v41, %v12473_v51  ;;  %v2528_v31 = vmul.f32 %v8513_v41, %v12474_v52 }
 0x19f   : > { %v2529_v63 = vmul.f32 %v8513_v41, %v12475_v59  ;;  %v2530_v4 = vmul.f32 %v8513_v41, %v12476_v18  ;;  %v2531_v22 = vmul.f32 %v8513_v41, %v12477_v42  ;;  %v2532_v37 = vmul.f32 %v8513_v41, %v12478_v12 }
 0x1a0   : > { %v2533_v27 = vmul.f32 %v8513_v41, %v12479_v2  ;;  %v2534_v34 = vmul.f32 %v8513_v41, %v12480_v62  ;;  %v2535_v0 = vmul.f32 %v8513_v41, %v12481_v33  ;;  %v2568_v40 = vrot.slane %v2520_v43, 3  ;;  %v12488_v43 = vld [vmem:[#allocation35_spill] sm:$0xff] }
 0x1a1   : > { %v2569_v54 = vrot.slane %v2521_v57, 3  ;;  %v2571_v29 = vrot.slane %v2522_v3, 3  ;;  %v2536_v58 = vmul.f32 %v8513_v41, %v12482_v17  ;;  %v2537_v55 = vmul.f32 %v8513_v41, %v12483_v44  ;;  %v12489_v3 = vld [vmem:[#allocation36_spill] sm:$0xff] }
 0x1a2   : > { %v2538_v8 = vmul.f32 %v8513_v41, %v12484_v46  ;;  %v2539_v19 = vmul.f32 %v8513_v41, %v12485_v38  ;;  %v2540_v39 = vmul.f32 %v8513_v41, %v12486_v1  ;;  %v2541_v49 = vmul.f32 %v8513_v41, %v12487_v30 }
 0x1a3   : > { %v2542_v57 = vmul.f32 %v8513_v41, %v12488_v43  ;;  %v2543_v21 = vmul.f32 %v8513_v41, %v12489_v3  ;;  %v2573_v35 = vrot.slane %v2523_v26, 3  ;;  %v2574_v20 = vrot.slane %v2524_v47, 3 }
 0x1a4   : > { %v2576_v44 = vrot.slane %v2525_v6, 3  ;;  %v2578_v17 = vrot.slane %v2526_v28, 3  ;;  %v2570_v46 = vsel %vm2443_vm3, %v2568_v40, %v2569_v54  ;;  %v2572_v38 = vsel %vm2443_vm3, %v2569_v54, %v2571_v29 }
 0x1a5   : > { %v2579_v33 = vrot.slane %v2527_v23, 3  ;;  %v2581_v62 = vrot.slane %v2528_v31, 3  ;;  %v2583_v1 = vrot.slane %v2529_v63, 3  ;;  %v2584_v2 = vrot.slane %v2530_v4, 3 }
 0x1a6   : > { %v2586_v12 = vrot.slane %v2531_v22, 3  ;;  %v2588_v30 = vrot.slane %v2532_v37, 3  ;;  %v2589_v42 = vrot.slane %v2533_v27, 3  ;;  %v2591_v18 = vrot.slane %v2534_v34, 3 }
 0x1a7   : > { %v2593_v43 = vrot.slane %v2535_v0, 3  ;;  %v2594_v59 = vrot.slane %v2536_v58, 3  ;;  %v2596_v52 = vrot.slane %v2537_v55, 3  ;;  %v2598_v41 = vrot.slane %v2538_v8, 3  ;;  %v12493_v58 = vld [vmem:[#allocation23_spill] sm:$0xff]  ;;  %v12494_v55 = vld [vmem:[#allocation24_spill] sm:$0xff] }
 0x1a8   : > { %v2599_v26 = vrot.slane %v2539_v19, 3  ;;  %v2601_v47 = vrot.slane %v2540_v39, 3  ;;  %v2575_v6 = vsel %vm2443_vm3, %v2573_v35, %v2574_v20  ;;  %v2603_v28 = vrot.slane %v2541_v49, 3  ;;  %v12495_v8 = vld [vmem:[#allocation25_spill] sm:$0xff]  ;;  %v12496_v19 = vld [vmem:[#allocation26_spill] sm:$0xff]  ;;  %v12497_v39 = vld [vmem:[#allocation27_spill] sm:$0xff] }
 0x1a9   : > { %v2604_v40 = vrot.slane %v2542_v57, 3  ;;  %v2606_v3 = vrot.slane %v2543_v21, 3  ;;  %v2577_v23 = vsel %vm2443_vm3, %v2574_v20, %v2576_v44  ;;  %v2580_v31 = vsel %vm2443_vm3, %v2578_v17, %v2579_v33  ;;  %v12498_v49 = vld [vmem:[#allocation28_spill] sm:$0xff]  ;;  %v12499_v57 = vld [vmem:[#allocation29_spill] sm:$0xff] }
 0x1aa   : > { %v2582_v63 = vsel %vm2443_vm3, %v2579_v33, %v2581_v62  ;;  %v2585_v4 = vsel %vm2443_vm3, %v2583_v1, %v2584_v2  ;;  %v2587_v22 = vsel %vm2443_vm3, %v2584_v2, %v2586_v12  ;;  %v2590_v37 = vsel %vm2443_vm3, %v2588_v30, %v2589_v42 }
 0x1ab   : > { %v2592_v27 = vsel %vm2443_vm3, %v2589_v42, %v2591_v18  ;;  %v2595_v34 = vsel %vm2443_vm3, %v2593_v43, %v2594_v59  ;;  %v2597_v35 = vsel %vm2443_vm3, %v2594_v59, %v2596_v52  ;;  %v2600_v21 = vsel %vm2443_vm3, %v2598_v41, %v2599_v26  ;;  %v12500_v41 = vld [vmem:[#allocation30_spill] sm:$0xff] }
 0x1ac   : > { %v2602_v20 = vsel %vm2443_vm3, %v2599_v26, %v2601_v47  ;;  %v8681_v0 = vadd.f32 %v2570_v46, %v8569_v9  ;;  %v2605_v62 = vsel %vm2443_vm3, %v2603_v28, %v2604_v40  ;;  %v2607_v33 = vsel %vm2443_vm3, %v2604_v40, %v2606_v3  ;;  %v12501_v47 = vld [vmem:[#allocation31_spill] sm:$0xff] }
 0x1ad   : > { %v8686_v12 = vadd.f32 %v2572_v38, %v8574_v15  ;;  %v8689_v18 = vadd.f32 %v2575_v6, %v8577_v10  ;;  %v8692_v42 = vadd.f32 %v2577_v23, %v8580_v32  ;;  %v8695_v52 = vadd.f32 %v2580_v31, %v8583_v60  ;;  %v12502_v31 = vld [vmem:[#allocation32_spill] sm:$0xff] }
 0x1ae   : > { %v8698_v59 = vadd.f32 %v2582_v63, %v8586_v48  ;;  %v8701_v9 = vadd.f32 %v2585_v4, %v8589_v14  ;;  %v8704_v2 = vadd.f32 %v2587_v22, %v8592_v36  ;;  %v8707_v15 = vadd.f32 %v2590_v37, %v8595_v16  ;;  %v12503_v4 = vld [vmem:[#allocation33_spill] sm:$0xff]  ;;  %v12504_v37 = vld [vmem:[#allocation34_spill] sm:$0xff] }
 0x1af   : > { %v8710_v10 = vadd.f32 %v2592_v27, %v8598_v45  ;;  %v8713_v32 = vadd.f32 %v2595_v34, %v8601_v5  ;;  %v8716_v60 = vadd.f32 %v2597_v35, %v8604_v24  ;;  %v8719_v48 = vadd.f32 %v2600_v21, %v8607_v13  ;;  %v12490_v45 = vld [vmem:[#allocation58_spill] sm:$0xff]  ;;  %v12505_v34 = vld [vmem:[#allocation35_spill] sm:$0xff]  ;;  %v12506_v21 = vld [vmem:[#allocation36_spill] sm:$0xff] }
 0x1b0   : > { %v8722_v14 = vadd.f32 %v2602_v20, %v8610_v61  ;;  %v8725_v36 = vadd.f32 %v2605_v62, %v8613_v53  ;;  %v8728_v16 = vadd.f32 %v2607_v33, %v8616_v7  ;;  %v2644_v54 = vmul.f32 %v12490_v45, %v12458_v25  ;;  %v12491_v53 = vld [vmem:[#allocation21_spill] sm:$0xff]  ;;  %v12492_v7 = vld [vmem:[#allocation22_spill] sm:$0xff] }
 0x1b1   : > { %v2645_v5 = vmul.f32 %v12490_v45, %v12470_v56  ;;  %v2646_v24 = vmul.f32 %v12490_v45, %v12471_v50  ;;  %v2647_v13 = vmul.f32 %v12490_v45, %v12472_v11  ;;  %v2648_v61 = vmul.f32 %v12490_v45, %v12473_v51  ;;  %v12507_v62 = vld [vmem:[#allocation37_spill] sm:$0xff] }
 0x1b2   : > { %v2649_v29 = vmul.f32 %v12490_v45, %v12491_v53  ;;  %v2650_v17 = vmul.f32 %v12490_v45, %v12492_v7  ;;  %v2651_v44 = vmul.f32 %v12490_v45, %v12493_v58  ;;  %v2652_v46 = vmul.f32 %v12490_v45, %v12494_v55 }
 0x1b3   : > { %v2653_v38 = vmul.f32 %v12490_v45, %v12495_v8  ;;  %v2654_v1 = vmul.f32 %v12490_v45, %v12496_v19  ;;  %v2655_v30 = vmul.f32 %v12490_v45, %v12497_v39  ;;  %v2656_v43 = vmul.f32 %v12490_v45, %v12498_v49 }
 0x1b4   : > { %v2657_v3 = vmul.f32 %v12490_v45, %v12499_v57  ;;  %v2658_v26 = vmul.f32 %v12490_v45, %v12500_v41  ;;  %v2659_v6 = vmul.f32 %v12490_v45, %v12501_v47  ;;  %v2692_v28 = vrot.slane %v2644_v54, 3  ;;  %v12508_v54 = vld [vmem:[#allocation38_spill] sm:$0xff] }
 0x1b5   : > { %v2693_v40 = vrot.slane %v2645_v5, 3  ;;  %v2695_v23 = vrot.slane %v2646_v24, 3  ;;  %v2660_v63 = vmul.f32 %v12490_v45, %v12502_v31  ;;  %v2661_v22 = vmul.f32 %v12490_v45, %v12503_v4  ;;  %v12509_v24 = vld [vmem:[#allocation39_spill] sm:$0xff] }
 0x1b6   : > { %v2662_v27 = vmul.f32 %v12490_v45, %v12504_v37  ;;  %v2663_v35 = vmul.f32 %v12490_v45, %v12505_v34  ;;  %v2664_v20 = vmul.f32 %v12490_v45, %v12506_v21  ;;  %v2665_v33 = vmul.f32 %v12490_v45, %v12507_v62 }
 0x1b7   : > { %v2666_v5 = vmul.f32 %v12490_v45, %v12508_v54  ;;  %v2667_v50 = vmul.f32 %v12490_v45, %v12509_v24  ;;  %v2697_v56 = vrot.slane %v2647_v13, 3  ;;  %v2698_v25 = vrot.slane %v2648_v61, 3 }
 0x1b8   : > { %v2700_v4 = vrot.slane %v2649_v29, 3  ;;  %v2702_v31 = vrot.slane %v2650_v17, 3  ;;  %v2694_v37 = vsel %vm2443_vm3, %v2692_v28, %v2693_v40  ;;  %v2696_v34 = vsel %vm2443_vm3, %v2693_v40, %v2695_v23 }
 0x1b9   : > { %v2703_v47 = vrot.slane %v2651_v44, 3  ;;  %v2705_v41 = vrot.slane %v2652_v46, 3  ;;  %v2707_v21 = vrot.slane %v2653_v38, 3  ;;  %v2708_v57 = vrot.slane %v2654_v1, 3 }
 0x1ba   : > { %v2710_v49 = vrot.slane %v2655_v30, 3  ;;  %v2712_v62 = vrot.slane %v2656_v43, 3  ;;  %v2713_v39 = vrot.slane %v2657_v3, 3  ;;  %v2715_v19 = vrot.slane %v2658_v26, 3 }
 0x1bb   : > { %v2717_v54 = vrot.slane %v2659_v6, 3  ;;  %v2718_v8 = vrot.slane %v2660_v63, 3  ;;  %v2720_v55 = vrot.slane %v2661_v22, 3  ;;  %v2722_v45 = vrot.slane %v2662_v27, 3  ;;  %v12513_v63 = vld [vmem:[#allocation26_spill] sm:$0xff]  ;;  %v12514_v22 = vld [vmem:[#allocation27_spill] sm:$0xff] }
 0x1bc   : > { %v2723_v13 = vrot.slane %v2663_v35, 3  ;;  %v2725_v61 = vrot.slane %v2664_v20, 3  ;;  %v2699_v29 = vsel %vm2443_vm3, %v2697_v56, %v2698_v25  ;;  %v2727_v17 = vrot.slane %v2665_v33, 3  ;;  %v12515_v27 = vld [vmem:[#allocation28_spill] sm:$0xff]  ;;  %v12516_v35 = vld [vmem:[#allocation29_spill] sm:$0xff]  ;;  %v12517_v20 = vld [vmem:[#allocation30_spill] sm:$0xff] }
 0x1bd   : > { %v2728_v28 = vrot.slane %v2666_v5, 3  ;;  %v2730_v24 = vrot.slane %v2667_v50, 3  ;;  %v2701_v44 = vsel %vm2443_vm3, %v2698_v25, %v2700_v4  ;;  %v2704_v46 = vsel %vm2443_vm3, %v2702_v31, %v2703_v47  ;;  %v12518_v33 = vld [vmem:[#allocation31_spill] sm:$0xff]  ;;  %v12519_v5 = vld [vmem:[#allocation32_spill] sm:$0xff] }
 0x1be   : > { %v2706_v38 = vsel %vm2443_vm3, %v2703_v47, %v2705_v41  ;;  %v2709_v1 = vsel %vm2443_vm3, %v2707_v21, %v2708_v57  ;;  %v2711_v30 = vsel %vm2443_vm3, %v2708_v57, %v2710_v49  ;;  %v2714_v43 = vsel %vm2443_vm3, %v2712_v62, %v2713_v39 }
 0x1bf   : > { %v2716_v3 = vsel %vm2443_vm3, %v2713_v39, %v2715_v19  ;;  %v2719_v26 = vsel %vm2443_vm3, %v2717_v54, %v2718_v8  ;;  %v2721_v56 = vsel %vm2443_vm3, %v2718_v8, %v2720_v55  ;;  %v2724_v50 = vsel %vm2443_vm3, %v2722_v45, %v2723_v13  ;;  %v12520_v45 = vld [vmem:[#allocation33_spill] sm:$0xff] }
 0x1c0   : > { %v2726_v25 = vsel %vm2443_vm3, %v2723_v13, %v2725_v61  ;;  %v8793_v6 = vadd.f32 %v2694_v37, %v8681_v0  ;;  %v2729_v41 = vsel %vm2443_vm3, %v2727_v17, %v2728_v28  ;;  %v2731_v47 = vsel %vm2443_vm3, %v2728_v28, %v2730_v24  ;;  %v12521_v61 = vld [vmem:[#allocation34_spill] sm:$0xff] }
 0x1c1   : > { %v8798_v49 = vadd.f32 %v2696_v34, %v8686_v12  ;;  %v8801_v19 = vadd.f32 %v2699_v29, %v8689_v18  ;;  %v8804_v39 = vadd.f32 %v2701_v44, %v8692_v42  ;;  %v8807_v55 = vadd.f32 %v2704_v46, %v8695_v52  ;;  %v12522_v46 = vld [vmem:[#allocation35_spill] sm:$0xff] }
 0x1c2   : > { %v8810_v8 = vadd.f32 %v2706_v38, %v8698_v59  ;;  %v8813_v0 = vadd.f32 %v2709_v1, %v8701_v9  ;;  %v8816_v57 = vadd.f32 %v2711_v30, %v8704_v2  ;;  %v8819_v12 = vadd.f32 %v2714_v43, %v8707_v15  ;;  %v12523_v1 = vld [vmem:[#allocation36_spill] sm:$0xff]  ;;  %v12524_v43 = vld [vmem:[#allocation37_spill] sm:$0xff] }
 0x1c3   : > { %v8822_v18 = vadd.f32 %v2716_v3, %v8710_v10  ;;  %v8825_v42 = vadd.f32 %v2719_v26, %v8713_v32  ;;  %v8828_v52 = vadd.f32 %v2721_v56, %v8716_v60  ;;  %v8831_v59 = vadd.f32 %v2724_v50, %v8719_v48  ;;  %v12510_v10 = vld [vmem:[#allocation53_spill] sm:$0xff]  ;;  %v12525_v26 = vld [vmem:[#allocation38_spill] sm:$0xff]  ;;  %v12526_v50 = vld [vmem:[#allocation39_spill] sm:$0xff] }
 0x1c4   : > { %v8834_v9 = vadd.f32 %v2726_v25, %v8722_v14  ;;  %v8837_v2 = vadd.f32 %v2729_v41, %v8725_v36  ;;  %v8840_v15 = vadd.f32 %v2731_v47, %v8728_v16  ;;  %v2768_v40 = vmul.f32 %v12510_v10, %v12472_v11  ;;  %v12511_v36 = vld [vmem:[#allocation24_spill] sm:$0xff]  ;;  %v12512_v16 = vld [vmem:[#allocation25_spill] sm:$0xff] }
 0x1c5   : > { %v2769_v32 = vmul.f32 %v12510_v10, %v12473_v51  ;;  %v2770_v60 = vmul.f32 %v12510_v10, %v12491_v53  ;;  %v2771_v48 = vmul.f32 %v12510_v10, %v12492_v7  ;;  %v2772_v14 = vmul.f32 %v12510_v10, %v12493_v58  ;;  %v12527_v41 = vld [vmem:[#allocation40_spill] sm:$0xff] }
 0x1c6   : > { %v2773_v23 = vmul.f32 %v12510_v10, %v12511_v36  ;;  %v2774_v31 = vmul.f32 %v12510_v10, %v12512_v16  ;;  %v2775_v4 = vmul.f32 %v12510_v10, %v12513_v63  ;;  %v2776_v37 = vmul.f32 %v12510_v10, %v12514_v22 }
 0x1c7   : > { %v2777_v34 = vmul.f32 %v12510_v10, %v12515_v27  ;;  %v2778_v21 = vmul.f32 %v12510_v10, %v12516_v35  ;;  %v2779_v62 = vmul.f32 %v12510_v10, %v12517_v20  ;;  %v2780_v54 = vmul.f32 %v12510_v10, %v12518_v33 }
 0x1c8   : > { %v2781_v24 = vmul.f32 %v12510_v10, %v12519_v5  ;;  %v2782_v13 = vmul.f32 %v12510_v10, %v12520_v45  ;;  %v2783_v29 = vmul.f32 %v12510_v10, %v12521_v61  ;;  %v2816_v17 = vrot.slane %v2768_v40, 3  ;;  %v12528_v40 = vld [vmem:[#allocation41_spill] sm:$0xff] }
 0x1c9   : > { %v2817_v28 = vrot.slane %v2769_v32, 3  ;;  %v2819_v44 = vrot.slane %v2770_v60, 3  ;;  %v2784_v38 = vmul.f32 %v12510_v10, %v12522_v46  ;;  %v2785_v30 = vmul.f32 %v12510_v10, %v12523_v1  ;;  %v12529_v60 = vld [vmem:[#allocation42_spill] sm:$0xff] }
 0x1ca   : > { %v2786_v3 = vmul.f32 %v12510_v10, %v12524_v43  ;;  %v2787_v56 = vmul.f32 %v12510_v10, %v12525_v26  ;;  %v2788_v25 = vmul.f32 %v12510_v10, %v12526_v50  ;;  %v2789_v47 = vmul.f32 %v12510_v10, %v12527_v41 }
 0x1cb   : > { %v2790_v32 = vmul.f32 %v12510_v10, %v12528_v40  ;;  %v2791_v53 = vmul.f32 %v12510_v10, %v12529_v60  ;;  %v2821_v51 = vrot.slane %v2771_v48, 3  ;;  %v2822_v11 = vrot.slane %v2772_v14, 3 }
 0x1cc   : > { %v2824_v1 = vrot.slane %v2773_v23, 3  ;;  %v2826_v46 = vrot.slane %v2774_v31, 3  ;;  %v2818_v43 = vsel %vm2443_vm3, %v2816_v17, %v2817_v28  ;;  %v2820_v26 = vsel %vm2443_vm3, %v2817_v28, %v2819_v44 }
 0x1cd   : > { %v2827_v61 = vrot.slane %v2775_v4, 3  ;;  %v2829_v45 = vrot.slane %v2776_v37, 3  ;;  %v2831_v50 = vrot.slane %v2777_v34, 3  ;;  %v2832_v5 = vrot.slane %v2778_v21, 3 }
 0x1ce   : > { %v2834_v33 = vrot.slane %v2779_v62, 3  ;;  %v2836_v41 = vrot.slane %v2780_v54, 3  ;;  %v2837_v20 = vrot.slane %v2781_v24, 3  ;;  %v2839_v35 = vrot.slane %v2782_v13, 3 }
 0x1cf   : > { %v2841_v40 = vrot.slane %v2783_v29, 3  ;;  %v2842_v27 = vrot.slane %v2784_v38, 3  ;;  %v2844_v22 = vrot.slane %v2785_v30, 3  ;;  %v2846_v10 = vrot.slane %v2786_v3, 3  ;;  %v12533_v38 = vld [vmem:[#allocation29_spill] sm:$0xff]  ;;  %v12534_v30 = vld [vmem:[#allocation30_spill] sm:$0xff] }
 0x1d0   : > { %v2847_v48 = vrot.slane %v2787_v56, 3  ;;  %v2849_v14 = vrot.slane %v2788_v25, 3  ;;  %v2823_v23 = vsel %vm2443_vm3, %v2821_v51, %v2822_v11  ;;  %v2851_v31 = vrot.slane %v2789_v47, 3  ;;  %v12535_v3 = vld [vmem:[#allocation31_spill] sm:$0xff]  ;;  %v12536_v56 = vld [vmem:[#allocation32_spill] sm:$0xff]  ;;  %v12537_v25 = vld [vmem:[#allocation33_spill] sm:$0xff] }
 0x1d1   : > { %v2852_v17 = vrot.slane %v2790_v32, 3  ;;  %v2854_v60 = vrot.slane %v2791_v53, 3  ;;  %v2825_v4 = vsel %vm2443_vm3, %v2822_v11, %v2824_v1  ;;  %v2828_v37 = vsel %vm2443_vm3, %v2826_v46, %v2827_v61  ;;  %v12538_v47 = vld [vmem:[#allocation34_spill] sm:$0xff]  ;;  %v12539_v32 = vld [vmem:[#allocation35_spill] sm:$0xff] }
 0x1d2   : > { %v2830_v34 = vsel %vm2443_vm3, %v2827_v61, %v2829_v45  ;;  %v2833_v21 = vsel %vm2443_vm3, %v2831_v50, %v2832_v5  ;;  %v2835_v62 = vsel %vm2443_vm3, %v2832_v5, %v2834_v33  ;;  %v2838_v54 = vsel %vm2443_vm3, %v2836_v41, %v2837_v20 }
 0x1d3   : > { %v2840_v24 = vsel %vm2443_vm3, %v2837_v20, %v2839_v35  ;;  %v2843_v13 = vsel %vm2443_vm3, %v2841_v40, %v2842_v27  ;;  %v2845_v51 = vsel %vm2443_vm3, %v2842_v27, %v2844_v22  ;;  %v2848_v53 = vsel %vm2443_vm3, %v2846_v10, %v2847_v48  ;;  %v12540_v10 = vld [vmem:[#allocation36_spill] sm:$0xff] }
 0x1d4   : > { %v2850_v11 = vsel %vm2443_vm3, %v2847_v48, %v2849_v14  ;;  %v8905_v29 = vadd.f32 %v2818_v43, %v8793_v6  ;;  %v2853_v45 = vsel %vm2443_vm3, %v2851_v31, %v2852_v17  ;;  %v2855_v61 = vsel %vm2443_vm3, %v2852_v17, %v2854_v60  ;;  %v12541_v14 = vld [vmem:[#allocation37_spill] sm:$0xff] }
 0x1d5   : > { %v8910_v33 = vadd.f32 %v2820_v26, %v8798_v49  ;;  %v8913_v35 = vadd.f32 %v2823_v23, %v8801_v19  ;;  %v8916_v20 = vadd.f32 %v2825_v4, %v8804_v39  ;;  %v8919_v22 = vadd.f32 %v2828_v37, %v8807_v55  ;;  %v12542_v37 = vld [vmem:[#allocation38_spill] sm:$0xff] }
 0x1d6   : > { %v8922_v27 = vadd.f32 %v2830_v34, %v8810_v8  ;;  %v8925_v6 = vadd.f32 %v2833_v21, %v8813_v0  ;;  %v8928_v5 = vadd.f32 %v2835_v62, %v8816_v57  ;;  %v8931_v49 = vadd.f32 %v2838_v54, %v8819_v12  ;;  %v12543_v21 = vld [vmem:[#allocation39_spill] sm:$0xff]  ;;  %v12544_v54 = vld [vmem:[#allocation40_spill] sm:$0xff] }
 0x1d7   : > { %v8934_v19 = vadd.f32 %v2840_v24, %v8822_v18  ;;  %v8937_v39 = vadd.f32 %v2843_v13, %v8825_v42  ;;  %v8940_v55 = vadd.f32 %v2845_v51, %v8828_v52  ;;  %v8943_v8 = vadd.f32 %v2848_v53, %v8831_v59  ;;  %v12530_v18 = vld [vmem:[#allocation54_spill] sm:$0xff]  ;;  %v12545_v13 = vld [vmem:[#allocation41_spill] sm:$0xff] }
 0x1d8   : > { %v8946_v0 = vadd.f32 %v2850_v11, %v8834_v9  ;;  %v8949_v57 = vadd.f32 %v2853_v45, %v8837_v2  ;;  %v8952_v12 = vadd.f32 %v2855_v61, %v8840_v15  ;;  %v2892_v28 = vmul.f32 %v12530_v18, %v12492_v7  ;;  %v12531_v2 = vld [vmem:[#allocation27_spill] sm:$0xff]  ;;  %v12532_v15 = vld [vmem:[#allocation28_spill] sm:$0xff]  ;;  %v12546_v53 = vld [vmem:[#allocation42_spill] sm:$0xff] }
 0x1d9   : > { %v2893_v42 = vmul.f32 %v12530_v18, %v12493_v58  ;;  %v2894_v52 = vmul.f32 %v12530_v18, %v12511_v36  ;;  %v2895_v59 = vmul.f32 %v12530_v18, %v12512_v16  ;;  %v2896_v9 = vmul.f32 %v12530_v18, %v12513_v63  ;;  %v12547_v45 = vld [vmem:[#allocation43_spill] sm:$0xff] }
 0x1da   : > { %v2897_v44 = vmul.f32 %v12530_v18, %v12531_v2  ;;  %v2898_v46 = vmul.f32 %v12530_v18, %v12532_v15  ;;  %v2899_v1 = vmul.f32 %v12530_v18, %v12533_v38  ;;  %v2900_v43 = vmul.f32 %v12530_v18, %v12534_v30 }
 0x1db   : > { %v2901_v26 = vmul.f32 %v12530_v18, %v12535_v3  ;;  %v2902_v50 = vmul.f32 %v12530_v18, %v12536_v56  ;;  %v2903_v41 = vmul.f32 %v12530_v18, %v12537_v25  ;;  %v2904_v40 = vmul.f32 %v12530_v18, %v12538_v47 }
 0x1dc   : > { %v2905_v60 = vmul.f32 %v12530_v18, %v12539_v32  ;;  %v2906_v48 = vmul.f32 %v12530_v18, %v12540_v10  ;;  %v2907_v23 = vmul.f32 %v12530_v18, %v12541_v14  ;;  %v2940_v31 = vrot.slane %v2892_v28, 3  ;;  %v12548_v28 = vld [vmem:[#allocation44_spill] sm:$0xff] }
 0x1dd   : > { %v2941_v17 = vrot.slane %v2893_v42, 3  ;;  %v2943_v4 = vrot.slane %v2894_v52, 3  ;;  %v2908_v34 = vmul.f32 %v12530_v18, %v12542_v37  ;;  %v2909_v62 = vmul.f32 %v12530_v18, %v12543_v21  ;;  %v12549_v52 = vld [vmem:[#allocation45_spill] sm:$0xff] }
 0x1de   : > { %v2910_v24 = vmul.f32 %v12530_v18, %v12544_v54  ;;  %v2911_v51 = vmul.f32 %v12530_v18, %v12545_v13  ;;  %v2912_v11 = vmul.f32 %v12530_v18, %v12546_v53  ;;  %v2913_v61 = vmul.f32 %v12530_v18, %v12547_v45 }
 0x1df   : > { %v2914_v42 = vmul.f32 %v12530_v18, %v12548_v28  ;;  %v2915_v36 = vmul.f32 %v12530_v18, %v12549_v52  ;;  %v2945_v58 = vrot.slane %v2895_v59, 3  ;;  %v2946_v7 = vrot.slane %v2896_v9, 3 }
 0x1e0   : > { %v2948_v21 = vrot.slane %v2897_v44, 3  ;;  %v2950_v37 = vrot.slane %v2898_v46, 3  ;;  %v2942_v54 = vsel %vm2443_vm3, %v2940_v31, %v2941_v17  ;;  %v2944_v13 = vsel %vm2443_vm3, %v2941_v17, %v2943_v4 }
 0x1e1   : > { %v2951_v14 = vrot.slane %v2899_v1, 3  ;;  %v2953_v10 = vrot.slane %v2900_v43, 3  ;;  %v2955_v53 = vrot.slane %v2901_v26, 3  ;;  %v2956_v32 = vrot.slane %v2902_v50, 3 }
 0x1e2   : > { %v2958_v47 = vrot.slane %v2903_v41, 3  ;;  %v2960_v45 = vrot.slane %v2904_v40, 3  ;;  %v2961_v25 = vrot.slane %v2905_v60, 3  ;;  %v2963_v56 = vrot.slane %v2906_v48, 3 }
 0x1e3   : > { %v2965_v28 = vrot.slane %v2907_v23, 3  ;;  %v2966_v3 = vrot.slane %v2908_v34, 3  ;;  %v2968_v30 = vrot.slane %v2909_v62, 3  ;;  %v2970_v18 = vrot.slane %v2910_v24, 3  ;;  %v12553_v34 = vld [vmem:[#allocation32_spill] sm:$0xff]  ;;  %v12554_v62 = vld [vmem:[#allocation33_spill] sm:$0xff] }
 0x1e4   : > { %v2971_v59 = vrot.slane %v2911_v51, 3  ;;  %v2973_v9 = vrot.slane %v2912_v11, 3  ;;  %v2947_v44 = vsel %vm2443_vm3, %v2945_v58, %v2946_v7  ;;  %v2975_v46 = vrot.slane %v2913_v61, 3  ;;  %v12555_v24 = vld [vmem:[#allocation34_spill] sm:$0xff]  ;;  %v12556_v51 = vld [vmem:[#allocation35_spill] sm:$0xff]  ;;  %v12557_v11 = vld [vmem:[#allocation36_spill] sm:$0xff] }
 0x1e5   : > { %v2976_v31 = vrot.slane %v2914_v42, 3  ;;  %v2978_v52 = vrot.slane %v2915_v36, 3  ;;  %v2949_v1 = vsel %vm2443_vm3, %v2946_v7, %v2948_v21  ;;  %v2952_v43 = vsel %vm2443_vm3, %v2950_v37, %v2951_v14  ;;  %v12558_v61 = vld [vmem:[#allocation37_spill] sm:$0xff]  ;;  %v12559_v42 = vld [vmem:[#allocation38_spill] sm:$0xff] }
 0x1e6   : > { %v2954_v26 = vsel %vm2443_vm3, %v2951_v14, %v2953_v10  ;;  %v2957_v50 = vsel %vm2443_vm3, %v2955_v53, %v2956_v32  ;;  %v2959_v41 = vsel %vm2443_vm3, %v2956_v32, %v2958_v47  ;;  %v2962_v40 = vsel %vm2443_vm3, %v2960_v45, %v2961_v25 }
 0x1e7   : > { %v2964_v60 = vsel %vm2443_vm3, %v2961_v25, %v2963_v56  ;;  %v2967_v48 = vsel %vm2443_vm3, %v2965_v28, %v2966_v3  ;;  %v2969_v58 = vsel %vm2443_vm3, %v2966_v3, %v2968_v30  ;;  %v2972_v36 = vsel %vm2443_vm3, %v2970_v18, %v2971_v59  ;;  %v12560_v18 = vld [vmem:[#allocation39_spill] sm:$0xff] }
 0x1e8   : > { %v2974_v7 = vsel %vm2443_vm3, %v2971_v59, %v2973_v9  ;;  %v9017_v23 = vadd.f32 %v2942_v54, %v8905_v29  ;;  %v2977_v10 = vsel %vm2443_vm3, %v2975_v46, %v2976_v31  ;;  %v2979_v14 = vsel %vm2443_vm3, %v2976_v31, %v2978_v52  ;;  %v12561_v9 = vld [vmem:[#allocation40_spill] sm:$0xff] }
 0x1e9   : > { %v9022_v47 = vadd.f32 %v2944_v13, %v8910_v33  ;;  %v9025_v56 = vadd.f32 %v2947_v44, %v8913_v35  ;;  %v9028_v25 = vadd.f32 %v2949_v1, %v8916_v20  ;;  %v9031_v30 = vadd.f32 %v2952_v43, %v8919_v22  ;;  %v12562_v43 = vld [vmem:[#allocation41_spill] sm:$0xff] }
 0x1ea   : > { %v9034_v3 = vadd.f32 %v2954_v26, %v8922_v27  ;;  %v9037_v29 = vadd.f32 %v2957_v50, %v8925_v6  ;;  %v9040_v32 = vadd.f32 %v2959_v41, %v8928_v5  ;;  %v9043_v33 = vadd.f32 %v2962_v40, %v8931_v49  ;;  %v12563_v50 = vld [vmem:[#allocation42_spill] sm:$0xff]  ;;  %v12564_v40 = vld [vmem:[#allocation43_spill] sm:$0xff] }
 0x1eb   : > { %v9046_v35 = vadd.f32 %v2964_v60, %v8934_v19  ;;  %v9049_v20 = vadd.f32 %v2967_v48, %v8937_v39  ;;  %v9052_v22 = vadd.f32 %v2969_v58, %v8940_v55  ;;  %v9055_v27 = vadd.f32 %v2972_v36, %v8943_v8  ;;  %v12550_v19 = vld [vmem:[#allocation55_spill] sm:$0xff]  ;;  %v12565_v48 = vld [vmem:[#allocation44_spill] sm:$0xff]  ;;  %v12566_v36 = vld [vmem:[#allocation45_spill] sm:$0xff] }
 0x1ec   : > { %v9058_v6 = vadd.f32 %v2974_v7, %v8946_v0  ;;  %v9061_v5 = vadd.f32 %v2977_v10, %v8949_v57  ;;  %v9064_v49 = vadd.f32 %v2979_v14, %v8952_v12  ;;  %v3016_v17 = vmul.f32 %v12550_v19, %v12512_v16  ;;  %v12551_v57 = vld [vmem:[#allocation30_spill] sm:$0xff]  ;;  %v12552_v12 = vld [vmem:[#allocation31_spill] sm:$0xff] }
 0x1ed   : > { %v3017_v39 = vmul.f32 %v12550_v19, %v12513_v63  ;;  %v3018_v55 = vmul.f32 %v12550_v19, %v12531_v2  ;;  %v3019_v8 = vmul.f32 %v12550_v19, %v12532_v15  ;;  %v3020_v0 = vmul.f32 %v12550_v19, %v12533_v38  ;;  %v12567_v10 = vld [vmem:[#allocation46_spill] sm:$0xff] }
 0x1ee   : > { %v3021_v4 = vmul.f32 %v12550_v19, %v12551_v57  ;;  %v3022_v37 = vmul.f32 %v12550_v19, %v12552_v12  ;;  %v3023_v21 = vmul.f32 %v12550_v19, %v12553_v34  ;;  %v3024_v54 = vmul.f32 %v12550_v19, %v12554_v62 }
 0x1ef   : > { %v3025_v13 = vmul.f32 %v12550_v19, %v12555_v24  ;;  %v3026_v53 = vmul.f32 %v12550_v19, %v12556_v51  ;;  %v3027_v45 = vmul.f32 %v12550_v19, %v12557_v11  ;;  %v3028_v28 = vmul.f32 %v12550_v19, %v12558_v61 }
 0x1f0   : > { %v3029_v52 = vmul.f32 %v12550_v19, %v12559_v42  ;;  %v3030_v59 = vmul.f32 %v12550_v19, %v12560_v18  ;;  %v3031_v44 = vmul.f32 %v12550_v19, %v12561_v9  ;;  %v3064_v46 = vrot.slane %v3016_v17, 3  ;;  %v12568_v17 = vld [vmem:[#allocation47_spill] sm:$0xff] }
 0x1f1   : > { %v3065_v31 = vrot.slane %v3017_v39, 3  ;;  %v3067_v1 = vrot.slane %v3018_v55, 3  ;;  %v3032_v26 = vmul.f32 %v12550_v19, %v12562_v43  ;;  %v3033_v41 = vmul.f32 %v12550_v19, %v12563_v50  ;;  %v12569_v55 = vld [vmem:[#allocation48_spill] sm:$0xff] }
 0x1f2   : > { %v3034_v60 = vmul.f32 %v12550_v19, %v12564_v40  ;;  %v3035_v58 = vmul.f32 %v12550_v19, %v12565_v48  ;;  %v3036_v7 = vmul.f32 %v12550_v19, %v12566_v36  ;;  %v3037_v14 = vmul.f32 %v12550_v19, %v12567_v10 }
 0x1f3   : > { %v3038_v39 = vmul.f32 %v12550_v19, %v12568_v17  ;;  %v3039_v2 = vmul.f32 %v12550_v19, %v12569_v55  ;;  %v3069_v63 = vrot.slane %v3019_v8, 3  ;;  %v3070_v16 = vrot.slane %v3020_v0, 3 }
 0x1f4   : > { %v3072_v50 = vrot.slane %v3021_v4, 3  ;;  %v3074_v43 = vrot.slane %v3022_v37, 3  ;;  %v3066_v40 = vsel %vm2443_vm3, %v3064_v46, %v3065_v31  ;;  %v3068_v48 = vsel %vm2443_vm3, %v3065_v31, %v3067_v1 }
 0x1f5   : > { %v3075_v9 = vrot.slane %v3023_v21, 3  ;;  %v3077_v18 = vrot.slane %v3024_v54, 3  ;;  %v3079_v36 = vrot.slane %v3025_v13, 3  ;;  %v3080_v42 = vrot.slane %v3026_v53, 3 }
 0x1f6   : > { %v3082_v61 = vrot.slane %v3027_v45, 3  ;;  %v3084_v10 = vrot.slane %v3028_v28, 3  ;;  %v3085_v11 = vrot.slane %v3029_v52, 3  ;;  %v3087_v51 = vrot.slane %v3030_v59, 3 }
 0x1f7   : > { %v3089_v17 = vrot.slane %v3031_v44, 3  ;;  %v3090_v24 = vrot.slane %v3032_v26, 3  ;;  %v3092_v62 = vrot.slane %v3033_v41, 3  ;;  %v3094_v19 = vrot.slane %v3034_v60, 3  ;;  %v12573_v26 = vld [vmem:[#allocation35_spill] sm:$0xff]  ;;  %v12574_v41 = vld [vmem:[#allocation36_spill] sm:$0xff] }
 0x1f8   : > { %v3095_v8 = vrot.slane %v3035_v58, 3  ;;  %v3097_v0 = vrot.slane %v3036_v7, 3  ;;  %v3071_v4 = vsel %vm2443_vm3, %v3069_v63, %v3070_v16  ;;  %v3099_v37 = vrot.slane %v3037_v14, 3  ;;  %v12575_v60 = vld [vmem:[#allocation37_spill] sm:$0xff]  ;;  %v12576_v58 = vld [vmem:[#allocation38_spill] sm:$0xff]  ;;  %v12577_v7 = vld [vmem:[#allocation39_spill] sm:$0xff] }
 0x1f9   : > { %v3100_v46 = vrot.slane %v3038_v39, 3  ;;  %v3102_v55 = vrot.slane %v3039_v2, 3  ;;  %v3073_v21 = vsel %vm2443_vm3, %v3070_v16, %v3072_v50  ;;  %v3076_v54 = vsel %vm2443_vm3, %v3074_v43, %v3075_v9  ;;  %v12578_v14 = vld [vmem:[#allocation40_spill] sm:$0xff]  ;;  %v12579_v39 = vld [vmem:[#allocation41_spill] sm:$0xff] }
 0x1fa   : > { %v3078_v13 = vsel %vm2443_vm3, %v3075_v9, %v3077_v18  ;;  %v3081_v53 = vsel %vm2443_vm3, %v3079_v36, %v3080_v42  ;;  %v3083_v45 = vsel %vm2443_vm3, %v3080_v42, %v3082_v61  ;;  %v3086_v28 = vsel %vm2443_vm3, %v3084_v10, %v3085_v11 }
 0x1fb   : > { %v3088_v52 = vsel %vm2443_vm3, %v3085_v11, %v3087_v51  ;;  %v3091_v59 = vsel %vm2443_vm3, %v3089_v17, %v3090_v24  ;;  %v3093_v63 = vsel %vm2443_vm3, %v3090_v24, %v3092_v62  ;;  %v3096_v2 = vsel %vm2443_vm3, %v3094_v19, %v3095_v8  ;;  %v12580_v19 = vld [vmem:[#allocation42_spill] sm:$0xff] }
 0x1fc   : > { %v3098_v16 = vsel %vm2443_vm3, %v3095_v8, %v3097_v0  ;;  %v9129_v44 = vadd.f32 %v3066_v40, %v9017_v23  ;;  %v3101_v18 = vsel %vm2443_vm3, %v3099_v37, %v3100_v46  ;;  %v3103_v9 = vsel %vm2443_vm3, %v3100_v46, %v3102_v55  ;;  %v12581_v0 = vld [vmem:[#allocation43_spill] sm:$0xff] }
 0x1fd   : > { %v9134_v61 = vadd.f32 %v3068_v48, %v9022_v47  ;;  %v9137_v51 = vadd.f32 %v3071_v4, %v9025_v56  ;;  %v9140_v11 = vadd.f32 %v3073_v21, %v9028_v25  ;;  %v9143_v62 = vadd.f32 %v3076_v54, %v9031_v30  ;;  %v12582_v54 = vld [vmem:[#allocation44_spill] sm:$0xff] }
 0x1fe   : > { %v9146_v24 = vadd.f32 %v3078_v13, %v9034_v3  ;;  %v9149_v23 = vadd.f32 %v3081_v53, %v9037_v29  ;;  %v9152_v42 = vadd.f32 %v3083_v45, %v9040_v32  ;;  %v9155_v47 = vadd.f32 %v3086_v28, %v9043_v33  ;;  %v12583_v53 = vld [vmem:[#allocation45_spill] sm:$0xff]  ;;  %v12584_v28 = vld [vmem:[#allocation46_spill] sm:$0xff] }
 0x1ff   : > { %v9158_v56 = vadd.f32 %v3088_v52, %v9046_v35  ;;  %v9161_v25 = vadd.f32 %v3091_v59, %v9049_v20  ;;  %v9164_v30 = vadd.f32 %v3093_v63, %v9052_v22  ;;  %v9167_v3 = vadd.f32 %v3096_v2, %v9055_v27  ;;  %v12570_v35 = vld [vmem:[#allocation56_spill] sm:$0xff]  ;;  %v12585_v59 = vld [vmem:[#allocation47_spill] sm:$0xff] }
 0x200   : > { %v9170_v29 = vadd.f32 %v3098_v16, %v9058_v6  ;;  %v9173_v32 = vadd.f32 %v3101_v18, %v9061_v5  ;;  %v9176_v33 = vadd.f32 %v3103_v9, %v9064_v49  ;;  %v3140_v31 = vmul.f32 %v12570_v35, %v12532_v15  ;;  %v12571_v5 = vld [vmem:[#allocation33_spill] sm:$0xff]  ;;  %v12572_v49 = vld [vmem:[#allocation34_spill] sm:$0xff]  ;;  %v12586_v2 = vld [vmem:[#allocation48_spill] sm:$0xff] }
 0x201   : > { %v3141_v20 = vmul.f32 %v12570_v35, %v12533_v38  ;;  %v3142_v22 = vmul.f32 %v12570_v35, %v12551_v57  ;;  %v3143_v27 = vmul.f32 %v12570_v35, %v12552_v12  ;;  %v3144_v6 = vmul.f32 %v12570_v35, %v12553_v34  ;;  %v12587_v18 = vld [vmem:[#allocation49_spill] sm:$0xff] }
 0x202   : > { %v3145_v1 = vmul.f32 %v12570_v35, %v12571_v5  ;;  %v3146_v43 = vmul.f32 %v12570_v35, %v12572_v49  ;;  %v3147_v50 = vmul.f32 %v12570_v35, %v12573_v26  ;;  %v3148_v40 = vmul.f32 %v12570_v35, %v12574_v41 }
 0x203   : > { %v3149_v48 = vmul.f32 %v12570_v35, %v12575_v60  ;;  %v3150_v36 = vmul.f32 %v12570_v35, %v12576_v58  ;;  %v3151_v10 = vmul.f32 %v12570_v35, %v12577_v7  ;;  %v3152_v17 = vmul.f32 %v12570_v35, %v12578_v14 }
 0x204   : > { %v3153_v55 = vmul.f32 %v12570_v35, %v12579_v39  ;;  %v3154_v8 = vmul.f32 %v12570_v35, %v12580_v19  ;;  %v3155_v4 = vmul.f32 %v12570_v35, %v12581_v0  ;;  %v3188_v37 = vrot.slane %v3140_v31, 3  ;;  %v12588_v31 = vld [vmem:[#allocation50_spill] sm:$0xff] }
 0x205   : > { %v3189_v46 = vrot.slane %v3141_v20, 3  ;;  %v3191_v21 = vrot.slane %v3142_v22, 3  ;;  %v3156_v13 = vmul.f32 %v12570_v35, %v12582_v54  ;;  %v3157_v45 = vmul.f32 %v12570_v35, %v12583_v53  ;;  %v12589_v22 = vld [vmem:[#allocation51_spill] sm:$0xff] }
 0x206   : > { %v3158_v52 = vmul.f32 %v12570_v35, %v12584_v28  ;;  %v3159_v63 = vmul.f32 %v12570_v35, %v12585_v59  ;;  %v3160_v16 = vmul.f32 %v12570_v35, %v12586_v2  ;;  %v3161_v9 = vmul.f32 %v12570_v35, %v12587_v18 }
 0x207   : > { %v3162_v20 = vmul.f32 %v12570_v35, %v12588_v31  ;;  %v3163_v54 = vmul.f32 %v12570_v35, %v12589_v22  ;;  %v3193_v0 = vrot.slane %v3143_v27, 3  ;;  %v3194_v53 = vrot.slane %v3144_v6, 3 }
 0x208   : > { %v3196_v19 = vrot.slane %v3145_v1, 3  ;;  %v3198_v39 = vrot.slane %v3146_v43, 3  ;;  %v3190_v28 = vsel %vm2443_vm3, %v3188_v37, %v3189_v46  ;;  %v3192_v59 = vsel %vm2443_vm3, %v3189_v46, %v3191_v21  ;;  %v12590_v46 = vld [vmem:[#allocation52_spill] sm:$0xff] }
 0x209   : > { %v3199_v14 = vrot.slane %v3147_v50, 3  ;;  %v3201_v7 = vrot.slane %v3148_v40, 3  ;;  %v3203_v2 = vrot.slane %v3149_v48, 3  ;;  %v3204_v58 = vrot.slane %v3150_v36, 3 }
 0x20a   : > { %v3206_v60 = vrot.slane %v3151_v10, 3  ;;  %v3208_v18 = vrot.slane %v3152_v17, 3  ;;  %v3209_v41 = vrot.slane %v3153_v55, 3  ;;  %v3211_v26 = vrot.slane %v3154_v8, 3 }
 0x20b   : > { %v3213_v31 = vrot.slane %v3155_v4, 3  ;;  %v3214_v49 = vrot.slane %v3156_v13, 3  ;;  %v3216_v5 = vrot.slane %v3157_v45, 3  ;;  %v3218_v35 = vrot.slane %v3158_v52, 3 }
 0x20c   : > { %v3219_v27 = vrot.slane %v3159_v63, 3  ;;  %v3221_v6 = vrot.slane %v3160_v16, 3  ;;  %v3195_v1 = vsel %vm2443_vm3, %v3193_v0, %v3194_v53  ;;  %v3223_v43 = vrot.slane %v3161_v9, 3  ;;  %v12603_v16 = vld [vmem:[#allocation9_spill] sm:$0xff]  ;;  %v12605_v9 = vld [vmem:[#allocation12_spill] sm:$0xff] }
 0x20d   : > { %v3224_v37 = vrot.slane %v3162_v20, 3  ;;  %v3226_v22 = vrot.slane %v3163_v54, 3  ;;  %v3197_v50 = vsel %vm2443_vm3, %v3194_v53, %v3196_v19  ;;  %v3200_v40 = vsel %vm2443_vm3, %v3198_v39, %v3199_v14  ;;  %v12606_v20 = vld [vmem:[#allocation13_spill] sm:$0xff] }
 0x20e   : > { %v3202_v48 = vsel %vm2443_vm3, %v3199_v14, %v3201_v7  ;;  %v3205_v36 = vsel %vm2443_vm3, %v3203_v2, %v3204_v58  ;;  %v3207_v10 = vsel %vm2443_vm3, %v3204_v58, %v3206_v60  ;;  %v3210_v17 = vsel %vm2443_vm3, %v3208_v18, %v3209_v41  ;;  %v12601_v2 = vld [vmem:[#allocation8_spill] sm:$0xff] }
 0x20f   : > { %v3212_v55 = vsel %vm2443_vm3, %v3209_v41, %v3211_v26  ;;  %v3215_v8 = vsel %vm2443_vm3, %v3213_v31, %v3214_v49  ;;  %v3217_v0 = vsel %vm2443_vm3, %v3214_v49, %v3216_v5  ;;  %v3220_v4 = vsel %vm2443_vm3, %v3218_v35, %v3219_v27  ;;  %v12607_v35 = vld [vmem:[#allocation14_spill] sm:$0xff] }
 0x210   : > { %v3222_v19 = vsel %vm2443_vm3, %v3219_v27, %v3221_v6  ;;  %v3262_v39 = vsub.s32 4, %v12590_v46  ;;  %v3225_v7 = vsel %vm2443_vm3, %v3223_v43, %v3224_v37  ;;  %v3227_v14 = vsel %vm2443_vm3, %v3224_v37, %v3226_v22  ;;  %v12608_v6 = vld [vmem:[#allocation15_spill] sm:$0xff]  ;;  %v12609_v43 = vld [vmem:[#allocation16_spill] sm:$0xff] }
 0x211   : > { %v9244_v60 = vadd.f32 %v3190_v28, %v9129_v44  ;;  %v9247_v58 = vadd.f32 %v3192_v59, %v9134_v61  ;;  %v9250_v26 = vadd.f32 %v3195_v1, %v9137_v51  ;;  %v9253_v5 = vadd.f32 %v3197_v50, %v9140_v11  ;;  %v12591_v51 = vld [vmem:[#allocation3_spill] sm:$0xff]  ;;  %v12610_v50 = vld [vmem:[#allocation17_spill] sm:$0xff] }
 0x212   : > { %v9256_v49 = vadd.f32 %v3200_v40, %v9143_v62  ;;  %v9259_v41 = vadd.f32 %v3202_v48, %v9146_v24  ;;  %v9262_v21 = vadd.f32 %v3205_v36, %v9149_v23  ;;  %v9265_v44 = vadd.f32 %v3207_v10, %v9152_v42  ;;  %v12611_v48 = vld [vmem:[#allocation18_spill] sm:$0xff]  ;;  %v12612_v10 = vld [vmem:[#allocation19_spill] sm:$0xff] }
 0x213   : > { %v9268_v61 = vadd.f32 %v3210_v17, %v9155_v47  ;;  %v3263_v54 = vrot.slane %v12591_v51, %v3262_v39  ;;  %v9272_v11 = vadd.f32 %v3212_v55, %v9158_v56  ;;  %v9275_v62 = vadd.f32 %v3215_v8, %v9161_v25  ;;  %v12592_v56 = vld [vmem:[#allocation4_spill] sm:$0xff]  ;;  %v12593_v25 = vld [vmem:[#allocation5_spill] sm:$0xff] }
 0x214   : > { %v9278_v24 = vadd.f32 %v3217_v0, %v9164_v30  ;;  %v9281_v23 = vadd.f32 %v3220_v4, %v9167_v3  ;;  %v9284_v42 = vadd.f32 %v3222_v19, %v9170_v29  ;;  %v9287_v47 = vadd.f32 %v3225_v7, %v9173_v32  ;;  %v12595_v30 = vld [vmem:[#allocation6_spill] sm:$0xff]  ;;  %v12597_v3 = vld [vmem:[#allocation7_spill] sm:$0xff]  ;;  %v12613_v55 = vld [vmem:[#allocation20_spill] sm:$0xff] }
 0x215   : > { %v9290_v13 = vadd.f32 %v3227_v14, %v9176_v33  ;;  %v9293_v53 = vrot.slane %v12592_v56, %v3262_v39  ;;  %v9296_v45 = vrot.slane %v12593_v25, %v3262_v39  ;;  %v9299_v28 = vrot.slane %v12595_v30, %v3262_v39  ;;  %v12599_v29 = vld [vmem:[#allocation10_spill] sm:$0xff]  ;;  %v12600_v32 = vld [vmem:[#allocation11_spill] sm:$0xff]  ;;  %v12614_v0 = vld [vmem:[#allocation21_spill] sm:$0xff] }
 0x216   : > { %v9302_v52 = vrot.slane %v12597_v3, %v3262_v39  ;;  %v3264_v59 = vmul.f32 %v3263_v54, %v12599_v29  ;;  %v3265_v63 = vmul.f32 %v3263_v54, %v12600_v32  ;;  %v9307_v33 = vrot.slane %v12601_v2, %v3262_v39  ;;  %v12615_v19 = vld [vmem:[#allocation22_spill] sm:$0xff]  ;;  %v12616_v7 = vld [vmem:[#allocation23_spill] sm:$0xff] }
 0x217   : > { %12594 = vst [vmem:[#allocation57_spill] sm:$0xff] %v9296_v45  ;;  %12596 = vst [vmem:[#allocation58_spill] sm:$0xff] %v9299_v28  ;;  %v9310_v18 = vrot.slane %v12603_v16, %v3262_v39  ;;  %v3266_v31 = vmul.f32 %v3263_v54, %v12605_v9  ;;  %v3267_v22 = vmul.f32 %v3263_v54, %v12606_v20  ;;  %v12617_v9 = vld [vmem:[#allocation24_spill] sm:$0xff]  ;;  %v12618_v16 = vld [vmem:[#allocation25_spill] sm:$0xff] }
 0x218   : > { %12598 = vst [vmem:[#allocation53_spill] sm:$0xff] %v9302_v52  ;;  %12602 = vst [vmem:[#allocation54_spill] sm:$0xff] %v9307_v33  ;;  %v3268_v27 = vmul.f32 %v3263_v54, %v12607_v35  ;;  %v3269_v1 = vmul.f32 %v3263_v54, %v12608_v6  ;;  %v3270_v37 = vmul.f32 %v3263_v54, %v12609_v43  ;;  %v3313_v3 = vrot.slane %v3264_v59, 4  ;;  %v12619_v30 = vld [vmem:[#allocation26_spill] sm:$0xff]  ;;  %v12620_v56 = vld [vmem:[#allocation27_spill] sm:$0xff] }
 0x219   : > { %12604 = vst [vmem:[#allocation55_spill] sm:$0xff] %v9310_v18  ;;  %v3271_v40 = vmul.f32 %v3263_v54, %v12610_v50  ;;  %v3272_v36 = vmul.f32 %v3263_v54, %v12611_v48  ;;  %v3273_v17 = vmul.f32 %v3263_v54, %v12612_v10  ;;  %v3274_v8 = vmul.f32 %v3263_v54, %v12613_v55  ;;  %v12621_v45 = vld [vmem:[#allocation33_spill] sm:$0xff] }
 0x21a   : > { %v3275_v4 = vmul.f32 %v3263_v54, %v12614_v0  ;;  %v3276_v39 = vmul.f32 %v3263_v54, %v12615_v19  ;;  %v3277_v14 = vmul.f32 %v3263_v54, %v12616_v7  ;;  %v3278_v32 = vmul.f32 %v3263_v54, %v12617_v9 }
 0x21b   : > { %v3279_v2 = vmul.f32 %v3263_v54, %v12618_v16  ;;  %v3314_v29 = vrot.slane %v3265_v63, 4  ;;  %v3280_v25 = vmul.f32 %v3263_v54, %v12619_v30  ;;  %v3281_v51 = vmul.f32 %v3263_v54, %v12620_v56 }
 0x21c   : > { %v3282_v46 = vmul.f32 %v3263_v54, %v12532_v15  ;;  %v3283_v18 = vmul.f32 %v3263_v54, %v12533_v38  ;;  %v3284_v33 = vmul.f32 %v3263_v54, %v12551_v57  ;;  %v3285_v52 = vmul.f32 %v3263_v54, %v12552_v12 }
 0x21d   : > { %v3286_v28 = vmul.f32 %v3263_v54, %v12553_v34  ;;  %v3287_v9 = vmul.f32 %v3263_v54, %v12621_v45  ;;  %v3316_v7 = vrot.slane %v3266_v31, 4  ;;  %v3318_v16 = vrot.slane %v3267_v22, 4 }
 0x21e   : > { %v3319_v59 = vrot.slane %v3268_v27, 4  ;;  %v3321_v63 = vrot.slane %v3269_v1, 4  ;;  %v3315_v30 = vsel %vm3312_vm4, %v3313_v3, %v3314_v29  ;;  %v3323_v19 = vrot.slane %v3270_v37, 4 }
 0x21f   : > { %v3324_v56 = vrot.slane %v3271_v40, 4  ;;  %v3326_v0 = vrot.slane %v3272_v36, 4  ;;  %v3328_v15 = vrot.slane %v3273_v17, 4  ;;  %v3329_v55 = vrot.slane %v3274_v8, 4 }
 0x220   : > { %v3331_v38 = vrot.slane %v3275_v4, 4  ;;  %v3333_v10 = vrot.slane %v3276_v39, 4  ;;  %v3334_v57 = vrot.slane %v3277_v14, 4  ;;  %v3336_v48 = vrot.slane %v3278_v32, 4 }
 0x221   : > { %v3338_v12 = vrot.slane %v3279_v2, 4  ;;  %v3339_v50 = vrot.slane %v3280_v25, 4  ;;  %v3341_v34 = vrot.slane %v3281_v51, 4  ;;  %v3343_v43 = vrot.slane %v3282_v46, 4 }
 0x222   : > { %v3344_v54 = vrot.slane %v3283_v18, 4  ;;  %v3346_v31 = vrot.slane %v3284_v33, 4  ;;  %v3317_v22 = vsel %vm3312_vm4, %v3314_v29, %v3316_v7  ;;  %v3348_v27 = vrot.slane %v3285_v52, 4  ;;  %v12630_v7 = vld [vmem:[#allocation24_spill] sm:$0xff] }
 0x223   : > { %v3349_v1 = vrot.slane %v3286_v28, 4  ;;  %v3351_v3 = vrot.slane %v3287_v9, 4  ;;  %v3320_v37 = vsel %vm3312_vm4, %v3318_v16, %v3319_v59  ;;  %v3322_v40 = vsel %vm3312_vm4, %v3319_v59, %v3321_v63  ;;  %v12631_v59 = vld [vmem:[#allocation25_spill] sm:$0xff] }
 0x224   : > { %v3325_v36 = vsel %vm3312_vm4, %v3323_v19, %v3324_v56  ;;  %v3327_v17 = vsel %vm3312_vm4, %v3324_v56, %v3326_v0  ;;  %v3330_v32 = vsel %vm3312_vm4, %v3328_v15, %v3329_v55  ;;  %v3332_v51 = vsel %vm3312_vm4, %v3329_v55, %v3331_v38  ;;  %v12627_v55 = vld [vmem:[#allocation21_spill] sm:$0xff]  ;;  %v12628_v0 = vld [vmem:[#allocation22_spill] sm:$0xff]  ;;  %v12629_v19 = vld [vmem:[#allocation23_spill] sm:$0xff] }
 0x225   : > { %v3335_v46 = vsel %vm3312_vm4, %v3333_v10, %v3334_v57  ;;  %v3337_v25 = vsel %vm3312_vm4, %v3334_v57, %v3336_v48  ;;  %v3340_v52 = vsel %vm3312_vm4, %v3338_v12, %v3339_v50  ;;  %v3342_v28 = vsel %vm3312_vm4, %v3339_v50, %v3341_v34  ;;  %v12626_v48 = vld [vmem:[#allocation20_spill] sm:$0xff] }
 0x226   : > { %v3345_v29 = vsel %vm3312_vm4, %v3343_v43, %v3344_v54  ;;  %v3347_v2 = vsel %vm3312_vm4, %v3344_v54, %v3346_v31  ;;  %v3350_v33 = vsel %vm3312_vm4, %v3348_v27, %v3349_v1  ;;  %v3352_v56 = vsel %vm3312_vm4, %v3349_v1, %v3351_v3  ;;  %v12632_v54 = vld [vmem:[#allocation26_spill] sm:$0xff]  ;;  %v12634_v1 = vld [vmem:[#allocation28_spill] sm:$0xff] }
 0x227   : > { %v9351_v15 = vadd.f32 %v3315_v30, %v9244_v60  ;;  %v9354_v38 = vadd.f32 %v3317_v22, %v9247_v58  ;;  %v9357_v57 = vadd.f32 %v3320_v37, %v9250_v26  ;;  %v9360_v12 = vadd.f32 %v3322_v40, %v9253_v5  ;;  %v12633_v22 = vld [vmem:[#allocation27_spill] sm:$0xff] }
 0x228   : > { %v9363_v34 = vadd.f32 %v3325_v36, %v9256_v49  ;;  %v9366_v16 = vadd.f32 %v3327_v17, %v9259_v41  ;;  %v9369_v18 = vadd.f32 %v3330_v32, %v9262_v21  ;;  %v9372_v60 = vadd.f32 %v3332_v51, %v9265_v44  ;;  %v12635_v36 = vld [vmem:[#allocation29_spill] sm:$0xff]  ;;  %v12636_v32 = vld [vmem:[#allocation30_spill] sm:$0xff] }
 0x229   : > { %v9375_v58 = vadd.f32 %v3335_v46, %v9268_v61  ;;  %v9378_v26 = vadd.f32 %v3337_v25, %v9272_v11  ;;  %v9381_v5 = vadd.f32 %v3340_v52, %v9275_v62  ;;  %v9384_v49 = vadd.f32 %v3342_v28, %v9278_v24  ;;  %v12637_v46 = vld [vmem:[#allocation31_spill] sm:$0xff]  ;;  %v12638_v52 = vld [vmem:[#allocation32_spill] sm:$0xff] }
 0x22a   : > { %v9387_v41 = vadd.f32 %v3345_v29, %v9281_v23  ;;  %v9390_v21 = vadd.f32 %v3347_v2, %v9284_v42  ;;  %v9393_v44 = vadd.f32 %v3350_v33, %v9287_v47  ;;  %v9396_v61 = vadd.f32 %v3352_v56, %v9290_v13  ;;  %v12622_v23 = vld [vmem:[#allocation16_spill] sm:$0xff]  ;;  %v12623_v42 = vld [vmem:[#allocation17_spill] sm:$0xff]  ;;  %v12624_v47 = vld [vmem:[#allocation18_spill] sm:$0xff] }
 0x22b   : > { %v3389_v11 = vmul.f32 %v9293_v53, %v12606_v20  ;;  %v3390_v62 = vmul.f32 %v9293_v53, %v12607_v35  ;;  %v3391_v24 = vmul.f32 %v9293_v53, %v12608_v6  ;;  %v3392_v30 = vmul.f32 %v9293_v53, %v12622_v23  ;;  %v12625_v13 = vld [vmem:[#allocation19_spill] sm:$0xff]  ;;  %v12639_v2 = vld [vmem:[#allocation34_spill] sm:$0xff] }
 0x22c   : > { %v3393_v9 = vmul.f32 %v9293_v53, %v12623_v42  ;;  %v3394_v43 = vmul.f32 %v9293_v53, %v12624_v47  ;;  %v3395_v50 = vmul.f32 %v9293_v53, %v12625_v13  ;;  %v3396_v10 = vmul.f32 %v9293_v53, %v12626_v48  ;;  %v12640_v56 = vld [vmem:[#allocation35_spill] sm:$0xff] }
 0x22d   : > { %v3397_v8 = vmul.f32 %v9293_v53, %v12627_v55  ;;  %v3398_v4 = vmul.f32 %v9293_v53, %v12628_v0  ;;  %v3399_v39 = vmul.f32 %v9293_v53, %v12629_v19  ;;  %v3400_v14 = vmul.f32 %v9293_v53, %v12630_v7 }
 0x22e   : > { %v3401_v63 = vmul.f32 %v9293_v53, %v12631_v59  ;;  %v3402_v31 = vmul.f32 %v9293_v53, %v12632_v54  ;;  %v3403_v27 = vmul.f32 %v9293_v53, %v12633_v22  ;;  %v3404_v3 = vmul.f32 %v9293_v53, %v12634_v1 }
 0x22f   : > { %v3437_v37 = vrot.slane %v3389_v11, 4  ;;  %v3438_v40 = vrot.slane %v3390_v62, 4  ;;  %v3405_v17 = vmul.f32 %v9293_v53, %v12635_v36  ;;  %v3406_v51 = vmul.f32 %v9293_v53, %v12636_v32  ;;  %v12641_v62 = vld [vmem:[#allocation36_spill] sm:$0xff] }
 0x230   : > { %v3407_v25 = vmul.f32 %v9293_v53, %v12637_v46  ;;  %v3408_v28 = vmul.f32 %v9293_v53, %v12638_v52  ;;  %v3409_v29 = vmul.f32 %v9293_v53, %v12621_v45  ;;  %v3410_v33 = vmul.f32 %v9293_v53, %v12639_v2 }
 0x231   : > { %v3411_v11 = vmul.f32 %v9293_v53, %v12640_v56  ;;  %v3412_v6 = vmul.f32 %v9293_v53, %v12641_v62  ;;  %v3440_v35 = vrot.slane %v3391_v24, 4  ;;  %v3442_v20 = vrot.slane %v3392_v30, 4 }
 0x232   : > { %v3443_v32 = vrot.slane %v3393_v9, 4  ;;  %v3445_v36 = vrot.slane %v3394_v43, 4  ;;  %v3439_v46 = vsel %vm3312_vm4, %v3437_v37, %v3438_v40  ;;  %v3447_v1 = vrot.slane %v3395_v50, 4 }
 0x233   : > { %v3448_v52 = vrot.slane %v3396_v10, 4  ;;  %v3450_v22 = vrot.slane %v3397_v8, 4  ;;  %v3452_v54 = vrot.slane %v3398_v4, 4  ;;  %v3453_v45 = vrot.slane %v3399_v39, 4 }
 0x234   : > { %v3455_v59 = vrot.slane %v3400_v14, 4  ;;  %v3457_v7 = vrot.slane %v3401_v63, 4  ;;  %v3458_v2 = vrot.slane %v3402_v31, 4  ;;  %v3460_v19 = vrot.slane %v3403_v27, 4 }
 0x235   : > { %v3462_v0 = vrot.slane %v3404_v3, 4  ;;  %v3463_v56 = vrot.slane %v3405_v17, 4  ;;  %v3465_v55 = vrot.slane %v3406_v51, 4  ;;  %v3467_v48 = vrot.slane %v3407_v25, 4  ;;  %v12646_v17 = vld [vmem:[#allocation23_spill] sm:$0xff]  ;;  %v12647_v51 = vld [vmem:[#allocation24_spill] sm:$0xff] }
 0x236   : > { %v3468_v53 = vrot.slane %v3408_v28, 4  ;;  %v3470_v24 = vrot.slane %v3409_v29, 4  ;;  %v3441_v30 = vsel %vm3312_vm4, %v3438_v40, %v3440_v35  ;;  %v3472_v9 = vrot.slane %v3410_v33, 4  ;;  %v12648_v25 = vld [vmem:[#allocation25_spill] sm:$0xff]  ;;  %v12649_v28 = vld [vmem:[#allocation26_spill] sm:$0xff] }
 0x237   : > { %v3473_v43 = vrot.slane %v3411_v11, 4  ;;  %v3475_v37 = vrot.slane %v3412_v6, 4  ;;  %v3444_v50 = vsel %vm3312_vm4, %v3442_v20, %v3443_v32  ;;  %v3446_v10 = vsel %vm3312_vm4, %v3443_v32, %v3445_v36 }
 0x238   : > { %v3449_v8 = vsel %vm3312_vm4, %v3447_v1, %v3448_v52  ;;  %v3451_v4 = vsel %vm3312_vm4, %v3448_v52, %v3450_v22  ;;  %v3454_v39 = vsel %vm3312_vm4, %v3452_v54, %v3453_v45  ;;  %v3456_v14 = vsel %vm3312_vm4, %v3453_v45, %v3455_v59 }
 0x239   : > { %v3459_v63 = vsel %vm3312_vm4, %v3457_v7, %v3458_v2  ;;  %v3461_v31 = vsel %vm3312_vm4, %v3458_v2, %v3460_v19  ;;  %v3464_v35 = vsel %vm3312_vm4, %v3462_v0, %v3463_v56  ;;  %v3466_v6 = vsel %vm3312_vm4, %v3463_v56, %v3465_v55  ;;  %v12650_v2 = vld [vmem:[#allocation27_spill] sm:$0xff]  ;;  %v12651_v56 = vld [vmem:[#allocation28_spill] sm:$0xff] }
 0x23a   : > { %v3469_v20 = vsel %vm3312_vm4, %v3467_v48, %v3468_v53  ;;  %v3471_v27 = vsel %vm3312_vm4, %v3468_v53, %v3470_v24  ;;  %v3474_v1 = vsel %vm3312_vm4, %v3472_v9, %v3473_v43  ;;  %v3476_v22 = vsel %vm3312_vm4, %v3473_v43, %v3475_v37  ;;  %v12652_v53 = vld [vmem:[#allocation29_spill] sm:$0xff]  ;;  %v12654_v43 = vld [vmem:[#allocation31_spill] sm:$0xff] }
 0x23b   : > { %v9463_v54 = vadd.f32 %v3439_v46, %v9351_v15  ;;  %v9466_v45 = vadd.f32 %v3441_v30, %v9354_v38  ;;  %v9469_v19 = vadd.f32 %v3444_v50, %v9357_v57  ;;  %v9472_v0 = vadd.f32 %v3446_v10, %v9360_v12  ;;  %v12653_v30 = vld [vmem:[#allocation30_spill] sm:$0xff] }
 0x23c   : > { %v9475_v48 = vadd.f32 %v3449_v8, %v9363_v34  ;;  %v9478_v55 = vadd.f32 %v3451_v4, %v9366_v16  ;;  %v9481_v7 = vadd.f32 %v3454_v39, %v9369_v18  ;;  %v9484_v15 = vadd.f32 %v3456_v14, %v9372_v60  ;;  %v12655_v8 = vld [vmem:[#allocation32_spill] sm:$0xff]  ;;  %v12656_v39 = vld [vmem:[#allocation33_spill] sm:$0xff] }
 0x23d   : > { %v9487_v38 = vadd.f32 %v3459_v63, %v9375_v58  ;;  %v9490_v57 = vadd.f32 %v3461_v31, %v9378_v26  ;;  %v9493_v12 = vadd.f32 %v3464_v35, %v9381_v5  ;;  %v9496_v34 = vadd.f32 %v3466_v6, %v9384_v49  ;;  %v12642_v26 = vld [vmem:[#allocation57_spill] sm:$0xff]  ;;  %v12657_v63 = vld [vmem:[#allocation34_spill] sm:$0xff]  ;;  %v12658_v35 = vld [vmem:[#allocation35_spill] sm:$0xff] }
 0x23e   : > { %v9499_v16 = vadd.f32 %v3469_v20, %v9387_v41  ;;  %v9502_v18 = vadd.f32 %v3471_v27, %v9390_v21  ;;  %v9505_v60 = vadd.f32 %v3474_v1, %v9393_v44  ;;  %v9508_v58 = vadd.f32 %v3476_v22, %v9396_v61  ;;  %v12643_v21 = vld [vmem:[#allocation20_spill] sm:$0xff]  ;;  %v12644_v44 = vld [vmem:[#allocation21_spill] sm:$0xff]  ;;  %v12645_v61 = vld [vmem:[#allocation22_spill] sm:$0xff] }
 0x23f   : > { %v3513_v59 = vmul.f32 %v12642_v26, %v12622_v23  ;;  %v3514_v5 = vmul.f32 %v12642_v26, %v12623_v42  ;;  %v3515_v49 = vmul.f32 %v12642_v26, %v12624_v47  ;;  %v3516_v41 = vmul.f32 %v12642_v26, %v12625_v13  ;;  %v12659_v27 = vld [vmem:[#allocation37_spill] sm:$0xff]  ;;  %v12660_v22 = vld [vmem:[#allocation38_spill] sm:$0xff] }
 0x240   : > { %v3517_v3 = vmul.f32 %v12642_v26, %v12643_v21  ;;  %v3518_v40 = vmul.f32 %v12642_v26, %v12644_v44  ;;  %v3519_v36 = vmul.f32 %v12642_v26, %v12645_v61  ;;  %v3520_v32 = vmul.f32 %v12642_v26, %v12646_v17 }
 0x241   : > { %v3521_v46 = vmul.f32 %v12642_v26, %v12647_v51  ;;  %v3522_v52 = vmul.f32 %v12642_v26, %v12648_v25  ;;  %v3523_v29 = vmul.f32 %v12642_v26, %v12649_v28  ;;  %v3524_v33 = vmul.f32 %v12642_v26, %v12650_v2 }
 0x242   : > { %v3525_v11 = vmul.f32 %v12642_v26, %v12651_v56  ;;  %v3526_v24 = vmul.f32 %v12642_v26, %v12652_v53  ;;  %v3527_v9 = vmul.f32 %v12642_v26, %v12653_v30  ;;  %v3528_v37 = vmul.f32 %v12642_v26, %v12654_v43 }
 0x243   : > { %v3561_v50 = vrot.slane %v3513_v59, 4  ;;  %v3562_v10 = vrot.slane %v3514_v5, 4  ;;  %v3529_v4 = vmul.f32 %v12642_v26, %v12655_v8  ;;  %v3530_v14 = vmul.f32 %v12642_v26, %v12656_v39  ;;  %v12661_v5 = vld [vmem:[#allocation39_spill] sm:$0xff] }
 0x244   : > { %v3531_v31 = vmul.f32 %v12642_v26, %v12657_v63  ;;  %v3532_v6 = vmul.f32 %v12642_v26, %v12658_v35  ;;  %v3533_v20 = vmul.f32 %v12642_v26, %v12641_v62  ;;  %v3534_v1 = vmul.f32 %v12642_v26, %v12659_v27 }
 0x245   : > { %v3535_v59 = vmul.f32 %v12642_v26, %v12660_v22  ;;  %v3536_v47 = vmul.f32 %v12642_v26, %v12661_v5  ;;  %v3564_v42 = vrot.slane %v3515_v49, 4  ;;  %v3566_v23 = vrot.slane %v3516_v41, 4 }
 0x246   : > { %v3567_v39 = vrot.slane %v3517_v3, 4  ;;  %v3569_v8 = vrot.slane %v3518_v40, 4  ;;  %v3563_v63 = vsel %vm3312_vm4, %v3561_v50, %v3562_v10  ;;  %v3571_v43 = vrot.slane %v3519_v36, 4 }
 0x247   : > { %v3572_v35 = vrot.slane %v3520_v32, 4  ;;  %v3574_v30 = vrot.slane %v3521_v46, 4  ;;  %v3576_v53 = vrot.slane %v3522_v52, 4  ;;  %v3577_v62 = vrot.slane %v3523_v29, 4 }
 0x248   : > { %v3579_v56 = vrot.slane %v3524_v33, 4  ;;  %v3581_v2 = vrot.slane %v3525_v11, 4  ;;  %v3582_v27 = vrot.slane %v3526_v24, 4  ;;  %v3584_v28 = vrot.slane %v3527_v9, 4 }
 0x249   : > { %v3586_v25 = vrot.slane %v3528_v37, 4  ;;  %v3587_v22 = vrot.slane %v3529_v4, 4  ;;  %v3589_v51 = vrot.slane %v3530_v14, 4  ;;  %v3591_v17 = vrot.slane %v3531_v31, 4  ;;  %v12666_v4 = vld [vmem:[#allocation26_spill] sm:$0xff]  ;;  %v12667_v14 = vld [vmem:[#allocation27_spill] sm:$0xff] }
 0x24a   : > { %v3592_v26 = vrot.slane %v3532_v6, 4  ;;  %v3594_v49 = vrot.slane %v3533_v20, 4  ;;  %v3565_v41 = vsel %vm3312_vm4, %v3562_v10, %v3564_v42  ;;  %v3596_v3 = vrot.slane %v3534_v1, 4  ;;  %v12668_v31 = vld [vmem:[#allocation28_spill] sm:$0xff]  ;;  %v12669_v6 = vld [vmem:[#allocation29_spill] sm:$0xff] }
 0x24b   : > { %v3597_v40 = vrot.slane %v3535_v59, 4  ;;  %v3599_v50 = vrot.slane %v3536_v47, 4  ;;  %v3568_v36 = vsel %vm3312_vm4, %v3566_v23, %v3567_v39  ;;  %v3570_v32 = vsel %vm3312_vm4, %v3567_v39, %v3569_v8 }
 0x24c   : > { %v3573_v46 = vsel %vm3312_vm4, %v3571_v43, %v3572_v35  ;;  %v3575_v52 = vsel %vm3312_vm4, %v3572_v35, %v3574_v30  ;;  %v3578_v29 = vsel %vm3312_vm4, %v3576_v53, %v3577_v62  ;;  %v3580_v33 = vsel %vm3312_vm4, %v3577_v62, %v3579_v56 }
 0x24d   : > { %v3583_v11 = vsel %vm3312_vm4, %v3581_v2, %v3582_v27  ;;  %v3585_v24 = vsel %vm3312_vm4, %v3582_v27, %v3584_v28  ;;  %v3588_v42 = vsel %vm3312_vm4, %v3586_v25, %v3587_v22  ;;  %v3590_v47 = vsel %vm3312_vm4, %v3587_v22, %v3589_v51  ;;  %v12670_v27 = vld [vmem:[#allocation30_spill] sm:$0xff]  ;;  %v12671_v22 = vld [vmem:[#allocation31_spill] sm:$0xff] }
 0x24e   : > { %v3593_v23 = vsel %vm3312_vm4, %v3591_v17, %v3592_v26  ;;  %v3595_v9 = vsel %vm3312_vm4, %v3592_v26, %v3594_v49  ;;  %v3598_v43 = vsel %vm3312_vm4, %v3596_v3, %v3597_v40  ;;  %v3600_v30 = vsel %vm3312_vm4, %v3597_v40, %v3599_v50  ;;  %v12672_v26 = vld [vmem:[#allocation32_spill] sm:$0xff]  ;;  %v12674_v40 = vld [vmem:[#allocation34_spill] sm:$0xff] }
 0x24f   : > { %v9575_v53 = vadd.f32 %v3563_v63, %v9463_v54  ;;  %v9578_v62 = vadd.f32 %v3565_v41, %v9466_v45  ;;  %v9581_v28 = vadd.f32 %v3568_v36, %v9469_v19  ;;  %v9584_v25 = vadd.f32 %v3570_v32, %v9472_v0  ;;  %v12673_v41 = vld [vmem:[#allocation33_spill] sm:$0xff] }
 0x250   : > { %v9587_v17 = vadd.f32 %v3573_v46, %v9475_v48  ;;  %v9590_v51 = vadd.f32 %v3575_v52, %v9478_v55  ;;  %v9593_v2 = vadd.f32 %v3578_v29, %v9481_v7  ;;  %v9596_v54 = vadd.f32 %v3580_v33, %v9484_v15  ;;  %v12675_v46 = vld [vmem:[#allocation35_spill] sm:$0xff]  ;;  %v12676_v29 = vld [vmem:[#allocation36_spill] sm:$0xff] }
 0x251   : > { %v9599_v45 = vadd.f32 %v3583_v11, %v9487_v38  ;;  %v9602_v19 = vadd.f32 %v3585_v24, %v9490_v57  ;;  %v9605_v0 = vadd.f32 %v3588_v42, %v9493_v12  ;;  %v9608_v48 = vadd.f32 %v3590_v47, %v9496_v34  ;;  %v12662_v57 = vld [vmem:[#allocation58_spill] sm:$0xff]  ;;  %v12677_v11 = vld [vmem:[#allocation37_spill] sm:$0xff] }
 0x252   : > { %v9611_v55 = vadd.f32 %v3593_v23, %v9499_v16  ;;  %v9614_v7 = vadd.f32 %v3595_v9, %v9502_v18  ;;  %v9617_v15 = vadd.f32 %v3598_v43, %v9505_v60  ;;  %v9620_v38 = vadd.f32 %v3600_v30, %v9508_v58  ;;  %v12663_v18 = vld [vmem:[#allocation23_spill] sm:$0xff]  ;;  %v12664_v60 = vld [vmem:[#allocation24_spill] sm:$0xff]  ;;  %v12665_v58 = vld [vmem:[#allocation25_spill] sm:$0xff] }
 0x253   : > { %v3637_v56 = vmul.f32 %v12662_v57, %v12625_v13  ;;  %v3638_v12 = vmul.f32 %v12662_v57, %v12643_v21  ;;  %v3639_v34 = vmul.f32 %v12662_v57, %v12644_v44  ;;  %v3640_v16 = vmul.f32 %v12662_v57, %v12645_v61  ;;  %v12678_v42 = vld [vmem:[#allocation38_spill] sm:$0xff]  ;;  %v12679_v9 = vld [vmem:[#allocation40_spill] sm:$0xff]  ;;  %v12680_v30 = vld [vmem:[#allocation41_spill] sm:$0xff] }
 0x254   : > { %v3641_v37 = vmul.f32 %v12662_v57, %v12663_v18  ;;  %v3642_v10 = vmul.f32 %v12662_v57, %v12664_v60  ;;  %v3643_v8 = vmul.f32 %v12662_v57, %v12665_v58  ;;  %v3644_v39 = vmul.f32 %v12662_v57, %v12666_v4 }
 0x255   : > { %v3645_v63 = vmul.f32 %v12662_v57, %v12667_v14  ;;  %v3646_v35 = vmul.f32 %v12662_v57, %v12668_v31  ;;  %v3647_v20 = vmul.f32 %v12662_v57, %v12669_v6  ;;  %v3648_v1 = vmul.f32 %v12662_v57, %v12670_v27 }
 0x256   : > { %v3649_v59 = vmul.f32 %v12662_v57, %v12671_v22  ;;  %v3650_v49 = vmul.f32 %v12662_v57, %v12672_v26  ;;  %v3651_v3 = vmul.f32 %v12662_v57, %v12673_v41  ;;  %v3652_v50 = vmul.f32 %v12662_v57, %v12674_v40 }
 0x257   : > { %v3685_v36 = vrot.slane %v3637_v56, 4  ;;  %v3686_v32 = vrot.slane %v3638_v12, 4  ;;  %v3653_v52 = vmul.f32 %v12662_v57, %v12675_v46  ;;  %v3654_v33 = vmul.f32 %v12662_v57, %v12676_v29  ;;  %v12681_v12 = vld [vmem:[#allocation42_spill] sm:$0xff] }
 0x258   : > { %v3655_v24 = vmul.f32 %v12662_v57, %v12677_v11  ;;  %v3656_v47 = vmul.f32 %v12662_v57, %v12678_v42  ;;  %v3657_v23 = vmul.f32 %v12662_v57, %v12661_v5  ;;  %v3658_v43 = vmul.f32 %v12662_v57, %v12679_v9 }
 0x259   : > { %v3659_v56 = vmul.f32 %v12662_v57, %v12680_v30  ;;  %v3660_v44 = vmul.f32 %v12662_v57, %v12681_v12  ;;  %v3688_v21 = vrot.slane %v3639_v34, 4  ;;  %v3690_v13 = vrot.slane %v3640_v16, 4 }
 0x25a   : > { %v3691_v29 = vrot.slane %v3641_v37, 4  ;;  %v3693_v46 = vrot.slane %v3642_v10, 4  ;;  %v3687_v11 = vsel %vm3312_vm4, %v3685_v36, %v3686_v32  ;;  %v3695_v40 = vrot.slane %v3643_v8, 4 }
 0x25b   : > { %v3696_v42 = vrot.slane %v3644_v39, 4  ;;  %v3698_v41 = vrot.slane %v3645_v63, 4  ;;  %v3700_v26 = vrot.slane %v3646_v35, 4  ;;  %v3701_v5 = vrot.slane %v3647_v20, 4 }
 0x25c   : > { %v3703_v22 = vrot.slane %v3648_v1, 4  ;;  %v3705_v27 = vrot.slane %v3649_v59, 4  ;;  %v3706_v9 = vrot.slane %v3650_v49, 4  ;;  %v3708_v6 = vrot.slane %v3651_v3, 4 }
 0x25d   : > { %v3710_v31 = vrot.slane %v3652_v50, 4  ;;  %v3711_v30 = vrot.slane %v3653_v52, 4  ;;  %v3713_v14 = vrot.slane %v3654_v33, 4  ;;  %v3715_v4 = vrot.slane %v3655_v24, 4  ;;  %v12686_v52 = vld [vmem:[#allocation29_spill] sm:$0xff]  ;;  %v12687_v33 = vld [vmem:[#allocation30_spill] sm:$0xff] }
 0x25e   : > { %v3716_v57 = vrot.slane %v3656_v47, 4  ;;  %v3718_v34 = vrot.slane %v3657_v23, 4  ;;  %v3689_v16 = vsel %vm3312_vm4, %v3686_v32, %v3688_v21  ;;  %v3720_v37 = vrot.slane %v3658_v43, 4  ;;  %v12688_v24 = vld [vmem:[#allocation31_spill] sm:$0xff]  ;;  %v12689_v47 = vld [vmem:[#allocation32_spill] sm:$0xff] }
 0x25f   : > { %v3721_v10 = vrot.slane %v3659_v56, 4  ;;  %v3723_v36 = vrot.slane %v3660_v44, 4  ;;  %v3692_v8 = vsel %vm3312_vm4, %v3690_v13, %v3691_v29  ;;  %v3694_v39 = vsel %vm3312_vm4, %v3691_v29, %v3693_v46 }
 0x260   : > { %v3697_v63 = vsel %vm3312_vm4, %v3695_v40, %v3696_v42  ;;  %v3699_v35 = vsel %vm3312_vm4, %v3696_v42, %v3698_v41  ;;  %v3702_v20 = vsel %vm3312_vm4, %v3700_v26, %v3701_v5  ;;  %v3704_v1 = vsel %vm3312_vm4, %v3701_v5, %v3703_v22 }
 0x261   : > { %v3707_v59 = vsel %vm3312_vm4, %v3705_v27, %v3706_v9  ;;  %v3709_v49 = vsel %vm3312_vm4, %v3706_v9, %v3708_v6  ;;  %v3712_v21 = vsel %vm3312_vm4, %v3710_v31, %v3711_v30  ;;  %v3714_v44 = vsel %vm3312_vm4, %v3711_v30, %v3713_v14  ;;  %v12690_v9 = vld [vmem:[#allocation33_spill] sm:$0xff]  ;;  %v12691_v30 = vld [vmem:[#allocation34_spill] sm:$0xff] }
 0x262   : > { %v3717_v13 = vsel %vm3312_vm4, %v3715_v4, %v3716_v57  ;;  %v3719_v3 = vsel %vm3312_vm4, %v3716_v57, %v3718_v34  ;;  %v3722_v40 = vsel %vm3312_vm4, %v3720_v37, %v3721_v10  ;;  %v3724_v41 = vsel %vm3312_vm4, %v3721_v10, %v3723_v36  ;;  %v12692_v57 = vld [vmem:[#allocation35_spill] sm:$0xff]  ;;  %v12694_v10 = vld [vmem:[#allocation37_spill] sm:$0xff] }
 0x263   : > { %v9687_v26 = vadd.f32 %v3687_v11, %v9575_v53  ;;  %v9690_v5 = vadd.f32 %v3689_v16, %v9578_v62  ;;  %v9693_v6 = vadd.f32 %v3692_v8, %v9581_v28  ;;  %v9696_v31 = vadd.f32 %v3694_v39, %v9584_v25  ;;  %v12693_v16 = vld [vmem:[#allocation36_spill] sm:$0xff] }
 0x264   : > { %v9699_v4 = vadd.f32 %v3697_v63, %v9587_v17  ;;  %v9702_v14 = vadd.f32 %v3699_v35, %v9590_v51  ;;  %v9705_v27 = vadd.f32 %v3702_v20, %v9593_v2  ;;  %v9708_v53 = vadd.f32 %v3704_v1, %v9596_v54  ;;  %v12695_v63 = vld [vmem:[#allocation38_spill] sm:$0xff]  ;;  %v12696_v20 = vld [vmem:[#allocation39_spill] sm:$0xff] }
 0x265   : > { %v9711_v62 = vadd.f32 %v3707_v59, %v9599_v45  ;;  %v9714_v28 = vadd.f32 %v3709_v49, %v9602_v19  ;;  %v9717_v25 = vadd.f32 %v3712_v21, %v9605_v0  ;;  %v9720_v17 = vadd.f32 %v3714_v44, %v9608_v48  ;;  %v12682_v19 = vld [vmem:[#allocation53_spill] sm:$0xff]  ;;  %v12697_v59 = vld [vmem:[#allocation40_spill] sm:$0xff] }
 0x266   : > { %v9723_v51 = vadd.f32 %v3717_v13, %v9611_v55  ;;  %v9726_v2 = vadd.f32 %v3719_v3, %v9614_v7  ;;  %v9729_v54 = vadd.f32 %v3722_v40, %v9617_v15  ;;  %v9732_v45 = vadd.f32 %v3724_v41, %v9620_v38  ;;  %v12683_v7 = vld [vmem:[#allocation26_spill] sm:$0xff]  ;;  %v12684_v15 = vld [vmem:[#allocation27_spill] sm:$0xff]  ;;  %v12685_v38 = vld [vmem:[#allocation28_spill] sm:$0xff] }
 0x267   : > { %v3761_v22 = vmul.f32 %v12682_v19, %v12645_v61  ;;  %v3762_v0 = vmul.f32 %v12682_v19, %v12663_v18  ;;  %v3763_v48 = vmul.f32 %v12682_v19, %v12664_v60  ;;  %v3764_v55 = vmul.f32 %v12682_v19, %v12665_v58  ;;  %v12698_v21 = vld [vmem:[#allocation41_spill] sm:$0xff]  ;;  %v12699_v3 = vld [vmem:[#allocation43_spill] sm:$0xff]  ;;  %v12700_v41 = vld [vmem:[#allocation44_spill] sm:$0xff] }
 0x268   : > { %v3765_v50 = vmul.f32 %v12682_v19, %v12683_v7  ;;  %v3766_v32 = vmul.f32 %v12682_v19, %v12684_v15  ;;  %v3767_v46 = vmul.f32 %v12682_v19, %v12685_v38  ;;  %v3768_v29 = vmul.f32 %v12682_v19, %v12686_v52 }
 0x269   : > { %v3769_v11 = vmul.f32 %v12682_v19, %v12687_v33  ;;  %v3770_v42 = vmul.f32 %v12682_v19, %v12688_v24  ;;  %v3771_v23 = vmul.f32 %v12682_v19, %v12689_v47  ;;  %v3772_v43 = vmul.f32 %v12682_v19, %v12690_v9 }
 0x26a   : > { %v3773_v56 = vmul.f32 %v12682_v19, %v12691_v30  ;;  %v3774_v34 = vmul.f32 %v12682_v19, %v12692_v57  ;;  %v3775_v37 = vmul.f32 %v12682_v19, %v12693_v16  ;;  %v3776_v36 = vmul.f32 %v12682_v19, %v12694_v10 }
 0x26b   : > { %v3809_v8 = vrot.slane %v3761_v22, 4  ;;  %v3810_v39 = vrot.slane %v3762_v0, 4  ;;  %v3777_v35 = vmul.f32 %v12682_v19, %v12695_v63  ;;  %v3778_v1 = vmul.f32 %v12682_v19, %v12696_v20  ;;  %v12701_v0 = vld [vmem:[#allocation45_spill] sm:$0xff] }
 0x26c   : > { %v3779_v49 = vmul.f32 %v12682_v19, %v12697_v59  ;;  %v3780_v44 = vmul.f32 %v12682_v19, %v12698_v21  ;;  %v3781_v13 = vmul.f32 %v12682_v19, %v12681_v12  ;;  %v3782_v40 = vmul.f32 %v12682_v19, %v12699_v3 }
 0x26d   : > { %v3783_v22 = vmul.f32 %v12682_v19, %v12700_v41  ;;  %v3784_v60 = vmul.f32 %v12682_v19, %v12701_v0  ;;  %v3812_v18 = vrot.slane %v3763_v48, 4  ;;  %v3814_v61 = vrot.slane %v3764_v55, 4 }
 0x26e   : > { %v3815_v20 = vrot.slane %v3765_v50, 4  ;;  %v3817_v63 = vrot.slane %v3766_v32, 4  ;;  %v3811_v59 = vsel %vm3312_vm4, %v3809_v8, %v3810_v39  ;;  %v3819_v10 = vrot.slane %v3767_v46, 4 }
 0x26f   : > { %v3820_v21 = vrot.slane %v3768_v29, 4  ;;  %v3822_v16 = vrot.slane %v3769_v11, 4  ;;  %v3824_v57 = vrot.slane %v3770_v42, 4  ;;  %v3825_v12 = vrot.slane %v3771_v23, 4 }
 0x270   : > { %v3827_v30 = vrot.slane %v3772_v43, 4  ;;  %v3829_v9 = vrot.slane %v3773_v56, 4  ;;  %v3830_v3 = vrot.slane %v3774_v34, 4  ;;  %v3832_v47 = vrot.slane %v3775_v37, 4 }
 0x271   : > { %v3834_v24 = vrot.slane %v3776_v36, 4  ;;  %v3835_v41 = vrot.slane %v3777_v35, 4  ;;  %v3837_v33 = vrot.slane %v3778_v1, 4  ;;  %v3839_v52 = vrot.slane %v3779_v49, 4  ;;  %v12706_v35 = vld [vmem:[#allocation32_spill] sm:$0xff]  ;;  %v12707_v1 = vld [vmem:[#allocation33_spill] sm:$0xff] }
 0x272   : > { %v3840_v19 = vrot.slane %v3780_v44, 4  ;;  %v3842_v48 = vrot.slane %v3781_v13, 4  ;;  %v3813_v55 = vsel %vm3312_vm4, %v3810_v39, %v3812_v18  ;;  %v3844_v50 = vrot.slane %v3782_v40, 4  ;;  %v12708_v49 = vld [vmem:[#allocation34_spill] sm:$0xff]  ;;  %v12709_v44 = vld [vmem:[#allocation35_spill] sm:$0xff] }
 0x273   : > { %v3845_v32 = vrot.slane %v3783_v22, 4  ;;  %v3847_v8 = vrot.slane %v3784_v60, 4  ;;  %v3816_v46 = vsel %vm3312_vm4, %v3814_v61, %v3815_v20  ;;  %v3818_v29 = vsel %vm3312_vm4, %v3815_v20, %v3817_v63 }
 0x274   : > { %v3821_v11 = vsel %vm3312_vm4, %v3819_v10, %v3820_v21  ;;  %v3823_v42 = vsel %vm3312_vm4, %v3820_v21, %v3822_v16  ;;  %v3826_v23 = vsel %vm3312_vm4, %v3824_v57, %v3825_v12  ;;  %v3828_v43 = vsel %vm3312_vm4, %v3825_v12, %v3827_v30 }
 0x275   : > { %v3831_v56 = vsel %vm3312_vm4, %v3829_v9, %v3830_v3  ;;  %v3833_v34 = vsel %vm3312_vm4, %v3830_v3, %v3832_v47  ;;  %v3836_v18 = vsel %vm3312_vm4, %v3834_v24, %v3835_v41  ;;  %v3838_v60 = vsel %vm3312_vm4, %v3835_v41, %v3837_v33  ;;  %v12710_v3 = vld [vmem:[#allocation36_spill] sm:$0xff]  ;;  %v12711_v41 = vld [vmem:[#allocation37_spill] sm:$0xff] }
 0x276   : > { %v3841_v61 = vsel %vm3312_vm4, %v3839_v52, %v3840_v19  ;;  %v3843_v37 = vsel %vm3312_vm4, %v3840_v19, %v3842_v48  ;;  %v3846_v10 = vsel %vm3312_vm4, %v3844_v50, %v3845_v32  ;;  %v3848_v16 = vsel %vm3312_vm4, %v3845_v32, %v3847_v8  ;;  %v12712_v19 = vld [vmem:[#allocation38_spill] sm:$0xff]  ;;  %v12714_v32 = vld [vmem:[#allocation40_spill] sm:$0xff] }
 0x277   : > { %v9799_v57 = vadd.f32 %v3811_v59, %v9687_v26  ;;  %v9802_v12 = vadd.f32 %v3813_v55, %v9690_v5  ;;  %v9805_v47 = vadd.f32 %v3816_v46, %v9693_v6  ;;  %v9808_v24 = vadd.f32 %v3818_v29, %v9696_v31  ;;  %v12713_v55 = vld [vmem:[#allocation39_spill] sm:$0xff] }
 0x278   : > { %v9811_v52 = vadd.f32 %v3821_v11, %v9699_v4  ;;  %v9814_v33 = vadd.f32 %v3823_v42, %v9702_v14  ;;  %v9817_v9 = vadd.f32 %v3826_v23, %v9705_v27  ;;  %v9820_v26 = vadd.f32 %v3828_v43, %v9708_v53  ;;  %v12715_v11 = vld [vmem:[#allocation41_spill] sm:$0xff]  ;;  %v12716_v23 = vld [vmem:[#allocation42_spill] sm:$0xff] }
 0x279   : > { %v9823_v5 = vadd.f32 %v3831_v56, %v9711_v62  ;;  %v9826_v6 = vadd.f32 %v3833_v34, %v9714_v28  ;;  %v9829_v31 = vadd.f32 %v3836_v18, %v9717_v25  ;;  %v9832_v4 = vadd.f32 %v3838_v60, %v9720_v17  ;;  %v12702_v28 = vld [vmem:[#allocation54_spill] sm:$0xff]  ;;  %v12717_v56 = vld [vmem:[#allocation43_spill] sm:$0xff]  ;;  %v12718_v18 = vld [vmem:[#allocation44_spill] sm:$0xff] }
 0x27a   : > { %v9835_v14 = vadd.f32 %v3841_v61, %v9723_v51  ;;  %v9838_v27 = vadd.f32 %v3843_v37, %v9726_v2  ;;  %v9841_v53 = vadd.f32 %v3846_v10, %v9729_v54  ;;  %v9844_v62 = vadd.f32 %v3848_v16, %v9732_v45  ;;  %v12703_v2 = vld [vmem:[#allocation29_spill] sm:$0xff]  ;;  %v12704_v54 = vld [vmem:[#allocation30_spill] sm:$0xff]  ;;  %v12705_v45 = vld [vmem:[#allocation31_spill] sm:$0xff] }
 0x27b   : > { %v3885_v30 = vmul.f32 %v12702_v28, %v12665_v58  ;;  %v3886_v25 = vmul.f32 %v12702_v28, %v12683_v7  ;;  %v3887_v17 = vmul.f32 %v12702_v28, %v12684_v15  ;;  %v3888_v51 = vmul.f32 %v12702_v28, %v12685_v38  ;;  %v12719_v37 = vld [vmem:[#allocation46_spill] sm:$0xff]  ;;  %v12720_v16 = vld [vmem:[#allocation47_spill] sm:$0xff] }
 0x27c   : > { %v3889_v36 = vmul.f32 %v12702_v28, %v12703_v2  ;;  %v3890_v39 = vmul.f32 %v12702_v28, %v12704_v54  ;;  %v3891_v63 = vmul.f32 %v12702_v28, %v12705_v45  ;;  %v3892_v20 = vmul.f32 %v12702_v28, %v12706_v35 }
 0x27d   : > { %v3893_v59 = vmul.f32 %v12702_v28, %v12707_v1  ;;  %v3894_v21 = vmul.f32 %v12702_v28, %v12708_v49  ;;  %v3895_v13 = vmul.f32 %v12702_v28, %v12709_v44  ;;  %v3896_v40 = vmul.f32 %v12702_v28, %v12710_v3 }
 0x27e   : > { %v3897_v22 = vmul.f32 %v12702_v28, %v12711_v41  ;;  %v3898_v48 = vmul.f32 %v12702_v28, %v12712_v19  ;;  %v3899_v50 = vmul.f32 %v12702_v28, %v12713_v55  ;;  %v3900_v8 = vmul.f32 %v12702_v28, %v12714_v32 }
 0x27f   : > { %v3933_v46 = vrot.slane %v3885_v30, 4  ;;  %v3934_v29 = vrot.slane %v3886_v25, 4  ;;  %v3901_v42 = vmul.f32 %v12702_v28, %v12715_v11  ;;  %v3902_v43 = vmul.f32 %v12702_v28, %v12716_v23  ;;  %v12721_v25 = vld [vmem:[#allocation48_spill] sm:$0xff] }
 0x280   : > { %v3903_v34 = vmul.f32 %v12702_v28, %v12717_v56  ;;  %v3904_v60 = vmul.f32 %v12702_v28, %v12718_v18  ;;  %v3905_v61 = vmul.f32 %v12702_v28, %v12701_v0  ;;  %v3906_v10 = vmul.f32 %v12702_v28, %v12719_v37 }
 0x281   : > { %v3907_v30 = vmul.f32 %v12702_v28, %v12720_v16  ;;  %v3908_v15 = vmul.f32 %v12702_v28, %v12721_v25  ;;  %v3936_v7 = vrot.slane %v3887_v17, 4  ;;  %v3938_v58 = vrot.slane %v3888_v51, 4 }
 0x282   : > { %v3939_v23 = vrot.slane %v3889_v36, 4  ;;  %v3941_v11 = vrot.slane %v3890_v39, 4  ;;  %v3935_v56 = vsel %vm3312_vm4, %v3933_v46, %v3934_v29  ;;  %v3943_v32 = vrot.slane %v3891_v63, 4 }
 0x283   : > { %v3944_v18 = vrot.slane %v3892_v20, 4  ;;  %v3946_v55 = vrot.slane %v3893_v59, 4  ;;  %v3948_v19 = vrot.slane %v3894_v21, 4  ;;  %v3949_v0 = vrot.slane %v3895_v13, 4 }
 0x284   : > { %v3951_v41 = vrot.slane %v3896_v40, 4  ;;  %v3953_v3 = vrot.slane %v3897_v22, 4  ;;  %v3954_v37 = vrot.slane %v3898_v48, 4  ;;  %v3956_v44 = vrot.slane %v3899_v50, 4 }
 0x285   : > { %v3958_v49 = vrot.slane %v3900_v8, 4  ;;  %v3959_v16 = vrot.slane %v3901_v42, 4  ;;  %v3961_v1 = vrot.slane %v3902_v43, 4  ;;  %v3963_v35 = vrot.slane %v3903_v34, 4  ;;  %v12726_v42 = vld [vmem:[#allocation35_spill] sm:$0xff]  ;;  %v12727_v43 = vld [vmem:[#allocation36_spill] sm:$0xff] }
 0x286   : > { %v3964_v28 = vrot.slane %v3904_v60, 4  ;;  %v3966_v17 = vrot.slane %v3905_v61, 4  ;;  %v3937_v51 = vsel %vm3312_vm4, %v3934_v29, %v3936_v7  ;;  %v3968_v36 = vrot.slane %v3906_v10, 4  ;;  %v12728_v34 = vld [vmem:[#allocation37_spill] sm:$0xff]  ;;  %v12729_v60 = vld [vmem:[#allocation38_spill] sm:$0xff] }
 0x287   : > { %v3969_v39 = vrot.slane %v3907_v30, 4  ;;  %v3971_v46 = vrot.slane %v3908_v15, 4  ;;  %v3940_v63 = vsel %vm3312_vm4, %v3938_v58, %v3939_v23  ;;  %v3942_v20 = vsel %vm3312_vm4, %v3939_v23, %v3941_v11 }
 0x288   : > { %v3945_v59 = vsel %vm3312_vm4, %v3943_v32, %v3944_v18  ;;  %v3947_v21 = vsel %vm3312_vm4, %v3944_v18, %v3946_v55  ;;  %v3950_v13 = vsel %vm3312_vm4, %v3948_v19, %v3949_v0  ;;  %v3952_v40 = vsel %vm3312_vm4, %v3949_v0, %v3951_v41 }
 0x289   : > { %v3955_v22 = vsel %vm3312_vm4, %v3953_v3, %v3954_v37  ;;  %v3957_v48 = vsel %vm3312_vm4, %v3954_v37, %v3956_v44  ;;  %v3960_v7 = vsel %vm3312_vm4, %v3958_v49, %v3959_v16  ;;  %v3962_v15 = vsel %vm3312_vm4, %v3959_v16, %v3961_v1  ;;  %v12730_v37 = vld [vmem:[#allocation39_spill] sm:$0xff]  ;;  %v12731_v16 = vld [vmem:[#allocation40_spill] sm:$0xff] }
 0x28a   : > { %v3965_v58 = vsel %vm3312_vm4, %v3963_v35, %v3964_v28  ;;  %v3967_v50 = vsel %vm3312_vm4, %v3964_v28, %v3966_v17  ;;  %v3970_v32 = vsel %vm3312_vm4, %v3968_v36, %v3969_v39  ;;  %v3972_v55 = vsel %vm3312_vm4, %v3969_v39, %v3971_v46  ;;  %v12732_v28 = vld [vmem:[#allocation41_spill] sm:$0xff]  ;;  %v12734_v39 = vld [vmem:[#allocation43_spill] sm:$0xff] }
 0x28b   : > { %v9911_v19 = vadd.f32 %v3935_v56, %v9799_v57  ;;  %v9914_v0 = vadd.f32 %v3937_v51, %v9802_v12  ;;  %v9917_v44 = vadd.f32 %v3940_v63, %v9805_v47  ;;  %v9920_v49 = vadd.f32 %v3942_v20, %v9808_v24  ;;  %v12733_v51 = vld [vmem:[#allocation42_spill] sm:$0xff] }
 0x28c   : > { %v9923_v35 = vadd.f32 %v3945_v59, %v9811_v52  ;;  %v9926_v1 = vadd.f32 %v3947_v21, %v9814_v33  ;;  %v9929_v3 = vadd.f32 %v3950_v13, %v9817_v9  ;;  %v9932_v57 = vadd.f32 %v3952_v40, %v9820_v26  ;;  %v12735_v59 = vld [vmem:[#allocation44_spill] sm:$0xff]  ;;  %v12736_v13 = vld [vmem:[#allocation45_spill] sm:$0xff] }
 0x28d   : > { %v9935_v12 = vadd.f32 %v3955_v22, %v9823_v5  ;;  %v9938_v47 = vadd.f32 %v3957_v48, %v9826_v6  ;;  %v9941_v24 = vadd.f32 %v3960_v7, %v9829_v31  ;;  %v9944_v52 = vadd.f32 %v3962_v15, %v9832_v4  ;;  %v12722_v6 = vld [vmem:[#allocation55_spill] sm:$0xff]  ;;  %v12737_v22 = vld [vmem:[#allocation46_spill] sm:$0xff] }
 0x28e   : > { %v9947_v33 = vadd.f32 %v3965_v58, %v9835_v14  ;;  %v9950_v9 = vadd.f32 %v3967_v50, %v9838_v27  ;;  %v9953_v26 = vadd.f32 %v3970_v32, %v9841_v53  ;;  %v9956_v5 = vadd.f32 %v3972_v55, %v9844_v62  ;;  %v12723_v27 = vld [vmem:[#allocation32_spill] sm:$0xff]  ;;  %v12724_v53 = vld [vmem:[#allocation33_spill] sm:$0xff]  ;;  %v12725_v62 = vld [vmem:[#allocation34_spill] sm:$0xff] }
 0x28f   : > { %v4009_v41 = vmul.f32 %v12722_v6, %v12685_v38  ;;  %v4010_v31 = vmul.f32 %v12722_v6, %v12703_v2  ;;  %v4011_v4 = vmul.f32 %v12722_v6, %v12704_v54  ;;  %v4012_v14 = vmul.f32 %v12722_v6, %v12705_v45  ;;  %v12738_v7 = vld [vmem:[#allocation47_spill] sm:$0xff]  ;;  %v12739_v50 = vld [vmem:[#allocation49_spill] sm:$0xff]  ;;  %v12740_v55 = vld [vmem:[#allocation50_spill] sm:$0xff] }
 0x290   : > { %v4013_v8 = vmul.f32 %v12722_v6, %v12723_v27  ;;  %v4014_v29 = vmul.f32 %v12722_v6, %v12724_v53  ;;  %v4015_v11 = vmul.f32 %v12722_v6, %v12725_v62  ;;  %v4016_v23 = vmul.f32 %v12722_v6, %v12726_v42 }
 0x291   : > { %v4017_v56 = vmul.f32 %v12722_v6, %v12727_v43  ;;  %v4018_v18 = vmul.f32 %v12722_v6, %v12728_v34  ;;  %v4019_v61 = vmul.f32 %v12722_v6, %v12729_v60  ;;  %v4020_v10 = vmul.f32 %v12722_v6, %v12730_v37 }
 0x292   : > { %v4021_v30 = vmul.f32 %v12722_v6, %v12731_v16  ;;  %v4022_v17 = vmul.f32 %v12722_v6, %v12732_v28  ;;  %v4023_v36 = vmul.f32 %v12722_v6, %v12733_v51  ;;  %v4024_v46 = vmul.f32 %v12722_v6, %v12734_v39 }
 0x293   : > { %v4057_v63 = vrot.slane %v4009_v41, 4  ;;  %v4058_v20 = vrot.slane %v4010_v31, 4  ;;  %v4025_v21 = vmul.f32 %v12722_v6, %v12735_v59  ;;  %v4026_v40 = vmul.f32 %v12722_v6, %v12736_v13  ;;  %v12741_v31 = vld [vmem:[#allocation51_spill] sm:$0xff] }
 0x294   : > { %v4027_v48 = vmul.f32 %v12722_v6, %v12737_v22  ;;  %v4028_v15 = vmul.f32 %v12722_v6, %v12738_v7  ;;  %v4029_v58 = vmul.f32 %v12722_v6, %v12721_v25  ;;  %v4030_v32 = vmul.f32 %v12722_v6, %v12739_v50 }
 0x295   : > { %v4031_v41 = vmul.f32 %v12722_v6, %v12740_v55  ;;  %v4032_v59 = vmul.f32 %v12722_v6, %v12741_v31  ;;  %v4060_v39 = vrot.slane %v4011_v4, 4  ;;  %v4062_v13 = vrot.slane %v4012_v14, 4 }
 0x296   : > { %v4063_v51 = vrot.slane %v4013_v8, 4  ;;  %v4065_v28 = vrot.slane %v4014_v29, 4  ;;  %v4059_v22 = vsel %vm3312_vm4, %v4057_v63, %v4058_v20  ;;  %v4067_v16 = vrot.slane %v4015_v11, 4 }
 0x297   : > { %v4068_v7 = vrot.slane %v4016_v23, 4  ;;  %v4070_v37 = vrot.slane %v4017_v56, 4  ;;  %v4072_v60 = vrot.slane %v4018_v18, 4  ;;  %v4073_v25 = vrot.slane %v4019_v61, 4 }
 0x298   : > { %v4075_v34 = vrot.slane %v4020_v10, 4  ;;  %v4077_v43 = vrot.slane %v4021_v30, 4  ;;  %v4078_v50 = vrot.slane %v4022_v17, 4  ;;  %v4080_v42 = vrot.slane %v4023_v36, 4 }
 0x299   : > { %v4082_v62 = vrot.slane %v4024_v46, 4  ;;  %v4083_v55 = vrot.slane %v4025_v21, 4  ;;  %v4085_v53 = vrot.slane %v4026_v40, 4  ;;  %v4087_v27 = vrot.slane %v4027_v48, 4 }
 0x29a   : > { %v4088_v6 = vrot.slane %v4028_v15, 4  ;;  %v4090_v4 = vrot.slane %v4029_v58, 4  ;;  %v4061_v14 = vsel %vm3312_vm4, %v4058_v20, %v4060_v39  ;;  %v4092_v8 = vrot.slane %v4030_v32, 4  ;;  %v12756_v58 = vld [vmem:[#allocation11_spill] sm:$0xff]  ;;  %v12757_v32 = vld [vmem:[#allocation12_spill] sm:$0xff] }
 0x29b   : > { %v4093_v29 = vrot.slane %v4031_v41, 4  ;;  %v4095_v63 = vrot.slane %v4032_v59, 4  ;;  %v4064_v11 = vsel %vm3312_vm4, %v4062_v13, %v4063_v51  ;;  %v4066_v23 = vsel %vm3312_vm4, %v4063_v51, %v4065_v28  ;;  %v12747_v13 = vld [vmem:[#allocation6_spill] sm:$0xff]  ;;  %v12758_v41 = vld [vmem:[#allocation13_spill] sm:$0xff] }
 0x29c   : > { %v4069_v56 = vsel %vm3312_vm4, %v4067_v16, %v4068_v7  ;;  %v4071_v18 = vsel %vm3312_vm4, %v4068_v7, %v4070_v37  ;;  %v4074_v61 = vsel %vm3312_vm4, %v4072_v60, %v4073_v25  ;;  %v4076_v10 = vsel %vm3312_vm4, %v4073_v25, %v4075_v34 }
 0x29d   : > { %v4079_v30 = vsel %vm3312_vm4, %v4077_v43, %v4078_v50  ;;  %v4081_v17 = vsel %vm3312_vm4, %v4078_v50, %v4080_v42  ;;  %v4084_v36 = vsel %vm3312_vm4, %v4082_v62, %v4083_v55  ;;  %v4086_v39 = vsel %vm3312_vm4, %v4083_v55, %v4085_v53  ;;  %v12742_v53 = vld [vmem:[#allocation52_spill] sm:$0xff] }
 0x29e   : > { %v4089_v46 = vsel %vm3312_vm4, %v4087_v27, %v4088_v6  ;;  %v4091_v28 = vsel %vm3312_vm4, %v4088_v6, %v4090_v4  ;;  %v4094_v16 = vsel %vm3312_vm4, %v4092_v8, %v4093_v29  ;;  %v4096_v37 = vsel %vm3312_vm4, %v4093_v29, %v4095_v63  ;;  %v12759_v4 = vld [vmem:[#allocation14_spill] sm:$0xff]  ;;  %v12760_v8 = vld [vmem:[#allocation15_spill] sm:$0xff]  ;;  %v12761_v63 = vld [vmem:[#allocation16_spill] sm:$0xff] }
 0x29f   : > { %v10023_v60 = vadd.f32 %v4059_v22, %v9911_v19  ;;  %v10026_v25 = vadd.f32 %v4061_v14, %v9914_v0  ;;  %v10029_v42 = vadd.f32 %v4064_v11, %v9917_v44  ;;  %v10032_v62 = vadd.f32 %v4066_v23, %v9920_v49  ;;  %v12762_v23 = vld [vmem:[#allocation17_spill] sm:$0xff] }
 0x2a0   : > { %v10035_v27 = vadd.f32 %v4069_v56, %v9923_v35  ;;  %v4131_v43 = vsub.s32 5, %v12742_v53  ;;  %v10039_v34 = vadd.f32 %v4071_v18, %v9926_v1  ;;  %v10042_v19 = vadd.f32 %v4074_v61, %v9929_v3  ;;  %v12743_v1 = vld [vmem:[#allocation3_spill] sm:$0xff]  ;;  %v12763_v18 = vld [vmem:[#allocation18_spill] sm:$0xff] }
 0x2a1   : > { %v10045_v0 = vadd.f32 %v4076_v10, %v9932_v57  ;;  %v10048_v44 = vadd.f32 %v4079_v30, %v9935_v12  ;;  %v10051_v49 = vadd.f32 %v4081_v17, %v9938_v47  ;;  %v10054_v35 = vadd.f32 %v4084_v36, %v9941_v24  ;;  %v12744_v24 = vld [vmem:[#allocation4_spill] sm:$0xff]  ;;  %v12764_v10 = vld [vmem:[#allocation19_spill] sm:$0xff] }
 0x2a2   : > { %v10057_v51 = vadd.f32 %v4086_v39, %v9944_v52  ;;  %v4132_v20 = vrot.slane %v12743_v1, %v4131_v43  ;;  %v10061_v3 = vadd.f32 %v4089_v46, %v9947_v33  ;;  %v10064_v57 = vadd.f32 %v4091_v28, %v9950_v9  ;;  %v12745_v52 = vld [vmem:[#allocation5_spill] sm:$0xff]  ;;  %v12749_v33 = vld [vmem:[#allocation10_spill] sm:$0xff]  ;;  %v12750_v9 = vld [vmem:[#allocation7_spill] sm:$0xff] }
 0x2a3   : > { %v10067_v12 = vadd.f32 %v4094_v16, %v9953_v26  ;;  %v10070_v47 = vadd.f32 %v4096_v37, %v9956_v5  ;;  %v10073_v59 = vrot.slane %v12744_v24, %v4131_v43  ;;  %v10076_v21 = vrot.slane %v12745_v52, %v4131_v43  ;;  %v12752_v26 = vld [vmem:[#allocation8_spill] sm:$0xff]  ;;  %v12754_v5 = vld [vmem:[#allocation9_spill] sm:$0xff]  ;;  %v12767_v28 = vld [vmem:[#allocation22_spill] sm:$0xff] }
 0x2a4   : > { %v10079_v40 = vrot.slane %v12747_v13, %v4131_v43  ;;  %v4133_v22 = vmul.f32 %v4132_v20, %v12749_v33  ;;  %v10083_v48 = vrot.slane %v12750_v9, %v4131_v43  ;;  %v10086_v7 = vrot.slane %v12752_v26, %v4131_v43  ;;  %v12765_v17 = vld [vmem:[#allocation20_spill] sm:$0xff]  ;;  %v12766_v39 = vld [vmem:[#allocation21_spill] sm:$0xff]  ;;  %v12768_v37 = vld [vmem:[#allocation23_spill] sm:$0xff] }
 0x2a5   : > { %12746 = vst [vmem:[#allocation56_spill] sm:$0xff] %v10076_v21  ;;  %v10089_v15 = vrot.slane %v12754_v5, %v4131_v43  ;;  %v4134_v50 = vmul.f32 %v4132_v20, %v12756_v58  ;;  %v4135_v55 = vmul.f32 %v4132_v20, %v12757_v32  ;;  %v4136_v6 = vmul.f32 %v4132_v20, %v12758_v41  ;;  %v12769_v32 = vld [vmem:[#allocation24_spill] sm:$0xff]  ;;  %v12770_v33 = vld [vmem:[#allocation25_spill] sm:$0xff]  ;;  %v12771_v26 = vld [vmem:[#allocation26_spill] sm:$0xff] }
 0x2a6   : > { %12748 = vst [vmem:[#allocation57_spill] sm:$0xff] %v10079_v40  ;;  %12751 = vst [vmem:[#allocation58_spill] sm:$0xff] %v10083_v48  ;;  %v4137_v14 = vmul.f32 %v4132_v20, %v12759_v4  ;;  %v4138_v29 = vmul.f32 %v4132_v20, %v12760_v8  ;;  %v4139_v11 = vmul.f32 %v4132_v20, %v12761_v63  ;;  %v12772_v13 = vld [vmem:[#allocation27_spill] sm:$0xff]  ;;  %v4182_v24 = vrot.slane %v4133_v22, 5  ;;  %v12773_v40 = vld [vmem:[#allocation32_spill] sm:$0xff] }
 0x2a7   : > { %12753 = vst [vmem:[#allocation53_spill] sm:$0xff] %v10086_v7  ;;  %12755 = vst [vmem:[#allocation54_spill] sm:$0xff] %v10089_v15  ;;  %v4140_v56 = vmul.f32 %v4132_v20, %v12762_v23  ;;  %v4141_v61 = vmul.f32 %v4132_v20, %v12763_v18  ;;  %v4142_v30 = vmul.f32 %v4132_v20, %v12764_v10  ;;  %v4183_v1 = vrot.slane %v4134_v50, 5 }
 0x2a8   : > { %v4143_v36 = vmul.f32 %v4132_v20, %v12765_v17  ;;  %v4144_v46 = vmul.f32 %v4132_v20, %v12766_v39  ;;  %v4145_v16 = vmul.f32 %v4132_v20, %v12767_v28  ;;  %v4146_v43 = vmul.f32 %v4132_v20, %v12768_v37 }
 0x2a9   : > { %v4147_v58 = vmul.f32 %v4132_v20, %v12769_v32  ;;  %v4148_v5 = vmul.f32 %v4132_v20, %v12770_v33  ;;  %v4149_v9 = vmul.f32 %v4132_v20, %v12771_v26  ;;  %v4150_v52 = vmul.f32 %v4132_v20, %v12772_v13  ;;  %v12774_v32 = vld [vmem:[#allocation33_spill] sm:$0xff] }
 0x2aa   : > { %v4185_v53 = vrot.slane %v4135_v55, 5  ;;  %v4151_v31 = vmul.f32 %v4132_v20, %v12685_v38  ;;  %v4152_v15 = vmul.f32 %v4132_v20, %v12703_v2  ;;  %v4153_v7 = vmul.f32 %v4132_v20, %v12704_v54 }
 0x2ab   : > { %v4154_v48 = vmul.f32 %v4132_v20, %v12705_v45  ;;  %v4155_v21 = vmul.f32 %v4132_v20, %v12773_v40  ;;  %v4156_v37 = vmul.f32 %v4132_v20, %v12774_v32  ;;  %v4187_v33 = vrot.slane %v4136_v6, 5 }
 0x2ac   : > { %v4188_v28 = vrot.slane %v4137_v14, 5  ;;  %v4184_v26 = vsel %vm4181_vm5, %v4182_v24, %v4183_v1  ;;  %v4190_v13 = vrot.slane %v4138_v29, 5  ;;  %v4192_v22 = vrot.slane %v4139_v11, 5 }
 0x2ad   : > { %v4193_v50 = vrot.slane %v4140_v56, 5  ;;  %v4186_v55 = vsel %vm4181_vm5, %v4183_v1, %v4185_v53  ;;  %v4195_v38 = vrot.slane %v4141_v61, 5  ;;  %v4197_v39 = vrot.slane %v4142_v30, 5 }
 0x2ae   : > { %v4198_v2 = vrot.slane %v4143_v36, 5  ;;  %v4200_v17 = vrot.slane %v4144_v46, 5  ;;  %v4202_v54 = vrot.slane %v4145_v16, 5  ;;  %v4203_v10 = vrot.slane %v4146_v43, 5  ;;  %v12779_v36 = vld [vmem:[#allocation21_spill] sm:$0xff]  ;;  %v12780_v46 = vld [vmem:[#allocation22_spill] sm:$0xff] }
 0x2af   : > { %v4205_v45 = vrot.slane %v4147_v58, 5  ;;  %v4207_v18 = vrot.slane %v4148_v5, 5  ;;  %v4208_v40 = vrot.slane %v4149_v9, 5  ;;  %v4210_v23 = vrot.slane %v4150_v52, 5  ;;  %v12781_v16 = vld [vmem:[#allocation23_spill] sm:$0xff]  ;;  %v12782_v43 = vld [vmem:[#allocation24_spill] sm:$0xff] }
 0x2b0   : > { %v4212_v20 = vrot.slane %v4151_v31, 5  ;;  %v4189_v6 = vsel %vm4181_vm5, %v4187_v33, %v4188_v28  ;;  %v4191_v24 = vsel %vm4181_vm5, %v4188_v28, %v4190_v13  ;;  %v4213_v14 = vrot.slane %v4152_v15, 5 }
 0x2b1   : > { %v4215_v29 = vrot.slane %v4153_v7, 5  ;;  %v4194_v11 = vsel %vm4181_vm5, %v4192_v22, %v4193_v50  ;;  %v4217_v53 = vrot.slane %v4154_v48, 5  ;;  %v4218_v1 = vrot.slane %v4155_v21, 5 }
 0x2b2   : > { %v4220_v56 = vrot.slane %v4156_v37, 5  ;;  %v4196_v61 = vsel %vm4181_vm5, %v4193_v50, %v4195_v38  ;;  %v4199_v30 = vsel %vm4181_vm5, %v4197_v39, %v4198_v2  ;;  %v4201_v5 = vsel %vm4181_vm5, %v4198_v2, %v4200_v17  ;;  %v12783_v50 = vld [vmem:[#allocation25_spill] sm:$0xff] }
 0x2b3   : > { %v4204_v52 = vsel %vm4181_vm5, %v4202_v54, %v4203_v10  ;;  %v4206_v31 = vsel %vm4181_vm5, %v4203_v10, %v4205_v45  ;;  %v4209_v33 = vsel %vm4181_vm5, %v4207_v18, %v4208_v40  ;;  %v4211_v13 = vsel %vm4181_vm5, %v4208_v40, %v4210_v23  ;;  %v12778_v10 = vld [vmem:[#allocation20_spill] sm:$0xff] }
 0x2b4   : > { %v4214_v9 = vsel %vm4181_vm5, %v4212_v20, %v4213_v14  ;;  %v4216_v48 = vsel %vm4181_vm5, %v4213_v14, %v4215_v29  ;;  %v4219_v21 = vsel %vm4181_vm5, %v4217_v53, %v4218_v1  ;;  %v10130_v38 = vadd.f32 %v4184_v26, %v10023_v60  ;;  %v12784_v20 = vld [vmem:[#allocation26_spill] sm:$0xff]  ;;  %v12786_v29 = vld [vmem:[#allocation28_spill] sm:$0xff]  ;;  %v12787_v53 = vld [vmem:[#allocation29_spill] sm:$0xff] }
 0x2b5   : > { %v10133_v7 = vadd.f32 %v4186_v55, %v10026_v25  ;;  %v4221_v2 = vsel %vm4181_vm5, %v4218_v1, %v4220_v56  ;;  %v10137_v54 = vadd.f32 %v4189_v6, %v10029_v42  ;;  %v10140_v45 = vadd.f32 %v4191_v24, %v10032_v62  ;;  %v12785_v24 = vld [vmem:[#allocation27_spill] sm:$0xff]  ;;  %v12788_v56 = vld [vmem:[#allocation30_spill] sm:$0xff] }
 0x2b6   : > { %v10143_v40 = vadd.f32 %v4194_v11, %v10035_v27  ;;  %v10146_v15 = vadd.f32 %v4196_v61, %v10039_v34  ;;  %v10149_v60 = vadd.f32 %v4199_v30, %v10042_v19  ;;  %v10152_v25 = vadd.f32 %v4201_v5, %v10045_v0 }
 0x2b7   : > { %v10155_v26 = vadd.f32 %v4204_v52, %v10048_v44  ;;  %v10158_v42 = vadd.f32 %v4206_v31, %v10051_v49  ;;  %v10161_v62 = vadd.f32 %v4209_v33, %v10054_v35  ;;  %v10164_v27 = vadd.f32 %v4211_v13, %v10057_v51  ;;  %v12789_v31 = vld [vmem:[#allocation31_spill] sm:$0xff]  ;;  %v12790_v13 = vld [vmem:[#allocation32_spill] sm:$0xff] }
 0x2b8   : > { %v10167_v34 = vadd.f32 %v4214_v9, %v10061_v3  ;;  %v10170_v19 = vadd.f32 %v4216_v48, %v10064_v57  ;;  %v10173_v0 = vadd.f32 %v4219_v21, %v10067_v12  ;;  %v10176_v44 = vadd.f32 %v4221_v2, %v10070_v47  ;;  %v12775_v57 = vld [vmem:[#allocation17_spill] sm:$0xff]  ;;  %v12776_v12 = vld [vmem:[#allocation18_spill] sm:$0xff]  ;;  %v12777_v47 = vld [vmem:[#allocation19_spill] sm:$0xff] }
 0x2b9   : > { %v4258_v49 = vmul.f32 %v10073_v59, %v12758_v41  ;;  %v4259_v35 = vmul.f32 %v10073_v59, %v12759_v4  ;;  %v4260_v51 = vmul.f32 %v10073_v59, %v12760_v8  ;;  %v4261_v3 = vmul.f32 %v10073_v59, %v12761_v63  ;;  %v12791_v21 = vld [vmem:[#allocation34_spill] sm:$0xff]  ;;  %v12792_v8 = vld [vmem:[#allocation35_spill] sm:$0xff]  ;;  %v12793_v41 = vld [vmem:[#allocation36_spill] sm:$0xff] }
 0x2ba   : > { %v4262_v58 = vmul.f32 %v10073_v59, %v12775_v57  ;;  %v4263_v23 = vmul.f32 %v10073_v59, %v12776_v12  ;;  %v4264_v18 = vmul.f32 %v10073_v59, %v12777_v47  ;;  %v4265_v17 = vmul.f32 %v10073_v59, %v12778_v10 }
 0x2bb   : > { %v4266_v39 = vmul.f32 %v10073_v59, %v12779_v36  ;;  %v4267_v28 = vmul.f32 %v10073_v59, %v12780_v46  ;;  %v4268_v37 = vmul.f32 %v10073_v59, %v12781_v16  ;;  %v4269_v22 = vmul.f32 %v10073_v59, %v12782_v43 }
 0x2bc   : > { %v4270_v55 = vmul.f32 %v10073_v59, %v12783_v50  ;;  %v4271_v6 = vmul.f32 %v10073_v59, %v12784_v20  ;;  %v4272_v14 = vmul.f32 %v10073_v59, %v12785_v24  ;;  %v4273_v11 = vmul.f32 %v10073_v59, %v12786_v29 }
 0x2bd   : > { %v4274_v1 = vmul.f32 %v10073_v59, %v12787_v53  ;;  %v4275_v61 = vmul.f32 %v10073_v59, %v12788_v56  ;;  %v4306_v30 = vrot.slane %v4258_v49, 5  ;;  %v4307_v5 = vrot.slane %v4259_v35, 5 }
 0x2be   : > { %v4309_v52 = vrot.slane %v4260_v51, 5  ;;  %v4276_v33 = vmul.f32 %v10073_v59, %v12789_v31  ;;  %v4277_v9 = vmul.f32 %v10073_v59, %v12790_v13  ;;  %v4278_v48 = vmul.f32 %v10073_v59, %v12774_v32 }
 0x2bf   : > { %v4279_v2 = vmul.f32 %v10073_v59, %v12791_v21  ;;  %v4280_v4 = vmul.f32 %v10073_v59, %v12792_v8  ;;  %v4281_v49 = vmul.f32 %v10073_v59, %v12793_v41  ;;  %v4311_v35 = vrot.slane %v4261_v3, 5 }
 0x2c0   : > { %v4312_v51 = vrot.slane %v4262_v58, 5  ;;  %v4308_v56 = vsel %vm4181_vm5, %v4306_v30, %v4307_v5  ;;  %v4314_v31 = vrot.slane %v4263_v23, 5  ;;  %v4316_v53 = vrot.slane %v4264_v18, 5 }
 0x2c1   : > { %v4317_v29 = vrot.slane %v4265_v17, 5  ;;  %v4310_v13 = vsel %vm4181_vm5, %v4307_v5, %v4309_v52  ;;  %v4319_v24 = vrot.slane %v4266_v39, 5  ;;  %v4321_v32 = vrot.slane %v4267_v28, 5  ;;  %v12797_v5 = vld [vmem:[#allocation23_spill] sm:$0xff] }
 0x2c2   : > { %v4322_v20 = vrot.slane %v4268_v37, 5  ;;  %v4324_v50 = vrot.slane %v4269_v22, 5  ;;  %v4326_v21 = vrot.slane %v4270_v55, 5  ;;  %v4327_v43 = vrot.slane %v4271_v6, 5 }
 0x2c3   : > { %v4329_v16 = vrot.slane %v4272_v14, 5  ;;  %v4331_v8 = vrot.slane %v4273_v11, 5  ;;  %v4332_v46 = vrot.slane %v4274_v1, 5  ;;  %v4334_v36 = vrot.slane %v4275_v61, 5 }
 0x2c4   : > { %v4336_v59 = vrot.slane %v4276_v33, 5  ;;  %v4313_v3 = vsel %vm4181_vm5, %v4311_v35, %v4312_v51  ;;  %v4315_v58 = vsel %vm4181_vm5, %v4312_v51, %v4314_v31  ;;  %v4337_v23 = vrot.slane %v4277_v9, 5  ;;  %v12798_v31 = vld [vmem:[#allocation24_spill] sm:$0xff] }
 0x2c5   : > { %v4339_v18 = vrot.slane %v4278_v48, 5  ;;  %v4318_v17 = vsel %vm4181_vm5, %v4316_v53, %v4317_v29  ;;  %v4341_v30 = vrot.slane %v4279_v2, 5  ;;  %v4342_v39 = vrot.slane %v4280_v4, 5  ;;  %v12800_v48 = vld [vmem:[#allocation26_spill] sm:$0xff]  ;;  %v12801_v2 = vld [vmem:[#allocation27_spill] sm:$0xff]  ;;  %v12802_v35 = vld [vmem:[#allocation28_spill] sm:$0xff] }
 0x2c6   : > { %v4344_v28 = vrot.slane %v4281_v49, 5  ;;  %v4320_v37 = vsel %vm4181_vm5, %v4317_v29, %v4319_v24  ;;  %v4323_v22 = vsel %vm4181_vm5, %v4321_v32, %v4322_v20  ;;  %v4325_v55 = vsel %vm4181_vm5, %v4322_v20, %v4324_v50 }
 0x2c7   : > { %v4328_v6 = vsel %vm4181_vm5, %v4326_v21, %v4327_v43  ;;  %v4330_v14 = vsel %vm4181_vm5, %v4327_v43, %v4329_v16  ;;  %v4333_v11 = vsel %vm4181_vm5, %v4331_v8, %v4332_v46  ;;  %v4335_v1 = vsel %vm4181_vm5, %v4332_v46, %v4334_v36 }
 0x2c8   : > { %v4338_v61 = vsel %vm4181_vm5, %v4336_v59, %v4337_v23  ;;  %v4340_v53 = vsel %vm4181_vm5, %v4337_v23, %v4339_v18  ;;  %v4343_v4 = vsel %vm4181_vm5, %v4341_v30, %v4342_v39  ;;  %v10242_v24 = vadd.f32 %v4308_v56, %v10130_v38  ;;  %v12803_v59 = vld [vmem:[#allocation29_spill] sm:$0xff]  ;;  %v12805_v18 = vld [vmem:[#allocation31_spill] sm:$0xff]  ;;  %v12806_v30 = vld [vmem:[#allocation32_spill] sm:$0xff] }
 0x2c9   : > { %v10245_v32 = vadd.f32 %v4310_v13, %v10133_v7  ;;  %v4345_v50 = vsel %vm4181_vm5, %v4342_v39, %v4344_v28  ;;  %v10249_v16 = vadd.f32 %v4313_v3, %v10137_v54  ;;  %v10252_v8 = vadd.f32 %v4315_v58, %v10140_v45  ;;  %v12799_v13 = vld [vmem:[#allocation25_spill] sm:$0xff]  ;;  %v12804_v58 = vld [vmem:[#allocation30_spill] sm:$0xff] }
 0x2ca   : > { %v10255_v36 = vadd.f32 %v4318_v17, %v10143_v40  ;;  %v10258_v46 = vadd.f32 %v4320_v37, %v10146_v15  ;;  %v10261_v38 = vadd.f32 %v4323_v22, %v10149_v60  ;;  %v10264_v7 = vadd.f32 %v4325_v55, %v10152_v25  ;;  %v12807_v28 = vld [vmem:[#allocation33_spill] sm:$0xff] }
 0x2cb   : > { %v10267_v43 = vadd.f32 %v4328_v6, %v10155_v26  ;;  %v10270_v54 = vadd.f32 %v4330_v14, %v10158_v42  ;;  %v10273_v45 = vadd.f32 %v4333_v11, %v10161_v62  ;;  %v10276_v40 = vadd.f32 %v4335_v1, %v10164_v27  ;;  %v12794_v42 = vld [vmem:[#allocation56_spill] sm:$0xff]  ;;  %v12808_v14 = vld [vmem:[#allocation34_spill] sm:$0xff]  ;;  %v12809_v1 = vld [vmem:[#allocation35_spill] sm:$0xff] }
 0x2cc   : > { %v10279_v15 = vadd.f32 %v4338_v61, %v10167_v34  ;;  %v10282_v60 = vadd.f32 %v4340_v53, %v10170_v19  ;;  %v10285_v25 = vadd.f32 %v4343_v4, %v10173_v0  ;;  %v10288_v26 = vadd.f32 %v4345_v50, %v10176_v44  ;;  %v12795_v0 = vld [vmem:[#allocation21_spill] sm:$0xff]  ;;  %v12796_v44 = vld [vmem:[#allocation22_spill] sm:$0xff] }
 0x2cd   : > { %v4382_v20 = vmul.f32 %v12794_v42, %v12761_v63  ;;  %v4383_v62 = vmul.f32 %v12794_v42, %v12775_v57  ;;  %v4384_v27 = vmul.f32 %v12794_v42, %v12776_v12  ;;  %v4385_v34 = vmul.f32 %v12794_v42, %v12777_v47  ;;  %v12810_v4 = vld [vmem:[#allocation37_spill] sm:$0xff]  ;;  %v12811_v12 = vld [vmem:[#allocation38_spill] sm:$0xff]  ;;  %v12812_v63 = vld [vmem:[#allocation39_spill] sm:$0xff] }
 0x2ce   : > { %v4386_v19 = vmul.f32 %v12794_v42, %v12778_v10  ;;  %v4387_v29 = vmul.f32 %v12794_v42, %v12795_v0  ;;  %v4388_v56 = vmul.f32 %v12794_v42, %v12796_v44  ;;  %v4389_v52 = vmul.f32 %v12794_v42, %v12797_v5 }
 0x2cf   : > { %v4390_v33 = vmul.f32 %v12794_v42, %v12798_v31  ;;  %v4391_v9 = vmul.f32 %v12794_v42, %v12799_v13  ;;  %v4392_v21 = vmul.f32 %v12794_v42, %v12800_v48  ;;  %v4393_v49 = vmul.f32 %v12794_v42, %v12801_v2 }
 0x2d0   : > { %v4394_v51 = vmul.f32 %v12794_v42, %v12802_v35  ;;  %v4395_v3 = vmul.f32 %v12794_v42, %v12803_v59  ;;  %v4396_v23 = vmul.f32 %v12794_v42, %v12804_v58  ;;  %v4397_v17 = vmul.f32 %v12794_v42, %v12805_v18 }
 0x2d1   : > { %v4398_v39 = vmul.f32 %v12794_v42, %v12806_v30  ;;  %v4399_v37 = vmul.f32 %v12794_v42, %v12807_v28  ;;  %v4430_v22 = vrot.slane %v4382_v20, 5  ;;  %v4431_v55 = vrot.slane %v4383_v62, 5 }
 0x2d2   : > { %v4433_v6 = vrot.slane %v4384_v27, 5  ;;  %v4400_v11 = vmul.f32 %v12794_v42, %v12808_v14  ;;  %v4401_v61 = vmul.f32 %v12794_v42, %v12809_v1  ;;  %v4402_v53 = vmul.f32 %v12794_v42, %v12793_v41 }
 0x2d3   : > { %v4403_v50 = vmul.f32 %v12794_v42, %v12810_v4  ;;  %v4404_v57 = vmul.f32 %v12794_v42, %v12811_v12  ;;  %v4405_v20 = vmul.f32 %v12794_v42, %v12812_v63  ;;  %v4435_v62 = vrot.slane %v4385_v34, 5 }
 0x2d4   : > { %v4436_v27 = vrot.slane %v4386_v19, 5  ;;  %v4432_v28 = vsel %vm4181_vm5, %v4430_v22, %v4431_v55  ;;  %v4438_v14 = vrot.slane %v4387_v29, 5  ;;  %v4440_v30 = vrot.slane %v4388_v56, 5 }
 0x2d5   : > { %v4441_v18 = vrot.slane %v4389_v52, 5  ;;  %v4434_v1 = vsel %vm4181_vm5, %v4431_v55, %v4433_v6  ;;  %v4443_v58 = vrot.slane %v4390_v33, 5  ;;  %v4445_v41 = vrot.slane %v4391_v9, 5  ;;  %v12816_v55 = vld [vmem:[#allocation26_spill] sm:$0xff] }
 0x2d6   : > { %v4446_v59 = vrot.slane %v4392_v21, 5  ;;  %v4448_v35 = vrot.slane %v4393_v49, 5  ;;  %v4450_v4 = vrot.slane %v4394_v51, 5  ;;  %v4451_v2 = vrot.slane %v4395_v3, 5 }
 0x2d7   : > { %v4453_v48 = vrot.slane %v4396_v23, 5  ;;  %v4455_v12 = vrot.slane %v4397_v17, 5  ;;  %v4456_v13 = vrot.slane %v4398_v39, 5  ;;  %v4458_v31 = vrot.slane %v4399_v37, 5 }
 0x2d8   : > { %v4460_v42 = vrot.slane %v4400_v11, 5  ;;  %v4437_v34 = vsel %vm4181_vm5, %v4435_v62, %v4436_v27  ;;  %v4439_v19 = vsel %vm4181_vm5, %v4436_v27, %v4438_v14  ;;  %v4461_v29 = vrot.slane %v4401_v61, 5  ;;  %v12817_v14 = vld [vmem:[#allocation27_spill] sm:$0xff] }
 0x2d9   : > { %v4463_v56 = vrot.slane %v4402_v53, 5  ;;  %v4442_v52 = vsel %vm4181_vm5, %v4440_v30, %v4441_v18  ;;  %v4465_v22 = vrot.slane %v4403_v50, 5  ;;  %v4466_v33 = vrot.slane %v4404_v57, 5  ;;  %v12819_v53 = vld [vmem:[#allocation29_spill] sm:$0xff]  ;;  %v12820_v50 = vld [vmem:[#allocation30_spill] sm:$0xff]  ;;  %v12821_v62 = vld [vmem:[#allocation31_spill] sm:$0xff] }
 0x2da   : > { %v4468_v9 = vrot.slane %v4405_v20, 5  ;;  %v4444_v21 = vsel %vm4181_vm5, %v4441_v18, %v4443_v58  ;;  %v4447_v49 = vsel %vm4181_vm5, %v4445_v41, %v4446_v59  ;;  %v4449_v51 = vsel %vm4181_vm5, %v4446_v59, %v4448_v35 }
 0x2db   : > { %v4452_v3 = vsel %vm4181_vm5, %v4450_v4, %v4451_v2  ;;  %v4454_v23 = vsel %vm4181_vm5, %v4451_v2, %v4453_v48  ;;  %v4457_v17 = vsel %vm4181_vm5, %v4455_v12, %v4456_v13  ;;  %v4459_v39 = vsel %vm4181_vm5, %v4456_v13, %v4458_v31 }
 0x2dc   : > { %v4462_v37 = vsel %vm4181_vm5, %v4460_v42, %v4461_v29  ;;  %v4464_v30 = vsel %vm4181_vm5, %v4461_v29, %v4463_v56  ;;  %v4467_v57 = vsel %vm4181_vm5, %v4465_v22, %v4466_v33  ;;  %v10354_v58 = vadd.f32 %v4432_v28, %v10242_v24  ;;  %v12822_v42 = vld [vmem:[#allocation32_spill] sm:$0xff]  ;;  %v12824_v56 = vld [vmem:[#allocation34_spill] sm:$0xff]  ;;  %v12825_v22 = vld [vmem:[#allocation35_spill] sm:$0xff] }
 0x2dd   : > { %v10357_v41 = vadd.f32 %v4434_v1, %v10245_v32  ;;  %v4469_v35 = vsel %vm4181_vm5, %v4466_v33, %v4468_v9  ;;  %v10361_v48 = vadd.f32 %v4437_v34, %v10249_v16  ;;  %v10364_v12 = vadd.f32 %v4439_v19, %v10252_v8  ;;  %v12818_v1 = vld [vmem:[#allocation28_spill] sm:$0xff]  ;;  %v12823_v19 = vld [vmem:[#allocation33_spill] sm:$0xff] }
 0x2de   : > { %v10367_v31 = vadd.f32 %v4442_v52, %v10255_v36  ;;  %v10370_v13 = vadd.f32 %v4444_v21, %v10258_v46  ;;  %v10373_v24 = vadd.f32 %v4447_v49, %v10261_v38  ;;  %v10376_v32 = vadd.f32 %v4449_v51, %v10264_v7  ;;  %v12826_v9 = vld [vmem:[#allocation36_spill] sm:$0xff] }
 0x2df   : > { %v10379_v2 = vadd.f32 %v4452_v3, %v10267_v43  ;;  %v10382_v16 = vadd.f32 %v4454_v23, %v10270_v54  ;;  %v10385_v8 = vadd.f32 %v4457_v17, %v10273_v45  ;;  %v10388_v36 = vadd.f32 %v4459_v39, %v10276_v40  ;;  %v12813_v54 = vld [vmem:[#allocation57_spill] sm:$0xff]  ;;  %v12828_v39 = vld [vmem:[#allocation38_spill] sm:$0xff] }
 0x2e0   : > { %v10391_v46 = vadd.f32 %v4462_v37, %v10279_v15  ;;  %v10394_v38 = vadd.f32 %v4464_v30, %v10282_v60  ;;  %v10397_v7 = vadd.f32 %v4467_v57, %v10285_v25  ;;  %v10400_v43 = vadd.f32 %v4469_v35, %v10288_v26  ;;  %v12814_v25 = vld [vmem:[#allocation24_spill] sm:$0xff]  ;;  %v12815_v26 = vld [vmem:[#allocation25_spill] sm:$0xff] }
 0x2e1   : > { %v4506_v59 = vmul.f32 %v12813_v54, %v12777_v47  ;;  %v4507_v45 = vmul.f32 %v12813_v54, %v12778_v10  ;;  %v4508_v40 = vmul.f32 %v12813_v54, %v12795_v0  ;;  %v4509_v15 = vmul.f32 %v12813_v54, %v12796_v44  ;;  %v12827_v23 = vld [vmem:[#allocation37_spill] sm:$0xff]  ;;  %v12829_v57 = vld [vmem:[#allocation40_spill] sm:$0xff]  ;;  %v12831_v47 = vld [vmem:[#allocation42_spill] sm:$0xff] }
 0x2e2   : > { %v4510_v60 = vmul.f32 %v12813_v54, %v12797_v5  ;;  %v4511_v18 = vmul.f32 %v12813_v54, %v12814_v25  ;;  %v4512_v28 = vmul.f32 %v12813_v54, %v12815_v26  ;;  %v4513_v6 = vmul.f32 %v12813_v54, %v12816_v55  ;;  %v12830_v0 = vld [vmem:[#allocation41_spill] sm:$0xff] }
 0x2e3   : > { %v4514_v11 = vmul.f32 %v12813_v54, %v12817_v14  ;;  %v4515_v61 = vmul.f32 %v12813_v54, %v12818_v1  ;;  %v4516_v4 = vmul.f32 %v12813_v54, %v12819_v53  ;;  %v4517_v20 = vmul.f32 %v12813_v54, %v12820_v50 }
 0x2e4   : > { %v4518_v27 = vmul.f32 %v12813_v54, %v12821_v62  ;;  %v4519_v34 = vmul.f32 %v12813_v54, %v12822_v42  ;;  %v4520_v29 = vmul.f32 %v12813_v54, %v12823_v19  ;;  %v4521_v52 = vmul.f32 %v12813_v54, %v12824_v56 }
 0x2e5   : > { %v4522_v33 = vmul.f32 %v12813_v54, %v12825_v22  ;;  %v4523_v21 = vmul.f32 %v12813_v54, %v12826_v9  ;;  %v4554_v49 = vrot.slane %v4506_v59, 5  ;;  %v4555_v51 = vrot.slane %v4507_v45, 5 }
 0x2e6   : > { %v4557_v3 = vrot.slane %v4508_v40, 5  ;;  %v4524_v17 = vmul.f32 %v12813_v54, %v12827_v23  ;;  %v4525_v37 = vmul.f32 %v12813_v54, %v12828_v39  ;;  %v4526_v30 = vmul.f32 %v12813_v54, %v12812_v63 }
 0x2e7   : > { %v4527_v35 = vmul.f32 %v12813_v54, %v12829_v57  ;;  %v4528_v10 = vmul.f32 %v12813_v54, %v12830_v0  ;;  %v4529_v59 = vmul.f32 %v12813_v54, %v12831_v47  ;;  %v4559_v45 = vrot.slane %v4509_v15, 5 }
 0x2e8   : > { %v4560_v40 = vrot.slane %v4510_v60, 5  ;;  %v4556_v9 = vsel %vm4181_vm5, %v4554_v49, %v4555_v51  ;;  %v4562_v23 = vrot.slane %v4511_v18, 5  ;;  %v4564_v22 = vrot.slane %v4512_v28, 5 }
 0x2e9   : > { %v4565_v56 = vrot.slane %v4513_v6, 5  ;;  %v4558_v39 = vsel %vm4181_vm5, %v4555_v51, %v4557_v3  ;;  %v4567_v19 = vrot.slane %v4514_v11, 5  ;;  %v4569_v63 = vrot.slane %v4515_v61, 5  ;;  %v12835_v51 = vld [vmem:[#allocation29_spill] sm:$0xff] }
 0x2ea   : > { %v4570_v42 = vrot.slane %v4516_v4, 5  ;;  %v4572_v62 = vrot.slane %v4517_v20, 5  ;;  %v4574_v57 = vrot.slane %v4518_v27, 5  ;;  %v4575_v50 = vrot.slane %v4519_v34, 5 }
 0x2eb   : > { %v4577_v53 = vrot.slane %v4520_v29, 5  ;;  %v4579_v0 = vrot.slane %v4521_v52, 5  ;;  %v4580_v1 = vrot.slane %v4522_v33, 5  ;;  %v4582_v14 = vrot.slane %v4523_v21, 5 }
 0x2ec   : > { %v4584_v54 = vrot.slane %v4524_v17, 5  ;;  %v4561_v15 = vsel %vm4181_vm5, %v4559_v45, %v4560_v40  ;;  %v4563_v60 = vsel %vm4181_vm5, %v4560_v40, %v4562_v23  ;;  %v4585_v18 = vrot.slane %v4525_v37, 5  ;;  %v12836_v23 = vld [vmem:[#allocation30_spill] sm:$0xff] }
 0x2ed   : > { %v4587_v28 = vrot.slane %v4526_v30, 5  ;;  %v4566_v6 = vsel %vm4181_vm5, %v4564_v22, %v4565_v56  ;;  %v4589_v49 = vrot.slane %v4527_v35, 5  ;;  %v4590_v11 = vrot.slane %v4528_v10, 5  ;;  %v12838_v30 = vld [vmem:[#allocation32_spill] sm:$0xff]  ;;  %v12839_v35 = vld [vmem:[#allocation33_spill] sm:$0xff]  ;;  %v12840_v45 = vld [vmem:[#allocation34_spill] sm:$0xff] }
 0x2ee   : > { %v4592_v61 = vrot.slane %v4529_v59, 5  ;;  %v4568_v4 = vsel %vm4181_vm5, %v4565_v56, %v4567_v19  ;;  %v4571_v20 = vsel %vm4181_vm5, %v4569_v63, %v4570_v42  ;;  %v4573_v27 = vsel %vm4181_vm5, %v4570_v42, %v4572_v62 }
 0x2ef   : > { %v4576_v34 = vsel %vm4181_vm5, %v4574_v57, %v4575_v50  ;;  %v4578_v29 = vsel %vm4181_vm5, %v4575_v50, %v4577_v53  ;;  %v4581_v52 = vsel %vm4181_vm5, %v4579_v0, %v4580_v1  ;;  %v4583_v33 = vsel %vm4181_vm5, %v4580_v1, %v4582_v14 }
 0x2f0   : > { %v4586_v21 = vsel %vm4181_vm5, %v4584_v54, %v4585_v18  ;;  %v4588_v22 = vsel %vm4181_vm5, %v4585_v18, %v4587_v28  ;;  %v4591_v10 = vsel %vm4181_vm5, %v4589_v49, %v4590_v11  ;;  %v10466_v19 = vadd.f32 %v4556_v9, %v10354_v58  ;;  %v12841_v54 = vld [vmem:[#allocation35_spill] sm:$0xff]  ;;  %v12843_v28 = vld [vmem:[#allocation37_spill] sm:$0xff]  ;;  %v12844_v49 = vld [vmem:[#allocation38_spill] sm:$0xff] }
 0x2f1   : > { %v10469_v63 = vadd.f32 %v4558_v39, %v10357_v41  ;;  %v4593_v62 = vsel %vm4181_vm5, %v4590_v11, %v4592_v61  ;;  %v10473_v53 = vadd.f32 %v4561_v15, %v10361_v48  ;;  %v10476_v0 = vadd.f32 %v4563_v60, %v10364_v12  ;;  %v12837_v39 = vld [vmem:[#allocation31_spill] sm:$0xff]  ;;  %v12842_v60 = vld [vmem:[#allocation36_spill] sm:$0xff] }
 0x2f2   : > { %v10479_v14 = vadd.f32 %v4566_v6, %v10367_v31  ;;  %v10482_v1 = vadd.f32 %v4568_v4, %v10370_v13  ;;  %v10485_v58 = vadd.f32 %v4571_v20, %v10373_v24  ;;  %v10488_v41 = vadd.f32 %v4573_v27, %v10376_v32  ;;  %v12845_v61 = vld [vmem:[#allocation39_spill] sm:$0xff] }
 0x2f3   : > { %v10491_v50 = vadd.f32 %v4576_v34, %v10379_v2  ;;  %v10494_v48 = vadd.f32 %v4578_v29, %v10382_v16  ;;  %v10497_v12 = vadd.f32 %v4581_v52, %v10385_v8  ;;  %v10500_v31 = vadd.f32 %v4583_v33, %v10388_v36  ;;  %v12832_v16 = vld [vmem:[#allocation58_spill] sm:$0xff]  ;;  %v12846_v29 = vld [vmem:[#allocation40_spill] sm:$0xff]  ;;  %v12847_v33 = vld [vmem:[#allocation41_spill] sm:$0xff] }
 0x2f4   : > { %v10503_v13 = vadd.f32 %v4586_v21, %v10391_v46  ;;  %v10506_v24 = vadd.f32 %v4588_v22, %v10394_v38  ;;  %v10509_v32 = vadd.f32 %v4591_v10, %v10397_v7  ;;  %v10512_v2 = vadd.f32 %v4593_v62, %v10400_v43  ;;  %v12833_v7 = vld [vmem:[#allocation27_spill] sm:$0xff]  ;;  %v12834_v43 = vld [vmem:[#allocation28_spill] sm:$0xff] }
 0x2f5   : > { %v4630_v42 = vmul.f32 %v12832_v16, %v12796_v44  ;;  %v4631_v8 = vmul.f32 %v12832_v16, %v12797_v5  ;;  %v4632_v36 = vmul.f32 %v12832_v16, %v12814_v25  ;;  %v4633_v46 = vmul.f32 %v12832_v16, %v12815_v26  ;;  %v12848_v10 = vld [vmem:[#allocation43_spill] sm:$0xff]  ;;  %v12849_v25 = vld [vmem:[#allocation44_spill] sm:$0xff]  ;;  %v12850_v44 = vld [vmem:[#allocation45_spill] sm:$0xff] }
 0x2f6   : > { %v4634_v38 = vmul.f32 %v12832_v16, %v12816_v55  ;;  %v4635_v56 = vmul.f32 %v12832_v16, %v12833_v7  ;;  %v4636_v9 = vmul.f32 %v12832_v16, %v12834_v43  ;;  %v4637_v3 = vmul.f32 %v12832_v16, %v12835_v51 }
 0x2f7   : > { %v4638_v17 = vmul.f32 %v12832_v16, %v12836_v23  ;;  %v4639_v37 = vmul.f32 %v12832_v16, %v12837_v39  ;;  %v4640_v57 = vmul.f32 %v12832_v16, %v12838_v30  ;;  %v4641_v59 = vmul.f32 %v12832_v16, %v12839_v35 }
 0x2f8   : > { %v4642_v40 = vmul.f32 %v12832_v16, %v12840_v45  ;;  %v4643_v15 = vmul.f32 %v12832_v16, %v12841_v54  ;;  %v4644_v18 = vmul.f32 %v12832_v16, %v12842_v60  ;;  %v4645_v6 = vmul.f32 %v12832_v16, %v12843_v28 }
 0x2f9   : > { %v4646_v11 = vmul.f32 %v12832_v16, %v12844_v49  ;;  %v4647_v4 = vmul.f32 %v12832_v16, %v12845_v61  ;;  %v4678_v20 = vrot.slane %v4630_v42, 5  ;;  %v4679_v27 = vrot.slane %v4631_v8, 5 }
 0x2fa   : > { %v4681_v34 = vrot.slane %v4632_v36, 5  ;;  %v4648_v52 = vmul.f32 %v12832_v16, %v12846_v29  ;;  %v4649_v21 = vmul.f32 %v12832_v16, %v12847_v33  ;;  %v4650_v22 = vmul.f32 %v12832_v16, %v12831_v47 }
 0x2fb   : > { %v4651_v62 = vmul.f32 %v12832_v16, %v12848_v10  ;;  %v4652_v5 = vmul.f32 %v12832_v16, %v12849_v25  ;;  %v4653_v42 = vmul.f32 %v12832_v16, %v12850_v44  ;;  %v4683_v8 = vrot.slane %v4633_v46, 5 }
 0x2fc   : > { %v4684_v36 = vrot.slane %v4634_v38, 5  ;;  %v4680_v61 = vsel %vm4181_vm5, %v4678_v20, %v4679_v27  ;;  %v4686_v29 = vrot.slane %v4635_v56, 5  ;;  %v4688_v49 = vrot.slane %v4636_v9, 5 }
 0x2fd   : > { %v4689_v28 = vrot.slane %v4637_v3, 5  ;;  %v4682_v33 = vsel %vm4181_vm5, %v4679_v27, %v4681_v34  ;;  %v4691_v60 = vrot.slane %v4638_v17, 5  ;;  %v4693_v47 = vrot.slane %v4639_v37, 5  ;;  %v12854_v27 = vld [vmem:[#allocation32_spill] sm:$0xff] }
 0x2fe   : > { %v4694_v54 = vrot.slane %v4640_v57, 5  ;;  %v4696_v45 = vrot.slane %v4641_v59, 5  ;;  %v4698_v10 = vrot.slane %v4642_v40, 5  ;;  %v4699_v35 = vrot.slane %v4643_v15, 5 }
 0x2ff   : > { %v4701_v30 = vrot.slane %v4644_v18, 5  ;;  %v4703_v25 = vrot.slane %v4645_v6, 5  ;;  %v4704_v39 = vrot.slane %v4646_v11, 5  ;;  %v4706_v23 = vrot.slane %v4647_v4, 5 }
 0x300   : > { %v4708_v16 = vrot.slane %v4648_v52, 5  ;;  %v4685_v46 = vsel %vm4181_vm5, %v4683_v8, %v4684_v36  ;;  %v4687_v38 = vsel %vm4181_vm5, %v4684_v36, %v4686_v29  ;;  %v4709_v56 = vrot.slane %v4649_v21, 5  ;;  %v12855_v29 = vld [vmem:[#allocation33_spill] sm:$0xff] }
 0x301   : > { %v4711_v9 = vrot.slane %v4650_v22, 5  ;;  %v4690_v3 = vsel %vm4181_vm5, %v4688_v49, %v4689_v28  ;;  %v4713_v20 = vrot.slane %v4651_v62, 5  ;;  %v4714_v17 = vrot.slane %v4652_v5, 5  ;;  %v12857_v22 = vld [vmem:[#allocation35_spill] sm:$0xff]  ;;  %v12858_v62 = vld [vmem:[#allocation36_spill] sm:$0xff]  ;;  %v12859_v8 = vld [vmem:[#allocation37_spill] sm:$0xff] }
 0x302   : > { %v4716_v37 = vrot.slane %v4653_v42, 5  ;;  %v4692_v57 = vsel %vm4181_vm5, %v4689_v28, %v4691_v60  ;;  %v4695_v59 = vsel %vm4181_vm5, %v4693_v47, %v4694_v54  ;;  %v4697_v40 = vsel %vm4181_vm5, %v4694_v54, %v4696_v45 }
 0x303   : > { %v4700_v15 = vsel %vm4181_vm5, %v4698_v10, %v4699_v35  ;;  %v4702_v18 = vsel %vm4181_vm5, %v4699_v35, %v4701_v30  ;;  %v4705_v6 = vsel %vm4181_vm5, %v4703_v25, %v4704_v39  ;;  %v4707_v11 = vsel %vm4181_vm5, %v4704_v39, %v4706_v23 }
 0x304   : > { %v4710_v4 = vsel %vm4181_vm5, %v4708_v16, %v4709_v56  ;;  %v4712_v49 = vsel %vm4181_vm5, %v4709_v56, %v4711_v9  ;;  %v4715_v5 = vsel %vm4181_vm5, %v4713_v20, %v4714_v17  ;;  %v10578_v60 = vadd.f32 %v4680_v61, %v10466_v19  ;;  %v12860_v16 = vld [vmem:[#allocation38_spill] sm:$0xff]  ;;  %v12862_v9 = vld [vmem:[#allocation40_spill] sm:$0xff]  ;;  %v12863_v20 = vld [vmem:[#allocation41_spill] sm:$0xff] }
 0x305   : > { %v10581_v47 = vadd.f32 %v4682_v33, %v10469_v63  ;;  %v4717_v45 = vsel %vm4181_vm5, %v4714_v17, %v4716_v37  ;;  %v10585_v30 = vadd.f32 %v4685_v46, %v10473_v53  ;;  %v10588_v25 = vadd.f32 %v4687_v38, %v10476_v0  ;;  %v12856_v33 = vld [vmem:[#allocation34_spill] sm:$0xff]  ;;  %v12861_v38 = vld [vmem:[#allocation39_spill] sm:$0xff] }
 0x306   : > { %v10591_v23 = vadd.f32 %v4690_v3, %v10479_v14  ;;  %v10594_v39 = vadd.f32 %v4692_v57, %v10482_v1  ;;  %v10597_v19 = vadd.f32 %v4695_v59, %v10485_v58  ;;  %v10600_v63 = vadd.f32 %v4697_v40, %v10488_v41  ;;  %v12864_v37 = vld [vmem:[#allocation42_spill] sm:$0xff] }
 0x307   : > { %v10603_v35 = vadd.f32 %v4700_v15, %v10491_v50  ;;  %v10606_v53 = vadd.f32 %v4702_v18, %v10494_v48  ;;  %v10609_v0 = vadd.f32 %v4705_v6, %v10497_v12  ;;  %v10612_v14 = vadd.f32 %v4707_v11, %v10500_v31  ;;  %v12851_v48 = vld [vmem:[#allocation53_spill] sm:$0xff]  ;;  %v12865_v18 = vld [vmem:[#allocation43_spill] sm:$0xff]  ;;  %v12866_v11 = vld [vmem:[#allocation44_spill] sm:$0xff] }
 0x308   : > { %v10615_v1 = vadd.f32 %v4710_v4, %v10503_v13  ;;  %v10618_v58 = vadd.f32 %v4712_v49, %v10506_v24  ;;  %v10621_v41 = vadd.f32 %v4715_v5, %v10509_v32  ;;  %v10624_v50 = vadd.f32 %v4717_v45, %v10512_v2  ;;  %v12852_v32 = vld [vmem:[#allocation30_spill] sm:$0xff]  ;;  %v12853_v2 = vld [vmem:[#allocation31_spill] sm:$0xff] }
 0x309   : > { %v4754_v54 = vmul.f32 %v12851_v48, %v12815_v26  ;;  %v4755_v12 = vmul.f32 %v12851_v48, %v12816_v55  ;;  %v4756_v31 = vmul.f32 %v12851_v48, %v12833_v7  ;;  %v4757_v13 = vmul.f32 %v12851_v48, %v12834_v43  ;;  %v12867_v5 = vld [vmem:[#allocation46_spill] sm:$0xff]  ;;  %v12868_v7 = vld [vmem:[#allocation47_spill] sm:$0xff]  ;;  %v12869_v26 = vld [vmem:[#allocation48_spill] sm:$0xff] }
 0x30a   : > { %v4758_v24 = vmul.f32 %v12851_v48, %v12835_v51  ;;  %v4759_v28 = vmul.f32 %v12851_v48, %v12852_v32  ;;  %v4760_v61 = vmul.f32 %v12851_v48, %v12853_v2  ;;  %v4761_v34 = vmul.f32 %v12851_v48, %v12854_v27 }
 0x30b   : > { %v4762_v52 = vmul.f32 %v12851_v48, %v12855_v29  ;;  %v4763_v21 = vmul.f32 %v12851_v48, %v12856_v33  ;;  %v4764_v10 = vmul.f32 %v12851_v48, %v12857_v22  ;;  %v4765_v42 = vmul.f32 %v12851_v48, %v12858_v62 }
 0x30c   : > { %v4766_v36 = vmul.f32 %v12851_v48, %v12859_v8  ;;  %v4767_v46 = vmul.f32 %v12851_v48, %v12860_v16  ;;  %v4768_v56 = vmul.f32 %v12851_v48, %v12861_v38  ;;  %v4769_v3 = vmul.f32 %v12851_v48, %v12862_v9 }
 0x30d   : > { %v4770_v17 = vmul.f32 %v12851_v48, %v12863_v20  ;;  %v4771_v57 = vmul.f32 %v12851_v48, %v12864_v37  ;;  %v4802_v59 = vrot.slane %v4754_v54, 5  ;;  %v4803_v40 = vrot.slane %v4755_v12, 5 }
 0x30e   : > { %v4805_v15 = vrot.slane %v4756_v31, 5  ;;  %v4772_v6 = vmul.f32 %v12851_v48, %v12865_v18  ;;  %v4773_v4 = vmul.f32 %v12851_v48, %v12866_v11  ;;  %v4774_v49 = vmul.f32 %v12851_v48, %v12850_v44 }
 0x30f   : > { %v4775_v45 = vmul.f32 %v12851_v48, %v12867_v5  ;;  %v4776_v55 = vmul.f32 %v12851_v48, %v12868_v7  ;;  %v4777_v54 = vmul.f32 %v12851_v48, %v12869_v26  ;;  %v4807_v12 = vrot.slane %v4757_v13, 5 }
 0x310   : > { %v4808_v31 = vrot.slane %v4758_v24, 5  ;;  %v4804_v37 = vsel %vm4181_vm5, %v4802_v59, %v4803_v40  ;;  %v4810_v18 = vrot.slane %v4759_v28, 5  ;;  %v4812_v20 = vrot.slane %v4760_v61, 5 }
 0x311   : > { %v4813_v9 = vrot.slane %v4761_v34, 5  ;;  %v4806_v11 = vsel %vm4181_vm5, %v4803_v40, %v4805_v15  ;;  %v4815_v38 = vrot.slane %v4762_v52, 5  ;;  %v4817_v44 = vrot.slane %v4763_v21, 5  ;;  %v12873_v40 = vld [vmem:[#allocation35_spill] sm:$0xff] }
 0x312   : > { %v4818_v16 = vrot.slane %v4764_v10, 5  ;;  %v4820_v8 = vrot.slane %v4765_v42, 5  ;;  %v4822_v5 = vrot.slane %v4766_v36, 5  ;;  %v4823_v62 = vrot.slane %v4767_v46, 5 }
 0x313   : > { %v4825_v22 = vrot.slane %v4768_v56, 5  ;;  %v4827_v7 = vrot.slane %v4769_v3, 5  ;;  %v4828_v33 = vrot.slane %v4770_v17, 5  ;;  %v4830_v29 = vrot.slane %v4771_v57, 5 }
 0x314   : > { %v4832_v48 = vrot.slane %v4772_v6, 5  ;;  %v4809_v13 = vsel %vm4181_vm5, %v4807_v12, %v4808_v31  ;;  %v4811_v24 = vsel %vm4181_vm5, %v4808_v31, %v4810_v18  ;;  %v4833_v28 = vrot.slane %v4773_v4, 5  ;;  %v12874_v18 = vld [vmem:[#allocation36_spill] sm:$0xff] }
 0x315   : > { %v4835_v61 = vrot.slane %v4774_v49, 5  ;;  %v4814_v34 = vsel %vm4181_vm5, %v4812_v20, %v4813_v9  ;;  %v4837_v59 = vrot.slane %v4775_v45, 5  ;;  %v4838_v52 = vrot.slane %v4776_v55, 5  ;;  %v12876_v49 = vld [vmem:[#allocation38_spill] sm:$0xff]  ;;  %v12877_v45 = vld [vmem:[#allocation39_spill] sm:$0xff]  ;;  %v12878_v12 = vld [vmem:[#allocation40_spill] sm:$0xff] }
 0x316   : > { %v4840_v21 = vrot.slane %v4777_v54, 5  ;;  %v4816_v10 = vsel %vm4181_vm5, %v4813_v9, %v4815_v38  ;;  %v4819_v42 = vsel %vm4181_vm5, %v4817_v44, %v4818_v16  ;;  %v4821_v36 = vsel %vm4181_vm5, %v4818_v16, %v4820_v8 }
 0x317   : > { %v4824_v46 = vsel %vm4181_vm5, %v4822_v5, %v4823_v62  ;;  %v4826_v56 = vsel %vm4181_vm5, %v4823_v62, %v4825_v22  ;;  %v4829_v3 = vsel %vm4181_vm5, %v4827_v7, %v4828_v33  ;;  %v4831_v17 = vsel %vm4181_vm5, %v4828_v33, %v4830_v29 }
 0x318   : > { %v4834_v57 = vsel %vm4181_vm5, %v4832_v48, %v4833_v28  ;;  %v4836_v20 = vsel %vm4181_vm5, %v4833_v28, %v4835_v61  ;;  %v4839_v55 = vsel %vm4181_vm5, %v4837_v59, %v4838_v52  ;;  %v10690_v38 = vadd.f32 %v4804_v37, %v10578_v60  ;;  %v12879_v48 = vld [vmem:[#allocation41_spill] sm:$0xff]  ;;  %v12881_v61 = vld [vmem:[#allocation43_spill] sm:$0xff]  ;;  %v12882_v59 = vld [vmem:[#allocation44_spill] sm:$0xff] }
 0x319   : > { %v10693_v44 = vadd.f32 %v4806_v11, %v10581_v47  ;;  %v4841_v8 = vsel %vm4181_vm5, %v4838_v52, %v4840_v21  ;;  %v10697_v22 = vadd.f32 %v4809_v13, %v10585_v30  ;;  %v10700_v7 = vadd.f32 %v4811_v24, %v10588_v25  ;;  %v12875_v11 = vld [vmem:[#allocation37_spill] sm:$0xff]  ;;  %v12880_v24 = vld [vmem:[#allocation42_spill] sm:$0xff] }
 0x31a   : > { %v10703_v29 = vadd.f32 %v4814_v34, %v10591_v23  ;;  %v10706_v33 = vadd.f32 %v4816_v10, %v10594_v39  ;;  %v10709_v60 = vadd.f32 %v4819_v42, %v10597_v19  ;;  %v10712_v47 = vadd.f32 %v4821_v36, %v10600_v63  ;;  %v12883_v21 = vld [vmem:[#allocation45_spill] sm:$0xff] }
 0x31b   : > { %v10715_v62 = vadd.f32 %v4824_v46, %v10603_v35  ;;  %v10718_v30 = vadd.f32 %v4826_v56, %v10606_v53  ;;  %v10721_v25 = vadd.f32 %v4829_v3, %v10609_v0  ;;  %v10724_v23 = vadd.f32 %v4831_v17, %v10612_v14  ;;  %v12870_v53 = vld [vmem:[#allocation54_spill] sm:$0xff]  ;;  %v12885_v17 = vld [vmem:[#allocation47_spill] sm:$0xff] }
 0x31c   : > { %v10727_v39 = vadd.f32 %v4834_v57, %v10615_v1  ;;  %v10730_v19 = vadd.f32 %v4836_v20, %v10618_v58  ;;  %v10733_v63 = vadd.f32 %v4839_v55, %v10621_v41  ;;  %v10736_v35 = vadd.f32 %v4841_v8, %v10624_v50  ;;  %v12871_v41 = vld [vmem:[#allocation33_spill] sm:$0xff]  ;;  %v12872_v50 = vld [vmem:[#allocation34_spill] sm:$0xff] }
 0x31d   : > { %v4878_v16 = vmul.f32 %v12870_v53, %v12834_v43  ;;  %v4879_v0 = vmul.f32 %v12870_v53, %v12835_v51  ;;  %v4880_v14 = vmul.f32 %v12870_v53, %v12852_v32  ;;  %v4881_v1 = vmul.f32 %v12870_v53, %v12853_v2  ;;  %v12884_v56 = vld [vmem:[#allocation46_spill] sm:$0xff]  ;;  %v12886_v55 = vld [vmem:[#allocation49_spill] sm:$0xff] }
 0x31e   : > { %v4882_v58 = vmul.f32 %v12870_v53, %v12854_v27  ;;  %v4883_v9 = vmul.f32 %v12870_v53, %v12871_v41  ;;  %v4884_v37 = vmul.f32 %v12870_v53, %v12872_v50  ;;  %v4885_v15 = vmul.f32 %v12870_v53, %v12873_v40 }
 0x31f   : > { %v4886_v6 = vmul.f32 %v12870_v53, %v12874_v18  ;;  %v4887_v4 = vmul.f32 %v12870_v53, %v12875_v11  ;;  %v4888_v5 = vmul.f32 %v12870_v53, %v12876_v49  ;;  %v4889_v54 = vmul.f32 %v12870_v53, %v12877_v45 }
 0x320   : > { %v4890_v31 = vmul.f32 %v12870_v53, %v12878_v12  ;;  %v4891_v13 = vmul.f32 %v12870_v53, %v12879_v48  ;;  %v4892_v28 = vmul.f32 %v12870_v53, %v12880_v24  ;;  %v4893_v34 = vmul.f32 %v12870_v53, %v12881_v61  ;;  %v12887_v61 = vld [vmem:[#allocation50_spill] sm:$0xff]  ;;  %v12888_v24 = vld [vmem:[#allocation51_spill] sm:$0xff] }
 0x321   : > { %v4894_v52 = vmul.f32 %v12870_v53, %v12882_v59  ;;  %v4895_v10 = vmul.f32 %v12870_v53, %v12883_v21  ;;  %v4926_v42 = vrot.slane %v4878_v16, 5  ;;  %v4927_v36 = vrot.slane %v4879_v0, 5 }
 0x322   : > { %v4929_v46 = vrot.slane %v4880_v14, 5  ;;  %v4896_v3 = vmul.f32 %v12870_v53, %v12884_v56  ;;  %v4897_v57 = vmul.f32 %v12870_v53, %v12885_v17  ;;  %v4898_v20 = vmul.f32 %v12870_v53, %v12869_v26 }
 0x323   : > { %v4899_v8 = vmul.f32 %v12870_v53, %v12886_v55  ;;  %v4900_v59 = vmul.f32 %v12870_v53, %v12887_v61  ;;  %v4901_v16 = vmul.f32 %v12870_v53, %v12888_v24  ;;  %v4931_v0 = vrot.slane %v4881_v1, 5 }
 0x324   : > { %v4932_v14 = vrot.slane %v4882_v58, 5  ;;  %v4928_v21 = vsel %vm4181_vm5, %v4926_v42, %v4927_v36  ;;  %v4934_v56 = vrot.slane %v4883_v9, 5  ;;  %v4936_v48 = vrot.slane %v4884_v37, 5 }
 0x325   : > { %v4937_v12 = vrot.slane %v4885_v15, 5  ;;  %v4930_v17 = vsel %vm4181_vm5, %v4927_v36, %v4929_v46  ;;  %v4939_v45 = vrot.slane %v4886_v6, 5  ;;  %v4941_v26 = vrot.slane %v4887_v4, 5  ;;  %v12892_v36 = vld [vmem:[#allocation5_spill] sm:$0xff] }
 0x326   : > { %v4942_v49 = vrot.slane %v4888_v5, 5  ;;  %v4944_v11 = vrot.slane %v4889_v54, 5  ;;  %v4946_v55 = vrot.slane %v4890_v31, 5  ;;  %v4947_v18 = vrot.slane %v4891_v13, 5 }
 0x327   : > { %v4949_v40 = vrot.slane %v4892_v28, 5  ;;  %v4951_v61 = vrot.slane %v4893_v34, 5  ;;  %v4952_v50 = vrot.slane %v4894_v52, 5  ;;  %v4954_v41 = vrot.slane %v4895_v10, 5 }
 0x328   : > { %v4956_v53 = vrot.slane %v4896_v3, 5  ;;  %v4933_v1 = vsel %vm4181_vm5, %v4931_v0, %v4932_v14  ;;  %v4935_v58 = vsel %vm4181_vm5, %v4932_v14, %v4934_v56  ;;  %v4957_v9 = vrot.slane %v4897_v57, 5  ;;  %v12904_v0 = vld [vmem:[#allocation12_spill] sm:$0xff] }
 0x329   : > { %v4959_v37 = vrot.slane %v4898_v20, 5  ;;  %v4938_v15 = vsel %vm4181_vm5, %v4936_v48, %v4937_v12  ;;  %v4961_v42 = vrot.slane %v4899_v8, 5  ;;  %v4962_v6 = vrot.slane %v4900_v59, 5  ;;  %v12902_v20 = vld [vmem:[#allocation10_spill] sm:$0xff]  ;;  %v12903_v8 = vld [vmem:[#allocation11_spill] sm:$0xff] }
 0x32a   : > { %v4964_v4 = vrot.slane %v4901_v16, 5  ;;  %v4940_v5 = vsel %vm4181_vm5, %v4937_v12, %v4939_v45  ;;  %v4943_v54 = vsel %vm4181_vm5, %v4941_v26, %v4942_v49  ;;  %v4945_v31 = vsel %vm4181_vm5, %v4942_v49, %v4944_v11 }
 0x32b   : > { %v4948_v13 = vsel %vm4181_vm5, %v4946_v55, %v4947_v18  ;;  %v4950_v28 = vsel %vm4181_vm5, %v4947_v18, %v4949_v40  ;;  %v4953_v34 = vsel %vm4181_vm5, %v4951_v61, %v4952_v50  ;;  %v4955_v52 = vsel %vm4181_vm5, %v4952_v50, %v4954_v41  ;;  %v12890_v61 = vld [vmem:[#allocation3_spill] sm:$0xff] }
 0x32c   : > { %v4958_v10 = vsel %vm4181_vm5, %v4956_v53, %v4957_v9  ;;  %v4960_v48 = vsel %vm4181_vm5, %v4957_v9, %v4959_v37  ;;  %v4963_v59 = vsel %vm4181_vm5, %v4961_v42, %v4962_v6  ;;  %v10802_v45 = vadd.f32 %v4928_v21, %v10690_v38  ;;  %v12891_v21 = vld [vmem:[#allocation4_spill] sm:$0xff]  ;;  %v12905_v53 = vld [vmem:[#allocation13_spill] sm:$0xff]  ;;  %v12907_v37 = vld [vmem:[#allocation15_spill] sm:$0xff] }
 0x32d   : > { %v10805_v26 = vadd.f32 %v4930_v17, %v10693_v44  ;;  %v4965_v11 = vsel %vm4181_vm5, %v4962_v6, %v4964_v4  ;;  %v10809_v40 = vadd.f32 %v4933_v1, %v10697_v22  ;;  %v10812_v18 = vadd.f32 %v4935_v58, %v10700_v7  ;;  %v12906_v58 = vld [vmem:[#allocation14_spill] sm:$0xff]  ;;  %v12908_v42 = vld [vmem:[#allocation16_spill] sm:$0xff]  ;;  %v12909_v4 = vld [vmem:[#allocation17_spill] sm:$0xff] }
 0x32e   : > { %v10815_v41 = vadd.f32 %v4938_v15, %v10703_v29  ;;  %v10818_v50 = vadd.f32 %v4940_v5, %v10706_v33  ;;  %v10821_v38 = vadd.f32 %v4943_v54, %v10709_v60  ;;  %v10824_v44 = vadd.f32 %v4945_v31, %v10712_v47  ;;  %v12889_v33 = vld [vmem:[#allocation52_spill] sm:$0xff]  ;;  %v12910_v54 = vld [vmem:[#allocation18_spill] sm:$0xff] }
 0x32f   : > { %v10827_v49 = vadd.f32 %v4948_v13, %v10715_v62  ;;  %v10830_v22 = vadd.f32 %v4950_v28, %v10718_v30  ;;  %v10833_v7 = vadd.f32 %v4953_v34, %v10721_v25  ;;  %v10836_v29 = vadd.f32 %v4955_v52, %v10724_v23  ;;  %v12911_v13 = vld [vmem:[#allocation19_spill] sm:$0xff]  ;;  %v12912_v34 = vld [vmem:[#allocation20_spill] sm:$0xff] }
 0x330   : > { %v5000_v12 = vsub.s32 6, %v12889_v33  ;;  %v10840_v60 = vadd.f32 %v4958_v10, %v10727_v39  ;;  %v10843_v47 = vadd.f32 %v4960_v48, %v10730_v19  ;;  %v10846_v62 = vadd.f32 %v4963_v59, %v10733_v63  ;;  %v12894_v39 = vld [vmem:[#allocation6_spill] sm:$0xff]  ;;  %v12896_v19 = vld [vmem:[#allocation7_spill] sm:$0xff]  ;;  %v12898_v63 = vld [vmem:[#allocation8_spill] sm:$0xff] }
 0x331   : > { %v10849_v30 = vadd.f32 %v4965_v11, %v10736_v35  ;;  %v12900_v35 = vld [vmem:[#allocation9_spill] sm:$0xff]  ;;  %v12914_v59 = vld [vmem:[#allocation22_spill] sm:$0xff]  ;;  %v12915_v33 = vld [vmem:[#allocation23_spill] sm:$0xff] }
 0x332   : > { %v5001_v25 = vrot.slane %v12890_v61, %v5000_v12  ;;  %v10853_v23 = vrot.slane %v12891_v21, %v5000_v12  ;;  %v10856_v46 = vrot.slane %v12892_v36, %v5000_v12  ;;  %v10859_v56 = vrot.slane %v12894_v39, %v5000_v12  ;;  %v12913_v10 = vld [vmem:[#allocation21_spill] sm:$0xff]  ;;  %v12916_v61 = vld [vmem:[#allocation24_spill] sm:$0xff] }
 0x333   : > { %v10862_v3 = vrot.slane %v12896_v19, %v5000_v12  ;;  %v10865_v17 = vrot.slane %v12898_v63, %v5000_v12  ;;  %v10868_v57 = vrot.slane %v12900_v35, %v5000_v12  ;;  %v12917_v36 = vld [vmem:[#allocation25_spill] sm:$0xff]  ;;  %v12918_v19 = vld [vmem:[#allocation26_spill] sm:$0xff]  ;;  %v12919_v35 = vld [vmem:[#allocation27_spill] sm:$0xff] }
 0x334   : > { %12893 = vst [vmem:[#allocation55_spill] sm:$0xff] %v10856_v46  ;;  %12895 = vst [vmem:[#allocation56_spill] sm:$0xff] %v10859_v56  ;;  %v5002_v55 = vmul.f32 %v5001_v25, %v12902_v20  ;;  %v5003_v16 = vmul.f32 %v5001_v25, %v12903_v8  ;;  %v5004_v14 = vmul.f32 %v5001_v25, %v12904_v0 }
 0x335   : > { %12897 = vst [vmem:[#allocation57_spill] sm:$0xff] %v10862_v3  ;;  %12899 = vst [vmem:[#allocation58_spill] sm:$0xff] %v10865_v17  ;;  %v5005_v1 = vmul.f32 %v5001_v25, %v12905_v53  ;;  %v5006_v9 = vmul.f32 %v5001_v25, %v12906_v58  ;;  %v5007_v15 = vmul.f32 %v5001_v25, %v12907_v37  ;;  %v12920_v3 = vld [vmem:[#allocation33_spill] sm:$0xff] }
 0x336   : > { %12901 = vst [vmem:[#allocation53_spill] sm:$0xff] %v10868_v57  ;;  %v5008_v6 = vmul.f32 %v5001_v25, %v12908_v42  ;;  %v5009_v5 = vmul.f32 %v5001_v25, %v12909_v4  ;;  %v5010_v31 = vmul.f32 %v5001_v25, %v12910_v54  ;;  %v5011_v28 = vmul.f32 %v5001_v25, %v12911_v13 }
 0x337   : > { %v5012_v52 = vmul.f32 %v5001_v25, %v12912_v34  ;;  %v5013_v48 = vmul.f32 %v5001_v25, %v12913_v10  ;;  %v5014_v11 = vmul.f32 %v5001_v25, %v12914_v59  ;;  %v5015_v12 = vmul.f32 %v5001_v25, %v12915_v33 }
 0x338   : > { %v5016_v21 = vmul.f32 %v5001_v25, %v12916_v61  ;;  %v5017_v39 = vmul.f32 %v5001_v25, %v12917_v36  ;;  %v5018_v63 = vmul.f32 %v5001_v25, %v12918_v19  ;;  %v5019_v20 = vmul.f32 %v5001_v25, %v12919_v35 }
 0x339   : > { %v5020_v8 = vmul.f32 %v5001_v25, %v12834_v43  ;;  %v5021_v0 = vmul.f32 %v5001_v25, %v12835_v51  ;;  %v5022_v24 = vmul.f32 %v5001_v25, %v12852_v32  ;;  %v5023_v57 = vmul.f32 %v5001_v25, %v12853_v2 }
 0x33a   : > { %v5024_v17 = vmul.f32 %v5001_v25, %v12854_v27  ;;  %v5025_v56 = vmul.f32 %v5001_v25, %v12920_v3  ;;  %v5051_v46 = vrot.slane %v5002_v55, 6  ;;  %v5052_v61 = vrot.slane %v5003_v16, 6 }
 0x33b   : > { %v5054_v33 = vrot.slane %v5004_v14, 6  ;;  %v5056_v36 = vrot.slane %v5005_v1, 6  ;;  %v5057_v59 = vrot.slane %v5006_v9, 6  ;;  %v5059_v19 = vrot.slane %v5007_v15, 6 }
 0x33c   : > { %v5061_v10 = vrot.slane %v5008_v6, 6  ;;  %v5062_v35 = vrot.slane %v5009_v5, 6  ;;  %v5053_v43 = vsel %vm5050_vm6, %v5051_v46, %v5052_v61  ;;  %v5064_v34 = vrot.slane %v5010_v31, 6 }
 0x33d   : > { %v5055_v51 = vsel %vm5050_vm6, %v5052_v61, %v5054_v33  ;;  %v5066_v32 = vrot.slane %v5011_v28, 6  ;;  %v5058_v2 = vsel %vm5050_vm6, %v5056_v36, %v5057_v59  ;;  %v5060_v27 = vsel %vm5050_vm6, %v5057_v59, %v5059_v19 }
 0x33e   : > { %v5063_v25 = vsel %vm5050_vm6, %v5061_v10, %v5062_v35  ;;  %v5067_v55 = vrot.slane %v5012_v52, 6  ;;  %v5065_v16 = vsel %vm5050_vm6, %v5062_v35, %v5064_v34  ;;  %v5069_v14 = vrot.slane %v5013_v48, 6 }
 0x33f   : > { %v5071_v1 = vrot.slane %v5014_v11, 6  ;;  %v5072_v9 = vrot.slane %v5015_v12, 6  ;;  %v5074_v6 = vrot.slane %v5016_v21, 6  ;;  %v5076_v46 = vrot.slane %v5017_v39, 6 }
 0x340   : > { %v5068_v15 = vsel %vm5050_vm6, %v5066_v32, %v5067_v55  ;;  %v5077_v5 = vrot.slane %v5018_v63, 6  ;;  %v5070_v31 = vsel %vm5050_vm6, %v5067_v55, %v5069_v14  ;;  %v5079_v33 = vrot.slane %v5019_v20, 6  ;;  %v12924_v20 = vld [vmem:[#allocation23_spill] sm:$0xff]  ;;  %v12926_v55 = vld [vmem:[#allocation25_spill] sm:$0xff]  ;;  %v12927_v14 = vld [vmem:[#allocation26_spill] sm:$0xff] }
 0x341   : > { %v5073_v28 = vsel %vm5050_vm6, %v5071_v1, %v5072_v9  ;;  %v5081_v61 = vrot.slane %v5020_v8, 6  ;;  %v5075_v59 = vsel %vm5050_vm6, %v5072_v9, %v5074_v6  ;;  %v5082_v10 = vrot.slane %v5021_v0, 6  ;;  %v12925_v0 = vld [vmem:[#allocation24_spill] sm:$0xff]  ;;  %v12928_v9 = vld [vmem:[#allocation27_spill] sm:$0xff] }
 0x342   : > { %v5078_v52 = vsel %vm5050_vm6, %v5076_v46, %v5077_v5  ;;  %v5084_v34 = vrot.slane %v5022_v24, 6  ;;  %v5080_v48 = vsel %vm5050_vm6, %v5077_v5, %v5079_v33  ;;  %v5086_v11 = vrot.slane %v5023_v57, 6  ;;  %v12929_v6 = vld [vmem:[#allocation28_spill] sm:$0xff]  ;;  %v12930_v5 = vld [vmem:[#allocation29_spill] sm:$0xff] }
 0x343   : > { %v5087_v12 = vrot.slane %v5024_v17, 6  ;;  %v5089_v32 = vrot.slane %v5025_v56, 6  ;;  %v5083_v21 = vsel %vm5050_vm6, %v5081_v61, %v5082_v10  ;;  %v10909_v39 = vadd.f32 %v5053_v43, %v10802_v45  ;;  %v12932_v61 = vld [vmem:[#allocation31_spill] sm:$0xff] }
 0x344   : > { %v5085_v36 = vsel %vm5050_vm6, %v5082_v10, %v5084_v34  ;;  %v10912_v19 = vadd.f32 %v5055_v51, %v10805_v26  ;;  %v10917_v24 = vadd.f32 %v5058_v2, %v10809_v40  ;;  %v10920_v17 = vadd.f32 %v5060_v27, %v10812_v18 }
 0x345   : > { %v5088_v63 = vsel %vm5050_vm6, %v5086_v11, %v5087_v12  ;;  %v5090_v35 = vsel %vm5050_vm6, %v5087_v12, %v5089_v32  ;;  %v10923_v56 = vadd.f32 %v5063_v25, %v10815_v41  ;;  %v10926_v57 = vadd.f32 %v5065_v16, %v10818_v50  ;;  %v12935_v12 = vld [vmem:[#allocation35_spill] sm:$0xff] }
 0x346   : > { %v10929_v43 = vadd.f32 %v5068_v15, %v10821_v38  ;;  %v10932_v51 = vadd.f32 %v5070_v31, %v10824_v44  ;;  %v10935_v45 = vadd.f32 %v5073_v28, %v10827_v49  ;;  %v10938_v2 = vadd.f32 %v5075_v59, %v10830_v22  ;;  %v12931_v28 = vld [vmem:[#allocation30_spill] sm:$0xff] }
 0x347   : > { %v10941_v27 = vadd.f32 %v5078_v52, %v10833_v7  ;;  %v10944_v26 = vadd.f32 %v5080_v48, %v10836_v29  ;;  %v10947_v40 = vadd.f32 %v5083_v21, %v10840_v60  ;;  %v10950_v18 = vadd.f32 %v5085_v36, %v10843_v47  ;;  %v12921_v47 = vld [vmem:[#allocation20_spill] sm:$0xff]  ;;  %v12934_v48 = vld [vmem:[#allocation34_spill] sm:$0xff] }
 0x348   : > { %v10953_v41 = vadd.f32 %v5088_v63, %v10846_v62  ;;  %v10956_v50 = vadd.f32 %v5090_v35, %v10849_v30  ;;  %v5127_v38 = vmul.f32 %v10853_v23, %v12905_v53  ;;  %v5128_v44 = vmul.f32 %v10853_v23, %v12906_v58  ;;  %v12922_v30 = vld [vmem:[#allocation21_spill] sm:$0xff]  ;;  %v12923_v58 = vld [vmem:[#allocation22_spill] sm:$0xff]  ;;  %v12933_v52 = vld [vmem:[#allocation32_spill] sm:$0xff] }
 0x349   : > { %v5129_v49 = vmul.f32 %v10853_v23, %v12907_v37  ;;  %v5130_v22 = vmul.f32 %v10853_v23, %v12908_v42  ;;  %v5131_v7 = vmul.f32 %v10853_v23, %v12909_v4  ;;  %v5132_v29 = vmul.f32 %v10853_v23, %v12910_v54  ;;  %v12936_v21 = vld [vmem:[#allocation36_spill] sm:$0xff] }
 0x34a   : > { %v5133_v60 = vmul.f32 %v10853_v23, %v12911_v13  ;;  %v5134_v62 = vmul.f32 %v10853_v23, %v12921_v47  ;;  %v5135_v53 = vmul.f32 %v10853_v23, %v12922_v30  ;;  %v5136_v37 = vmul.f32 %v10853_v23, %v12923_v58 }
 0x34b   : > { %v5137_v8 = vmul.f32 %v10853_v23, %v12924_v20  ;;  %v5138_v25 = vmul.f32 %v10853_v23, %v12925_v0  ;;  %v5139_v16 = vmul.f32 %v10853_v23, %v12926_v55  ;;  %v5140_v1 = vmul.f32 %v10853_v23, %v12927_v14 }
 0x34c   : > { %v5141_v15 = vmul.f32 %v10853_v23, %v12928_v9  ;;  %v5142_v46 = vmul.f32 %v10853_v23, %v12929_v6  ;;  %v5143_v31 = vmul.f32 %v10853_v23, %v12930_v5  ;;  %v5144_v33 = vmul.f32 %v10853_v23, %v12931_v28 }
 0x34d   : > { %v5145_v59 = vmul.f32 %v10853_v23, %v12932_v61  ;;  %v5146_v10 = vmul.f32 %v10853_v23, %v12933_v52  ;;  %v5147_v34 = vmul.f32 %v10853_v23, %v12920_v3  ;;  %v5148_v11 = vmul.f32 %v10853_v23, %v12934_v48 }
 0x34e   : > { %v5149_v32 = vmul.f32 %v10853_v23, %v12935_v12  ;;  %v5150_v36 = vmul.f32 %v10853_v23, %v12936_v21  ;;  %v5175_v63 = vrot.slane %v5127_v38, 6  ;;  %v5176_v35 = vrot.slane %v5128_v44, 6 }
 0x34f   : > { %v5178_v28 = vrot.slane %v5129_v49, 6  ;;  %v5180_v5 = vrot.slane %v5130_v22, 6  ;;  %v5181_v61 = vrot.slane %v5131_v7, 6  ;;  %v5183_v6 = vrot.slane %v5132_v29, 6 }
 0x350   : > { %v5185_v9 = vrot.slane %v5133_v60, 6  ;;  %v5186_v52 = vrot.slane %v5134_v62, 6  ;;  %v5177_v14 = vsel %vm5050_vm6, %v5175_v63, %v5176_v35  ;;  %v5188_v55 = vrot.slane %v5135_v53, 6 }
 0x351   : > { %v5179_v3 = vsel %vm5050_vm6, %v5176_v35, %v5178_v28  ;;  %v5190_v48 = vrot.slane %v5136_v37, 6  ;;  %v5182_v0 = vsel %vm5050_vm6, %v5180_v5, %v5181_v61  ;;  %v5184_v12 = vsel %vm5050_vm6, %v5181_v61, %v5183_v6  ;;  %v12941_v35 = vld [vmem:[#allocation27_spill] sm:$0xff] }
 0x352   : > { %v5187_v23 = vsel %vm5050_vm6, %v5185_v9, %v5186_v52  ;;  %v5191_v38 = vrot.slane %v5137_v8, 6  ;;  %v5189_v44 = vsel %vm5050_vm6, %v5186_v52, %v5188_v55  ;;  %v5193_v49 = vrot.slane %v5138_v25, 6 }
 0x353   : > { %v5195_v22 = vrot.slane %v5139_v16, 6  ;;  %v5196_v7 = vrot.slane %v5140_v1, 6  ;;  %v5198_v60 = vrot.slane %v5141_v15, 6  ;;  %v5200_v62 = vrot.slane %v5142_v46, 6 }
 0x354   : > { %v5192_v29 = vsel %vm5050_vm6, %v5190_v48, %v5191_v38  ;;  %v5201_v63 = vrot.slane %v5143_v31, 6  ;;  %v5194_v53 = vsel %vm5050_vm6, %v5191_v38, %v5193_v49  ;;  %v5203_v5 = vrot.slane %v5144_v33, 6  ;;  %v12942_v38 = vld [vmem:[#allocation28_spill] sm:$0xff]  ;;  %v12943_v49 = vld [vmem:[#allocation29_spill] sm:$0xff] }
 0x355   : > { %v5197_v37 = vsel %vm5050_vm6, %v5195_v22, %v5196_v7  ;;  %v5205_v28 = vrot.slane %v5145_v59, 6  ;;  %v5199_v6 = vsel %vm5050_vm6, %v5196_v7, %v5198_v60  ;;  %v5206_v9 = vrot.slane %v5146_v10, 6  ;;  %v12944_v7 = vld [vmem:[#allocation30_spill] sm:$0xff]  ;;  %v12945_v60 = vld [vmem:[#allocation31_spill] sm:$0xff] }
 0x356   : > { %v5202_v8 = vsel %vm5050_vm6, %v5200_v62, %v5201_v63  ;;  %v5208_v55 = vrot.slane %v5147_v34, 6  ;;  %v5204_v25 = vsel %vm5050_vm6, %v5201_v63, %v5203_v5  ;;  %v5210_v16 = vrot.slane %v5148_v11, 6  ;;  %v12946_v63 = vld [vmem:[#allocation32_spill] sm:$0xff] }
 0x357   : > { %v5211_v1 = vrot.slane %v5149_v32, 6  ;;  %v5213_v61 = vrot.slane %v5150_v36, 6  ;;  %v5207_v15 = vsel %vm5050_vm6, %v5205_v28, %v5206_v9  ;;  %v11021_v31 = vadd.f32 %v5177_v14, %v10909_v39  ;;  %v12938_v14 = vld [vmem:[#allocation24_spill] sm:$0xff]  ;;  %v12940_v32 = vld [vmem:[#allocation26_spill] sm:$0xff] }
 0x358   : > { %v5209_v46 = vsel %vm5050_vm6, %v5206_v9, %v5208_v55  ;;  %v11024_v33 = vadd.f32 %v5179_v3, %v10912_v19  ;;  %v11029_v10 = vadd.f32 %v5182_v0, %v10917_v24  ;;  %v11032_v34 = vadd.f32 %v5184_v12, %v10920_v17  ;;  %v12939_v12 = vld [vmem:[#allocation25_spill] sm:$0xff]  ;;  %v12948_v28 = vld [vmem:[#allocation34_spill] sm:$0xff] }
 0x359   : > { %v5212_v59 = vsel %vm5050_vm6, %v5210_v16, %v5211_v1  ;;  %v5214_v52 = vsel %vm5050_vm6, %v5211_v1, %v5213_v61  ;;  %v11035_v48 = vadd.f32 %v5187_v23, %v10923_v56  ;;  %v11038_v11 = vadd.f32 %v5189_v44, %v10926_v57  ;;  %v12951_v1 = vld [vmem:[#allocation38_spill] sm:$0xff] }
 0x35a   : > { %v11041_v39 = vadd.f32 %v5192_v29, %v10929_v43  ;;  %v11044_v3 = vadd.f32 %v5194_v53, %v10932_v51  ;;  %v11047_v19 = vadd.f32 %v5197_v37, %v10935_v45  ;;  %v11050_v24 = vadd.f32 %v5199_v6, %v10938_v2  ;;  %v12937_v2 = vld [vmem:[#allocation55_spill] sm:$0xff]  ;;  %v12947_v37 = vld [vmem:[#allocation33_spill] sm:$0xff] }
 0x35b   : > { %v11053_v17 = vadd.f32 %v5202_v8, %v10941_v27  ;;  %v11056_v56 = vadd.f32 %v5204_v25, %v10944_v26  ;;  %v11059_v57 = vadd.f32 %v5207_v15, %v10947_v40  ;;  %v11062_v43 = vadd.f32 %v5209_v46, %v10950_v18  ;;  %v12949_v8 = vld [vmem:[#allocation35_spill] sm:$0xff]  ;;  %v12950_v25 = vld [vmem:[#allocation37_spill] sm:$0xff] }
 0x35c   : > { %v11065_v51 = vadd.f32 %v5212_v59, %v10953_v41  ;;  %v11068_v45 = vadd.f32 %v5214_v52, %v10956_v50  ;;  %v5251_v0 = vmul.f32 %v12937_v2, %v12908_v42  ;;  %v5252_v27 = vmul.f32 %v12937_v2, %v12909_v4  ;;  %v12952_v15 = vld [vmem:[#allocation39_spill] sm:$0xff] }
 0x35d   : > { %v5253_v26 = vmul.f32 %v12937_v2, %v12910_v54  ;;  %v5254_v40 = vmul.f32 %v12937_v2, %v12911_v13  ;;  %v5255_v18 = vmul.f32 %v12937_v2, %v12921_v47  ;;  %v5256_v41 = vmul.f32 %v12937_v2, %v12922_v30 }
 0x35e   : > { %v5257_v50 = vmul.f32 %v12937_v2, %v12923_v58  ;;  %v5258_v42 = vmul.f32 %v12937_v2, %v12924_v20  ;;  %v5259_v4 = vmul.f32 %v12937_v2, %v12938_v14  ;;  %v5260_v54 = vmul.f32 %v12937_v2, %v12939_v12 }
 0x35f   : > { %v5261_v36 = vmul.f32 %v12937_v2, %v12940_v32  ;;  %v5262_v23 = vmul.f32 %v12937_v2, %v12941_v35  ;;  %v5263_v44 = vmul.f32 %v12937_v2, %v12942_v38  ;;  %v5264_v22 = vmul.f32 %v12937_v2, %v12943_v49 }
 0x360   : > { %v5265_v29 = vmul.f32 %v12937_v2, %v12944_v7  ;;  %v5266_v62 = vmul.f32 %v12937_v2, %v12945_v60  ;;  %v5267_v53 = vmul.f32 %v12937_v2, %v12946_v63  ;;  %v5268_v5 = vmul.f32 %v12937_v2, %v12947_v37 }
 0x361   : > { %v5269_v6 = vmul.f32 %v12937_v2, %v12948_v28  ;;  %v5270_v9 = vmul.f32 %v12937_v2, %v12949_v8  ;;  %v5271_v55 = vmul.f32 %v12937_v2, %v12936_v21  ;;  %v5272_v16 = vmul.f32 %v12937_v2, %v12950_v25 }
 0x362   : > { %v5273_v61 = vmul.f32 %v12937_v2, %v12951_v1  ;;  %v5274_v46 = vmul.f32 %v12937_v2, %v12952_v15  ;;  %v5299_v59 = vrot.slane %v5251_v0, 6  ;;  %v5300_v52 = vrot.slane %v5252_v27, 6 }
 0x363   : > { %v5302_v37 = vrot.slane %v5253_v26, 6  ;;  %v5304_v63 = vrot.slane %v5254_v40, 6  ;;  %v5305_v28 = vrot.slane %v5255_v18, 6  ;;  %v5307_v60 = vrot.slane %v5256_v41, 6 }
 0x364   : > { %v5309_v7 = vrot.slane %v5257_v50, 6  ;;  %v5310_v8 = vrot.slane %v5258_v42, 6  ;;  %v5301_v49 = vsel %vm5050_vm6, %v5299_v59, %v5300_v52  ;;  %v5312_v38 = vrot.slane %v5259_v4, 6 }
 0x365   : > { %v5303_v21 = vsel %vm5050_vm6, %v5300_v52, %v5302_v37  ;;  %v5314_v25 = vrot.slane %v5260_v54, 6  ;;  %v5306_v35 = vsel %vm5050_vm6, %v5304_v63, %v5305_v28  ;;  %v5308_v1 = vsel %vm5050_vm6, %v5305_v28, %v5307_v60 }
 0x366   : > { %v5311_v2 = vsel %vm5050_vm6, %v5309_v7, %v5310_v8  ;;  %v5315_v0 = vrot.slane %v5261_v36, 6  ;;  %v5313_v27 = vsel %vm5050_vm6, %v5310_v8, %v5312_v38  ;;  %v5317_v26 = vrot.slane %v5262_v23, 6 }
 0x367   : > { %v5319_v40 = vrot.slane %v5263_v44, 6  ;;  %v5320_v18 = vrot.slane %v5264_v22, 6  ;;  %v5322_v50 = vrot.slane %v5265_v29, 6  ;;  %v5324_v42 = vrot.slane %v5266_v62, 6 }
 0x368   : > { %v5316_v41 = vsel %vm5050_vm6, %v5314_v25, %v5315_v0  ;;  %v5325_v59 = vrot.slane %v5267_v53, 6  ;;  %v5318_v4 = vsel %vm5050_vm6, %v5315_v0, %v5317_v26  ;;  %v5327_v63 = vrot.slane %v5268_v5, 6 }
 0x369   : > { %v5321_v54 = vsel %vm5050_vm6, %v5319_v40, %v5320_v18  ;;  %v5329_v37 = vrot.slane %v5269_v6, 6  ;;  %v5323_v60 = vsel %vm5050_vm6, %v5320_v18, %v5322_v50  ;;  %v5330_v7 = vrot.slane %v5270_v9, 6  ;;  %v12958_v40 = vld [vmem:[#allocation31_spill] sm:$0xff] }
 0x36a   : > { %v5326_v36 = vsel %vm5050_vm6, %v5324_v42, %v5325_v59  ;;  %v5332_v38 = vrot.slane %v5271_v55, 6  ;;  %v5328_v23 = vsel %vm5050_vm6, %v5325_v59, %v5327_v63  ;;  %v5334_v44 = vrot.slane %v5272_v16, 6  ;;  %v12960_v42 = vld [vmem:[#allocation33_spill] sm:$0xff]  ;;  %v12962_v63 = vld [vmem:[#allocation35_spill] sm:$0xff] }
 0x36b   : > { %v5335_v22 = vrot.slane %v5273_v61, 6  ;;  %v5337_v28 = vrot.slane %v5274_v46, 6  ;;  %v5331_v29 = vsel %vm5050_vm6, %v5329_v37, %v5330_v7  ;;  %v11133_v53 = vadd.f32 %v5301_v49, %v11021_v31  ;;  %v12955_v46 = vld [vmem:[#allocation28_spill] sm:$0xff] }
 0x36c   : > { %v5333_v62 = vsel %vm5050_vm6, %v5330_v7, %v5332_v38  ;;  %v11136_v5 = vadd.f32 %v5303_v21, %v11024_v33  ;;  %v11141_v9 = vadd.f32 %v5306_v35, %v11029_v10  ;;  %v11144_v55 = vadd.f32 %v5308_v1, %v11032_v34  ;;  %v12954_v1 = vld [vmem:[#allocation27_spill] sm:$0xff]  ;;  %v12964_v7 = vld [vmem:[#allocation37_spill] sm:$0xff]  ;;  %5918 = vst.msk [vmem:[%s6554_s19 + $0x2d] sm:$0xf8] %vm5907_vm8, %v12955_v46 }
 0x36d   : > { %v5336_v6 = vsel %vm5050_vm6, %v5334_v44, %v5335_v22  ;;  %v5338_v8 = vsel %vm5050_vm6, %v5335_v22, %v5337_v28  ;;  %v11147_v25 = vadd.f32 %v5311_v2, %v11035_v48  ;;  %v11150_v16 = vadd.f32 %v5313_v27, %v11038_v11  ;;  %v12956_v2 = vld [vmem:[#allocation29_spill] sm:$0xff]  ;;  %v12957_v27 = vld [vmem:[#allocation30_spill] sm:$0xff]  ;;  %v12966_v28 = vld [vmem:[#allocation40_spill] sm:$0xff] }
 0x36e   : > { %v11153_v31 = vadd.f32 %v5316_v41, %v11041_v39  ;;  %v11156_v21 = vadd.f32 %v5318_v4, %v11044_v3  ;;  %v11159_v33 = vadd.f32 %v5321_v54, %v11047_v19  ;;  %v11162_v10 = vadd.f32 %v5323_v60, %v11050_v24  ;;  %v12953_v24 = vld [vmem:[#allocation56_spill] sm:$0xff]  ;;  %v12961_v4 = vld [vmem:[#allocation34_spill] sm:$0xff]  ;;  %5919 = vst.msk [vmem:[%s6554_s19 + $0x35] sm:$0xff] %vm5890_vm7, %v12956_v2 }
 0x36f   : > { %v11165_v34 = vadd.f32 %v5326_v36, %v11053_v17  ;;  %v11168_v48 = vadd.f32 %v5328_v23, %v11056_v56  ;;  %v11171_v11 = vadd.f32 %v5331_v29, %v11059_v57  ;;  %v11174_v39 = vadd.f32 %v5333_v62, %v11062_v43  ;;  %v12959_v41 = vld [vmem:[#allocation32_spill] sm:$0xff]  ;;  %v12965_v23 = vld [vmem:[#allocation38_spill] sm:$0xff]  ;;  %v12967_v62 = vld [vmem:[#allocation41_spill] sm:$0xff] }
 0x370   : > { %v11177_v3 = vadd.f32 %v5336_v6, %v11065_v51  ;;  %v11180_v19 = vadd.f32 %v5338_v8, %v11068_v45  ;;  %v5375_v35 = vmul.f32 %v12953_v24, %v12911_v13  ;;  %v5376_v17 = vmul.f32 %v12953_v24, %v12921_v47  ;;  %v12963_v60 = vld [vmem:[#allocation36_spill] sm:$0xff]  ;;  %v12968_v8 = vld [vmem:[#allocation42_spill] sm:$0xff] }
 0x371   : > { %v5377_v56 = vmul.f32 %v12953_v24, %v12922_v30  ;;  %v5378_v57 = vmul.f32 %v12953_v24, %v12923_v58  ;;  %v5379_v43 = vmul.f32 %v12953_v24, %v12924_v20  ;;  %v5380_v51 = vmul.f32 %v12953_v24, %v12938_v14 }
 0x372   : > { %v5381_v45 = vmul.f32 %v12953_v24, %v12939_v12  ;;  %v5382_v49 = vmul.f32 %v12953_v24, %v12940_v32  ;;  %v5383_v61 = vmul.f32 %v12953_v24, %v12954_v1  ;;  %v5384_v52 = vmul.f32 %v12953_v24, %v12955_v46 }
 0x373   : > { %v5385_v0 = vmul.f32 %v12953_v24, %v12956_v2  ;;  %v5386_v26 = vmul.f32 %v12953_v24, %v12957_v27  ;;  %v5387_v18 = vmul.f32 %v12953_v24, %v12958_v40  ;;  %v5388_v50 = vmul.f32 %v12953_v24, %v12959_v41 }
 0x374   : > { %v5389_v59 = vmul.f32 %v12953_v24, %v12960_v42  ;;  %v5390_v54 = vmul.f32 %v12953_v24, %v12961_v4  ;;  %v5391_v37 = vmul.f32 %v12953_v24, %v12962_v63  ;;  %v5392_v36 = vmul.f32 %v12953_v24, %v12963_v60 }
 0x375   : > { %v5393_v38 = vmul.f32 %v12953_v24, %v12964_v7  ;;  %v5394_v44 = vmul.f32 %v12953_v24, %v12965_v23  ;;  %v5395_v22 = vmul.f32 %v12953_v24, %v12952_v15  ;;  %v5396_v29 = vmul.f32 %v12953_v24, %v12966_v28 }
 0x376   : > { %v5397_v6 = vmul.f32 %v12953_v24, %v12967_v62  ;;  %v5398_v30 = vmul.f32 %v12953_v24, %v12968_v8  ;;  %v5423_v13 = vrot.slane %v5375_v35, 6  ;;  %v5424_v47 = vrot.slane %v5376_v17, 6 }
 0x377   : > { %v5426_v60 = vrot.slane %v5377_v56, 6  ;;  %v5428_v63 = vrot.slane %v5378_v57, 6  ;;  %v5429_v7 = vrot.slane %v5379_v43, 6  ;;  %v5431_v4 = vrot.slane %v5380_v51, 6 }
 0x378   : > { %v5433_v42 = vrot.slane %v5381_v45, 6  ;;  %v5434_v23 = vrot.slane %v5382_v49, 6  ;;  %v5425_v41 = vsel %vm5050_vm6, %v5423_v13, %v5424_v47  ;;  %v5436_v40 = vrot.slane %v5383_v61, 6 }
 0x379   : > { %v5427_v15 = vsel %vm5050_vm6, %v5424_v47, %v5426_v60  ;;  %v5438_v28 = vrot.slane %v5384_v52, 6  ;;  %v5430_v27 = vsel %vm5050_vm6, %v5428_v63, %v5429_v7  ;;  %v5432_v62 = vsel %vm5050_vm6, %v5429_v7, %v5431_v4 }
 0x37a   : > { %v5435_v24 = vsel %vm5050_vm6, %v5433_v42, %v5434_v23  ;;  %v5439_v35 = vrot.slane %v5385_v0, 6  ;;  %v5437_v17 = vsel %vm5050_vm6, %v5434_v23, %v5436_v40  ;;  %v5441_v56 = vrot.slane %v5386_v26, 6 }
 0x37b   : > { %v5443_v57 = vrot.slane %v5387_v18, 6  ;;  %v5444_v43 = vrot.slane %v5388_v50, 6  ;;  %v5446_v45 = vrot.slane %v5389_v59, 6  ;;  %v5448_v13 = vrot.slane %v5390_v54, 6 }
 0x37c   : > { %v5440_v51 = vsel %vm5050_vm6, %v5438_v28, %v5439_v35  ;;  %v5449_v49 = vrot.slane %v5391_v37, 6  ;;  %v5442_v47 = vsel %vm5050_vm6, %v5439_v35, %v5441_v56  ;;  %v5451_v52 = vrot.slane %v5392_v36, 6  ;;  %v12970_v28 = vld [vmem:[#allocation30_spill] sm:$0xff] }
 0x37d   : > { %v5445_v61 = vsel %vm5050_vm6, %v5443_v57, %v5444_v43  ;;  %v5453_v63 = vrot.slane %v5393_v38, 6  ;;  %v5447_v4 = vsel %vm5050_vm6, %v5444_v43, %v5446_v45  ;;  %v5454_v42 = vrot.slane %v5394_v44, 6  ;;  %v12974_v57 = vld [vmem:[#allocation34_spill] sm:$0xff]  ;;  %5920 = vst.msk [vmem:[%s6554_s19 + $0x3d] sm:$0x7] %vm5910_vm9, %v12970_v28 }
 0x37e   : > { %v5450_v0 = vsel %vm5050_vm6, %v5448_v13, %v5449_v49  ;;  %v5456_v40 = vrot.slane %v5395_v22, 6  ;;  %v5452_v26 = vsel %vm5050_vm6, %v5449_v49, %v5451_v52  ;;  %v5458_v18 = vrot.slane %v5396_v29, 6  ;;  %v12976_v13 = vld [vmem:[#allocation36_spill] sm:$0xff]  ;;  %v12978_v52 = vld [vmem:[#allocation38_spill] sm:$0xff] }
 0x37f   : > { %v5459_v50 = vrot.slane %v5397_v6, 6  ;;  %v5461_v60 = vrot.slane %v5398_v30, 6  ;;  %v5455_v59 = vsel %vm5050_vm6, %v5453_v63, %v5454_v42  ;;  %v11245_v37 = vadd.f32 %v5425_v41, %v11133_v53 }
 0x380   : > { %v5457_v54 = vsel %vm5050_vm6, %v5454_v42, %v5456_v40  ;;  %v11248_v36 = vadd.f32 %v5427_v15, %v11136_v5  ;;  %v11253_v23 = vadd.f32 %v5430_v27, %v11141_v9  ;;  %v11256_v44 = vadd.f32 %v5432_v62, %v11144_v55  ;;  %v12971_v62 = vld [vmem:[#allocation31_spill] sm:$0xff]  ;;  %v12980_v42 = vld [vmem:[#allocation40_spill] sm:$0xff] }
 0x381   : > { %v5460_v7 = vsel %vm5050_vm6, %v5458_v18, %v5459_v50  ;;  %v5462_v38 = vsel %vm5050_vm6, %v5459_v50, %v5461_v60  ;;  %v11259_v30 = vadd.f32 %v5435_v24, %v11147_v25  ;;  %v11262_v22 = vadd.f32 %v5437_v17, %v11150_v16  ;;  %v12972_v24 = vld [vmem:[#allocation32_spill] sm:$0xff]  ;;  %v12973_v17 = vld [vmem:[#allocation33_spill] sm:$0xff]  ;;  %v12982_v60 = vld [vmem:[#allocation43_spill] sm:$0xff]  ;;  %5921 = vst.msk [vmem:[%s6554_s19 + $0x3d] sm:$0xf8] %vm5907_vm8, %v12971_v62 }
 0x382   : > { %v11265_v53 = vadd.f32 %v5440_v51, %v11153_v31  ;;  %v11268_v15 = vadd.f32 %v5442_v47, %v11156_v21  ;;  %v11271_v5 = vadd.f32 %v5445_v61, %v11159_v33  ;;  %v11274_v9 = vadd.f32 %v5447_v4, %v11162_v10  ;;  %v12969_v10 = vld [vmem:[#allocation57_spill] sm:$0xff]  ;;  %v12975_v51 = vld [vmem:[#allocation35_spill] sm:$0xff]  ;;  %5922 = vst.msk [vmem:[%s6554_s19 + $0x45] sm:$0xff] %vm5890_vm7, %v12972_v24 }
 0x383   : > { %v11277_v55 = vadd.f32 %v5450_v0, %v11165_v34  ;;  %v11280_v25 = vadd.f32 %v5452_v26, %v11168_v48  ;;  %v11283_v16 = vadd.f32 %v5455_v59, %v11171_v11  ;;  %v11286_v31 = vadd.f32 %v5457_v54, %v11174_v39  ;;  %v12977_v47 = vld [vmem:[#allocation37_spill] sm:$0xff]  ;;  %v12979_v4 = vld [vmem:[#allocation39_spill] sm:$0xff]  ;;  %v12983_v54 = vld [vmem:[#allocation44_spill] sm:$0xff] }
 0x384   : > { %v11289_v21 = vadd.f32 %v5460_v7, %v11177_v3  ;;  %v11292_v33 = vadd.f32 %v5462_v38, %v11180_v19  ;;  %v5499_v27 = vmul.f32 %v12969_v10, %v12923_v58  ;;  %v5500_v34 = vmul.f32 %v12969_v10, %v12924_v20  ;;  %v12981_v26 = vld [vmem:[#allocation41_spill] sm:$0xff] }
 0x385   : > { %v5501_v48 = vmul.f32 %v12969_v10, %v12938_v14  ;;  %v5502_v11 = vmul.f32 %v12969_v10, %v12939_v12  ;;  %v5503_v39 = vmul.f32 %v12969_v10, %v12940_v32  ;;  %v5504_v3 = vmul.f32 %v12969_v10, %v12954_v1  ;;  %v12984_v38 = vld [vmem:[#allocation45_spill] sm:$0xff] }
 0x386   : > { %v5505_v19 = vmul.f32 %v12969_v10, %v12955_v46  ;;  %v5506_v41 = vmul.f32 %v12969_v10, %v12956_v2  ;;  %v5507_v29 = vmul.f32 %v12969_v10, %v12970_v28  ;;  %v5508_v6 = vmul.f32 %v12969_v10, %v12971_v62 }
 0x387   : > { %v5509_v35 = vmul.f32 %v12969_v10, %v12972_v24  ;;  %v5510_v56 = vmul.f32 %v12969_v10, %v12973_v17  ;;  %v5511_v43 = vmul.f32 %v12969_v10, %v12974_v57  ;;  %v5512_v45 = vmul.f32 %v12969_v10, %v12975_v51 }
 0x388   : > { %v5513_v49 = vmul.f32 %v12969_v10, %v12976_v13  ;;  %v5514_v61 = vmul.f32 %v12969_v10, %v12977_v47  ;;  %v5515_v63 = vmul.f32 %v12969_v10, %v12978_v52  ;;  %v5516_v0 = vmul.f32 %v12969_v10, %v12979_v4 }
 0x389   : > { %v5517_v40 = vmul.f32 %v12969_v10, %v12980_v42  ;;  %v5518_v18 = vmul.f32 %v12969_v10, %v12981_v26  ;;  %v5519_v50 = vmul.f32 %v12969_v10, %v12968_v8  ;;  %v5520_v59 = vmul.f32 %v12969_v10, %v12982_v60 }
 0x38a   : > { %v5521_v7 = vmul.f32 %v12969_v10, %v12983_v54  ;;  %v5522_v14 = vmul.f32 %v12969_v10, %v12984_v38  ;;  %v5547_v58 = vrot.slane %v5499_v27, 6  ;;  %v5548_v20 = vrot.slane %v5500_v34, 6 }
 0x38b   : > { %v5550_v4 = vrot.slane %v5501_v48, 6  ;;  %v5552_v52 = vrot.slane %v5502_v11, 6  ;;  %v5553_v42 = vrot.slane %v5503_v39, 6  ;;  %v5555_v47 = vrot.slane %v5504_v3, 6 }
 0x38c   : > { %v5557_v13 = vrot.slane %v5505_v19, 6  ;;  %v5558_v26 = vrot.slane %v5506_v41, 6  ;;  %v5549_v51 = vsel %vm5050_vm6, %v5547_v58, %v5548_v20  ;;  %v5560_v57 = vrot.slane %v5507_v29, 6 }
 0x38d   : > { %v5551_v8 = vsel %vm5050_vm6, %v5548_v20, %v5550_v4  ;;  %v5562_v60 = vrot.slane %v5508_v6, 6  ;;  %v5554_v17 = vsel %vm5050_vm6, %v5552_v52, %v5553_v42  ;;  %v5556_v54 = vsel %vm5050_vm6, %v5553_v42, %v5555_v47 }
 0x38e   : > { %v5559_v10 = vsel %vm5050_vm6, %v5557_v13, %v5558_v26  ;;  %v5563_v27 = vrot.slane %v5509_v35, 6  ;;  %v5561_v34 = vsel %vm5050_vm6, %v5558_v26, %v5560_v57  ;;  %v5565_v48 = vrot.slane %v5510_v56, 6 }
 0x38f   : > { %v5567_v11 = vrot.slane %v5511_v43, 6  ;;  %v5568_v39 = vrot.slane %v5512_v45, 6  ;;  %v5570_v19 = vrot.slane %v5513_v49, 6  ;;  %v5572_v58 = vrot.slane %v5514_v61, 6 }
 0x390   : > { %v5564_v3 = vsel %vm5050_vm6, %v5562_v60, %v5563_v27  ;;  %v5573_v41 = vrot.slane %v5515_v63, 6  ;;  %v5566_v20 = vsel %vm5050_vm6, %v5563_v27, %v5565_v48  ;;  %v5575_v6 = vrot.slane %v5516_v0, 6  ;;  %v12986_v60 = vld [vmem:[#allocation33_spill] sm:$0xff] }
 0x391   : > { %v5569_v29 = vsel %vm5050_vm6, %v5567_v11, %v5568_v39  ;;  %v5577_v52 = vrot.slane %v5517_v40, 6  ;;  %v5571_v47 = vsel %vm5050_vm6, %v5568_v39, %v5570_v19  ;;  %v5578_v13 = vrot.slane %v5518_v18, 6  ;;  %v12990_v11 = vld [vmem:[#allocation37_spill] sm:$0xff] }
 0x392   : > { %v5574_v35 = vsel %vm5050_vm6, %v5572_v58, %v5573_v41  ;;  %v5580_v57 = vrot.slane %v5519_v50, 6  ;;  %v5576_v56 = vsel %vm5050_vm6, %v5573_v41, %v5575_v6  ;;  %v5582_v43 = vrot.slane %v5520_v59, 6  ;;  %v12992_v58 = vld [vmem:[#allocation39_spill] sm:$0xff]  ;;  %v12994_v6 = vld [vmem:[#allocation41_spill] sm:$0xff] }
 0x393   : > { %v5583_v45 = vrot.slane %v5521_v7, 6  ;;  %v5585_v4 = vrot.slane %v5522_v14, 6  ;;  %v5579_v49 = vsel %vm5050_vm6, %v5577_v52, %v5578_v13  ;;  %v11357_v63 = vadd.f32 %v5549_v51, %v11245_v37 }
 0x394   : > { %v5581_v61 = vsel %vm5050_vm6, %v5578_v13, %v5580_v57  ;;  %v11360_v0 = vadd.f32 %v5551_v8, %v11248_v36  ;;  %v11365_v26 = vadd.f32 %v5554_v17, %v11253_v23  ;;  %v11368_v18 = vadd.f32 %v5556_v54, %v11256_v44  ;;  %v12987_v54 = vld [vmem:[#allocation34_spill] sm:$0xff]  ;;  %v12996_v13 = vld [vmem:[#allocation43_spill] sm:$0xff] }
 0x395   : > { %v5584_v42 = vsel %vm5050_vm6, %v5582_v43, %v5583_v45  ;;  %v5586_v40 = vsel %vm5050_vm6, %v5583_v45, %v5585_v4  ;;  %v11371_v14 = vadd.f32 %v5559_v10, %v11259_v30  ;;  %v11374_v50 = vadd.f32 %v5561_v34, %v11262_v22  ;;  %v12988_v10 = vld [vmem:[#allocation35_spill] sm:$0xff]  ;;  %v12989_v34 = vld [vmem:[#allocation36_spill] sm:$0xff]  ;;  %v12998_v4 = vld [vmem:[#allocation46_spill] sm:$0xff] }
 0x396   : > { %v11377_v37 = vadd.f32 %v5564_v3, %v11265_v53  ;;  %v11380_v8 = vadd.f32 %v5566_v20, %v11268_v15  ;;  %v11383_v36 = vadd.f32 %v5569_v29, %v11271_v5  ;;  %v11386_v23 = vadd.f32 %v5571_v47, %v11274_v9  ;;  %v12985_v9 = vld [vmem:[#allocation58_spill] sm:$0xff]  ;;  %v12993_v20 = vld [vmem:[#allocation40_spill] sm:$0xff]  ;;  %5925 = vst.msk [vmem:[%s6554_s19 + $0x55] sm:$0xff] %vm5890_vm7, %v12988_v10 }
 0x397   : > { %v11389_v44 = vadd.f32 %v5574_v35, %v11277_v55  ;;  %v11392_v30 = vadd.f32 %v5576_v56, %v11280_v25  ;;  %v11395_v22 = vadd.f32 %v5579_v49, %v11283_v16  ;;  %v11398_v53 = vadd.f32 %v5581_v61, %v11286_v31  ;;  %v12991_v3 = vld [vmem:[#allocation38_spill] sm:$0xff]  ;;  %v12997_v56 = vld [vmem:[#allocation44_spill] sm:$0xff]  ;;  %v12999_v61 = vld [vmem:[#allocation47_spill] sm:$0xff] }
 0x398   : > { %v11401_v15 = vadd.f32 %v5584_v42, %v11289_v21  ;;  %v11404_v5 = vadd.f32 %v5586_v40, %v11292_v33  ;;  %v5623_v17 = vmul.f32 %v12985_v9, %v12939_v12  ;;  %v5624_v55 = vmul.f32 %v12985_v9, %v12940_v32  ;;  %v12995_v47 = vld [vmem:[#allocation42_spill] sm:$0xff]  ;;  %v13000_v40 = vld [vmem:[#allocation48_spill] sm:$0xff] }
 0x399   : > { %v5625_v25 = vmul.f32 %v12985_v9, %v12954_v1  ;;  %v5626_v16 = vmul.f32 %v12985_v9, %v12955_v46  ;;  %v5627_v31 = vmul.f32 %v12985_v9, %v12956_v2  ;;  %v5628_v21 = vmul.f32 %v12985_v9, %v12970_v28 }
 0x39a   : > { %v5629_v33 = vmul.f32 %v12985_v9, %v12971_v62  ;;  %v5630_v51 = vmul.f32 %v12985_v9, %v12972_v24  ;;  %v5631_v59 = vmul.f32 %v12985_v9, %v12986_v60  ;;  %v5632_v7 = vmul.f32 %v12985_v9, %v12987_v54 }
 0x39b   : > { %v5633_v27 = vmul.f32 %v12985_v9, %v12988_v10  ;;  %v5634_v48 = vmul.f32 %v12985_v9, %v12989_v34  ;;  %v5635_v39 = vmul.f32 %v12985_v9, %v12990_v11  ;;  %v5636_v19 = vmul.f32 %v12985_v9, %v12991_v3 }
 0x39c   : > { %v5637_v41 = vmul.f32 %v12985_v9, %v12992_v58  ;;  %v5638_v29 = vmul.f32 %v12985_v9, %v12993_v20  ;;  %v5639_v52 = vmul.f32 %v12985_v9, %v12994_v6  ;;  %v5640_v35 = vmul.f32 %v12985_v9, %v12995_v47 }
 0x39d   : > { %v5641_v57 = vmul.f32 %v12985_v9, %v12996_v13  ;;  %v5642_v43 = vmul.f32 %v12985_v9, %v12997_v56  ;;  %v5643_v45 = vmul.f32 %v12985_v9, %v12984_v38  ;;  %v5644_v49 = vmul.f32 %v12985_v9, %v12998_v4 }
 0x39e   : > { %v5645_v42 = vmul.f32 %v12985_v9, %v12999_v61  ;;  %v5646_v1 = vmul.f32 %v12985_v9, %v13000_v40  ;;  %v5671_v12 = vrot.slane %v5623_v17, 6  ;;  %v5672_v32 = vrot.slane %v5624_v55, 6 }
 0x39f   : > { %v5674_v47 = vrot.slane %v5625_v25, 6  ;;  %v5676_v6 = vrot.slane %v5626_v16, 6  ;;  %v5677_v13 = vrot.slane %v5627_v31, 6  ;;  %v5679_v20 = vrot.slane %v5628_v21, 6 }
 0x3a0   : > { %v5681_v58 = vrot.slane %v5629_v33, 6  ;;  %v5682_v56 = vrot.slane %v5630_v51, 6  ;;  %v5673_v3 = vsel %vm5050_vm6, %v5671_v12, %v5672_v32  ;;  %v5684_v11 = vrot.slane %v5631_v59, 6 }
 0x3a1   : > { %v5675_v38 = vsel %vm5050_vm6, %v5672_v32, %v5674_v47  ;;  %v5686_v4 = vrot.slane %v5632_v7, 6  ;;  %v5678_v34 = vsel %vm5050_vm6, %v5676_v6, %v5677_v13  ;;  %v5680_v61 = vsel %vm5050_vm6, %v5677_v13, %v5679_v20 }
 0x3a2   : > { %v5683_v9 = vsel %vm5050_vm6, %v5681_v58, %v5682_v56  ;;  %v5687_v17 = vrot.slane %v5633_v27, 6  ;;  %v5685_v55 = vsel %vm5050_vm6, %v5682_v56, %v5684_v11  ;;  %v5689_v25 = vrot.slane %v5634_v48, 6 }
 0x3a3   : > { %v5691_v16 = vrot.slane %v5635_v39, 6  ;;  %v5692_v31 = vrot.slane %v5636_v19, 6  ;;  %v5694_v33 = vrot.slane %v5637_v41, 6  ;;  %v5696_v12 = vrot.slane %v5638_v29, 6 }
 0x3a4   : > { %v5688_v21 = vsel %vm5050_vm6, %v5686_v4, %v5687_v17  ;;  %v5697_v51 = vrot.slane %v5639_v52, 6  ;;  %v5690_v32 = vsel %vm5050_vm6, %v5687_v17, %v5689_v25  ;;  %v5699_v7 = vrot.slane %v5640_v35, 6  ;;  %v13002_v4 = vld [vmem:[#allocation36_spill] sm:$0xff] }
 0x3a5   : > { %v5693_v59 = vsel %vm5050_vm6, %v5691_v16, %v5692_v31  ;;  %v5701_v6 = vrot.slane %v5641_v57, 6  ;;  %v5695_v20 = vsel %vm5050_vm6, %v5692_v31, %v5694_v33  ;;  %v5702_v58 = vrot.slane %v5642_v43, 6  ;;  %v13006_v16 = vld [vmem:[#allocation40_spill] sm:$0xff] }
 0x3a6   : > { %v5698_v27 = vsel %vm5050_vm6, %v5696_v12, %v5697_v51  ;;  %v5704_v11 = vrot.slane %v5643_v45, 6  ;;  %v5700_v48 = vsel %vm5050_vm6, %v5697_v51, %v5699_v7  ;;  %v5706_v39 = vrot.slane %v5644_v49, 6  ;;  %v13008_v12 = vld [vmem:[#allocation42_spill] sm:$0xff]  ;;  %v13010_v7 = vld [vmem:[#allocation44_spill] sm:$0xff] }
 0x3a7   : > { %v5707_v19 = vrot.slane %v5645_v42, 6  ;;  %v5709_v47 = vrot.slane %v5646_v1, 6  ;;  %v5703_v41 = vsel %vm5050_vm6, %v5701_v6, %v5702_v58  ;;  %v11469_v52 = vadd.f32 %v5673_v3, %v11357_v63 }
 0x3a8   : > { %v5705_v29 = vsel %vm5050_vm6, %v5702_v58, %v5704_v11  ;;  %v11472_v35 = vadd.f32 %v5675_v38, %v11360_v0  ;;  %v11477_v56 = vadd.f32 %v5678_v34, %v11365_v26  ;;  %v11480_v43 = vadd.f32 %v5680_v61, %v11368_v18  ;;  %v13003_v61 = vld [vmem:[#allocation37_spill] sm:$0xff]  ;;  %v13012_v58 = vld [vmem:[#allocation46_spill] sm:$0xff] }
 0x3a9   : > { %v5708_v13 = vsel %vm5050_vm6, %v5706_v39, %v5707_v19  ;;  %v5710_v57 = vsel %vm5050_vm6, %v5707_v19, %v5709_v47  ;;  %v11483_v1 = vadd.f32 %v5683_v9, %v11371_v14  ;;  %v11486_v45 = vadd.f32 %v5685_v55, %v11374_v50  ;;  %v13004_v9 = vld [vmem:[#allocation38_spill] sm:$0xff]  ;;  %v13005_v55 = vld [vmem:[#allocation39_spill] sm:$0xff]  ;;  %v13014_v47 = vld [vmem:[#allocation49_spill] sm:$0xff] }
 0x3aa   : > { %v11489_v63 = vadd.f32 %v5688_v21, %v11377_v37  ;;  %v11492_v38 = vadd.f32 %v5690_v32, %v11380_v8  ;;  %v11495_v0 = vadd.f32 %v5693_v59, %v11383_v36  ;;  %v11498_v26 = vadd.f32 %v5695_v20, %v11386_v23  ;;  %v13001_v23 = vld [vmem:[#allocation53_spill] sm:$0xff]  ;;  %v13009_v32 = vld [vmem:[#allocation43_spill] sm:$0xff]  ;;  %5928 = vst.msk [vmem:[%s6554_s19 + $0x65] sm:$0xff] %vm5890_vm7, %v13004_v9 }
 0x3ab   : > { %v11501_v18 = vadd.f32 %v5698_v27, %v11389_v44  ;;  %v11504_v14 = vadd.f32 %v5700_v48, %v11392_v30  ;;  %v11507_v50 = vadd.f32 %v5703_v41, %v11395_v22  ;;  %v11510_v37 = vadd.f32 %v5705_v29, %v11398_v53  ;;  %v13007_v21 = vld [vmem:[#allocation41_spill] sm:$0xff]  ;;  %v13013_v48 = vld [vmem:[#allocation47_spill] sm:$0xff]  ;;  %v13015_v29 = vld [vmem:[#allocation50_spill] sm:$0xff] }
 0x3ac   : > { %v11513_v8 = vadd.f32 %v5708_v13, %v11401_v15  ;;  %v11516_v36 = vadd.f32 %v5710_v57, %v11404_v5  ;;  %v5747_v34 = vmul.f32 %v13001_v23, %v12955_v46  ;;  %v5748_v44 = vmul.f32 %v13001_v23, %v12956_v2  ;;  %v13011_v20 = vld [vmem:[#allocation45_spill] sm:$0xff]  ;;  %v13016_v57 = vld [vmem:[#allocation51_spill] sm:$0xff]  ;;  %5931 = vst.msk [vmem:[%s6554_s19 + $0x75] sm:$0xff] %vm5890_vm7, %v13007_v21  ;;  %v13031_v46 = vld [vmem:[#allocation40_spill] sm:$0xff] }
 0x3ad   : > { %v5749_v30 = vmul.f32 %v13001_v23, %v12970_v28  ;;  %v5750_v22 = vmul.f32 %v13001_v23, %v12971_v62  ;;  %v5751_v53 = vmul.f32 %v13001_v23, %v12972_v24  ;;  %v5752_v15 = vmul.f32 %v13001_v23, %v12986_v60  ;;  %v13021_v2 = vld [vmem:[#allocation21_spill] sm:$0xff]  ;;  %v13022_v24 = vld [vmem:[#allocation22_spill] sm:$0xff]  ;;  %5930 = vst.msk [vmem:[%s6554_s19 + $0x6d] sm:$0xf8] %vm5907_vm8, %v13031_v46 }
 0x3ae   : > { %v5753_v5 = vmul.f32 %v13001_v23, %v12987_v54  ;;  %v5754_v3 = vmul.f32 %v13001_v23, %v12988_v10  ;;  %v5755_v49 = vmul.f32 %v13001_v23, %v13002_v4  ;;  %v5756_v42 = vmul.f32 %v13001_v23, %v13003_v61  ;;  %5911 = vst.msk [vmem:[%s6554_s19 + $0xd] sm:$0x7] %vm5910_vm9, %v13021_v2  ;;  %v13024_v10 = vld [vmem:[#allocation25_spill] sm:$0xff]  ;;  %v13032_v28 = vld [vmem:[#allocation42_spill] sm:$0xff] }
 0x3af   : > { %v5757_v17 = vmul.f32 %v13001_v23, %v13004_v9  ;;  %v5758_v25 = vmul.f32 %v13001_v23, %v13005_v55  ;;  %v5759_v31 = vmul.f32 %v13001_v23, %v13006_v16  ;;  %v5760_v33 = vmul.f32 %v13001_v23, %v13007_v21  ;;  %5912 = vst.msk [vmem:[%s6554_s19 + $0xd] sm:$0xf8] %vm5907_vm8, %v13022_v24  ;;  %v13025_v9 = vld [vmem:[#allocation27_spill] sm:$0xff]  ;;  %v13026_v21 = vld [vmem:[#allocation33_spill] sm:$0xff] }
 0x3b0   : > { %v5761_v51 = vmul.f32 %v13001_v23, %v13008_v12  ;;  %v5762_v59 = vmul.f32 %v13001_v23, %v13009_v32  ;;  %v5763_v6 = vmul.f32 %v13001_v23, %v13010_v7  ;;  %v5764_v27 = vmul.f32 %v13001_v23, %v13011_v20  ;;  %5915 = vst.msk [vmem:[%s6554_s19 + $0x1d] sm:$0xf8] %vm5907_vm8, %v13024_v10 }
 0x3b1   : > { %v5765_v11 = vmul.f32 %v13001_v23, %v13012_v58  ;;  %v5766_v39 = vmul.f32 %v13001_v23, %v13013_v48  ;;  %v5767_v19 = vmul.f32 %v13001_v23, %v13000_v40  ;;  %v5768_v41 = vmul.f32 %v13001_v23, %v13014_v47  ;;  %5917 = vst.msk [vmem:[%s6554_s19 + $0x2d] sm:$0x7] %vm5910_vm9, %v13025_v9 }
 0x3b2   : > { %v5769_v13 = vmul.f32 %v13001_v23, %v13015_v29  ;;  %v5770_v32 = vmul.f32 %v13001_v23, %v13016_v57  ;;  %v5795_v7 = vrot.slane %v5747_v34, 6  ;;  %v5796_v20 = vrot.slane %v5748_v44, 6  ;;  %5923 = vst.msk [vmem:[%s6554_s19 + $0x4d] sm:$0x7] %vm5910_vm9, %v13026_v21  ;;  %5932 = vst.msk [vmem:[%s6554_s19 + $0x7d] sm:$0x7] %vm5910_vm9, %v13032_v28 }
 0x3b3   : > { %v5798_v12 = vrot.slane %v5749_v30, 6  ;;  %v5800_v16 = vrot.slane %v5750_v22, 6  ;;  %v5801_v58 = vrot.slane %v5751_v53, 6  ;;  %v5803_v55 = vrot.slane %v5752_v15, 6 }
 0x3b4   : > { %v5805_v61 = vrot.slane %v5753_v5, 6  ;;  %v5806_v48 = vrot.slane %v5754_v3, 6  ;;  %v5797_v4 = vsel %vm5050_vm6, %v5795_v7, %v5796_v20  ;;  %v5808_v54 = vrot.slane %v5755_v49, 6 }
 0x3b5   : > { %v5799_v40 = vsel %vm5050_vm6, %v5796_v20, %v5798_v12  ;;  %v5810_v47 = vrot.slane %v5756_v42, 6  ;;  %v5802_v60 = vsel %vm5050_vm6, %v5800_v16, %v5801_v58  ;;  %v5804_v29 = vsel %vm5050_vm6, %v5801_v58, %v5803_v55 }
 0x3b6   : > { %v5807_v23 = vsel %vm5050_vm6, %v5805_v61, %v5806_v48  ;;  %v5811_v34 = vrot.slane %v5757_v17, 6  ;;  %v5809_v44 = vsel %vm5050_vm6, %v5806_v48, %v5808_v54  ;;  %v5813_v30 = vrot.slane %v5758_v25, 6 }
 0x3b7   : > { %v5815_v22 = vrot.slane %v5759_v31, 6  ;;  %v5816_v53 = vrot.slane %v5760_v33, 6  ;;  %v5818_v5 = vrot.slane %v5761_v51, 6  ;;  %v5820_v3 = vrot.slane %v5762_v59, 6 }
 0x3b8   : > { %v5812_v15 = vsel %vm5050_vm6, %v5810_v47, %v5811_v34  ;;  %v5821_v57 = vrot.slane %v5763_v6, 6  ;;  %v5814_v49 = vsel %vm5050_vm6, %v5811_v34, %v5813_v30  ;;  %v5823_v16 = vrot.slane %v5764_v27, 6  ;;  %v13017_v30 = vld [vmem:[#allocation20_spill] sm:$0xff] }
 0x3b9   : > { %v5817_v42 = vsel %vm5050_vm6, %v5815_v22, %v5816_v53  ;;  %v5825_v12 = vrot.slane %v5765_v11, 6  ;;  %v5819_v55 = vsel %vm5050_vm6, %v5816_v53, %v5818_v5  ;;  %v5826_v17 = vrot.slane %v5766_v39, 6  ;;  %5909 = vst.msk [vmem:[%s6554_s19 + $0x5] sm:$0xff] %vm5890_vm7, %v13017_v30  ;;  %v13018_v22 = vld [vmem:[#allocation23_spill] sm:$0xff]  ;;  %v13019_v53 = vld [vmem:[#allocation26_spill] sm:$0xff]  ;;  %v13023_v5 = vld [vmem:[#allocation24_spill] sm:$0xff] }
 0x3ba   : > { %v5822_v61 = vsel %vm5050_vm6, %v5820_v3, %v5821_v57  ;;  %v5828_v54 = vrot.slane %v5767_v19, 6  ;;  %v5824_v25 = vsel %vm5050_vm6, %v5821_v57, %v5823_v16  ;;  %v5830_v31 = vrot.slane %v5768_v41, 6  ;;  %5913 = vst.msk [vmem:[%s6554_s19 + $0x15] sm:$0xff] %vm5890_vm7, %v13018_v22  ;;  %5916 = vst.msk [vmem:[%s6554_s19 + $0x25] sm:$0xff] %vm5890_vm7, %v13019_v53  ;;  %v13027_v3 = vld [vmem:[#allocation34_spill] sm:$0xff]  ;;  %v13028_v57 = vld [vmem:[#allocation36_spill] sm:$0xff] }
 0x3bb   : > { %v5831_v33 = vrot.slane %v5769_v13, 6  ;;  %v5833_v7 = vrot.slane %v5770_v32, 6  ;;  %v5827_v51 = vsel %vm5050_vm6, %v5825_v12, %v5826_v17  ;;  %v5851_v6 = vadd.f32 %v5797_v4, %v11469_v52  ;;  %v6300_v52 = vld [vmem:[%s11803_s2] ss:$0 sm:$0xff]  ;;  %5914 = vst.msk [vmem:[%s6554_s19 + $0x1d] sm:$0x7] %vm5910_vm9, %v13023_v5 }
 0x3bc   : > { %v5829_v59 = vsel %vm5050_vm6, %v5826_v17, %v5828_v54  ;;  %v5852_v27 = vadd.f32 %v5799_v40, %v11472_v35  ;;  %v5853_v39 = vadd.f32 %v5802_v60, %v11477_v56  ;;  %v5854_v19 = vadd.f32 %v5804_v29, %v11480_v43  ;;  %5924 = vst.msk [vmem:[%s6554_s19 + $0x4d] sm:$0xf8] %vm5907_vm8, %v13027_v3  ;;  %v6058_v22 = vld [vmem:[%s11805_s4] sm:$0x3] (!%p6301_p8) }
 0x3bd   : > { %v5832_v11 = vsel %vm5050_vm6, %v5830_v31, %v5831_v33  ;;  %v5834_v20 = vsel %vm5050_vm6, %v5831_v33, %v5833_v7  ;;  %v5855_v41 = vadd.f32 %v5807_v23, %v11483_v1  ;;  %v5856_v13 = vadd.f32 %v5809_v44, %v11486_v45  ;;  %5926 = vst.msk [vmem:[%s6554_s19 + $0x5d] sm:$0x7] %vm5910_vm9, %v13028_v57 }
 0x3be   : > { %v5857_v32 = vadd.f32 %v5812_v15, %v11489_v63  ;;  %v5858_v58 = vadd.f32 %v5814_v49, %v11492_v38  ;;  %v5859_v35 = vadd.f32 %v5817_v42, %v11495_v0  ;;  %v5860_v4 = vadd.f32 %v5819_v55, %v11498_v26  ;;  %v13020_v15 = vld [vmem:[#allocation19_spill] sm:$0xff]  ;;  %v13029_v49 = vld [vmem:[#allocation37_spill] sm:$0xff] }
 0x3bf   : > { %v5861_v60 = vadd.f32 %v5822_v61, %v11501_v18  ;;  %v5862_v56 = vadd.f32 %v5824_v25, %v11504_v14  ;;  %v5863_v43 = vadd.f32 %v5827_v51, %v11507_v50  ;;  %v5864_v1 = vadd.f32 %v5829_v59, %v11510_v37  ;;  %5908 = vst.msk [vmem:[%s6554_s19 - $0x3] sm:$0xf8] %vm5907_vm8, %v13020_v15  ;;  %v13030_v42 = vld [vmem:[#allocation39_spill] sm:$0xff] }
 0x3c0   : > { %v5865_v45 = vadd.f32 %v5832_v11, %v11513_v8  ;;  %v5866_v63 = vadd.f32 %v5834_v20, %v11516_v36  ;;  %v5874_v38 = vadd.f32 %v6300_v52, %v5851_v6  ;;  %v5875_v48 = vadd.f32 %v6300_v52, %v5852_v27  ;;  %5927 = vst.msk [vmem:[%s6554_s19 + $0x5d] sm:$0xf8] %vm5907_vm8, %v13029_v49 }
 0x3c1   : > { %v5876_v40 = vadd.f32 %v6300_v52, %v5853_v39  ;;  %v5877_v47 = vadd.f32 %v6300_v52, %v5854_v19  ;;  %v5878_v0 = vadd.f32 %v6300_v52, %v5855_v41  ;;  %v5879_v26 = vadd.f32 %v6300_v52, %v5856_v13  ;;  %5929 = vst.msk [vmem:[%s6554_s19 + $0x6d] sm:$0x7] %vm5910_vm9, %v13030_v42 }
 0x3c2   : > { %v11601_v18 = vadd.f32 %v6300_v52, %v5857_v32  ;;  %v11603_v14 = vadd.f32 %v6300_v52, %v5858_v58  ;;  %v11605_v50 = vadd.f32 %v6300_v52, %v5859_v35  ;;  %v11607_v37 = vadd.f32 %v6300_v52, %v5860_v4  ;;  %5891 = vst.msk [vmem:[%s6549_s16] sm:$0xff] %vm5890_vm7, %v5874_v38 }
 0x3c3   : > { %v11609_v8 = vadd.f32 %v6300_v52, %v5861_v60  ;;  %v11611_v36 = vadd.f32 %v6300_v52, %v5862_v56  ;;  %v11613_v29 = vadd.f32 %v6300_v52, %v5863_v43  ;;  %v11615_v23 = vadd.f32 %v6300_v52, %v5864_v1  ;;  %5892 = vst.msk [vmem:[%s6549_s16 + $0x8] sm:$0xff] %vm5890_vm7, %v5875_v48 }
 0x3c4   : > { %v11617_v34 = vadd.f32 %v6300_v52, %v5865_v45  ;;  %v11619_v44 = vadd.f32 %v6300_v52, %v5866_v63  ;;  %5893 = vst.msk [vmem:[%s6549_s16 + $0x10] sm:$0xff] %vm5890_vm7, %v5876_v40  ;;  %5894 = vst.msk [vmem:[%s6549_s16 + $0x18] sm:$0xff] %vm5890_vm7, %v5877_v47  ;;  %v5934_v62 = vsel %vm5890_vm7, %v5874_v38, 0.0  ;;  %v5935_v16 = vsel %vm5890_vm7, %v5875_v48, 0.0 }
 0x3c5   : > { %5895 = vst.msk [vmem:[%s6549_s16 + $0x20] sm:$0xff] %vm5890_vm7, %v5878_v0  ;;  %5896 = vst.msk [vmem:[%s6549_s16 + $0x28] sm:$0xff] %vm5890_vm7, %v5879_v26  ;;  %v5937_v12 = vsel %vm5890_vm7, %v5876_v40, 0.0  ;;  %v5936_v55 = vadd.f32 %v5935_v16, %v5934_v62  ;;  %v5939_v61 = vsel %vm5890_vm7, %v5877_v47, 0.0  ;;  %v5941_v54 = vsel %vm5890_vm7, %v5878_v0, 0.0 }
 0x3c6   : > { %5897 = vst.msk [vmem:[%s6549_s16 + $0x30] sm:$0xff] %vm5890_vm7, %v11601_v18  ;;  %5898 = vst.msk [vmem:[%s6549_s16 + $0x38] sm:$0xff] %vm5890_vm7, %v11603_v14  ;;  %v5943_v31 = vsel %vm5890_vm7, %v5879_v26, 0.0  ;;  %v5945_v7 = vsel %vm5890_vm7, %v11601_v18, 0.0  ;;  %v5947_v59 = vsel %vm5890_vm7, %v11603_v14, 0.0  ;;  %v5949_v27 = vsel %vm5890_vm7, %v11605_v50, 0.0 }
 0x3c7   : > { %5899 = vst.msk [vmem:[%s6549_s16 + $0x40] sm:$0xff] %vm5890_vm7, %v11605_v50  ;;  %5900 = vst.msk [vmem:[%s6549_s16 + $0x48] sm:$0xff] %vm5890_vm7, %v11607_v37  ;;  %v5938_v17 = vadd.f32 %v5937_v12, %v5936_v55  ;;  %v5951_v20 = vsel %vm5890_vm7, %v11607_v37, 0.0  ;;  %v5953_v19 = vsel %vm5890_vm7, %v11609_v8, 0.0  ;;  %v5955_v13 = vsel %vm5890_vm7, %v11611_v36, 0.0  ;;  %v5980_v14 = vld [vmem:[%s11804_s3] sm:$0xff] (!%p6301_p8) }
 0x3c8   : > { %5901 = vst.msk [vmem:[%s6549_s16 + $0x50] sm:$0xff] %vm5890_vm7, %v11609_v8  ;;  %5902 = vst.msk [vmem:[%s6549_s16 + $0x58] sm:$0xff] %vm5890_vm7, %v11611_v36  ;;  %v5957_v58 = vsel %vm5890_vm7, %v11613_v29, 0.0  ;;  %v5959_v35 = vsel %vm5890_vm7, %v11615_v23, 0.0  ;;  %v5961_v60 = vsel %vm5890_vm7, %v11617_v34, 0.0  ;;  %v5963_v43 = vsel %vm5890_vm7, %v11619_v44, 0.0 }
 0x3c9   : > { %5903 = vst.msk [vmem:[%s6549_s16 + $0x60] sm:$0xff] %vm5890_vm7, %v11613_v29  ;;  %5904 = vst.msk [vmem:[%s6549_s16 + $0x68] sm:$0xff] %vm5890_vm7, %v11615_v23  ;;  %v5940_v25 = vadd.f32 %v5939_v61, %v5938_v17  ;;  %v5933_v0 = vld [vmem:[#allocation2] sm:$0x1]  ;;  %v5981_v50 = vld [vmem:[%s11804_s3 + $0x8] sm:$0xff] (!%p6301_p8)  ;;  %v6429_v8 = vmov (!%p6301_p8), 0.0|0.0  }
 0x3ca   : > { %5905 = vst.msk [vmem:[%s6549_s16 + $0x70] sm:$0xff] %vm5890_vm7, %v11617_v34  ;;  %5906 = vst.msk [vmem:[%s6549_s16 + $0x78] sm:$0xff] %vm5890_vm7, %v11619_v44  ;;  %v5982_v37 = vld [vmem:[%s11804_s3 + $0x10] sm:$0xff] (!%p6301_p8)  ;;  %6333 = vmatprep.subr.bf16.mxu0 (!%p6301_p8), %v6429_v8  ;;  %v6334_v36 = vpack.c.bf16 (!%p6301_p8), %v5981_v50, %v5980_v14  ;;  %v5983_v29 = vld [vmem:[%s11804_s3 + $0x18] sm:$0xff] (!%p6301_p8)  ;;  %v6431_v23 = vmov (!%p6301_p8), 0.0  }
 0x3cb   : > { %v5942_v33 = vadd.f32 %v5941_v54, %v5940_v25  ;;  %6325 = vmatprep.mubr.msk.f32.mxu0 (!%p6301_p8), %vm6430_vm11, %v6431_v23  ;;  %6328 = vmatprep.subr.mxu1 (!%p6301_p8), %v6431_v23  ;;  %v6337_v34 = vpack.c.bf16 (!%p6301_p8), %v5983_v29, %v5982_v37 }
 0x3cc   : > { %6330 = vmatprep.mubr.msk.f32.mxu1 (!%p6301_p8), %vm6430_vm11, %v6431_v23  ;;  %6335 = vmatpush3.bf16.msra.mxu0 (!%p6301_p8), %v6334_v36 }
 0x3cd   : > { %v5944_v51 = vadd.f32 %v5943_v31, %v5942_v33  ;;  %6336 = vmatprep.subr.bf16.mxu0 (!%p6301_p8), %v6429_v8  ;;  %6329 = vmatpush3.msk.msra.mxu1 (!%p6301_p8), %vm5050_vm6, %v6058_v22 }
 0x3cf   : > { %v5946_v6 = vadd.f32 %v5945_v7, %v5944_v51 }
 0x3d0   : > { %6338 = vmatpush3.bf16.msra.mxu0 (!%p6301_p8), %v6337_v34 }
 0x3d1   : > { %v5948_v11 = vadd.f32 %v5947_v59, %v5946_v6 }
 0x3d3   : > { %v5950_v39 = vadd.f32 %v5949_v27, %v5948_v11 }
 0x3d5   : > { %v5952_v41 = vadd.f32 %v5951_v20, %v5950_v39 }
 0x3d7   : > { %v5954_v32 = vadd.f32 %v5953_v19, %v5952_v41 }
 0x3d9   : > { %v5956_v52 = vadd.f32 %v5955_v13, %v5954_v32 }
 0x3db   : > { %v5958_v4 = vadd.f32 %v5957_v58, %v5956_v52 }
 0x3dd   : > { %v5960_v56 = vadd.f32 %v5959_v35, %v5958_v4 }
 0x3df   : > { %v5962_v1 = vadd.f32 %v5961_v60, %v5960_v56 }
 0x3e1   : > { %v5964_v45 = vadd.f32 %v5963_v43, %v5962_v1 }
 0x3e3   : > { %v5965_v63 = vrot.slane %v5964_v45, 4 }
 0x3e5   : > { %v5966_v38 = vadd.f32 %v5965_v63, %v5964_v45 }
 0x3e7   : > { %v5967_v48 = vrot.slane %v5966_v38, 2 }
 0x3e9   : > { %v5968_v40 = vadd.f32 %v5967_v48, %v5966_v38 }
 0x3eb   : > { %v5969_v47 = vrot.slane %v5968_v40, 1  ;;  %5977 = sbr.rel (%p6301_p8) target bundleno = 1472 (0x5c0), region = 48 }
 0x3ed   : > { %v5970_v26 = vadd.f32 %v5969_v47, %v5968_v40 }
 0x3ef   : > { %v5971_v18 = vadd.f32 %v5970_v26, %v5933_v0 }
 0x3f1   : > { %5973 = vst.msk [vmem:[#allocation2] sm:$0x1] %vm5972_vm10, %v5971_v18 }
 0x3f8   : > { %v5978_v44 = vld [vmem:[#allocation2] sm:$0x1] }
 0x3f9   : > { %v5979_v30 = vmul.f32 0.00390625, %v5978_v44 }
 0x3fb   : > { %6326 = vmatmul.mubr.msk.f32.vlgmr.msra.gmra.mrb[0].mxu0 %vm5890_vm7, %v5979_v30 }
 0x4ce   : > { %v6053_v53 = vpop.f32.mrb[0].mxu0 }
 0x4cf   : > { %v6057_v15 = vmax.f32 %v6053_v53, 0.0  ;;  %v6327_v2 = vpop.f32.mrb[1].mxu0 }
 0x4d1   : > { %6331 = vmatmul.mubr.msk.f32.vlgmr.msra.gmra.mrb[0].mxu1 %vm6059_vm12, %v6057_v15 }
 0x5a4   : > { %v6132_v24 = vpop.f32.mrb[0].mxu1 }
 0x5a5   : > { %v6305_v5 = vmul.f32 -1.442695, %v6132_v24  ;;  %v6332_v10 = vpop.f32.mrb[1].mxu1 }
 0x5a7   : > { %6384 = vpow2.f32 %v6305_v5 }
 0x5b1   : > { %v6385_v9 = vpop.eup %6384 }
 0x5b2   : > { %v6139_v21 = vadd.f32 1.0, %v6385_v9 }
 0x5b4   : > { %6386 = vrcp.f32 %v6139_v21 }
 0x5be   : > { %v6387_v3 = vpop.eup %6386 }
 0x5bf   : > { %6142 = vst.msk [vmem:[%s345_s10] sm:$0x1] %vm5972_vm10, %v6387_v3 }
 0x5c0 PF: > { %s18_s28 = sadd.s32 1, %s6426_s28   ;;  %s13033_s24 = smov %s6418_s26 }
 0x5c1   : > { %p15_p9 = scmp.ge.s32.totalorder %s18_s28, 6   ;;  %s13034_s25 = smov %s6422_s27 }
 0x5c2   : > { %s13035_s26 = smov %s13038_s29  ;;  %s13036_s27 = smov %s13042_s30 }
 0x5c3   :  { %17 = sbr.rel (!%p15_p9) target bundleno = 3 (0x3), region = 102 }

</bundles_post_ra>
